<compile_context>
chip_gen: v5e
topology: v5e:2x2
jax: 0.10.0
libtpu: 0.0.40
codegen_flags: <defaults>
</compile_context>

<pallas_src>
import jax
import jax.numpy as jnp
from jax.experimental import pallas as pl
from jax.experimental.pallas import tpu as pltpu


# -----------------------------------------------------------------------------
# Pallas kernel
# -----------------------------------------------------------------------------
def _make_kernel(T, B, E, H, units, C):
    HI = jax.lax.Precision.HIGHEST
    H2, H3 = 2 * H, 3 * H

    def dot(a, b):
        # All dots in this kernel are off the serial recurrence path, so full
        # precision is essentially free (MXU slot is otherwise idle).
        return jnp.dot(a, b, precision=HI, preferred_element_type=jnp.float32)

    def run_gru(gi_list, whh_rows, bhh, reverse):
        """One GRU direction, fully unrolled.

        gi_list[t]  : (B, 3H) input-side pre-activations (b_ih already folded in).
        whh_rows[i] : (B, 3H) row i of W_hh^T, pre-broadcast over batch.
        bhh         : (B, 3H) recurrent bias, pre-broadcast over batch.

        The recurrent matvec is done on the VPU (H is tiny) -> no MXU op and no
        VMEM traffic on the serial per-timestep chain.
        """
        h = jnp.zeros((B, H), jnp.float32)
        outs = [None] * T
        for s in range(T):
            t = (T - 1 - s) if reverse else s
            gi = gi_list[t]
            gh = bhh
            for i in range(H):
                gh = gh + h[:, i:i + 1] * whh_rows[i]          # VPU FMA
            rz = jax.nn.sigmoid(gi[:, :H2] + gh[:, :H2])        # r and z in one EUP pass
            r, z = rz[:, :H], rz[:, H:]
            n = jnp.tanh(gi[:, H2:] + r * gh[:, H2:])
            h = (1.0 - z) * n + z * h
            outs[t] = h
        return outs

    def kernel(x_ref,                                            # (T, B, E)
               w0_cat, b0_cat,                                   # layer-0 ih (both dirs)
               whh0f, bhh0f, whh0b, bhh0b,                       # layer-0 recurrent
               w1_a, w1_b, b1_cat,                               # layer-1 ih (both dirs)
               whh1f, bhh1f, whh1b, bhh1b,                       # layer-1 recurrent
               fcWf, fcWb, fc1_b, fc2_w, fc2_b, fc3_w, fc3_b,    # MLP head
               out_ref):                                         # (B, C)

        # ---- hoisted layer-0 input-side gate pre-activations (off serial path)
        w0 = w0_cat[...]
        b0 = b0_cat[...]
        gi0 = [dot(x_ref[t], w0) + b0 for t in range(T)]         # each (B, 6H)
        gi0f = [g[:, :H3] for g in gi0]
        gi0b = [g[:, H3:] for g in gi0]

        # recurrent weights / biases loaded once, reused by the unrolled loops
        w0f_rows = [whh0f[i] for i in range(H)]
        w0b_rows = [whh0b[i] for i in range(H)]
        w1f_rows = [whh1f[i] for i in range(H)]
        w1b_rows = [whh1b[i] for i in range(H)]
        b0f_h, b0b_h = bhh0f[...], bhh0b[...]
        b1f_h, b1b_h = bhh1f[...], bhh1b[...]

        # ---- layer 0: two independent unrolled chains (scheduler interleaves)
        h0f = run_gru(gi0f, w0f_rows, b0f_h, reverse=False)
        h0b = run_gru(gi0b, w0b_rows, b0b_h, reverse=True)

        # ---- hoisted layer-1 input-side gate pre-activations
        wa, wb, b1c = w1_a[...], w1_b[...], b1_cat[...]
        gi1 = [dot(h0f[t], wa) + dot(h0b[t], wb) + b1c for t in range(T)]
        gi1f = [g[:, :H3] for g in gi1]
        gi1b = [g[:, H3:] for g in gi1]

        # ---- layer 1: two independent unrolled chains
        h1f = run_gru(gi1f, w1f_rows, b1f_h, reverse=False)
        h1b = run_gru(gi1b, w1b_rows, b1b_h, reverse=True)

        # ---- fc1 (UN-fused: independent tiny dots after the recurrences) ----
        acc = None
        for t in range(T):
            c = dot(h1f[t], fcWf[t]) + dot(h1b[t], fcWb[t])
            acc = c if acc is None else acc + c

        a1 = jnp.maximum(acc + fc1_b[...], 0.0)
        a2 = jnp.maximum(dot(a1, fc2_w[...]) + fc2_b[...], 0.0)
        logits = dot(a2, fc3_w[...]) + fc3_b[...]

        m = jnp.max(logits, axis=-1, keepdims=True)
        e = jnp.exp(logits - m)
        out_ref[...] = (e / jnp.sum(e, axis=-1, keepdims=True)).astype(out_ref.dtype)

    return kernel


# -----------------------------------------------------------------------------
# Wrapper (glue: embedding lookup + weight layout prep + pallas_call)
# -----------------------------------------------------------------------------
def rnn_baseline_policy_forward(x_ids, p):
    B, T = x_ids.shape
    V, E = p["emb"].shape
    H = p["gru_w_hh_l0"].shape[1]
    units = p["fc1_w"].shape[0]
    C = p["fc3_w"].shape[0]
    f32 = jnp.float32

    # nn.Embedding(..., max_norm=True): renormalize looked-up rows to L2 norm 1.
    emb = p["emb"].astype(f32)
    norms = jnp.linalg.norm(emb, axis=1, keepdims=True)
    emb = emb * jnp.where(norms > 1.0, 1.0 / (norms + 1e-7), 1.0)
    x_tm = jnp.transpose(emb[x_ids], (1, 0, 2))                  # (T, B, E) time-major

    def t2(w):
        return jnp.asarray(w, f32).T

    def row(b):
        return jnp.asarray(b, f32)[None, :]

    # ---- layer-0 input weights: fwd and bwd side by side along output columns
    w0_cat = jnp.concatenate([t2(p["gru_w_ih_l0"]), t2(p["gru_w_ih_l0r"])], axis=1)   # (E, 6H)
    b0_cat = jnp.concatenate([row(p["gru_b_ih_l0"]), row(p["gru_b_ih_l0r"])], axis=1)  # (1, 6H)

    # ---- layer-1 input weights: rows 0:H multiply h0_fwd, rows H:2H multiply h0_bwd
    w1f_t = t2(p["gru_w_ih_l1"])                                 # (2H, 3H)
    w1b_t = t2(p["gru_w_ih_l1r"])                                # (2H, 3H)
    w1_a = jnp.concatenate([w1f_t[:H], w1b_t[:H]], axis=1)       # (H, 6H)  @ h0_fwd
    w1_b = jnp.concatenate([w1f_t[H:], w1b_t[H:]], axis=1)       # (H, 6H)  @ h0_bwd
    b1_cat = jnp.concatenate([row(p["gru_b_ih_l1"]), row(p["gru_b_ih_l1r"])], axis=1)

    # ---- recurrent weights as per-hidden-unit rows, pre-broadcast over batch
    def hh_rows(w):                                              # (3H,H) -> (H,B,3H)
        wt = t2(w)                                               # (H, 3H)
        return jnp.broadcast_to(wt[:, None, :], (H, B, 3 * H))

    def hh_bias(b):                                              # (3H,) -> (B,3H)
        return jnp.broadcast_to(jnp.asarray(b, f32)[None, :], (B, 3 * H))

    whh0f, bhh0f = hh_rows(p["gru_w_hh_l0"]), hh_bias(p["gru_b_hh_l0"])
    whh0b, bhh0b = hh_rows(p["gru_w_hh_l0r"]), hh_bias(p["gru_b_hh_l0r"])
    whh1f, bhh1f = hh_rows(p["gru_w_hh_l1"]), hh_bias(p["gru_b_hh_l1"])
    whh1b, bhh1b = hh_rows(p["gru_w_hh_l1r"]), hh_bias(p["gru_b_hh_l1r"])

    # ---- fc1 weight as per-timestep, per-direction blocks (T, H, units)
    fc1_wt = t2(p["fc1_w"]).reshape(T, 2 * H, units)             # (T, 2H, units)
    fcWf = fc1_wt[:, :H, :]
    fcWb = fc1_wt[:, H:, :]
    fc1_b = row(p["fc1_b"])
    fc2_w, fc2_b = t2(p["fc2_w"]), row(p["fc2_b"])
    fc3_w, fc3_b = t2(p["fc3_w"]), row(p["fc3_b"])

    inputs = (x_tm, w0_cat, b0_cat,
              whh0f, bhh0f, whh0b, bhh0b,
              w1_a, w1_b, b1_cat,
              whh1f, bhh1f, whh1b, bhh1b,
              fcWf, fcWb, fc1_b, fc2_w, fc2_b, fc3_w, fc3_b)

    kernel = _make_kernel(T, B, E, H, units, C)

    # Advisory cost estimate (tiny kernel; keeps XLA scheduling realistic).
    matmul_flops = 2 * (T * B * E * 6 * H          # layer-0 gi
                        + 2 * T * B * H * 6 * H    # layer-1 gi
                        + 2 * T * B * H * units    # fc1
                        + B * units * units        # fc2
                        + B * units * C)           # fc3
    vpu_flops = 4 * T * B * 3 * H * (2 * H + 8)    # recurrences (approx)
    transcendentals = 4 * T * B * 3 * H + B * C
    bytes_accessed = 4 * (sum(int(a.size) for a in inputs) + B * C)

    return pl.pallas_call(
        kernel,
        out_shape=jax.ShapeDtypeStruct((B, C), jnp.float32),
        in_specs=[pl.BlockSpec(memory_space=pltpu.MemorySpace.VMEM)
                  for _ in range(len(inputs))],
        out_specs=pl.BlockSpec(memory_space=pltpu.MemorySpace.VMEM),
        compiler_params=pltpu.CompilerParams(vmem_limit_bytes=32 * 1024 * 1024),
        cost_estimate=pl.CostEstimate(flops=matmul_flops + vpu_flops,
                                      transcendentals=transcendentals,
                                      bytes_accessed=bytes_accessed),
    )(*inputs)


# -----------------------------------------------------------------------------
# Pure-JAX reference (mirrors the PyTorch forward exactly)
# -----------------------------------------------------------------------------
def reference_forward(x_ids, p):
    hi = jax.lax.Precision.HIGHEST

    def mm(a, b):
        return jnp.dot(a, b, precision=hi)

    emb = p["emb"].astype(jnp.float32)
    norms = jnp.linalg.norm(emb, axis=1, keepdims=True)
    emb = emb * jnp.where(norms > 1.0, 1.0 / (norms + 1e-7), 1.0)
    x = emb[x_ids]                                               # (B, T, E)
    B, T, _ = x.shape
    H = p["gru_w_hh_l0"].shape[1]

    def gru_dir(xseq, w_ih, w_hh, b_ih, b_hh, reverse):
        h = jnp.zeros((xseq.shape[0], H), jnp.float32)
        outs = [None] * T
        order = range(T - 1, -1, -1) if reverse else range(T)
        for t in order:
            gi = mm(xseq[:, t, :], w_ih.T) + b_ih
            gh = mm(h, w_hh.T) + b_hh
            r = jax.nn.sigmoid(gi[:, :H] + gh[:, :H])
            z = jax.nn.sigmoid(gi[:, H:2 * H] + gh[:, H:2 * H])
            n = jnp.tanh(gi[:, 2 * H:] + r * gh[:, 2 * H:])
            h = (1.0 - z) * n + z * h
            outs[t] = h
        return jnp.stack(outs, axis=1)                           # (B, T, H)

    o0f = gru_dir(x, p["gru_w_ih_l0"], p["gru_w_hh_l0"],
                  p["gru_b_ih_l0"], p["gru_b_hh_l0"], False)
    o0b = gru_dir(x, p["gru_w_ih_l0r"], p["gru_w_hh_l0r"],
                  p["gru_b_ih_l0r"], p["gru_b_hh_l0r"], True)
    x1 = jnp.concatenate([o0f, o0b], axis=-1)
    o1f = gru_dir(x1, p["gru_w_ih_l1"], p["gru_w_hh_l1"],
                  p["gru_b_ih_l1"], p["gru_b_hh_l1"], False)
    o1b = gru_dir(x1, p["gru_w_ih_l1r"], p["gru_w_hh_l1r"],
                  p["gru_b_ih_l1r"], p["gru_b_hh_l1r"], True)
    flat = jnp.concatenate([o1f, o1b], axis=-1).reshape(B, -1)
    h1 = jax.nn.relu(mm(flat, p["fc1_w"].T) + p["fc1_b"])
    h2 = jax.nn.relu(mm(h1, p["fc2_w"].T) + p["fc2_b"])
    logits = mm(h2, p["fc3_w"].T) + p["fc3_b"]
    return jax.nn.softmax(logits, axis=1)


# -----------------------------------------------------------------------------
# Deterministic parameter construction + smoke test
# -----------------------------------------------------------------------------
def make_params(vocab_size, input_dim, out_num_classes,
                embed_dim=5, rnn_hidden_out=2, units=50):
    H = rnn_hidden_out
    key = jax.random.PRNGKey(0)
    ks = iter(jax.random.split(key, 40))

    def u(shape, scale):
        return jax.random.uniform(next(ks), shape, jnp.float32, -scale, scale)

    p = {"emb": u((vocab_size, embed_dim), 1.0)}
    for sfx in ["l0", "l0r"]:
        p[f"gru_w_ih_{sfx}"] = u((3 * H, embed_dim), 0.5)
        p[f"gru_w_hh_{sfx}"] = u((3 * H, H), 0.5)
        p[f"gru_b_ih_{sfx}"] = u((3 * H,), 0.5)
        p[f"gru_b_hh_{sfx}"] = u((3 * H,), 0.5)
    for sfx in ["l1", "l1r"]:
        p[f"gru_w_ih_{sfx}"] = u((3 * H, 2 * H), 0.5)
        p[f"gru_w_hh_{sfx}"] = u((3 * H, H), 0.5)
        p[f"gru_b_ih_{sfx}"] = u((3 * H,), 0.5)
        p[f"gru_b_hh_{sfx}"] = u((3 * H,), 0.5)
    rnn_out_dim = 2 * H * input_dim
    p["fc1_w"] = u((units, rnn_out_dim), 0.2)
    p["fc1_b"] = u((units,), 0.2)
    p["fc2_w"] = u((units, units), 0.2)
    p["fc2_b"] = u((units,), 0.2)
    p["fc3_w"] = u((out_num_classes, units), 0.2)
    p["fc3_b"] = u((out_num_classes,), 0.2)
    return p


if __name__ == "__main__":
    VOCAB, T, C = 30, 8, 3          # vocab_size, input_dim (seq len), out classes
    B = 2                           # batch
    params = make_params(VOCAB, T, C)

    x_ids = jax.random.randint(jax.random.PRNGKey(1), (B, T), 0, VOCAB,
                               dtype=jnp.int32)

    out = jax.block_until_ready(rnn_baseline_policy_forward(x_ids, params))
    ref = reference_forward(x_ids, params)

    assert out.shape == (B, C)
    assert bool(jnp.all(jnp.isfinite(out)))
    assert bool(jnp.allclose(jnp.sum(out, axis=1), 1.0, atol=1e-4))
    assert bool(jnp.allclose(out, ref, atol=2e-3, rtol=2e-3)), (out, ref)

    # TODO(synk): predict()'s Categorical sampling / log_prob is RL-side glue,
    # not part of the forward pass; intentionally not implemented in the kernel.
    print("KERNEL_OK")
</pallas_src>

<mosaic_0001>
module attributes {stable_mosaic.version = 11 : i64} {
  func.func @kernel(%arg0: memref<8x2x5xf32, #tpu.memory_space<vmem>>, %arg1: memref<5x12xf32, #tpu.memory_space<vmem>>, %arg2: memref<1x12xf32, #tpu.memory_space<vmem>>, %arg3: memref<2x2x6xf32, #tpu.memory_space<vmem>>, %arg4: memref<2x6xf32, #tpu.memory_space<vmem>>, %arg5: memref<2x2x6xf32, #tpu.memory_space<vmem>>, %arg6: memref<2x6xf32, #tpu.memory_space<vmem>>, %arg7: memref<2x12xf32, #tpu.memory_space<vmem>>, %arg8: memref<2x12xf32, #tpu.memory_space<vmem>>, %arg9: memref<1x12xf32, #tpu.memory_space<vmem>>, %arg10: memref<2x2x6xf32, #tpu.memory_space<vmem>>, %arg11: memref<2x6xf32, #tpu.memory_space<vmem>>, %arg12: memref<2x2x6xf32, #tpu.memory_space<vmem>>, %arg13: memref<2x6xf32, #tpu.memory_space<vmem>>, %arg14: memref<8x2x50xf32, #tpu.memory_space<vmem>>, %arg15: memref<8x2x50xf32, #tpu.memory_space<vmem>>, %arg16: memref<1x50xf32, #tpu.memory_space<vmem>>, %arg17: memref<50x50xf32, #tpu.memory_space<vmem>>, %arg18: memref<1x50xf32, #tpu.memory_space<vmem>>, %arg19: memref<50x3xf32, #tpu.memory_space<vmem>>, %arg20: memref<1x3xf32, #tpu.memory_space<vmem>>, %arg21: memref<2x3xf32, #tpu.memory_space<vmem>>) attributes {dimension_semantics = [], scalar_prefetch = 0 : i64, scratch_operands = 0 : i64, tpu.core_type = #tpu.core_type<tc>} {
    %c0 = arith.constant 0 : index
    %c0_0 = arith.constant 0 : index
    %0 = vector.load %arg1[%c0, %c0_0] : memref<5x12xf32, #tpu.memory_space<vmem>>, vector<5x12xf32>
    %c0_1 = arith.constant 0 : index
    %c0_2 = arith.constant 0 : index
    %1 = vector.load %arg2[%c0_1, %c0_2] : memref<1x12xf32, #tpu.memory_space<vmem>>, vector<1x12xf32>
    %c0_3 = arith.constant 0 : index
    %c0_4 = arith.constant 0 : index
    %c0_5 = arith.constant 0 : index
    %2 = vector.load %arg0[%c0_3, %c0_4, %c0_5] : memref<8x2x5xf32, #tpu.memory_space<vmem>>, vector<1x2x5xf32>
    %3 = vector.shape_cast %2 : vector<1x2x5xf32> to vector<2x5xf32>
    %cst = arith.constant dense<0.000000e+00> : vector<2x12xf32>
    %4 = tpu.matmul %3, %0, %cst {dimension_numbers = #tpu.dot_dimension_numbers<[1], [0], [0], [1], [0, 0, 1, 1], [], []>, precision = #tpu.contract_precision<fp32>} : vector<2x5xf32>, vector<5x12xf32>, vector<2x12xf32> -> vector<2x12xf32>
    %5 = vector.broadcast %1 : vector<1x12xf32> to vector<2x12xf32>
    %6 = arith.addf %4, %5 : vector<2x12xf32>
    %c1 = arith.constant 1 : index
    %c0_6 = arith.constant 0 : index
    %c0_7 = arith.constant 0 : index
    %7 = vector.load %arg0[%c1, %c0_6, %c0_7] : memref<8x2x5xf32, #tpu.memory_space<vmem>>, vector<1x2x5xf32>
    %8 = vector.shape_cast %7 : vector<1x2x5xf32> to vector<2x5xf32>
    %cst_8 = arith.constant dense<0.000000e+00> : vector<2x12xf32>
    %9 = tpu.matmul %8, %0, %cst_8 {dimension_numbers = #tpu.dot_dimension_numbers<[1], [0], [0], [1], [0, 0, 1, 1], [], []>, precision = #tpu.contract_precision<fp32>} : vector<2x5xf32>, vector<5x12xf32>, vector<2x12xf32> -> vector<2x12xf32>
    %10 = vector.broadcast %1 : vector<1x12xf32> to vector<2x12xf32>
    %11 = arith.addf %9, %10 : vector<2x12xf32>
    %c2 = arith.constant 2 : index
    %c0_9 = arith.constant 0 : index
    %c0_10 = arith.constant 0 : index
    %12 = vector.load %arg0[%c2, %c0_9, %c0_10] : memref<8x2x5xf32, #tpu.memory_space<vmem>>, vector<1x2x5xf32>
    %13 = vector.shape_cast %12 : vector<1x2x5xf32> to vector<2x5xf32>
    %cst_11 = arith.constant dense<0.000000e+00> : vector<2x12xf32>
    %14 = tpu.matmul %13, %0, %cst_11 {dimension_numbers = #tpu.dot_dimension_numbers<[1], [0], [0], [1], [0, 0, 1, 1], [], []>, precision = #tpu.contract_precision<fp32>} : vector<2x5xf32>, vector<5x12xf32>, vector<2x12xf32> -> vector<2x12xf32>
    %15 = vector.broadcast %1 : vector<1x12xf32> to vector<2x12xf32>
    %16 = arith.addf %14, %15 : vector<2x12xf32>
    %c3 = arith.constant 3 : index
    %c0_12 = arith.constant 0 : index
    %c0_13 = arith.constant 0 : index
    %17 = vector.load %arg0[%c3, %c0_12, %c0_13] : memref<8x2x5xf32, #tpu.memory_space<vmem>>, vector<1x2x5xf32>
    %18 = vector.shape_cast %17 : vector<1x2x5xf32> to vector<2x5xf32>
    %cst_14 = arith.constant dense<0.000000e+00> : vector<2x12xf32>
    %19 = tpu.matmul %18, %0, %cst_14 {dimension_numbers = #tpu.dot_dimension_numbers<[1], [0], [0], [1], [0, 0, 1, 1], [], []>, precision = #tpu.contract_precision<fp32>} : vector<2x5xf32>, vector<5x12xf32>, vector<2x12xf32> -> vector<2x12xf32>
    %20 = vector.broadcast %1 : vector<1x12xf32> to vector<2x12xf32>
    %21 = arith.addf %19, %20 : vector<2x12xf32>
    %c4 = arith.constant 4 : index
    %c0_15 = arith.constant 0 : index
    %c0_16 = arith.constant 0 : index
    %22 = vector.load %arg0[%c4, %c0_15, %c0_16] : memref<8x2x5xf32, #tpu.memory_space<vmem>>, vector<1x2x5xf32>
    %23 = vector.shape_cast %22 : vector<1x2x5xf32> to vector<2x5xf32>
    %cst_17 = arith.constant dense<0.000000e+00> : vector<2x12xf32>
    %24 = tpu.matmul %23, %0, %cst_17 {dimension_numbers = #tpu.dot_dimension_numbers<[1], [0], [0], [1], [0, 0, 1, 1], [], []>, precision = #tpu.contract_precision<fp32>} : vector<2x5xf32>, vector<5x12xf32>, vector<2x12xf32> -> vector<2x12xf32>
    %25 = vector.broadcast %1 : vector<1x12xf32> to vector<2x12xf32>
    %26 = arith.addf %24, %25 : vector<2x12xf32>
    %c5 = arith.constant 5 : index
    %c0_18 = arith.constant 0 : index
    %c0_19 = arith.constant 0 : index
    %27 = vector.load %arg0[%c5, %c0_18, %c0_19] : memref<8x2x5xf32, #tpu.memory_space<vmem>>, vector<1x2x5xf32>
    %28 = vector.shape_cast %27 : vector<1x2x5xf32> to vector<2x5xf32>
    %cst_20 = arith.constant dense<0.000000e+00> : vector<2x12xf32>
    %29 = tpu.matmul %28, %0, %cst_20 {dimension_numbers = #tpu.dot_dimension_numbers<[1], [0], [0], [1], [0, 0, 1, 1], [], []>, precision = #tpu.contract_precision<fp32>} : vector<2x5xf32>, vector<5x12xf32>, vector<2x12xf32> -> vector<2x12xf32>
    %30 = vector.broadcast %1 : vector<1x12xf32> to vector<2x12xf32>
    %31 = arith.addf %29, %30 : vector<2x12xf32>
    %c6 = arith.constant 6 : index
    %c0_21 = arith.constant 0 : index
    %c0_22 = arith.constant 0 : index
    %32 = vector.load %arg0[%c6, %c0_21, %c0_22] : memref<8x2x5xf32, #tpu.memory_space<vmem>>, vector<1x2x5xf32>
    %33 = vector.shape_cast %32 : vector<1x2x5xf32> to vector<2x5xf32>
    %cst_23 = arith.constant dense<0.000000e+00> : vector<2x12xf32>
    %34 = tpu.matmul %33, %0, %cst_23 {dimension_numbers = #tpu.dot_dimension_numbers<[1], [0], [0], [1], [0, 0, 1, 1], [], []>, precision = #tpu.contract_precision<fp32>} : vector<2x5xf32>, vector<5x12xf32>, vector<2x12xf32> -> vector<2x12xf32>
    %35 = vector.broadcast %1 : vector<1x12xf32> to vector<2x12xf32>
    %36 = arith.addf %34, %35 : vector<2x12xf32>
    %c7 = arith.constant 7 : index
    %c0_24 = arith.constant 0 : index
    %c0_25 = arith.constant 0 : index
    %37 = vector.load %arg0[%c7, %c0_24, %c0_25] : memref<8x2x5xf32, #tpu.memory_space<vmem>>, vector<1x2x5xf32>
    %38 = vector.shape_cast %37 : vector<1x2x5xf32> to vector<2x5xf32>
    %cst_26 = arith.constant dense<0.000000e+00> : vector<2x12xf32>
    %39 = tpu.matmul %38, %0, %cst_26 {dimension_numbers = #tpu.dot_dimension_numbers<[1], [0], [0], [1], [0, 0, 1, 1], [], []>, precision = #tpu.contract_precision<fp32>} : vector<2x5xf32>, vector<5x12xf32>, vector<2x12xf32> -> vector<2x12xf32>
    %40 = vector.broadcast %1 : vector<1x12xf32> to vector<2x12xf32>
    %41 = arith.addf %39, %40 : vector<2x12xf32>
    %42 = vector.extract_strided_slice %6 {offsets = [0, 0], sizes = [2, 6], strides = [1, 1]} : vector<2x12xf32> to vector<2x6xf32>
    %43 = vector.extract_strided_slice %11 {offsets = [0, 0], sizes = [2, 6], strides = [1, 1]} : vector<2x12xf32> to vector<2x6xf32>
    %44 = vector.extract_strided_slice %16 {offsets = [0, 0], sizes = [2, 6], strides = [1, 1]} : vector<2x12xf32> to vector<2x6xf32>
    %45 = vector.extract_strided_slice %21 {offsets = [0, 0], sizes = [2, 6], strides = [1, 1]} : vector<2x12xf32> to vector<2x6xf32>
    %46 = vector.extract_strided_slice %26 {offsets = [0, 0], sizes = [2, 6], strides = [1, 1]} : vector<2x12xf32> to vector<2x6xf32>
    %47 = vector.extract_strided_slice %31 {offsets = [0, 0], sizes = [2, 6], strides = [1, 1]} : vector<2x12xf32> to vector<2x6xf32>
    %48 = vector.extract_strided_slice %36 {offsets = [0, 0], sizes = [2, 6], strides = [1, 1]} : vector<2x12xf32> to vector<2x6xf32>
    %49 = vector.extract_strided_slice %41 {offsets = [0, 0], sizes = [2, 6], strides = [1, 1]} : vector<2x12xf32> to vector<2x6xf32>
    %50 = vector.extract_strided_slice %6 {offsets = [0, 6], sizes = [2, 6], strides = [1, 1]} : vector<2x12xf32> to vector<2x6xf32>
    %51 = vector.extract_strided_slice %11 {offsets = [0, 6], sizes = [2, 6], strides = [1, 1]} : vector<2x12xf32> to vector<2x6xf32>
    %52 = vector.extract_strided_slice %16 {offsets = [0, 6], sizes = [2, 6], strides = [1, 1]} : vector<2x12xf32> to vector<2x6xf32>
    %53 = vector.extract_strided_slice %21 {offsets = [0, 6], sizes = [2, 6], strides = [1, 1]} : vector<2x12xf32> to vector<2x6xf32>
    %54 = vector.extract_strided_slice %26 {offsets = [0, 6], sizes = [2, 6], strides = [1, 1]} : vector<2x12xf32> to vector<2x6xf32>
    %55 = vector.extract_strided_slice %31 {offsets = [0, 6], sizes = [2, 6], strides = [1, 1]} : vector<2x12xf32> to vector<2x6xf32>
    %56 = vector.extract_strided_slice %36 {offsets = [0, 6], sizes = [2, 6], strides = [1, 1]} : vector<2x12xf32> to vector<2x6xf32>
    %57 = vector.extract_strided_slice %41 {offsets = [0, 6], sizes = [2, 6], strides = [1, 1]} : vector<2x12xf32> to vector<2x6xf32>
    %c0_27 = arith.constant 0 : index
    %c0_28 = arith.constant 0 : index
    %c0_29 = arith.constant 0 : index
    %58 = vector.load %arg3[%c0_27, %c0_28, %c0_29] : memref<2x2x6xf32, #tpu.memory_space<vmem>>, vector<1x2x6xf32>
    %59 = vector.shape_cast %58 : vector<1x2x6xf32> to vector<2x6xf32>
    %c1_30 = arith.constant 1 : index
    %c0_31 = arith.constant 0 : index
    %c0_32 = arith.constant 0 : index
    %60 = vector.load %arg3[%c1_30, %c0_31, %c0_32] : memref<2x2x6xf32, #tpu.memory_space<vmem>>, vector<1x2x6xf32>
    %61 = vector.shape_cast %60 : vector<1x2x6xf32> to vector<2x6xf32>
    %c0_33 = arith.constant 0 : index
    %c0_34 = arith.constant 0 : index
    %c0_35 = arith.constant 0 : index
    %62 = vector.load %arg5[%c0_33, %c0_34, %c0_35] : memref<2x2x6xf32, #tpu.memory_space<vmem>>, vector<1x2x6xf32>
    %63 = vector.shape_cast %62 : vector<1x2x6xf32> to vector<2x6xf32>
    %c1_36 = arith.constant 1 : index
    %c0_37 = arith.constant 0 : index
    %c0_38 = arith.constant 0 : index
    %64 = vector.load %arg5[%c1_36, %c0_37, %c0_38] : memref<2x2x6xf32, #tpu.memory_space<vmem>>, vector<1x2x6xf32>
    %65 = vector.shape_cast %64 : vector<1x2x6xf32> to vector<2x6xf32>
    %c0_39 = arith.constant 0 : index
    %c0_40 = arith.constant 0 : index
    %c0_41 = arith.constant 0 : index
    %66 = vector.load %arg10[%c0_39, %c0_40, %c0_41] : memref<2x2x6xf32, #tpu.memory_space<vmem>>, vector<1x2x6xf32>
    %67 = vector.shape_cast %66 : vector<1x2x6xf32> to vector<2x6xf32>
    %c1_42 = arith.constant 1 : index
    %c0_43 = arith.constant 0 : index
    %c0_44 = arith.constant 0 : index
    %68 = vector.load %arg10[%c1_42, %c0_43, %c0_44] : memref<2x2x6xf32, #tpu.memory_space<vmem>>, vector<1x2x6xf32>
    %69 = vector.shape_cast %68 : vector<1x2x6xf32> to vector<2x6xf32>
    %c0_45 = arith.constant 0 : index
    %c0_46 = arith.constant 0 : index
    %c0_47 = arith.constant 0 : index
    %70 = vector.load %arg12[%c0_45, %c0_46, %c0_47] : memref<2x2x6xf32, #tpu.memory_space<vmem>>, vector<1x2x6xf32>
    %71 = vector.shape_cast %70 : vector<1x2x6xf32> to vector<2x6xf32>
    %c1_48 = arith.constant 1 : index
    %c0_49 = arith.constant 0 : index
    %c0_50 = arith.constant 0 : index
    %72 = vector.load %arg12[%c1_48, %c0_49, %c0_50] : memref<2x2x6xf32, #tpu.memory_space<vmem>>, vector<1x2x6xf32>
    %73 = vector.shape_cast %72 : vector<1x2x6xf32> to vector<2x6xf32>
    %c0_51 = arith.constant 0 : index
    %c0_52 = arith.constant 0 : index
    %74 = vector.load %arg4[%c0_51, %c0_52] : memref<2x6xf32, #tpu.memory_space<vmem>>, vector<2x6xf32>
    %c0_53 = arith.constant 0 : index
    %c0_54 = arith.constant 0 : index
    %75 = vector.load %arg6[%c0_53, %c0_54] : memref<2x6xf32, #tpu.memory_space<vmem>>, vector<2x6xf32>
    %c0_55 = arith.constant 0 : index
    %c0_56 = arith.constant 0 : index
    %76 = vector.load %arg11[%c0_55, %c0_56] : memref<2x6xf32, #tpu.memory_space<vmem>>, vector<2x6xf32>
    %c0_57 = arith.constant 0 : index
    %c0_58 = arith.constant 0 : index
    %77 = vector.load %arg13[%c0_57, %c0_58] : memref<2x6xf32, #tpu.memory_space<vmem>>, vector<2x6xf32>
    %cst_59 = arith.constant 0.000000e+00 : f32
    %78 = vector.broadcast %cst_59 : f32 to vector<2x2xf32>
    %79 = vector.extract_strided_slice %78 {offsets = [0, 0], sizes = [2, 1], strides = [1, 1]} : vector<2x2xf32> to vector<2x1xf32>
    %80 = vector.broadcast %79 : vector<2x1xf32> to vector<2x6xf32>
    %81 = arith.mulf %80, %59 : vector<2x6xf32>
    %82 = arith.addf %74, %81 : vector<2x6xf32>
    %83 = vector.extract_strided_slice %78 {offsets = [0, 1], sizes = [2, 1], strides = [1, 1]} : vector<2x2xf32> to vector<2x1xf32>
    %84 = vector.broadcast %83 : vector<2x1xf32> to vector<2x6xf32>
    %85 = arith.mulf %84, %61 : vector<2x6xf32>
    %86 = arith.addf %82, %85 : vector<2x6xf32>
    %87 = vector.extract_strided_slice %42 {offsets = [0, 0], sizes = [2, 4], strides = [1, 1]} : vector<2x6xf32> to vector<2x4xf32>
    %88 = vector.extract_strided_slice %86 {offsets = [0, 0], sizes = [2, 4], strides = [1, 1]} : vector<2x6xf32> to vector<2x4xf32>
    %89 = arith.addf %87, %88 : vector<2x4xf32>
    %90 = arith.negf %89 : vector<2x4xf32>
    %91 = math.exp %90 : vector<2x4xf32>
    %cst_60 = arith.constant 1.000000e+00 : f32
    %92 = vector.broadcast %cst_60 : f32 to vector<2x4xf32>
    %93 = arith.addf %92, %91 : vector<2x4xf32>
    %94 = arith.divf %92, %93 : vector<2x4xf32>
    %95 = vector.extract_strided_slice %94 {offsets = [0, 0], sizes = [2, 2], strides = [1, 1]} : vector<2x4xf32> to vector<2x2xf32>
    %96 = vector.extract_strided_slice %94 {offsets = [0, 2], sizes = [2, 2], strides = [1, 1]} : vector<2x4xf32> to vector<2x2xf32>
    %97 = vector.extract_strided_slice %42 {offsets = [0, 4], sizes = [2, 2], strides = [1, 1]} : vector<2x6xf32> to vector<2x2xf32>
    %98 = vector.extract_strided_slice %86 {offsets = [0, 4], sizes = [2, 2], strides = [1, 1]} : vector<2x6xf32> to vector<2x2xf32>
    %99 = arith.mulf %95, %98 : vector<2x2xf32>
    %100 = arith.addf %97, %99 : vector<2x2xf32>
    %101 = math.tanh %100 : vector<2x2xf32>
    %cst_61 = arith.constant 1.000000e+00 : f32
    %102 = vector.broadcast %cst_61 : f32 to vector<2x2xf32>
    %103 = arith.subf %102, %96 : vector<2x2xf32>
    %104 = arith.mulf %103, %101 : vector<2x2xf32>
    %105 = arith.mulf %96, %78 : vector<2x2xf32>
    %106 = arith.addf %104, %105 : vector<2x2xf32>
    %107 = vector.extract_strided_slice %106 {offsets = [0, 0], sizes = [2, 1], strides = [1, 1]} : vector<2x2xf32> to vector<2x1xf32>
    %108 = vector.broadcast %107 : vector<2x1xf32> to vector<2x6xf32>
    %109 = arith.mulf %108, %59 : vector<2x6xf32>
    %110 = arith.addf %74, %109 : vector<2x6xf32>
    %111 = vector.extract_strided_slice %106 {offsets = [0, 1], sizes = [2, 1], strides = [1, 1]} : vector<2x2xf32> to vector<2x1xf32>
    %112 = vector.broadcast %111 : vector<2x1xf32> to vector<2x6xf32>
    %113 = arith.mulf %112, %61 : vector<2x6xf32>
    %114 = arith.addf %110, %113 : vector<2x6xf32>
    %115 = vector.extract_strided_slice %43 {offsets = [0, 0], sizes = [2, 4], strides = [1, 1]} : vector<2x6xf32> to vector<2x4xf32>
    %116 = vector.extract_strided_slice %114 {offsets = [0, 0], sizes = [2, 4], strides = [1, 1]} : vector<2x6xf32> to vector<2x4xf32>
    %117 = arith.addf %115, %116 : vector<2x4xf32>
    %118 = arith.negf %117 : vector<2x4xf32>
    %119 = math.exp %118 : vector<2x4xf32>
    %cst_62 = arith.constant 1.000000e+00 : f32
    %120 = vector.broadcast %cst_62 : f32 to vector<2x4xf32>
    %121 = arith.addf %120, %119 : vector<2x4xf32>
    %122 = arith.divf %120, %121 : vector<2x4xf32>
    %123 = vector.extract_strided_slice %122 {offsets = [0, 0], sizes = [2, 2], strides = [1, 1]} : vector<2x4xf32> to vector<2x2xf32>
    %124 = vector.extract_strided_slice %122 {offsets = [0, 2], sizes = [2, 2], strides = [1, 1]} : vector<2x4xf32> to vector<2x2xf32>
    %125 = vector.extract_strided_slice %43 {offsets = [0, 4], sizes = [2, 2], strides = [1, 1]} : vector<2x6xf32> to vector<2x2xf32>
    %126 = vector.extract_strided_slice %114 {offsets = [0, 4], sizes = [2, 2], strides = [1, 1]} : vector<2x6xf32> to vector<2x2xf32>
    %127 = arith.mulf %123, %126 : vector<2x2xf32>
    %128 = arith.addf %125, %127 : vector<2x2xf32>
    %129 = math.tanh %128 : vector<2x2xf32>
    %cst_63 = arith.constant 1.000000e+00 : f32
    %130 = vector.broadcast %cst_63 : f32 to vector<2x2xf32>
    %131 = arith.subf %130, %124 : vector<2x2xf32>
    %132 = arith.mulf %131, %129 : vector<2x2xf32>
    %133 = arith.mulf %124, %106 : vector<2x2xf32>
    %134 = arith.addf %132, %133 : vector<2x2xf32>
    %135 = vector.extract_strided_slice %134 {offsets = [0, 0], sizes = [2, 1], strides = [1, 1]} : vector<2x2xf32> to vector<2x1xf32>
    %136 = vector.broadcast %135 : vector<2x1xf32> to vector<2x6xf32>
    %137 = arith.mulf %136, %59 : vector<2x6xf32>
    %138 = arith.addf %74, %137 : vector<2x6xf32>
    %139 = vector.extract_strided_slice %134 {offsets = [0, 1], sizes = [2, 1], strides = [1, 1]} : vector<2x2xf32> to vector<2x1xf32>
    %140 = vector.broadcast %139 : vector<2x1xf32> to vector<2x6xf32>
    %141 = arith.mulf %140, %61 : vector<2x6xf32>
    %142 = arith.addf %138, %141 : vector<2x6xf32>
    %143 = vector.extract_strided_slice %44 {offsets = [0, 0], sizes = [2, 4], strides = [1, 1]} : vector<2x6xf32> to vector<2x4xf32>
    %144 = vector.extract_strided_slice %142 {offsets = [0, 0], sizes = [2, 4], strides = [1, 1]} : vector<2x6xf32> to vector<2x4xf32>
    %145 = arith.addf %143, %144 : vector<2x4xf32>
    %146 = arith.negf %145 : vector<2x4xf32>
    %147 = math.exp %146 : vector<2x4xf32>
    %cst_64 = arith.constant 1.000000e+00 : f32
    %148 = vector.broadcast %cst_64 : f32 to vector<2x4xf32>
    %149 = arith.addf %148, %147 : vector<2x4xf32>
    %150 = arith.divf %148, %149 : vector<2x4xf32>
    %151 = vector.extract_strided_slice %150 {offsets = [0, 0], sizes = [2, 2], strides = [1, 1]} : vector<2x4xf32> to vector<2x2xf32>
    %152 = vector.extract_strided_slice %150 {offsets = [0, 2], sizes = [2, 2], strides = [1, 1]} : vector<2x4xf32> to vector<2x2xf32>
    %153 = vector.extract_strided_slice %44 {offsets = [0, 4], sizes = [2, 2], strides = [1, 1]} : vector<2x6xf32> to vector<2x2xf32>
    %154 = vector.extract_strided_slice %142 {offsets = [0, 4], sizes = [2, 2], strides = [1, 1]} : vector<2x6xf32> to vector<2x2xf32>
    %155 = arith.mulf %151, %154 : vector<2x2xf32>
    %156 = arith.addf %153, %155 : vector<2x2xf32>
    %157 = math.tanh %156 : vector<2x2xf32>
    %cst_65 = arith.constant 1.000000e+00 : f32
    %158 = vector.broadcast %cst_65 : f32 to vector<2x2xf32>
    %159 = arith.subf %158, %152 : vector<2x2xf32>
    %160 = arith.mulf %159, %157 : vector<2x2xf32>
    %161 = arith.mulf %152, %134 : vector<2x2xf32>
    %162 = arith.addf %160, %161 : vector<2x2xf32>
    %163 = vector.extract_strided_slice %162 {offsets = [0, 0], sizes = [2, 1], strides = [1, 1]} : vector<2x2xf32> to vector<2x1xf32>
    %164 = vector.broadcast %163 : vector<2x1xf32> to vector<2x6xf32>
    %165 = arith.mulf %164, %59 : vector<2x6xf32>
    %166 = arith.addf %74, %165 : vector<2x6xf32>
    %167 = vector.extract_strided_slice %162 {offsets = [0, 1], sizes = [2, 1], strides = [1, 1]} : vector<2x2xf32> to vector<2x1xf32>
    %168 = vector.broadcast %167 : vector<2x1xf32> to vector<2x6xf32>
    %169 = arith.mulf %168, %61 : vector<2x6xf32>
    %170 = arith.addf %166, %169 : vector<2x6xf32>
    %171 = vector.extract_strided_slice %45 {offsets = [0, 0], sizes = [2, 4], strides = [1, 1]} : vector<2x6xf32> to vector<2x4xf32>
    %172 = vector.extract_strided_slice %170 {offsets = [0, 0], sizes = [2, 4], strides = [1, 1]} : vector<2x6xf32> to vector<2x4xf32>
    %173 = arith.addf %171, %172 : vector<2x4xf32>
    %174 = arith.negf %173 : vector<2x4xf32>
    %175 = math.exp %174 : vector<2x4xf32>
    %cst_66 = arith.constant 1.000000e+00 : f32
    %176 = vector.broadcast %cst_66 : f32 to vector<2x4xf32>
    %177 = arith.addf %176, %175 : vector<2x4xf32>
    %178 = arith.divf %176, %177 : vector<2x4xf32>
    %179 = vector.extract_strided_slice %178 {offsets = [0, 0], sizes = [2, 2], strides = [1, 1]} : vector<2x4xf32> to vector<2x2xf32>
    %180 = vector.extract_strided_slice %178 {offsets = [0, 2], sizes = [2, 2], strides = [1, 1]} : vector<2x4xf32> to vector<2x2xf32>
    %181 = vector.extract_strided_slice %45 {offsets = [0, 4], sizes = [2, 2], strides = [1, 1]} : vector<2x6xf32> to vector<2x2xf32>
    %182 = vector.extract_strided_slice %170 {offsets = [0, 4], sizes = [2, 2], strides = [1, 1]} : vector<2x6xf32> to vector<2x2xf32>
    %183 = arith.mulf %179, %182 : vector<2x2xf32>
    %184 = arith.addf %181, %183 : vector<2x2xf32>
    %185 = math.tanh %184 : vector<2x2xf32>
    %cst_67 = arith.constant 1.000000e+00 : f32
    %186 = vector.broadcast %cst_67 : f32 to vector<2x2xf32>
    %187 = arith.subf %186, %180 : vector<2x2xf32>
    %188 = arith.mulf %187, %185 : vector<2x2xf32>
    %189 = arith.mulf %180, %162 : vector<2x2xf32>
    %190 = arith.addf %188, %189 : vector<2x2xf32>
    %191 = vector.extract_strided_slice %190 {offsets = [0, 0], sizes = [2, 1], strides = [1, 1]} : vector<2x2xf32> to vector<2x1xf32>
    %192 = vector.broadcast %191 : vector<2x1xf32> to vector<2x6xf32>
    %193 = arith.mulf %192, %59 : vector<2x6xf32>
    %194 = arith.addf %74, %193 : vector<2x6xf32>
    %195 = vector.extract_strided_slice %190 {offsets = [0, 1], sizes = [2, 1], strides = [1, 1]} : vector<2x2xf32> to vector<2x1xf32>
    %196 = vector.broadcast %195 : vector<2x1xf32> to vector<2x6xf32>
    %197 = arith.mulf %196, %61 : vector<2x6xf32>
    %198 = arith.addf %194, %197 : vector<2x6xf32>
    %199 = vector.extract_strided_slice %46 {offsets = [0, 0], sizes = [2, 4], strides = [1, 1]} : vector<2x6xf32> to vector<2x4xf32>
    %200 = vector.extract_strided_slice %198 {offsets = [0, 0], sizes = [2, 4], strides = [1, 1]} : vector<2x6xf32> to vector<2x4xf32>
    %201 = arith.addf %199, %200 : vector<2x4xf32>
    %202 = arith.negf %201 : vector<2x4xf32>
    %203 = math.exp %202 : vector<2x4xf32>
    %cst_68 = arith.constant 1.000000e+00 : f32
    %204 = vector.broadcast %cst_68 : f32 to vector<2x4xf32>
    %205 = arith.addf %204, %203 : vector<2x4xf32>
    %206 = arith.divf %204, %205 : vector<2x4xf32>
    %207 = vector.extract_strided_slice %206 {offsets = [0, 0], sizes = [2, 2], strides = [1, 1]} : vector<2x4xf32> to vector<2x2xf32>
    %208 = vector.extract_strided_slice %206 {offsets = [0, 2], sizes = [2, 2], strides = [1, 1]} : vector<2x4xf32> to vector<2x2xf32>
    %209 = vector.extract_strided_slice %46 {offsets = [0, 4], sizes = [2, 2], strides = [1, 1]} : vector<2x6xf32> to vector<2x2xf32>
    %210 = vector.extract_strided_slice %198 {offsets = [0, 4], sizes = [2, 2], strides = [1, 1]} : vector<2x6xf32> to vector<2x2xf32>
    %211 = arith.mulf %207, %210 : vector<2x2xf32>
    %212 = arith.addf %209, %211 : vector<2x2xf32>
    %213 = math.tanh %212 : vector<2x2xf32>
    %cst_69 = arith.constant 1.000000e+00 : f32
    %214 = vector.broadcast %cst_69 : f32 to vector<2x2xf32>
    %215 = arith.subf %214, %208 : vector<2x2xf32>
    %216 = arith.mulf %215, %213 : vector<2x2xf32>
    %217 = arith.mulf %208, %190 : vector<2x2xf32>
    %218 = arith.addf %216, %217 : vector<2x2xf32>
    %219 = vector.extract_strided_slice %218 {offsets = [0, 0], sizes = [2, 1], strides = [1, 1]} : vector<2x2xf32> to vector<2x1xf32>
    %220 = vector.broadcast %219 : vector<2x1xf32> to vector<2x6xf32>
    %221 = arith.mulf %220, %59 : vector<2x6xf32>
    %222 = arith.addf %74, %221 : vector<2x6xf32>
    %223 = vector.extract_strided_slice %218 {offsets = [0, 1], sizes = [2, 1], strides = [1, 1]} : vector<2x2xf32> to vector<2x1xf32>
    %224 = vector.broadcast %223 : vector<2x1xf32> to vector<2x6xf32>
    %225 = arith.mulf %224, %61 : vector<2x6xf32>
    %226 = arith.addf %222, %225 : vector<2x6xf32>
    %227 = vector.extract_strided_slice %47 {offsets = [0, 0], sizes = [2, 4], strides = [1, 1]} : vector<2x6xf32> to vector<2x4xf32>
    %228 = vector.extract_strided_slice %226 {offsets = [0, 0], sizes = [2, 4], strides = [1, 1]} : vector<2x6xf32> to vector<2x4xf32>
    %229 = arith.addf %227, %228 : vector<2x4xf32>
    %230 = arith.negf %229 : vector<2x4xf32>
    %231 = math.exp %230 : vector<2x4xf32>
    %cst_70 = arith.constant 1.000000e+00 : f32
    %232 = vector.broadcast %cst_70 : f32 to vector<2x4xf32>
    %233 = arith.addf %232, %231 : vector<2x4xf32>
    %234 = arith.divf %232, %233 : vector<2x4xf32>
    %235 = vector.extract_strided_slice %234 {offsets = [0, 0], sizes = [2, 2], strides = [1, 1]} : vector<2x4xf32> to vector<2x2xf32>
    %236 = vector.extract_strided_slice %234 {offsets = [0, 2], sizes = [2, 2], strides = [1, 1]} : vector<2x4xf32> to vector<2x2xf32>
    %237 = vector.extract_strided_slice %47 {offsets = [0, 4], sizes = [2, 2], strides = [1, 1]} : vector<2x6xf32> to vector<2x2xf32>
    %238 = vector.extract_strided_slice %226 {offsets = [0, 4], sizes = [2, 2], strides = [1, 1]} : vector<2x6xf32> to vector<2x2xf32>
    %239 = arith.mulf %235, %238 : vector<2x2xf32>
    %240 = arith.addf %237, %239 : vector<2x2xf32>
    %241 = math.tanh %240 : vector<2x2xf32>
    %cst_71 = arith.constant 1.000000e+00 : f32
    %242 = vector.broadcast %cst_71 : f32 to vector<2x2xf32>
    %243 = arith.subf %242, %236 : vector<2x2xf32>
    %244 = arith.mulf %243, %241 : vector<2x2xf32>
    %245 = arith.mulf %236, %218 : vector<2x2xf32>
    %246 = arith.addf %244, %245 : vector<2x2xf32>
    %247 = vector.extract_strided_slice %246 {offsets = [0, 0], sizes = [2, 1], strides = [1, 1]} : vector<2x2xf32> to vector<2x1xf32>
    %248 = vector.broadcast %247 : vector<2x1xf32> to vector<2x6xf32>
    %249 = arith.mulf %248, %59 : vector<2x6xf32>
    %250 = arith.addf %74, %249 : vector<2x6xf32>
    %251 = vector.extract_strided_slice %246 {offsets = [0, 1], sizes = [2, 1], strides = [1, 1]} : vector<2x2xf32> to vector<2x1xf32>
    %252 = vector.broadcast %251 : vector<2x1xf32> to vector<2x6xf32>
    %253 = arith.mulf %252, %61 : vector<2x6xf32>
    %254 = arith.addf %250, %253 : vector<2x6xf32>
    %255 = vector.extract_strided_slice %48 {offsets = [0, 0], sizes = [2, 4], strides = [1, 1]} : vector<2x6xf32> to vector<2x4xf32>
    %256 = vector.extract_strided_slice %254 {offsets = [0, 0], sizes = [2, 4], strides = [1, 1]} : vector<2x6xf32> to vector<2x4xf32>
    %257 = arith.addf %255, %256 : vector<2x4xf32>
    %258 = arith.negf %257 : vector<2x4xf32>
    %259 = math.exp %258 : vector<2x4xf32>
    %cst_72 = arith.constant 1.000000e+00 : f32
    %260 = vector.broadcast %cst_72 : f32 to vector<2x4xf32>
    %261 = arith.addf %260, %259 : vector<2x4xf32>
    %262 = arith.divf %260, %261 : vector<2x4xf32>
    %263 = vector.extract_strided_slice %262 {offsets = [0, 0], sizes = [2, 2], strides = [1, 1]} : vector<2x4xf32> to vector<2x2xf32>
    %264 = vector.extract_strided_slice %262 {offsets = [0, 2], sizes = [2, 2], strides = [1, 1]} : vector<2x4xf32> to vector<2x2xf32>
    %265 = vector.extract_strided_slice %48 {offsets = [0, 4], sizes = [2, 2], strides = [1, 1]} : vector<2x6xf32> to vector<2x2xf32>
    %266 = vector.extract_strided_slice %254 {offsets = [0, 4], sizes = [2, 2], strides = [1, 1]} : vector<2x6xf32> to vector<2x2xf32>
    %267 = arith.mulf %263, %266 : vector<2x2xf32>
    %268 = arith.addf %265, %267 : vector<2x2xf32>
    %269 = math.tanh %268 : vector<2x2xf32>
    %cst_73 = arith.constant 1.000000e+00 : f32
    %270 = vector.broadcast %cst_73 : f32 to vector<2x2xf32>
    %271 = arith.subf %270, %264 : vector<2x2xf32>
    %272 = arith.mulf %271, %269 : vector<2x2xf32>
    %273 = arith.mulf %264, %246 : vector<2x2xf32>
    %274 = arith.addf %272, %273 : vector<2x2xf32>
    %275 = vector.extract_strided_slice %274 {offsets = [0, 0], sizes = [2, 1], strides = [1, 1]} : vector<2x2xf32> to vector<2x1xf32>
    %276 = vector.broadcast %275 : vector<2x1xf32> to vector<2x6xf32>
    %277 = arith.mulf %276, %59 : vector<2x6xf32>
    %278 = arith.addf %74, %277 : vector<2x6xf32>
    %279 = vector.extract_strided_slice %274 {offsets = [0, 1], sizes = [2, 1], strides = [1, 1]} : vector<2x2xf32> to vector<2x1xf32>
    %280 = vector.broadcast %279 : vector<2x1xf32> to vector<2x6xf32>
    %281 = arith.mulf %280, %61 : vector<2x6xf32>
    %282 = arith.addf %278, %281 : vector<2x6xf32>
    %283 = vector.extract_strided_slice %49 {offsets = [0, 0], sizes = [2, 4], strides = [1, 1]} : vector<2x6xf32> to vector<2x4xf32>
    %284 = vector.extract_strided_slice %282 {offsets = [0, 0], sizes = [2, 4], strides = [1, 1]} : vector<2x6xf32> to vector<2x4xf32>
    %285 = arith.addf %283, %284 : vector<2x4xf32>
    %286 = arith.negf %285 : vector<2x4xf32>
    %287 = math.exp %286 : vector<2x4xf32>
    %cst_74 = arith.constant 1.000000e+00 : f32
    %288 = vector.broadcast %cst_74 : f32 to vector<2x4xf32>
    %289 = arith.addf %288, %287 : vector<2x4xf32>
    %290 = arith.divf %288, %289 : vector<2x4xf32>
    %291 = vector.extract_strided_slice %290 {offsets = [0, 0], sizes = [2, 2], strides = [1, 1]} : vector<2x4xf32> to vector<2x2xf32>
    %292 = vector.extract_strided_slice %290 {offsets = [0, 2], sizes = [2, 2], strides = [1, 1]} : vector<2x4xf32> to vector<2x2xf32>
    %293 = vector.extract_strided_slice %49 {offsets = [0, 4], sizes = [2, 2], strides = [1, 1]} : vector<2x6xf32> to vector<2x2xf32>
    %294 = vector.extract_strided_slice %282 {offsets = [0, 4], sizes = [2, 2], strides = [1, 1]} : vector<2x6xf32> to vector<2x2xf32>
    %295 = arith.mulf %291, %294 : vector<2x2xf32>
    %296 = arith.addf %293, %295 : vector<2x2xf32>
    %297 = math.tanh %296 : vector<2x2xf32>
    %cst_75 = arith.constant 1.000000e+00 : f32
    %298 = vector.broadcast %cst_75 : f32 to vector<2x2xf32>
    %299 = arith.subf %298, %292 : vector<2x2xf32>
    %300 = arith.mulf %299, %297 : vector<2x2xf32>
    %301 = arith.mulf %292, %274 : vector<2x2xf32>
    %302 = arith.addf %300, %301 : vector<2x2xf32>
    %cst_76 = arith.constant 0.000000e+00 : f32
    %303 = vector.broadcast %cst_76 : f32 to vector<2x2xf32>
    %304 = vector.extract_strided_slice %303 {offsets = [0, 0], sizes = [2, 1], strides = [1, 1]} : vector<2x2xf32> to vector<2x1xf32>
    %305 = vector.broadcast %304 : vector<2x1xf32> to vector<2x6xf32>
    %306 = arith.mulf %305, %63 : vector<2x6xf32>
    %307 = arith.addf %75, %306 : vector<2x6xf32>
    %308 = vector.extract_strided_slice %303 {offsets = [0, 1], sizes = [2, 1], strides = [1, 1]} : vector<2x2xf32> to vector<2x1xf32>
    %309 = vector.broadcast %308 : vector<2x1xf32> to vector<2x6xf32>
    %310 = arith.mulf %309, %65 : vector<2x6xf32>
    %311 = arith.addf %307, %310 : vector<2x6xf32>
    %312 = vector.extract_strided_slice %57 {offsets = [0, 0], sizes = [2, 4], strides = [1, 1]} : vector<2x6xf32> to vector<2x4xf32>
    %313 = vector.extract_strided_slice %311 {offsets = [0, 0], sizes = [2, 4], strides = [1, 1]} : vector<2x6xf32> to vector<2x4xf32>
    %314 = arith.addf %312, %313 : vector<2x4xf32>
    %315 = arith.negf %314 : vector<2x4xf32>
    %316 = math.exp %315 : vector<2x4xf32>
    %cst_77 = arith.constant 1.000000e+00 : f32
    %317 = vector.broadcast %cst_77 : f32 to vector<2x4xf32>
    %318 = arith.addf %317, %316 : vector<2x4xf32>
    %319 = arith.divf %317, %318 : vector<2x4xf32>
    %320 = vector.extract_strided_slice %319 {offsets = [0, 0], sizes = [2, 2], strides = [1, 1]} : vector<2x4xf32> to vector<2x2xf32>
    %321 = vector.extract_strided_slice %319 {offsets = [0, 2], sizes = [2, 2], strides = [1, 1]} : vector<2x4xf32> to vector<2x2xf32>
    %322 = vector.extract_strided_slice %57 {offsets = [0, 4], sizes = [2, 2], strides = [1, 1]} : vector<2x6xf32> to vector<2x2xf32>
    %323 = vector.extract_strided_slice %311 {offsets = [0, 4], sizes = [2, 2], strides = [1, 1]} : vector<2x6xf32> to vector<2x2xf32>
    %324 = arith.mulf %320, %323 : vector<2x2xf32>
    %325 = arith.addf %322, %324 : vector<2x2xf32>
    %326 = math.tanh %325 : vector<2x2xf32>
    %cst_78 = arith.constant 1.000000e+00 : f32
    %327 = vector.broadcast %cst_78 : f32 to vector<2x2xf32>
    %328 = arith.subf %327, %321 : vector<2x2xf32>
    %329 = arith.mulf %328, %326 : vector<2x2xf32>
    %330 = arith.mulf %321, %303 : vector<2x2xf32>
    %331 = arith.addf %329, %330 : vector<2x2xf32>
    %332 = vector.extract_strided_slice %331 {offsets = [0, 0], sizes = [2, 1], strides = [1, 1]} : vector<2x2xf32> to vector<2x1xf32>
    %333 = vector.broadcast %332 : vector<2x1xf32> to vector<2x6xf32>
    %334 = arith.mulf %333, %63 : vector<2x6xf32>
    %335 = arith.addf %75, %334 : vector<2x6xf32>
    %336 = vector.extract_strided_slice %331 {offsets = [0, 1], sizes = [2, 1], strides = [1, 1]} : vector<2x2xf32> to vector<2x1xf32>
    %337 = vector.broadcast %336 : vector<2x1xf32> to vector<2x6xf32>
    %338 = arith.mulf %337, %65 : vector<2x6xf32>
    %339 = arith.addf %335, %338 : vector<2x6xf32>
    %340 = vector.extract_strided_slice %56 {offsets = [0, 0], sizes = [2, 4], strides = [1, 1]} : vector<2x6xf32> to vector<2x4xf32>
    %341 = vector.extract_strided_slice %339 {offsets = [0, 0], sizes = [2, 4], strides = [1, 1]} : vector<2x6xf32> to vector<2x4xf32>
    %342 = arith.addf %340, %341 : vector<2x4xf32>
    %343 = arith.negf %342 : vector<2x4xf32>
    %344 = math.exp %343 : vector<2x4xf32>
    %cst_79 = arith.constant 1.000000e+00 : f32
    %345 = vector.broadcast %cst_79 : f32 to vector<2x4xf32>
    %346 = arith.addf %345, %344 : vector<2x4xf32>
    %347 = arith.divf %345, %346 : vector<2x4xf32>
    %348 = vector.extract_strided_slice %347 {offsets = [0, 0], sizes = [2, 2], strides = [1, 1]} : vector<2x4xf32> to vector<2x2xf32>
    %349 = vector.extract_strided_slice %347 {offsets = [0, 2], sizes = [2, 2], strides = [1, 1]} : vector<2x4xf32> to vector<2x2xf32>
    %350 = vector.extract_strided_slice %56 {offsets = [0, 4], sizes = [2, 2], strides = [1, 1]} : vector<2x6xf32> to vector<2x2xf32>
    %351 = vector.extract_strided_slice %339 {offsets = [0, 4], sizes = [2, 2], strides = [1, 1]} : vector<2x6xf32> to vector<2x2xf32>
    %352 = arith.mulf %348, %351 : vector<2x2xf32>
    %353 = arith.addf %350, %352 : vector<2x2xf32>
    %354 = math.tanh %353 : vector<2x2xf32>
    %cst_80 = arith.constant 1.000000e+00 : f32
    %355 = vector.broadcast %cst_80 : f32 to vector<2x2xf32>
    %356 = arith.subf %355, %349 : vector<2x2xf32>
    %357 = arith.mulf %356, %354 : vector<2x2xf32>
    %358 = arith.mulf %349, %331 : vector<2x2xf32>
    %359 = arith.addf %357, %358 : vector<2x2xf32>
    %360 = vector.extract_strided_slice %359 {offsets = [0, 0], sizes = [2, 1], strides = [1, 1]} : vector<2x2xf32> to vector<2x1xf32>
    %361 = vector.broadcast %360 : vector<2x1xf32> to vector<2x6xf32>
    %362 = arith.mulf %361, %63 : vector<2x6xf32>
    %363 = arith.addf %75, %362 : vector<2x6xf32>
    %364 = vector.extract_strided_slice %359 {offsets = [0, 1], sizes = [2, 1], strides = [1, 1]} : vector<2x2xf32> to vector<2x1xf32>
    %365 = vector.broadcast %364 : vector<2x1xf32> to vector<2x6xf32>
    %366 = arith.mulf %365, %65 : vector<2x6xf32>
    %367 = arith.addf %363, %366 : vector<2x6xf32>
    %368 = vector.extract_strided_slice %55 {offsets = [0, 0], sizes = [2, 4], strides = [1, 1]} : vector<2x6xf32> to vector<2x4xf32>
    %369 = vector.extract_strided_slice %367 {offsets = [0, 0], sizes = [2, 4], strides = [1, 1]} : vector<2x6xf32> to vector<2x4xf32>
    %370 = arith.addf %368, %369 : vector<2x4xf32>
    %371 = arith.negf %370 : vector<2x4xf32>
    %372 = math.exp %371 : vector<2x4xf32>
    %cst_81 = arith.constant 1.000000e+00 : f32
    %373 = vector.broadcast %cst_81 : f32 to vector<2x4xf32>
    %374 = arith.addf %373, %372 : vector<2x4xf32>
    %375 = arith.divf %373, %374 : vector<2x4xf32>
    %376 = vector.extract_strided_slice %375 {offsets = [0, 0], sizes = [2, 2], strides = [1, 1]} : vector<2x4xf32> to vector<2x2xf32>
    %377 = vector.extract_strided_slice %375 {offsets = [0, 2], sizes = [2, 2], strides = [1, 1]} : vector<2x4xf32> to vector<2x2xf32>
    %378 = vector.extract_strided_slice %55 {offsets = [0, 4], sizes = [2, 2], strides = [1, 1]} : vector<2x6xf32> to vector<2x2xf32>
    %379 = vector.extract_strided_slice %367 {offsets = [0, 4], sizes = [2, 2], strides = [1, 1]} : vector<2x6xf32> to vector<2x2xf32>
    %380 = arith.mulf %376, %379 : vector<2x2xf32>
    %381 = arith.addf %378, %380 : vector<2x2xf32>
    %382 = math.tanh %381 : vector<2x2xf32>
    %cst_82 = arith.constant 1.000000e+00 : f32
    %383 = vector.broadcast %cst_82 : f32 to vector<2x2xf32>
    %384 = arith.subf %383, %377 : vector<2x2xf32>
    %385 = arith.mulf %384, %382 : vector<2x2xf32>
    %386 = arith.mulf %377, %359 : vector<2x2xf32>
    %387 = arith.addf %385, %386 : vector<2x2xf32>
    %388 = vector.extract_strided_slice %387 {offsets = [0, 0], sizes = [2, 1], strides = [1, 1]} : vector<2x2xf32> to vector<2x1xf32>
    %389 = vector.broadcast %388 : vector<2x1xf32> to vector<2x6xf32>
    %390 = arith.mulf %389, %63 : vector<2x6xf32>
    %391 = arith.addf %75, %390 : vector<2x6xf32>
    %392 = vector.extract_strided_slice %387 {offsets = [0, 1], sizes = [2, 1], strides = [1, 1]} : vector<2x2xf32> to vector<2x1xf32>
    %393 = vector.broadcast %392 : vector<2x1xf32> to vector<2x6xf32>
    %394 = arith.mulf %393, %65 : vector<2x6xf32>
    %395 = arith.addf %391, %394 : vector<2x6xf32>
    %396 = vector.extract_strided_slice %54 {offsets = [0, 0], sizes = [2, 4], strides = [1, 1]} : vector<2x6xf32> to vector<2x4xf32>
    %397 = vector.extract_strided_slice %395 {offsets = [0, 0], sizes = [2, 4], strides = [1, 1]} : vector<2x6xf32> to vector<2x4xf32>
    %398 = arith.addf %396, %397 : vector<2x4xf32>
    %399 = arith.negf %398 : vector<2x4xf32>
    %400 = math.exp %399 : vector<2x4xf32>
    %cst_83 = arith.constant 1.000000e+00 : f32
    %401 = vector.broadcast %cst_83 : f32 to vector<2x4xf32>
    %402 = arith.addf %401, %400 : vector<2x4xf32>
    %403 = arith.divf %401, %402 : vector<2x4xf32>
    %404 = vector.extract_strided_slice %403 {offsets = [0, 0], sizes = [2, 2], strides = [1, 1]} : vector<2x4xf32> to vector<2x2xf32>
    %405 = vector.extract_strided_slice %403 {offsets = [0, 2], sizes = [2, 2], strides = [1, 1]} : vector<2x4xf32> to vector<2x2xf32>
    %406 = vector.extract_strided_slice %54 {offsets = [0, 4], sizes = [2, 2], strides = [1, 1]} : vector<2x6xf32> to vector<2x2xf32>
    %407 = vector.extract_strided_slice %395 {offsets = [0, 4], sizes = [2, 2], strides = [1, 1]} : vector<2x6xf32> to vector<2x2xf32>
    %408 = arith.mulf %404, %407 : vector<2x2xf32>
    %409 = arith.addf %406, %408 : vector<2x2xf32>
    %410 = math.tanh %409 : vector<2x2xf32>
    %cst_84 = arith.constant 1.000000e+00 : f32
    %411 = vector.broadcast %cst_84 : f32 to vector<2x2xf32>
    %412 = arith.subf %411, %405 : vector<2x2xf32>
    %413 = arith.mulf %412, %410 : vector<2x2xf32>
    %414 = arith.mulf %405, %387 : vector<2x2xf32>
    %415 = arith.addf %413, %414 : vector<2x2xf32>
    %416 = vector.extract_strided_slice %415 {offsets = [0, 0], sizes = [2, 1], strides = [1, 1]} : vector<2x2xf32> to vector<2x1xf32>
    %417 = vector.broadcast %416 : vector<2x1xf32> to vector<2x6xf32>
    %418 = arith.mulf %417, %63 : vector<2x6xf32>
    %419 = arith.addf %75, %418 : vector<2x6xf32>
    %420 = vector.extract_strided_slice %415 {offsets = [0, 1], sizes = [2, 1], strides = [1, 1]} : vector<2x2xf32> to vector<2x1xf32>
    %421 = vector.broadcast %420 : vector<2x1xf32> to vector<2x6xf32>
    %422 = arith.mulf %421, %65 : vector<2x6xf32>
    %423 = arith.addf %419, %422 : vector<2x6xf32>
    %424 = vector.extract_strided_slice %53 {offsets = [0, 0], sizes = [2, 4], strides = [1, 1]} : vector<2x6xf32> to vector<2x4xf32>
    %425 = vector.extract_strided_slice %423 {offsets = [0, 0], sizes = [2, 4], strides = [1, 1]} : vector<2x6xf32> to vector<2x4xf32>
    %426 = arith.addf %424, %425 : vector<2x4xf32>
    %427 = arith.negf %426 : vector<2x4xf32>
    %428 = math.exp %427 : vector<2x4xf32>
    %cst_85 = arith.constant 1.000000e+00 : f32
    %429 = vector.broadcast %cst_85 : f32 to vector<2x4xf32>
    %430 = arith.addf %429, %428 : vector<2x4xf32>
    %431 = arith.divf %429, %430 : vector<2x4xf32>
    %432 = vector.extract_strided_slice %431 {offsets = [0, 0], sizes = [2, 2], strides = [1, 1]} : vector<2x4xf32> to vector<2x2xf32>
    %433 = vector.extract_strided_slice %431 {offsets = [0, 2], sizes = [2, 2], strides = [1, 1]} : vector<2x4xf32> to vector<2x2xf32>
    %434 = vector.extract_strided_slice %53 {offsets = [0, 4], sizes = [2, 2], strides = [1, 1]} : vector<2x6xf32> to vector<2x2xf32>
    %435 = vector.extract_strided_slice %423 {offsets = [0, 4], sizes = [2, 2], strides = [1, 1]} : vector<2x6xf32> to vector<2x2xf32>
    %436 = arith.mulf %432, %435 : vector<2x2xf32>
    %437 = arith.addf %434, %436 : vector<2x2xf32>
    %438 = math.tanh %437 : vector<2x2xf32>
    %cst_86 = arith.constant 1.000000e+00 : f32
    %439 = vector.broadcast %cst_86 : f32 to vector<2x2xf32>
    %440 = arith.subf %439, %433 : vector<2x2xf32>
    %441 = arith.mulf %440, %438 : vector<2x2xf32>
    %442 = arith.mulf %433, %415 : vector<2x2xf32>
    %443 = arith.addf %441, %442 : vector<2x2xf32>
    %444 = vector.extract_strided_slice %443 {offsets = [0, 0], sizes = [2, 1], strides = [1, 1]} : vector<2x2xf32> to vector<2x1xf32>
    %445 = vector.broadcast %444 : vector<2x1xf32> to vector<2x6xf32>
    %446 = arith.mulf %445, %63 : vector<2x6xf32>
    %447 = arith.addf %75, %446 : vector<2x6xf32>
    %448 = vector.extract_strided_slice %443 {offsets = [0, 1], sizes = [2, 1], strides = [1, 1]} : vector<2x2xf32> to vector<2x1xf32>
    %449 = vector.broadcast %448 : vector<2x1xf32> to vector<2x6xf32>
    %450 = arith.mulf %449, %65 : vector<2x6xf32>
    %451 = arith.addf %447, %450 : vector<2x6xf32>
    %452 = vector.extract_strided_slice %52 {offsets = [0, 0], sizes = [2, 4], strides = [1, 1]} : vector<2x6xf32> to vector<2x4xf32>
    %453 = vector.extract_strided_slice %451 {offsets = [0, 0], sizes = [2, 4], strides = [1, 1]} : vector<2x6xf32> to vector<2x4xf32>
    %454 = arith.addf %452, %453 : vector<2x4xf32>
    %455 = arith.negf %454 : vector<2x4xf32>
    %456 = math.exp %455 : vector<2x4xf32>
    %cst_87 = arith.constant 1.000000e+00 : f32
    %457 = vector.broadcast %cst_87 : f32 to vector<2x4xf32>
    %458 = arith.addf %457, %456 : vector<2x4xf32>
    %459 = arith.divf %457, %458 : vector<2x4xf32>
    %460 = vector.extract_strided_slice %459 {offsets = [0, 0], sizes = [2, 2], strides = [1, 1]} : vector<2x4xf32> to vector<2x2xf32>
    %461 = vector.extract_strided_slice %459 {offsets = [0, 2], sizes = [2, 2], strides = [1, 1]} : vector<2x4xf32> to vector<2x2xf32>
    %462 = vector.extract_strided_slice %52 {offsets = [0, 4], sizes = [2, 2], strides = [1, 1]} : vector<2x6xf32> to vector<2x2xf32>
    %463 = vector.extract_strided_slice %451 {offsets = [0, 4], sizes = [2, 2], strides = [1, 1]} : vector<2x6xf32> to vector<2x2xf32>
    %464 = arith.mulf %460, %463 : vector<2x2xf32>
    %465 = arith.addf %462, %464 : vector<2x2xf32>
    %466 = math.tanh %465 : vector<2x2xf32>
    %cst_88 = arith.constant 1.000000e+00 : f32
    %467 = vector.broadcast %cst_88 : f32 to vector<2x2xf32>
    %468 = arith.subf %467, %461 : vector<2x2xf32>
    %469 = arith.mulf %468, %466 : vector<2x2xf32>
    %470 = arith.mulf %461, %443 : vector<2x2xf32>
    %471 = arith.addf %469, %470 : vector<2x2xf32>
    %472 = vector.extract_strided_slice %471 {offsets = [0, 0], sizes = [2, 1], strides = [1, 1]} : vector<2x2xf32> to vector<2x1xf32>
    %473 = vector.broadcast %472 : vector<2x1xf32> to vector<2x6xf32>
    %474 = arith.mulf %473, %63 : vector<2x6xf32>
    %475 = arith.addf %75, %474 : vector<2x6xf32>
    %476 = vector.extract_strided_slice %471 {offsets = [0, 1], sizes = [2, 1], strides = [1, 1]} : vector<2x2xf32> to vector<2x1xf32>
    %477 = vector.broadcast %476 : vector<2x1xf32> to vector<2x6xf32>
    %478 = arith.mulf %477, %65 : vector<2x6xf32>
    %479 = arith.addf %475, %478 : vector<2x6xf32>
    %480 = vector.extract_strided_slice %51 {offsets = [0, 0], sizes = [2, 4], strides = [1, 1]} : vector<2x6xf32> to vector<2x4xf32>
    %481 = vector.extract_strided_slice %479 {offsets = [0, 0], sizes = [2, 4], strides = [1, 1]} : vector<2x6xf32> to vector<2x4xf32>
    %482 = arith.addf %480, %481 : vector<2x4xf32>
    %483 = arith.negf %482 : vector<2x4xf32>
    %484 = math.exp %483 : vector<2x4xf32>
    %cst_89 = arith.constant 1.000000e+00 : f32
    %485 = vector.broadcast %cst_89 : f32 to vector<2x4xf32>
    %486 = arith.addf %485, %484 : vector<2x4xf32>
    %487 = arith.divf %485, %486 : vector<2x4xf32>
    %488 = vector.extract_strided_slice %487 {offsets = [0, 0], sizes = [2, 2], strides = [1, 1]} : vector<2x4xf32> to vector<2x2xf32>
    %489 = vector.extract_strided_slice %487 {offsets = [0, 2], sizes = [2, 2], strides = [1, 1]} : vector<2x4xf32> to vector<2x2xf32>
    %490 = vector.extract_strided_slice %51 {offsets = [0, 4], sizes = [2, 2], strides = [1, 1]} : vector<2x6xf32> to vector<2x2xf32>
    %491 = vector.extract_strided_slice %479 {offsets = [0, 4], sizes = [2, 2], strides = [1, 1]} : vector<2x6xf32> to vector<2x2xf32>
    %492 = arith.mulf %488, %491 : vector<2x2xf32>
    %493 = arith.addf %490, %492 : vector<2x2xf32>
    %494 = math.tanh %493 : vector<2x2xf32>
    %cst_90 = arith.constant 1.000000e+00 : f32
    %495 = vector.broadcast %cst_90 : f32 to vector<2x2xf32>
    %496 = arith.subf %495, %489 : vector<2x2xf32>
    %497 = arith.mulf %496, %494 : vector<2x2xf32>
    %498 = arith.mulf %489, %471 : vector<2x2xf32>
    %499 = arith.addf %497, %498 : vector<2x2xf32>
    %500 = vector.extract_strided_slice %499 {offsets = [0, 0], sizes = [2, 1], strides = [1, 1]} : vector<2x2xf32> to vector<2x1xf32>
    %501 = vector.broadcast %500 : vector<2x1xf32> to vector<2x6xf32>
    %502 = arith.mulf %501, %63 : vector<2x6xf32>
    %503 = arith.addf %75, %502 : vector<2x6xf32>
    %504 = vector.extract_strided_slice %499 {offsets = [0, 1], sizes = [2, 1], strides = [1, 1]} : vector<2x2xf32> to vector<2x1xf32>
    %505 = vector.broadcast %504 : vector<2x1xf32> to vector<2x6xf32>
    %506 = arith.mulf %505, %65 : vector<2x6xf32>
    %507 = arith.addf %503, %506 : vector<2x6xf32>
    %508 = vector.extract_strided_slice %50 {offsets = [0, 0], sizes = [2, 4], strides = [1, 1]} : vector<2x6xf32> to vector<2x4xf32>
    %509 = vector.extract_strided_slice %507 {offsets = [0, 0], sizes = [2, 4], strides = [1, 1]} : vector<2x6xf32> to vector<2x4xf32>
    %510 = arith.addf %508, %509 : vector<2x4xf32>
    %511 = arith.negf %510 : vector<2x4xf32>
    %512 = math.exp %511 : vector<2x4xf32>
    %cst_91 = arith.constant 1.000000e+00 : f32
    %513 = vector.broadcast %cst_91 : f32 to vector<2x4xf32>
    %514 = arith.addf %513, %512 : vector<2x4xf32>
    %515 = arith.divf %513, %514 : vector<2x4xf32>
    %516 = vector.extract_strided_slice %515 {offsets = [0, 0], sizes = [2, 2], strides = [1, 1]} : vector<2x4xf32> to vector<2x2xf32>
    %517 = vector.extract_strided_slice %515 {offsets = [0, 2], sizes = [2, 2], strides = [1, 1]} : vector<2x4xf32> to vector<2x2xf32>
    %518 = vector.extract_strided_slice %50 {offsets = [0, 4], sizes = [2, 2], strides = [1, 1]} : vector<2x6xf32> to vector<2x2xf32>
    %519 = vector.extract_strided_slice %507 {offsets = [0, 4], sizes = [2, 2], strides = [1, 1]} : vector<2x6xf32> to vector<2x2xf32>
    %520 = arith.mulf %516, %519 : vector<2x2xf32>
    %521 = arith.addf %518, %520 : vector<2x2xf32>
    %522 = math.tanh %521 : vector<2x2xf32>
    %cst_92 = arith.constant 1.000000e+00 : f32
    %523 = vector.broadcast %cst_92 : f32 to vector<2x2xf32>
    %524 = arith.subf %523, %517 : vector<2x2xf32>
    %525 = arith.mulf %524, %522 : vector<2x2xf32>
    %526 = arith.mulf %517, %499 : vector<2x2xf32>
    %527 = arith.addf %525, %526 : vector<2x2xf32>
    %c0_93 = arith.constant 0 : index
    %c0_94 = arith.constant 0 : index
    %528 = vector.load %arg7[%c0_93, %c0_94] : memref<2x12xf32, #tpu.memory_space<vmem>>, vector<2x12xf32>
    %c0_95 = arith.constant 0 : index
    %c0_96 = arith.constant 0 : index
    %529 = vector.load %arg8[%c0_95, %c0_96] : memref<2x12xf32, #tpu.memory_space<vmem>>, vector<2x12xf32>
    %c0_97 = arith.constant 0 : index
    %c0_98 = arith.constant 0 : index
    %530 = vector.load %arg9[%c0_97, %c0_98] : memref<1x12xf32, #tpu.memory_space<vmem>>, vector<1x12xf32>
    %cst_99 = arith.constant dense<0.000000e+00> : vector<2x12xf32>
    %531 = tpu.matmul %106, %528, %cst_99 {dimension_numbers = #tpu.dot_dimension_numbers<[1], [0], [0], [1], [0, 0, 1, 1], [], []>, precision = #tpu.contract_precision<fp32>} : vector<2x2xf32>, vector<2x12xf32>, vector<2x12xf32> -> vector<2x12xf32>
    %cst_100 = arith.constant dense<0.000000e+00> : vector<2x12xf32>
    %532 = tpu.matmul %527, %529, %cst_100 {dimension_numbers = #tpu.dot_dimension_numbers<[1], [0], [0], [1], [0, 0, 1, 1], [], []>, precision = #tpu.contract_precision<fp32>} : vector<2x2xf32>, vector<2x12xf32>, vector<2x12xf32> -> vector<2x12xf32>
    %533 = arith.addf %531, %532 : vector<2x12xf32>
    %534 = vector.broadcast %530 : vector<1x12xf32> to vector<2x12xf32>
    %535 = arith.addf %533, %534 : vector<2x12xf32>
    %cst_101 = arith.constant dense<0.000000e+00> : vector<2x12xf32>
    %536 = tpu.matmul %134, %528, %cst_101 {dimension_numbers = #tpu.dot_dimension_numbers<[1], [0], [0], [1], [0, 0, 1, 1], [], []>, precision = #tpu.contract_precision<fp32>} : vector<2x2xf32>, vector<2x12xf32>, vector<2x12xf32> -> vector<2x12xf32>
    %cst_102 = arith.constant dense<0.000000e+00> : vector<2x12xf32>
    %537 = tpu.matmul %499, %529, %cst_102 {dimension_numbers = #tpu.dot_dimension_numbers<[1], [0], [0], [1], [0, 0, 1, 1], [], []>, precision = #tpu.contract_precision<fp32>} : vector<2x2xf32>, vector<2x12xf32>, vector<2x12xf32> -> vector<2x12xf32>
    %538 = arith.addf %536, %537 : vector<2x12xf32>
    %539 = vector.broadcast %530 : vector<1x12xf32> to vector<2x12xf32>
    %540 = arith.addf %538, %539 : vector<2x12xf32>
    %cst_103 = arith.constant dense<0.000000e+00> : vector<2x12xf32>
    %541 = tpu.matmul %162, %528, %cst_103 {dimension_numbers = #tpu.dot_dimension_numbers<[1], [0], [0], [1], [0, 0, 1, 1], [], []>, precision = #tpu.contract_precision<fp32>} : vector<2x2xf32>, vector<2x12xf32>, vector<2x12xf32> -> vector<2x12xf32>
    %cst_104 = arith.constant dense<0.000000e+00> : vector<2x12xf32>
    %542 = tpu.matmul %471, %529, %cst_104 {dimension_numbers = #tpu.dot_dimension_numbers<[1], [0], [0], [1], [0, 0, 1, 1], [], []>, precision = #tpu.contract_precision<fp32>} : vector<2x2xf32>, vector<2x12xf32>, vector<2x12xf32> -> vector<2x12xf32>
    %543 = arith.addf %541, %542 : vector<2x12xf32>
    %544 = vector.broadcast %530 : vector<1x12xf32> to vector<2x12xf32>
    %545 = arith.addf %543, %544 : vector<2x12xf32>
    %cst_105 = arith.constant dense<0.000000e+00> : vector<2x12xf32>
    %546 = tpu.matmul %190, %528, %cst_105 {dimension_numbers = #tpu.dot_dimension_numbers<[1], [0], [0], [1], [0, 0, 1, 1], [], []>, precision = #tpu.contract_precision<fp32>} : vector<2x2xf32>, vector<2x12xf32>, vector<2x12xf32> -> vector<2x12xf32>
    %cst_106 = arith.constant dense<0.000000e+00> : vector<2x12xf32>
    %547 = tpu.matmul %443, %529, %cst_106 {dimension_numbers = #tpu.dot_dimension_numbers<[1], [0], [0], [1], [0, 0, 1, 1], [], []>, precision = #tpu.contract_precision<fp32>} : vector<2x2xf32>, vector<2x12xf32>, vector<2x12xf32> -> vector<2x12xf32>
    %548 = arith.addf %546, %547 : vector<2x12xf32>
    %549 = vector.broadcast %530 : vector<1x12xf32> to vector<2x12xf32>
    %550 = arith.addf %548, %549 : vector<2x12xf32>
    %cst_107 = arith.constant dense<0.000000e+00> : vector<2x12xf32>
    %551 = tpu.matmul %218, %528, %cst_107 {dimension_numbers = #tpu.dot_dimension_numbers<[1], [0], [0], [1], [0, 0, 1, 1], [], []>, precision = #tpu.contract_precision<fp32>} : vector<2x2xf32>, vector<2x12xf32>, vector<2x12xf32> -> vector<2x12xf32>
    %cst_108 = arith.constant dense<0.000000e+00> : vector<2x12xf32>
    %552 = tpu.matmul %415, %529, %cst_108 {dimension_numbers = #tpu.dot_dimension_numbers<[1], [0], [0], [1], [0, 0, 1, 1], [], []>, precision = #tpu.contract_precision<fp32>} : vector<2x2xf32>, vector<2x12xf32>, vector<2x12xf32> -> vector<2x12xf32>
    %553 = arith.addf %551, %552 : vector<2x12xf32>
    %554 = vector.broadcast %530 : vector<1x12xf32> to vector<2x12xf32>
    %555 = arith.addf %553, %554 : vector<2x12xf32>
    %cst_109 = arith.constant dense<0.000000e+00> : vector<2x12xf32>
    %556 = tpu.matmul %246, %528, %cst_109 {dimension_numbers = #tpu.dot_dimension_numbers<[1], [0], [0], [1], [0, 0, 1, 1], [], []>, precision = #tpu.contract_precision<fp32>} : vector<2x2xf32>, vector<2x12xf32>, vector<2x12xf32> -> vector<2x12xf32>
    %cst_110 = arith.constant dense<0.000000e+00> : vector<2x12xf32>
    %557 = tpu.matmul %387, %529, %cst_110 {dimension_numbers = #tpu.dot_dimension_numbers<[1], [0], [0], [1], [0, 0, 1, 1], [], []>, precision = #tpu.contract_precision<fp32>} : vector<2x2xf32>, vector<2x12xf32>, vector<2x12xf32> -> vector<2x12xf32>
    %558 = arith.addf %556, %557 : vector<2x12xf32>
    %559 = vector.broadcast %530 : vector<1x12xf32> to vector<2x12xf32>
    %560 = arith.addf %558, %559 : vector<2x12xf32>
    %cst_111 = arith.constant dense<0.000000e+00> : vector<2x12xf32>
    %561 = tpu.matmul %274, %528, %cst_111 {dimension_numbers = #tpu.dot_dimension_numbers<[1], [0], [0], [1], [0, 0, 1, 1], [], []>, precision = #tpu.contract_precision<fp32>} : vector<2x2xf32>, vector<2x12xf32>, vector<2x12xf32> -> vector<2x12xf32>
    %cst_112 = arith.constant dense<0.000000e+00> : vector<2x12xf32>
    %562 = tpu.matmul %359, %529, %cst_112 {dimension_numbers = #tpu.dot_dimension_numbers<[1], [0], [0], [1], [0, 0, 1, 1], [], []>, precision = #tpu.contract_precision<fp32>} : vector<2x2xf32>, vector<2x12xf32>, vector<2x12xf32> -> vector<2x12xf32>
    %563 = arith.addf %561, %562 : vector<2x12xf32>
    %564 = vector.broadcast %530 : vector<1x12xf32> to vector<2x12xf32>
    %565 = arith.addf %563, %564 : vector<2x12xf32>
    %cst_113 = arith.constant dense<0.000000e+00> : vector<2x12xf32>
    %566 = tpu.matmul %302, %528, %cst_113 {dimension_numbers = #tpu.dot_dimension_numbers<[1], [0], [0], [1], [0, 0, 1, 1], [], []>, precision = #tpu.contract_precision<fp32>} : vector<2x2xf32>, vector<2x12xf32>, vector<2x12xf32> -> vector<2x12xf32>
    %cst_114 = arith.constant dense<0.000000e+00> : vector<2x12xf32>
    %567 = tpu.matmul %331, %529, %cst_114 {dimension_numbers = #tpu.dot_dimension_numbers<[1], [0], [0], [1], [0, 0, 1, 1], [], []>, precision = #tpu.contract_precision<fp32>} : vector<2x2xf32>, vector<2x12xf32>, vector<2x12xf32> -> vector<2x12xf32>
    %568 = arith.addf %566, %567 : vector<2x12xf32>
    %569 = vector.broadcast %530 : vector<1x12xf32> to vector<2x12xf32>
    %570 = arith.addf %568, %569 : vector<2x12xf32>
    %571 = vector.extract_strided_slice %535 {offsets = [0, 0], sizes = [2, 6], strides = [1, 1]} : vector<2x12xf32> to vector<2x6xf32>
    %572 = vector.extract_strided_slice %540 {offsets = [0, 0], sizes = [2, 6], strides = [1, 1]} : vector<2x12xf32> to vector<2x6xf32>
    %573 = vector.extract_strided_slice %545 {offsets = [0, 0], sizes = [2, 6], strides = [1, 1]} : vector<2x12xf32> to vector<2x6xf32>
    %574 = vector.extract_strided_slice %550 {offsets = [0, 0], sizes = [2, 6], strides = [1, 1]} : vector<2x12xf32> to vector<2x6xf32>
    %575 = vector.extract_strided_slice %555 {offsets = [0, 0], sizes = [2, 6], strides = [1, 1]} : vector<2x12xf32> to vector<2x6xf32>
    %576 = vector.extract_strided_slice %560 {offsets = [0, 0], sizes = [2, 6], strides = [1, 1]} : vector<2x12xf32> to vector<2x6xf32>
    %577 = vector.extract_strided_slice %565 {offsets = [0, 0], sizes = [2, 6], strides = [1, 1]} : vector<2x12xf32> to vector<2x6xf32>
    %578 = vector.extract_strided_slice %570 {offsets = [0, 0], sizes = [2, 6], strides = [1, 1]} : vector<2x12xf32> to vector<2x6xf32>
    %579 = vector.extract_strided_slice %535 {offsets = [0, 6], sizes = [2, 6], strides = [1, 1]} : vector<2x12xf32> to vector<2x6xf32>
    %580 = vector.extract_strided_slice %540 {offsets = [0, 6], sizes = [2, 6], strides = [1, 1]} : vector<2x12xf32> to vector<2x6xf32>
    %581 = vector.extract_strided_slice %545 {offsets = [0, 6], sizes = [2, 6], strides = [1, 1]} : vector<2x12xf32> to vector<2x6xf32>
    %582 = vector.extract_strided_slice %550 {offsets = [0, 6], sizes = [2, 6], strides = [1, 1]} : vector<2x12xf32> to vector<2x6xf32>
    %583 = vector.extract_strided_slice %555 {offsets = [0, 6], sizes = [2, 6], strides = [1, 1]} : vector<2x12xf32> to vector<2x6xf32>
    %584 = vector.extract_strided_slice %560 {offsets = [0, 6], sizes = [2, 6], strides = [1, 1]} : vector<2x12xf32> to vector<2x6xf32>
    %585 = vector.extract_strided_slice %565 {offsets = [0, 6], sizes = [2, 6], strides = [1, 1]} : vector<2x12xf32> to vector<2x6xf32>
    %586 = vector.extract_strided_slice %570 {offsets = [0, 6], sizes = [2, 6], strides = [1, 1]} : vector<2x12xf32> to vector<2x6xf32>
    %cst_115 = arith.constant 0.000000e+00 : f32
    %587 = vector.broadcast %cst_115 : f32 to vector<2x2xf32>
    %588 = vector.extract_strided_slice %587 {offsets = [0, 0], sizes = [2, 1], strides = [1, 1]} : vector<2x2xf32> to vector<2x1xf32>
    %589 = vector.broadcast %588 : vector<2x1xf32> to vector<2x6xf32>
    %590 = arith.mulf %589, %67 : vector<2x6xf32>
    %591 = arith.addf %76, %590 : vector<2x6xf32>
    %592 = vector.extract_strided_slice %587 {offsets = [0, 1], sizes = [2, 1], strides = [1, 1]} : vector<2x2xf32> to vector<2x1xf32>
    %593 = vector.broadcast %592 : vector<2x1xf32> to vector<2x6xf32>
    %594 = arith.mulf %593, %69 : vector<2x6xf32>
    %595 = arith.addf %591, %594 : vector<2x6xf32>
    %596 = vector.extract_strided_slice %571 {offsets = [0, 0], sizes = [2, 4], strides = [1, 1]} : vector<2x6xf32> to vector<2x4xf32>
    %597 = vector.extract_strided_slice %595 {offsets = [0, 0], sizes = [2, 4], strides = [1, 1]} : vector<2x6xf32> to vector<2x4xf32>
    %598 = arith.addf %596, %597 : vector<2x4xf32>
    %599 = arith.negf %598 : vector<2x4xf32>
    %600 = math.exp %599 : vector<2x4xf32>
    %cst_116 = arith.constant 1.000000e+00 : f32
    %601 = vector.broadcast %cst_116 : f32 to vector<2x4xf32>
    %602 = arith.addf %601, %600 : vector<2x4xf32>
    %603 = arith.divf %601, %602 : vector<2x4xf32>
    %604 = vector.extract_strided_slice %603 {offsets = [0, 0], sizes = [2, 2], strides = [1, 1]} : vector<2x4xf32> to vector<2x2xf32>
    %605 = vector.extract_strided_slice %603 {offsets = [0, 2], sizes = [2, 2], strides = [1, 1]} : vector<2x4xf32> to vector<2x2xf32>
    %606 = vector.extract_strided_slice %571 {offsets = [0, 4], sizes = [2, 2], strides = [1, 1]} : vector<2x6xf32> to vector<2x2xf32>
    %607 = vector.extract_strided_slice %595 {offsets = [0, 4], sizes = [2, 2], strides = [1, 1]} : vector<2x6xf32> to vector<2x2xf32>
    %608 = arith.mulf %604, %607 : vector<2x2xf32>
    %609 = arith.addf %606, %608 : vector<2x2xf32>
    %610 = math.tanh %609 : vector<2x2xf32>
    %cst_117 = arith.constant 1.000000e+00 : f32
    %611 = vector.broadcast %cst_117 : f32 to vector<2x2xf32>
    %612 = arith.subf %611, %605 : vector<2x2xf32>
    %613 = arith.mulf %612, %610 : vector<2x2xf32>
    %614 = arith.mulf %605, %587 : vector<2x2xf32>
    %615 = arith.addf %613, %614 : vector<2x2xf32>
    %616 = vector.extract_strided_slice %615 {offsets = [0, 0], sizes = [2, 1], strides = [1, 1]} : vector<2x2xf32> to vector<2x1xf32>
    %617 = vector.broadcast %616 : vector<2x1xf32> to vector<2x6xf32>
    %618 = arith.mulf %617, %67 : vector<2x6xf32>
    %619 = arith.addf %76, %618 : vector<2x6xf32>
    %620 = vector.extract_strided_slice %615 {offsets = [0, 1], sizes = [2, 1], strides = [1, 1]} : vector<2x2xf32> to vector<2x1xf32>
    %621 = vector.broadcast %620 : vector<2x1xf32> to vector<2x6xf32>
    %622 = arith.mulf %621, %69 : vector<2x6xf32>
    %623 = arith.addf %619, %622 : vector<2x6xf32>
    %624 = vector.extract_strided_slice %572 {offsets = [0, 0], sizes = [2, 4], strides = [1, 1]} : vector<2x6xf32> to vector<2x4xf32>
    %625 = vector.extract_strided_slice %623 {offsets = [0, 0], sizes = [2, 4], strides = [1, 1]} : vector<2x6xf32> to vector<2x4xf32>
    %626 = arith.addf %624, %625 : vector<2x4xf32>
    %627 = arith.negf %626 : vector<2x4xf32>
    %628 = math.exp %627 : vector<2x4xf32>
    %cst_118 = arith.constant 1.000000e+00 : f32
    %629 = vector.broadcast %cst_118 : f32 to vector<2x4xf32>
    %630 = arith.addf %629, %628 : vector<2x4xf32>
    %631 = arith.divf %629, %630 : vector<2x4xf32>
    %632 = vector.extract_strided_slice %631 {offsets = [0, 0], sizes = [2, 2], strides = [1, 1]} : vector<2x4xf32> to vector<2x2xf32>
    %633 = vector.extract_strided_slice %631 {offsets = [0, 2], sizes = [2, 2], strides = [1, 1]} : vector<2x4xf32> to vector<2x2xf32>
    %634 = vector.extract_strided_slice %572 {offsets = [0, 4], sizes = [2, 2], strides = [1, 1]} : vector<2x6xf32> to vector<2x2xf32>
    %635 = vector.extract_strided_slice %623 {offsets = [0, 4], sizes = [2, 2], strides = [1, 1]} : vector<2x6xf32> to vector<2x2xf32>
    %636 = arith.mulf %632, %635 : vector<2x2xf32>
    %637 = arith.addf %634, %636 : vector<2x2xf32>
    %638 = math.tanh %637 : vector<2x2xf32>
    %cst_119 = arith.constant 1.000000e+00 : f32
    %639 = vector.broadcast %cst_119 : f32 to vector<2x2xf32>
    %640 = arith.subf %639, %633 : vector<2x2xf32>
    %641 = arith.mulf %640, %638 : vector<2x2xf32>
    %642 = arith.mulf %633, %615 : vector<2x2xf32>
    %643 = arith.addf %641, %642 : vector<2x2xf32>
    %644 = vector.extract_strided_slice %643 {offsets = [0, 0], sizes = [2, 1], strides = [1, 1]} : vector<2x2xf32> to vector<2x1xf32>
    %645 = vector.broadcast %644 : vector<2x1xf32> to vector<2x6xf32>
    %646 = arith.mulf %645, %67 : vector<2x6xf32>
    %647 = arith.addf %76, %646 : vector<2x6xf32>
    %648 = vector.extract_strided_slice %643 {offsets = [0, 1], sizes = [2, 1], strides = [1, 1]} : vector<2x2xf32> to vector<2x1xf32>
    %649 = vector.broadcast %648 : vector<2x1xf32> to vector<2x6xf32>
    %650 = arith.mulf %649, %69 : vector<2x6xf32>
    %651 = arith.addf %647, %650 : vector<2x6xf32>
    %652 = vector.extract_strided_slice %573 {offsets = [0, 0], sizes = [2, 4], strides = [1, 1]} : vector<2x6xf32> to vector<2x4xf32>
    %653 = vector.extract_strided_slice %651 {offsets = [0, 0], sizes = [2, 4], strides = [1, 1]} : vector<2x6xf32> to vector<2x4xf32>
    %654 = arith.addf %652, %653 : vector<2x4xf32>
    %655 = arith.negf %654 : vector<2x4xf32>
    %656 = math.exp %655 : vector<2x4xf32>
    %cst_120 = arith.constant 1.000000e+00 : f32
    %657 = vector.broadcast %cst_120 : f32 to vector<2x4xf32>
    %658 = arith.addf %657, %656 : vector<2x4xf32>
    %659 = arith.divf %657, %658 : vector<2x4xf32>
    %660 = vector.extract_strided_slice %659 {offsets = [0, 0], sizes = [2, 2], strides = [1, 1]} : vector<2x4xf32> to vector<2x2xf32>
    %661 = vector.extract_strided_slice %659 {offsets = [0, 2], sizes = [2, 2], strides = [1, 1]} : vector<2x4xf32> to vector<2x2xf32>
    %662 = vector.extract_strided_slice %573 {offsets = [0, 4], sizes = [2, 2], strides = [1, 1]} : vector<2x6xf32> to vector<2x2xf32>
    %663 = vector.extract_strided_slice %651 {offsets = [0, 4], sizes = [2, 2], strides = [1, 1]} : vector<2x6xf32> to vector<2x2xf32>
    %664 = arith.mulf %660, %663 : vector<2x2xf32>
    %665 = arith.addf %662, %664 : vector<2x2xf32>
    %666 = math.tanh %665 : vector<2x2xf32>
    %cst_121 = arith.constant 1.000000e+00 : f32
    %667 = vector.broadcast %cst_121 : f32 to vector<2x2xf32>
    %668 = arith.subf %667, %661 : vector<2x2xf32>
    %669 = arith.mulf %668, %666 : vector<2x2xf32>
    %670 = arith.mulf %661, %643 : vector<2x2xf32>
    %671 = arith.addf %669, %670 : vector<2x2xf32>
    %672 = vector.extract_strided_slice %671 {offsets = [0, 0], sizes = [2, 1], strides = [1, 1]} : vector<2x2xf32> to vector<2x1xf32>
    %673 = vector.broadcast %672 : vector<2x1xf32> to vector<2x6xf32>
    %674 = arith.mulf %673, %67 : vector<2x6xf32>
    %675 = arith.addf %76, %674 : vector<2x6xf32>
    %676 = vector.extract_strided_slice %671 {offsets = [0, 1], sizes = [2, 1], strides = [1, 1]} : vector<2x2xf32> to vector<2x1xf32>
    %677 = vector.broadcast %676 : vector<2x1xf32> to vector<2x6xf32>
    %678 = arith.mulf %677, %69 : vector<2x6xf32>
    %679 = arith.addf %675, %678 : vector<2x6xf32>
    %680 = vector.extract_strided_slice %574 {offsets = [0, 0], sizes = [2, 4], strides = [1, 1]} : vector<2x6xf32> to vector<2x4xf32>
    %681 = vector.extract_strided_slice %679 {offsets = [0, 0], sizes = [2, 4], strides = [1, 1]} : vector<2x6xf32> to vector<2x4xf32>
    %682 = arith.addf %680, %681 : vector<2x4xf32>
    %683 = arith.negf %682 : vector<2x4xf32>
    %684 = math.exp %683 : vector<2x4xf32>
    %cst_122 = arith.constant 1.000000e+00 : f32
    %685 = vector.broadcast %cst_122 : f32 to vector<2x4xf32>
    %686 = arith.addf %685, %684 : vector<2x4xf32>
    %687 = arith.divf %685, %686 : vector<2x4xf32>
    %688 = vector.extract_strided_slice %687 {offsets = [0, 0], sizes = [2, 2], strides = [1, 1]} : vector<2x4xf32> to vector<2x2xf32>
    %689 = vector.extract_strided_slice %687 {offsets = [0, 2], sizes = [2, 2], strides = [1, 1]} : vector<2x4xf32> to vector<2x2xf32>
    %690 = vector.extract_strided_slice %574 {offsets = [0, 4], sizes = [2, 2], strides = [1, 1]} : vector<2x6xf32> to vector<2x2xf32>
    %691 = vector.extract_strided_slice %679 {offsets = [0, 4], sizes = [2, 2], strides = [1, 1]} : vector<2x6xf32> to vector<2x2xf32>
    %692 = arith.mulf %688, %691 : vector<2x2xf32>
    %693 = arith.addf %690, %692 : vector<2x2xf32>
    %694 = math.tanh %693 : vector<2x2xf32>
    %cst_123 = arith.constant 1.000000e+00 : f32
    %695 = vector.broadcast %cst_123 : f32 to vector<2x2xf32>
    %696 = arith.subf %695, %689 : vector<2x2xf32>
    %697 = arith.mulf %696, %694 : vector<2x2xf32>
    %698 = arith.mulf %689, %671 : vector<2x2xf32>
    %699 = arith.addf %697, %698 : vector<2x2xf32>
    %700 = vector.extract_strided_slice %699 {offsets = [0, 0], sizes = [2, 1], strides = [1, 1]} : vector<2x2xf32> to vector<2x1xf32>
    %701 = vector.broadcast %700 : vector<2x1xf32> to vector<2x6xf32>
    %702 = arith.mulf %701, %67 : vector<2x6xf32>
    %703 = arith.addf %76, %702 : vector<2x6xf32>
    %704 = vector.extract_strided_slice %699 {offsets = [0, 1], sizes = [2, 1], strides = [1, 1]} : vector<2x2xf32> to vector<2x1xf32>
    %705 = vector.broadcast %704 : vector<2x1xf32> to vector<2x6xf32>
    %706 = arith.mulf %705, %69 : vector<2x6xf32>
    %707 = arith.addf %703, %706 : vector<2x6xf32>
    %708 = vector.extract_strided_slice %575 {offsets = [0, 0], sizes = [2, 4], strides = [1, 1]} : vector<2x6xf32> to vector<2x4xf32>
    %709 = vector.extract_strided_slice %707 {offsets = [0, 0], sizes = [2, 4], strides = [1, 1]} : vector<2x6xf32> to vector<2x4xf32>
    %710 = arith.addf %708, %709 : vector<2x4xf32>
    %711 = arith.negf %710 : vector<2x4xf32>
    %712 = math.exp %711 : vector<2x4xf32>
    %cst_124 = arith.constant 1.000000e+00 : f32
    %713 = vector.broadcast %cst_124 : f32 to vector<2x4xf32>
    %714 = arith.addf %713, %712 : vector<2x4xf32>
    %715 = arith.divf %713, %714 : vector<2x4xf32>
    %716 = vector.extract_strided_slice %715 {offsets = [0, 0], sizes = [2, 2], strides = [1, 1]} : vector<2x4xf32> to vector<2x2xf32>
    %717 = vector.extract_strided_slice %715 {offsets = [0, 2], sizes = [2, 2], strides = [1, 1]} : vector<2x4xf32> to vector<2x2xf32>
    %718 = vector.extract_strided_slice %575 {offsets = [0, 4], sizes = [2, 2], strides = [1, 1]} : vector<2x6xf32> to vector<2x2xf32>
    %719 = vector.extract_strided_slice %707 {offsets = [0, 4], sizes = [2, 2], strides = [1, 1]} : vector<2x6xf32> to vector<2x2xf32>
    %720 = arith.mulf %716, %719 : vector<2x2xf32>
    %721 = arith.addf %718, %720 : vector<2x2xf32>
    %722 = math.tanh %721 : vector<2x2xf32>
    %cst_125 = arith.constant 1.000000e+00 : f32
    %723 = vector.broadcast %cst_125 : f32 to vector<2x2xf32>
    %724 = arith.subf %723, %717 : vector<2x2xf32>
    %725 = arith.mulf %724, %722 : vector<2x2xf32>
    %726 = arith.mulf %717, %699 : vector<2x2xf32>
    %727 = arith.addf %725, %726 : vector<2x2xf32>
    %728 = vector.extract_strided_slice %727 {offsets = [0, 0], sizes = [2, 1], strides = [1, 1]} : vector<2x2xf32> to vector<2x1xf32>
    %729 = vector.broadcast %728 : vector<2x1xf32> to vector<2x6xf32>
    %730 = arith.mulf %729, %67 : vector<2x6xf32>
    %731 = arith.addf %76, %730 : vector<2x6xf32>
    %732 = vector.extract_strided_slice %727 {offsets = [0, 1], sizes = [2, 1], strides = [1, 1]} : vector<2x2xf32> to vector<2x1xf32>
    %733 = vector.broadcast %732 : vector<2x1xf32> to vector<2x6xf32>
    %734 = arith.mulf %733, %69 : vector<2x6xf32>
    %735 = arith.addf %731, %734 : vector<2x6xf32>
    %736 = vector.extract_strided_slice %576 {offsets = [0, 0], sizes = [2, 4], strides = [1, 1]} : vector<2x6xf32> to vector<2x4xf32>
    %737 = vector.extract_strided_slice %735 {offsets = [0, 0], sizes = [2, 4], strides = [1, 1]} : vector<2x6xf32> to vector<2x4xf32>
    %738 = arith.addf %736, %737 : vector<2x4xf32>
    %739 = arith.negf %738 : vector<2x4xf32>
    %740 = math.exp %739 : vector<2x4xf32>
    %cst_126 = arith.constant 1.000000e+00 : f32
    %741 = vector.broadcast %cst_126 : f32 to vector<2x4xf32>
    %742 = arith.addf %741, %740 : vector<2x4xf32>
    %743 = arith.divf %741, %742 : vector<2x4xf32>
    %744 = vector.extract_strided_slice %743 {offsets = [0, 0], sizes = [2, 2], strides = [1, 1]} : vector<2x4xf32> to vector<2x2xf32>
    %745 = vector.extract_strided_slice %743 {offsets = [0, 2], sizes = [2, 2], strides = [1, 1]} : vector<2x4xf32> to vector<2x2xf32>
    %746 = vector.extract_strided_slice %576 {offsets = [0, 4], sizes = [2, 2], strides = [1, 1]} : vector<2x6xf32> to vector<2x2xf32>
    %747 = vector.extract_strided_slice %735 {offsets = [0, 4], sizes = [2, 2], strides = [1, 1]} : vector<2x6xf32> to vector<2x2xf32>
    %748 = arith.mulf %744, %747 : vector<2x2xf32>
    %749 = arith.addf %746, %748 : vector<2x2xf32>
    %750 = math.tanh %749 : vector<2x2xf32>
    %cst_127 = arith.constant 1.000000e+00 : f32
    %751 = vector.broadcast %cst_127 : f32 to vector<2x2xf32>
    %752 = arith.subf %751, %745 : vector<2x2xf32>
    %753 = arith.mulf %752, %750 : vector<2x2xf32>
    %754 = arith.mulf %745, %727 : vector<2x2xf32>
    %755 = arith.addf %753, %754 : vector<2x2xf32>
    %756 = vector.extract_strided_slice %755 {offsets = [0, 0], sizes = [2, 1], strides = [1, 1]} : vector<2x2xf32> to vector<2x1xf32>
    %757 = vector.broadcast %756 : vector<2x1xf32> to vector<2x6xf32>
    %758 = arith.mulf %757, %67 : vector<2x6xf32>
    %759 = arith.addf %76, %758 : vector<2x6xf32>
    %760 = vector.extract_strided_slice %755 {offsets = [0, 1], sizes = [2, 1], strides = [1, 1]} : vector<2x2xf32> to vector<2x1xf32>
    %761 = vector.broadcast %760 : vector<2x1xf32> to vector<2x6xf32>
    %762 = arith.mulf %761, %69 : vector<2x6xf32>
    %763 = arith.addf %759, %762 : vector<2x6xf32>
    %764 = vector.extract_strided_slice %577 {offsets = [0, 0], sizes = [2, 4], strides = [1, 1]} : vector<2x6xf32> to vector<2x4xf32>
    %765 = vector.extract_strided_slice %763 {offsets = [0, 0], sizes = [2, 4], strides = [1, 1]} : vector<2x6xf32> to vector<2x4xf32>
    %766 = arith.addf %764, %765 : vector<2x4xf32>
    %767 = arith.negf %766 : vector<2x4xf32>
    %768 = math.exp %767 : vector<2x4xf32>
    %cst_128 = arith.constant 1.000000e+00 : f32
    %769 = vector.broadcast %cst_128 : f32 to vector<2x4xf32>
    %770 = arith.addf %769, %768 : vector<2x4xf32>
    %771 = arith.divf %769, %770 : vector<2x4xf32>
    %772 = vector.extract_strided_slice %771 {offsets = [0, 0], sizes = [2, 2], strides = [1, 1]} : vector<2x4xf32> to vector<2x2xf32>
    %773 = vector.extract_strided_slice %771 {offsets = [0, 2], sizes = [2, 2], strides = [1, 1]} : vector<2x4xf32> to vector<2x2xf32>
    %774 = vector.extract_strided_slice %577 {offsets = [0, 4], sizes = [2, 2], strides = [1, 1]} : vector<2x6xf32> to vector<2x2xf32>
    %775 = vector.extract_strided_slice %763 {offsets = [0, 4], sizes = [2, 2], strides = [1, 1]} : vector<2x6xf32> to vector<2x2xf32>
    %776 = arith.mulf %772, %775 : vector<2x2xf32>
    %777 = arith.addf %774, %776 : vector<2x2xf32>
    %778 = math.tanh %777 : vector<2x2xf32>
    %cst_129 = arith.constant 1.000000e+00 : f32
    %779 = vector.broadcast %cst_129 : f32 to vector<2x2xf32>
    %780 = arith.subf %779, %773 : vector<2x2xf32>
    %781 = arith.mulf %780, %778 : vector<2x2xf32>
    %782 = arith.mulf %773, %755 : vector<2x2xf32>
    %783 = arith.addf %781, %782 : vector<2x2xf32>
    %784 = vector.extract_strided_slice %783 {offsets = [0, 0], sizes = [2, 1], strides = [1, 1]} : vector<2x2xf32> to vector<2x1xf32>
    %785 = vector.broadcast %784 : vector<2x1xf32> to vector<2x6xf32>
    %786 = arith.mulf %785, %67 : vector<2x6xf32>
    %787 = arith.addf %76, %786 : vector<2x6xf32>
    %788 = vector.extract_strided_slice %783 {offsets = [0, 1], sizes = [2, 1], strides = [1, 1]} : vector<2x2xf32> to vector<2x1xf32>
    %789 = vector.broadcast %788 : vector<2x1xf32> to vector<2x6xf32>
    %790 = arith.mulf %789, %69 : vector<2x6xf32>
    %791 = arith.addf %787, %790 : vector<2x6xf32>
    %792 = vector.extract_strided_slice %578 {offsets = [0, 0], sizes = [2, 4], strides = [1, 1]} : vector<2x6xf32> to vector<2x4xf32>
    %793 = vector.extract_strided_slice %791 {offsets = [0, 0], sizes = [2, 4], strides = [1, 1]} : vector<2x6xf32> to vector<2x4xf32>
    %794 = arith.addf %792, %793 : vector<2x4xf32>
    %795 = arith.negf %794 : vector<2x4xf32>
    %796 = math.exp %795 : vector<2x4xf32>
    %cst_130 = arith.constant 1.000000e+00 : f32
    %797 = vector.broadcast %cst_130 : f32 to vector<2x4xf32>
    %798 = arith.addf %797, %796 : vector<2x4xf32>
    %799 = arith.divf %797, %798 : vector<2x4xf32>
    %800 = vector.extract_strided_slice %799 {offsets = [0, 0], sizes = [2, 2], strides = [1, 1]} : vector<2x4xf32> to vector<2x2xf32>
    %801 = vector.extract_strided_slice %799 {offsets = [0, 2], sizes = [2, 2], strides = [1, 1]} : vector<2x4xf32> to vector<2x2xf32>
    %802 = vector.extract_strided_slice %578 {offsets = [0, 4], sizes = [2, 2], strides = [1, 1]} : vector<2x6xf32> to vector<2x2xf32>
    %803 = vector.extract_strided_slice %791 {offsets = [0, 4], sizes = [2, 2], strides = [1, 1]} : vector<2x6xf32> to vector<2x2xf32>
    %804 = arith.mulf %800, %803 : vector<2x2xf32>
    %805 = arith.addf %802, %804 : vector<2x2xf32>
    %806 = math.tanh %805 : vector<2x2xf32>
    %cst_131 = arith.constant 1.000000e+00 : f32
    %807 = vector.broadcast %cst_131 : f32 to vector<2x2xf32>
    %808 = arith.subf %807, %801 : vector<2x2xf32>
    %809 = arith.mulf %808, %806 : vector<2x2xf32>
    %810 = arith.mulf %801, %783 : vector<2x2xf32>
    %811 = arith.addf %809, %810 : vector<2x2xf32>
    %cst_132 = arith.constant 0.000000e+00 : f32
    %812 = vector.broadcast %cst_132 : f32 to vector<2x2xf32>
    %813 = vector.extract_strided_slice %812 {offsets = [0, 0], sizes = [2, 1], strides = [1, 1]} : vector<2x2xf32> to vector<2x1xf32>
    %814 = vector.broadcast %813 : vector<2x1xf32> to vector<2x6xf32>
    %815 = arith.mulf %814, %71 : vector<2x6xf32>
    %816 = arith.addf %77, %815 : vector<2x6xf32>
    %817 = vector.extract_strided_slice %812 {offsets = [0, 1], sizes = [2, 1], strides = [1, 1]} : vector<2x2xf32> to vector<2x1xf32>
    %818 = vector.broadcast %817 : vector<2x1xf32> to vector<2x6xf32>
    %819 = arith.mulf %818, %73 : vector<2x6xf32>
    %820 = arith.addf %816, %819 : vector<2x6xf32>
    %821 = vector.extract_strided_slice %586 {offsets = [0, 0], sizes = [2, 4], strides = [1, 1]} : vector<2x6xf32> to vector<2x4xf32>
    %822 = vector.extract_strided_slice %820 {offsets = [0, 0], sizes = [2, 4], strides = [1, 1]} : vector<2x6xf32> to vector<2x4xf32>
    %823 = arith.addf %821, %822 : vector<2x4xf32>
    %824 = arith.negf %823 : vector<2x4xf32>
    %825 = math.exp %824 : vector<2x4xf32>
    %cst_133 = arith.constant 1.000000e+00 : f32
    %826 = vector.broadcast %cst_133 : f32 to vector<2x4xf32>
    %827 = arith.addf %826, %825 : vector<2x4xf32>
    %828 = arith.divf %826, %827 : vector<2x4xf32>
    %829 = vector.extract_strided_slice %828 {offsets = [0, 0], sizes = [2, 2], strides = [1, 1]} : vector<2x4xf32> to vector<2x2xf32>
    %830 = vector.extract_strided_slice %828 {offsets = [0, 2], sizes = [2, 2], strides = [1, 1]} : vector<2x4xf32> to vector<2x2xf32>
    %831 = vector.extract_strided_slice %586 {offsets = [0, 4], sizes = [2, 2], strides = [1, 1]} : vector<2x6xf32> to vector<2x2xf32>
    %832 = vector.extract_strided_slice %820 {offsets = [0, 4], sizes = [2, 2], strides = [1, 1]} : vector<2x6xf32> to vector<2x2xf32>
    %833 = arith.mulf %829, %832 : vector<2x2xf32>
    %834 = arith.addf %831, %833 : vector<2x2xf32>
    %835 = math.tanh %834 : vector<2x2xf32>
    %cst_134 = arith.constant 1.000000e+00 : f32
    %836 = vector.broadcast %cst_134 : f32 to vector<2x2xf32>
    %837 = arith.subf %836, %830 : vector<2x2xf32>
    %838 = arith.mulf %837, %835 : vector<2x2xf32>
    %839 = arith.mulf %830, %812 : vector<2x2xf32>
    %840 = arith.addf %838, %839 : vector<2x2xf32>
    %841 = vector.extract_strided_slice %840 {offsets = [0, 0], sizes = [2, 1], strides = [1, 1]} : vector<2x2xf32> to vector<2x1xf32>
    %842 = vector.broadcast %841 : vector<2x1xf32> to vector<2x6xf32>
    %843 = arith.mulf %842, %71 : vector<2x6xf32>
    %844 = arith.addf %77, %843 : vector<2x6xf32>
    %845 = vector.extract_strided_slice %840 {offsets = [0, 1], sizes = [2, 1], strides = [1, 1]} : vector<2x2xf32> to vector<2x1xf32>
    %846 = vector.broadcast %845 : vector<2x1xf32> to vector<2x6xf32>
    %847 = arith.mulf %846, %73 : vector<2x6xf32>
    %848 = arith.addf %844, %847 : vector<2x6xf32>
    %849 = vector.extract_strided_slice %585 {offsets = [0, 0], sizes = [2, 4], strides = [1, 1]} : vector<2x6xf32> to vector<2x4xf32>
    %850 = vector.extract_strided_slice %848 {offsets = [0, 0], sizes = [2, 4], strides = [1, 1]} : vector<2x6xf32> to vector<2x4xf32>
    %851 = arith.addf %849, %850 : vector<2x4xf32>
    %852 = arith.negf %851 : vector<2x4xf32>
    %853 = math.exp %852 : vector<2x4xf32>
    %cst_135 = arith.constant 1.000000e+00 : f32
    %854 = vector.broadcast %cst_135 : f32 to vector<2x4xf32>
    %855 = arith.addf %854, %853 : vector<2x4xf32>
    %856 = arith.divf %854, %855 : vector<2x4xf32>
    %857 = vector.extract_strided_slice %856 {offsets = [0, 0], sizes = [2, 2], strides = [1, 1]} : vector<2x4xf32> to vector<2x2xf32>
    %858 = vector.extract_strided_slice %856 {offsets = [0, 2], sizes = [2, 2], strides = [1, 1]} : vector<2x4xf32> to vector<2x2xf32>
    %859 = vector.extract_strided_slice %585 {offsets = [0, 4], sizes = [2, 2], strides = [1, 1]} : vector<2x6xf32> to vector<2x2xf32>
    %860 = vector.extract_strided_slice %848 {offsets = [0, 4], sizes = [2, 2], strides = [1, 1]} : vector<2x6xf32> to vector<2x2xf32>
    %861 = arith.mulf %857, %860 : vector<2x2xf32>
    %862 = arith.addf %859, %861 : vector<2x2xf32>
    %863 = math.tanh %862 : vector<2x2xf32>
    %cst_136 = arith.constant 1.000000e+00 : f32
    %864 = vector.broadcast %cst_136 : f32 to vector<2x2xf32>
    %865 = arith.subf %864, %858 : vector<2x2xf32>
    %866 = arith.mulf %865, %863 : vector<2x2xf32>
    %867 = arith.mulf %858, %840 : vector<2x2xf32>
    %868 = arith.addf %866, %867 : vector<2x2xf32>
    %869 = vector.extract_strided_slice %868 {offsets = [0, 0], sizes = [2, 1], strides = [1, 1]} : vector<2x2xf32> to vector<2x1xf32>
    %870 = vector.broadcast %869 : vector<2x1xf32> to vector<2x6xf32>
    %871 = arith.mulf %870, %71 : vector<2x6xf32>
    %872 = arith.addf %77, %871 : vector<2x6xf32>
    %873 = vector.extract_strided_slice %868 {offsets = [0, 1], sizes = [2, 1], strides = [1, 1]} : vector<2x2xf32> to vector<2x1xf32>
    %874 = vector.broadcast %873 : vector<2x1xf32> to vector<2x6xf32>
    %875 = arith.mulf %874, %73 : vector<2x6xf32>
    %876 = arith.addf %872, %875 : vector<2x6xf32>
    %877 = vector.extract_strided_slice %584 {offsets = [0, 0], sizes = [2, 4], strides = [1, 1]} : vector<2x6xf32> to vector<2x4xf32>
    %878 = vector.extract_strided_slice %876 {offsets = [0, 0], sizes = [2, 4], strides = [1, 1]} : vector<2x6xf32> to vector<2x4xf32>
    %879 = arith.addf %877, %878 : vector<2x4xf32>
    %880 = arith.negf %879 : vector<2x4xf32>
    %881 = math.exp %880 : vector<2x4xf32>
    %cst_137 = arith.constant 1.000000e+00 : f32
    %882 = vector.broadcast %cst_137 : f32 to vector<2x4xf32>
    %883 = arith.addf %882, %881 : vector<2x4xf32>
    %884 = arith.divf %882, %883 : vector<2x4xf32>
    %885 = vector.extract_strided_slice %884 {offsets = [0, 0], sizes = [2, 2], strides = [1, 1]} : vector<2x4xf32> to vector<2x2xf32>
    %886 = vector.extract_strided_slice %884 {offsets = [0, 2], sizes = [2, 2], strides = [1, 1]} : vector<2x4xf32> to vector<2x2xf32>
    %887 = vector.extract_strided_slice %584 {offsets = [0, 4], sizes = [2, 2], strides = [1, 1]} : vector<2x6xf32> to vector<2x2xf32>
    %888 = vector.extract_strided_slice %876 {offsets = [0, 4], sizes = [2, 2], strides = [1, 1]} : vector<2x6xf32> to vector<2x2xf32>
    %889 = arith.mulf %885, %888 : vector<2x2xf32>
    %890 = arith.addf %887, %889 : vector<2x2xf32>
    %891 = math.tanh %890 : vector<2x2xf32>
    %cst_138 = arith.constant 1.000000e+00 : f32
    %892 = vector.broadcast %cst_138 : f32 to vector<2x2xf32>
    %893 = arith.subf %892, %886 : vector<2x2xf32>
    %894 = arith.mulf %893, %891 : vector<2x2xf32>
    %895 = arith.mulf %886, %868 : vector<2x2xf32>
    %896 = arith.addf %894, %895 : vector<2x2xf32>
    %897 = vector.extract_strided_slice %896 {offsets = [0, 0], sizes = [2, 1], strides = [1, 1]} : vector<2x2xf32> to vector<2x1xf32>
    %898 = vector.broadcast %897 : vector<2x1xf32> to vector<2x6xf32>
    %899 = arith.mulf %898, %71 : vector<2x6xf32>
    %900 = arith.addf %77, %899 : vector<2x6xf32>
    %901 = vector.extract_strided_slice %896 {offsets = [0, 1], sizes = [2, 1], strides = [1, 1]} : vector<2x2xf32> to vector<2x1xf32>
    %902 = vector.broadcast %901 : vector<2x1xf32> to vector<2x6xf32>
    %903 = arith.mulf %902, %73 : vector<2x6xf32>
    %904 = arith.addf %900, %903 : vector<2x6xf32>
    %905 = vector.extract_strided_slice %583 {offsets = [0, 0], sizes = [2, 4], strides = [1, 1]} : vector<2x6xf32> to vector<2x4xf32>
    %906 = vector.extract_strided_slice %904 {offsets = [0, 0], sizes = [2, 4], strides = [1, 1]} : vector<2x6xf32> to vector<2x4xf32>
    %907 = arith.addf %905, %906 : vector<2x4xf32>
    %908 = arith.negf %907 : vector<2x4xf32>
    %909 = math.exp %908 : vector<2x4xf32>
    %cst_139 = arith.constant 1.000000e+00 : f32
    %910 = vector.broadcast %cst_139 : f32 to vector<2x4xf32>
    %911 = arith.addf %910, %909 : vector<2x4xf32>
    %912 = arith.divf %910, %911 : vector<2x4xf32>
    %913 = vector.extract_strided_slice %912 {offsets = [0, 0], sizes = [2, 2], strides = [1, 1]} : vector<2x4xf32> to vector<2x2xf32>
    %914 = vector.extract_strided_slice %912 {offsets = [0, 2], sizes = [2, 2], strides = [1, 1]} : vector<2x4xf32> to vector<2x2xf32>
    %915 = vector.extract_strided_slice %583 {offsets = [0, 4], sizes = [2, 2], strides = [1, 1]} : vector<2x6xf32> to vector<2x2xf32>
    %916 = vector.extract_strided_slice %904 {offsets = [0, 4], sizes = [2, 2], strides = [1, 1]} : vector<2x6xf32> to vector<2x2xf32>
    %917 = arith.mulf %913, %916 : vector<2x2xf32>
    %918 = arith.addf %915, %917 : vector<2x2xf32>
    %919 = math.tanh %918 : vector<2x2xf32>
    %cst_140 = arith.constant 1.000000e+00 : f32
    %920 = vector.broadcast %cst_140 : f32 to vector<2x2xf32>
    %921 = arith.subf %920, %914 : vector<2x2xf32>
    %922 = arith.mulf %921, %919 : vector<2x2xf32>
    %923 = arith.mulf %914, %896 : vector<2x2xf32>
    %924 = arith.addf %922, %923 : vector<2x2xf32>
    %925 = vector.extract_strided_slice %924 {offsets = [0, 0], sizes = [2, 1], strides = [1, 1]} : vector<2x2xf32> to vector<2x1xf32>
    %926 = vector.broadcast %925 : vector<2x1xf32> to vector<2x6xf32>
    %927 = arith.mulf %926, %71 : vector<2x6xf32>
    %928 = arith.addf %77, %927 : vector<2x6xf32>
    %929 = vector.extract_strided_slice %924 {offsets = [0, 1], sizes = [2, 1], strides = [1, 1]} : vector<2x2xf32> to vector<2x1xf32>
    %930 = vector.broadcast %929 : vector<2x1xf32> to vector<2x6xf32>
    %931 = arith.mulf %930, %73 : vector<2x6xf32>
    %932 = arith.addf %928, %931 : vector<2x6xf32>
    %933 = vector.extract_strided_slice %582 {offsets = [0, 0], sizes = [2, 4], strides = [1, 1]} : vector<2x6xf32> to vector<2x4xf32>
    %934 = vector.extract_strided_slice %932 {offsets = [0, 0], sizes = [2, 4], strides = [1, 1]} : vector<2x6xf32> to vector<2x4xf32>
    %935 = arith.addf %933, %934 : vector<2x4xf32>
    %936 = arith.negf %935 : vector<2x4xf32>
    %937 = math.exp %936 : vector<2x4xf32>
    %cst_141 = arith.constant 1.000000e+00 : f32
    %938 = vector.broadcast %cst_141 : f32 to vector<2x4xf32>
    %939 = arith.addf %938, %937 : vector<2x4xf32>
    %940 = arith.divf %938, %939 : vector<2x4xf32>
    %941 = vector.extract_strided_slice %940 {offsets = [0, 0], sizes = [2, 2], strides = [1, 1]} : vector<2x4xf32> to vector<2x2xf32>
    %942 = vector.extract_strided_slice %940 {offsets = [0, 2], sizes = [2, 2], strides = [1, 1]} : vector<2x4xf32> to vector<2x2xf32>
    %943 = vector.extract_strided_slice %582 {offsets = [0, 4], sizes = [2, 2], strides = [1, 1]} : vector<2x6xf32> to vector<2x2xf32>
    %944 = vector.extract_strided_slice %932 {offsets = [0, 4], sizes = [2, 2], strides = [1, 1]} : vector<2x6xf32> to vector<2x2xf32>
    %945 = arith.mulf %941, %944 : vector<2x2xf32>
    %946 = arith.addf %943, %945 : vector<2x2xf32>
    %947 = math.tanh %946 : vector<2x2xf32>
    %cst_142 = arith.constant 1.000000e+00 : f32
    %948 = vector.broadcast %cst_142 : f32 to vector<2x2xf32>
    %949 = arith.subf %948, %942 : vector<2x2xf32>
    %950 = arith.mulf %949, %947 : vector<2x2xf32>
    %951 = arith.mulf %942, %924 : vector<2x2xf32>
    %952 = arith.addf %950, %951 : vector<2x2xf32>
    %953 = vector.extract_strided_slice %952 {offsets = [0, 0], sizes = [2, 1], strides = [1, 1]} : vector<2x2xf32> to vector<2x1xf32>
    %954 = vector.broadcast %953 : vector<2x1xf32> to vector<2x6xf32>
    %955 = arith.mulf %954, %71 : vector<2x6xf32>
    %956 = arith.addf %77, %955 : vector<2x6xf32>
    %957 = vector.extract_strided_slice %952 {offsets = [0, 1], sizes = [2, 1], strides = [1, 1]} : vector<2x2xf32> to vector<2x1xf32>
    %958 = vector.broadcast %957 : vector<2x1xf32> to vector<2x6xf32>
    %959 = arith.mulf %958, %73 : vector<2x6xf32>
    %960 = arith.addf %956, %959 : vector<2x6xf32>
    %961 = vector.extract_strided_slice %581 {offsets = [0, 0], sizes = [2, 4], strides = [1, 1]} : vector<2x6xf32> to vector<2x4xf32>
    %962 = vector.extract_strided_slice %960 {offsets = [0, 0], sizes = [2, 4], strides = [1, 1]} : vector<2x6xf32> to vector<2x4xf32>
    %963 = arith.addf %961, %962 : vector<2x4xf32>
    %964 = arith.negf %963 : vector<2x4xf32>
    %965 = math.exp %964 : vector<2x4xf32>
    %cst_143 = arith.constant 1.000000e+00 : f32
    %966 = vector.broadcast %cst_143 : f32 to vector<2x4xf32>
    %967 = arith.addf %966, %965 : vector<2x4xf32>
    %968 = arith.divf %966, %967 : vector<2x4xf32>
    %969 = vector.extract_strided_slice %968 {offsets = [0, 0], sizes = [2, 2], strides = [1, 1]} : vector<2x4xf32> to vector<2x2xf32>
    %970 = vector.extract_strided_slice %968 {offsets = [0, 2], sizes = [2, 2], strides = [1, 1]} : vector<2x4xf32> to vector<2x2xf32>
    %971 = vector.extract_strided_slice %581 {offsets = [0, 4], sizes = [2, 2], strides = [1, 1]} : vector<2x6xf32> to vector<2x2xf32>
    %972 = vector.extract_strided_slice %960 {offsets = [0, 4], sizes = [2, 2], strides = [1, 1]} : vector<2x6xf32> to vector<2x2xf32>
    %973 = arith.mulf %969, %972 : vector<2x2xf32>
    %974 = arith.addf %971, %973 : vector<2x2xf32>
    %975 = math.tanh %974 : vector<2x2xf32>
    %cst_144 = arith.constant 1.000000e+00 : f32
    %976 = vector.broadcast %cst_144 : f32 to vector<2x2xf32>
    %977 = arith.subf %976, %970 : vector<2x2xf32>
    %978 = arith.mulf %977, %975 : vector<2x2xf32>
    %979 = arith.mulf %970, %952 : vector<2x2xf32>
    %980 = arith.addf %978, %979 : vector<2x2xf32>
    %981 = vector.extract_strided_slice %980 {offsets = [0, 0], sizes = [2, 1], strides = [1, 1]} : vector<2x2xf32> to vector<2x1xf32>
    %982 = vector.broadcast %981 : vector<2x1xf32> to vector<2x6xf32>
    %983 = arith.mulf %982, %71 : vector<2x6xf32>
    %984 = arith.addf %77, %983 : vector<2x6xf32>
    %985 = vector.extract_strided_slice %980 {offsets = [0, 1], sizes = [2, 1], strides = [1, 1]} : vector<2x2xf32> to vector<2x1xf32>
    %986 = vector.broadcast %985 : vector<2x1xf32> to vector<2x6xf32>
    %987 = arith.mulf %986, %73 : vector<2x6xf32>
    %988 = arith.addf %984, %987 : vector<2x6xf32>
    %989 = vector.extract_strided_slice %580 {offsets = [0, 0], sizes = [2, 4], strides = [1, 1]} : vector<2x6xf32> to vector<2x4xf32>
    %990 = vector.extract_strided_slice %988 {offsets = [0, 0], sizes = [2, 4], strides = [1, 1]} : vector<2x6xf32> to vector<2x4xf32>
    %991 = arith.addf %989, %990 : vector<2x4xf32>
    %992 = arith.negf %991 : vector<2x4xf32>
    %993 = math.exp %992 : vector<2x4xf32>
    %cst_145 = arith.constant 1.000000e+00 : f32
    %994 = vector.broadcast %cst_145 : f32 to vector<2x4xf32>
    %995 = arith.addf %994, %993 : vector<2x4xf32>
    %996 = arith.divf %994, %995 : vector<2x4xf32>
    %997 = vector.extract_strided_slice %996 {offsets = [0, 0], sizes = [2, 2], strides = [1, 1]} : vector<2x4xf32> to vector<2x2xf32>
    %998 = vector.extract_strided_slice %996 {offsets = [0, 2], sizes = [2, 2], strides = [1, 1]} : vector<2x4xf32> to vector<2x2xf32>
    %999 = vector.extract_strided_slice %580 {offsets = [0, 4], sizes = [2, 2], strides = [1, 1]} : vector<2x6xf32> to vector<2x2xf32>
    %1000 = vector.extract_strided_slice %988 {offsets = [0, 4], sizes = [2, 2], strides = [1, 1]} : vector<2x6xf32> to vector<2x2xf32>
    %1001 = arith.mulf %997, %1000 : vector<2x2xf32>
    %1002 = arith.addf %999, %1001 : vector<2x2xf32>
    %1003 = math.tanh %1002 : vector<2x2xf32>
    %cst_146 = arith.constant 1.000000e+00 : f32
    %1004 = vector.broadcast %cst_146 : f32 to vector<2x2xf32>
    %1005 = arith.subf %1004, %998 : vector<2x2xf32>
    %1006 = arith.mulf %1005, %1003 : vector<2x2xf32>
    %1007 = arith.mulf %998, %980 : vector<2x2xf32>
    %1008 = arith.addf %1006, %1007 : vector<2x2xf32>
    %1009 = vector.extract_strided_slice %1008 {offsets = [0, 0], sizes = [2, 1], strides = [1, 1]} : vector<2x2xf32> to vector<2x1xf32>
    %1010 = vector.broadcast %1009 : vector<2x1xf32> to vector<2x6xf32>
    %1011 = arith.mulf %1010, %71 : vector<2x6xf32>
    %1012 = arith.addf %77, %1011 : vector<2x6xf32>
    %1013 = vector.extract_strided_slice %1008 {offsets = [0, 1], sizes = [2, 1], strides = [1, 1]} : vector<2x2xf32> to vector<2x1xf32>
    %1014 = vector.broadcast %1013 : vector<2x1xf32> to vector<2x6xf32>
    %1015 = arith.mulf %1014, %73 : vector<2x6xf32>
    %1016 = arith.addf %1012, %1015 : vector<2x6xf32>
    %1017 = vector.extract_strided_slice %579 {offsets = [0, 0], sizes = [2, 4], strides = [1, 1]} : vector<2x6xf32> to vector<2x4xf32>
    %1018 = vector.extract_strided_slice %1016 {offsets = [0, 0], sizes = [2, 4], strides = [1, 1]} : vector<2x6xf32> to vector<2x4xf32>
    %1019 = arith.addf %1017, %1018 : vector<2x4xf32>
    %1020 = arith.negf %1019 : vector<2x4xf32>
    %1021 = math.exp %1020 : vector<2x4xf32>
    %cst_147 = arith.constant 1.000000e+00 : f32
    %1022 = vector.broadcast %cst_147 : f32 to vector<2x4xf32>
    %1023 = arith.addf %1022, %1021 : vector<2x4xf32>
    %1024 = arith.divf %1022, %1023 : vector<2x4xf32>
    %1025 = vector.extract_strided_slice %1024 {offsets = [0, 0], sizes = [2, 2], strides = [1, 1]} : vector<2x4xf32> to vector<2x2xf32>
    %1026 = vector.extract_strided_slice %1024 {offsets = [0, 2], sizes = [2, 2], strides = [1, 1]} : vector<2x4xf32> to vector<2x2xf32>
    %1027 = vector.extract_strided_slice %579 {offsets = [0, 4], sizes = [2, 2], strides = [1, 1]} : vector<2x6xf32> to vector<2x2xf32>
    %1028 = vector.extract_strided_slice %1016 {offsets = [0, 4], sizes = [2, 2], strides = [1, 1]} : vector<2x6xf32> to vector<2x2xf32>
    %1029 = arith.mulf %1025, %1028 : vector<2x2xf32>
    %1030 = arith.addf %1027, %1029 : vector<2x2xf32>
    %1031 = math.tanh %1030 : vector<2x2xf32>
    %cst_148 = arith.constant 1.000000e+00 : f32
    %1032 = vector.broadcast %cst_148 : f32 to vector<2x2xf32>
    %1033 = arith.subf %1032, %1026 : vector<2x2xf32>
    %1034 = arith.mulf %1033, %1031 : vector<2x2xf32>
    %1035 = arith.mulf %1026, %1008 : vector<2x2xf32>
    %1036 = arith.addf %1034, %1035 : vector<2x2xf32>
    %c0_149 = arith.constant 0 : index
    %c0_150 = arith.constant 0 : index
    %c0_151 = arith.constant 0 : index
    %1037 = vector.load %arg14[%c0_149, %c0_150, %c0_151] : memref<8x2x50xf32, #tpu.memory_space<vmem>>, vector<1x2x50xf32>
    %1038 = vector.shape_cast %1037 : vector<1x2x50xf32> to vector<2x50xf32>
    %cst_152 = arith.constant dense<0.000000e+00> : vector<2x50xf32>
    %1039 = tpu.matmul %615, %1038, %cst_152 {dimension_numbers = #tpu.dot_dimension_numbers<[1], [0], [0], [1], [0, 0, 1, 1], [], []>, precision = #tpu.contract_precision<fp32>} : vector<2x2xf32>, vector<2x50xf32>, vector<2x50xf32> -> vector<2x50xf32>
    %c0_153 = arith.constant 0 : index
    %c0_154 = arith.constant 0 : index
    %c0_155 = arith.constant 0 : index
    %1040 = vector.load %arg15[%c0_153, %c0_154, %c0_155] : memref<8x2x50xf32, #tpu.memory_space<vmem>>, vector<1x2x50xf32>
    %1041 = vector.shape_cast %1040 : vector<1x2x50xf32> to vector<2x50xf32>
    %cst_156 = arith.constant dense<0.000000e+00> : vector<2x50xf32>
    %1042 = tpu.matmul %1036, %1041, %cst_156 {dimension_numbers = #tpu.dot_dimension_numbers<[1], [0], [0], [1], [0, 0, 1, 1], [], []>, precision = #tpu.contract_precision<fp32>} : vector<2x2xf32>, vector<2x50xf32>, vector<2x50xf32> -> vector<2x50xf32>
    %1043 = arith.addf %1039, %1042 : vector<2x50xf32>
    %c1_157 = arith.constant 1 : index
    %c0_158 = arith.constant 0 : index
    %c0_159 = arith.constant 0 : index
    %1044 = vector.load %arg14[%c1_157, %c0_158, %c0_159] : memref<8x2x50xf32, #tpu.memory_space<vmem>>, vector<1x2x50xf32>
    %1045 = vector.shape_cast %1044 : vector<1x2x50xf32> to vector<2x50xf32>
    %cst_160 = arith.constant dense<0.000000e+00> : vector<2x50xf32>
    %1046 = tpu.matmul %643, %1045, %cst_160 {dimension_numbers = #tpu.dot_dimension_numbers<[1], [0], [0], [1], [0, 0, 1, 1], [], []>, precision = #tpu.contract_precision<fp32>} : vector<2x2xf32>, vector<2x50xf32>, vector<2x50xf32> -> vector<2x50xf32>
    %c1_161 = arith.constant 1 : index
    %c0_162 = arith.constant 0 : index
    %c0_163 = arith.constant 0 : index
    %1047 = vector.load %arg15[%c1_161, %c0_162, %c0_163] : memref<8x2x50xf32, #tpu.memory_space<vmem>>, vector<1x2x50xf32>
    %1048 = vector.shape_cast %1047 : vector<1x2x50xf32> to vector<2x50xf32>
    %cst_164 = arith.constant dense<0.000000e+00> : vector<2x50xf32>
    %1049 = tpu.matmul %1008, %1048, %cst_164 {dimension_numbers = #tpu.dot_dimension_numbers<[1], [0], [0], [1], [0, 0, 1, 1], [], []>, precision = #tpu.contract_precision<fp32>} : vector<2x2xf32>, vector<2x50xf32>, vector<2x50xf32> -> vector<2x50xf32>
    %1050 = arith.addf %1046, %1049 : vector<2x50xf32>
    %1051 = arith.addf %1043, %1050 : vector<2x50xf32>
    %c2_165 = arith.constant 2 : index
    %c0_166 = arith.constant 0 : index
    %c0_167 = arith.constant 0 : index
    %1052 = vector.load %arg14[%c2_165, %c0_166, %c0_167] : memref<8x2x50xf32, #tpu.memory_space<vmem>>, vector<1x2x50xf32>
    %1053 = vector.shape_cast %1052 : vector<1x2x50xf32> to vector<2x50xf32>
    %cst_168 = arith.constant dense<0.000000e+00> : vector<2x50xf32>
    %1054 = tpu.matmul %671, %1053, %cst_168 {dimension_numbers = #tpu.dot_dimension_numbers<[1], [0], [0], [1], [0, 0, 1, 1], [], []>, precision = #tpu.contract_precision<fp32>} : vector<2x2xf32>, vector<2x50xf32>, vector<2x50xf32> -> vector<2x50xf32>
    %c2_169 = arith.constant 2 : index
    %c0_170 = arith.constant 0 : index
    %c0_171 = arith.constant 0 : index
    %1055 = vector.load %arg15[%c2_169, %c0_170, %c0_171] : memref<8x2x50xf32, #tpu.memory_space<vmem>>, vector<1x2x50xf32>
    %1056 = vector.shape_cast %1055 : vector<1x2x50xf32> to vector<2x50xf32>
    %cst_172 = arith.constant dense<0.000000e+00> : vector<2x50xf32>
    %1057 = tpu.matmul %980, %1056, %cst_172 {dimension_numbers = #tpu.dot_dimension_numbers<[1], [0], [0], [1], [0, 0, 1, 1], [], []>, precision = #tpu.contract_precision<fp32>} : vector<2x2xf32>, vector<2x50xf32>, vector<2x50xf32> -> vector<2x50xf32>
    %1058 = arith.addf %1054, %1057 : vector<2x50xf32>
    %1059 = arith.addf %1051, %1058 : vector<2x50xf32>
    %c3_173 = arith.constant 3 : index
    %c0_174 = arith.constant 0 : index
    %c0_175 = arith.constant 0 : index
    %1060 = vector.load %arg14[%c3_173, %c0_174, %c0_175] : memref<8x2x50xf32, #tpu.memory_space<vmem>>, vector<1x2x50xf32>
    %1061 = vector.shape_cast %1060 : vector<1x2x50xf32> to vector<2x50xf32>
    %cst_176 = arith.constant dense<0.000000e+00> : vector<2x50xf32>
    %1062 = tpu.matmul %699, %1061, %cst_176 {dimension_numbers = #tpu.dot_dimension_numbers<[1], [0], [0], [1], [0, 0, 1, 1], [], []>, precision = #tpu.contract_precision<fp32>} : vector<2x2xf32>, vector<2x50xf32>, vector<2x50xf32> -> vector<2x50xf32>
    %c3_177 = arith.constant 3 : index
    %c0_178 = arith.constant 0 : index
    %c0_179 = arith.constant 0 : index
    %1063 = vector.load %arg15[%c3_177, %c0_178, %c0_179] : memref<8x2x50xf32, #tpu.memory_space<vmem>>, vector<1x2x50xf32>
    %1064 = vector.shape_cast %1063 : vector<1x2x50xf32> to vector<2x50xf32>
    %cst_180 = arith.constant dense<0.000000e+00> : vector<2x50xf32>
    %1065 = tpu.matmul %952, %1064, %cst_180 {dimension_numbers = #tpu.dot_dimension_numbers<[1], [0], [0], [1], [0, 0, 1, 1], [], []>, precision = #tpu.contract_precision<fp32>} : vector<2x2xf32>, vector<2x50xf32>, vector<2x50xf32> -> vector<2x50xf32>
    %1066 = arith.addf %1062, %1065 : vector<2x50xf32>
    %1067 = arith.addf %1059, %1066 : vector<2x50xf32>
    %c4_181 = arith.constant 4 : index
    %c0_182 = arith.constant 0 : index
    %c0_183 = arith.constant 0 : index
    %1068 = vector.load %arg14[%c4_181, %c0_182, %c0_183] : memref<8x2x50xf32, #tpu.memory_space<vmem>>, vector<1x2x50xf32>
    %1069 = vector.shape_cast %1068 : vector<1x2x50xf32> to vector<2x50xf32>
    %cst_184 = arith.constant dense<0.000000e+00> : vector<2x50xf32>
    %1070 = tpu.matmul %727, %1069, %cst_184 {dimension_numbers = #tpu.dot_dimension_numbers<[1], [0], [0], [1], [0, 0, 1, 1], [], []>, precision = #tpu.contract_precision<fp32>} : vector<2x2xf32>, vector<2x50xf32>, vector<2x50xf32> -> vector<2x50xf32>
    %c4_185 = arith.constant 4 : index
    %c0_186 = arith.constant 0 : index
    %c0_187 = arith.constant 0 : index
    %1071 = vector.load %arg15[%c4_185, %c0_186, %c0_187] : memref<8x2x50xf32, #tpu.memory_space<vmem>>, vector<1x2x50xf32>
    %1072 = vector.shape_cast %1071 : vector<1x2x50xf32> to vector<2x50xf32>
    %cst_188 = arith.constant dense<0.000000e+00> : vector<2x50xf32>
    %1073 = tpu.matmul %924, %1072, %cst_188 {dimension_numbers = #tpu.dot_dimension_numbers<[1], [0], [0], [1], [0, 0, 1, 1], [], []>, precision = #tpu.contract_precision<fp32>} : vector<2x2xf32>, vector<2x50xf32>, vector<2x50xf32> -> vector<2x50xf32>
    %1074 = arith.addf %1070, %1073 : vector<2x50xf32>
    %1075 = arith.addf %1067, %1074 : vector<2x50xf32>
    %c5_189 = arith.constant 5 : index
    %c0_190 = arith.constant 0 : index
    %c0_191 = arith.constant 0 : index
    %1076 = vector.load %arg14[%c5_189, %c0_190, %c0_191] : memref<8x2x50xf32, #tpu.memory_space<vmem>>, vector<1x2x50xf32>
    %1077 = vector.shape_cast %1076 : vector<1x2x50xf32> to vector<2x50xf32>
    %cst_192 = arith.constant dense<0.000000e+00> : vector<2x50xf32>
    %1078 = tpu.matmul %755, %1077, %cst_192 {dimension_numbers = #tpu.dot_dimension_numbers<[1], [0], [0], [1], [0, 0, 1, 1], [], []>, precision = #tpu.contract_precision<fp32>} : vector<2x2xf32>, vector<2x50xf32>, vector<2x50xf32> -> vector<2x50xf32>
    %c5_193 = arith.constant 5 : index
    %c0_194 = arith.constant 0 : index
    %c0_195 = arith.constant 0 : index
    %1079 = vector.load %arg15[%c5_193, %c0_194, %c0_195] : memref<8x2x50xf32, #tpu.memory_space<vmem>>, vector<1x2x50xf32>
    %1080 = vector.shape_cast %1079 : vector<1x2x50xf32> to vector<2x50xf32>
    %cst_196 = arith.constant dense<0.000000e+00> : vector<2x50xf32>
    %1081 = tpu.matmul %896, %1080, %cst_196 {dimension_numbers = #tpu.dot_dimension_numbers<[1], [0], [0], [1], [0, 0, 1, 1], [], []>, precision = #tpu.contract_precision<fp32>} : vector<2x2xf32>, vector<2x50xf32>, vector<2x50xf32> -> vector<2x50xf32>
    %1082 = arith.addf %1078, %1081 : vector<2x50xf32>
    %1083 = arith.addf %1075, %1082 : vector<2x50xf32>
    %c6_197 = arith.constant 6 : index
    %c0_198 = arith.constant 0 : index
    %c0_199 = arith.constant 0 : index
    %1084 = vector.load %arg14[%c6_197, %c0_198, %c0_199] : memref<8x2x50xf32, #tpu.memory_space<vmem>>, vector<1x2x50xf32>
    %1085 = vector.shape_cast %1084 : vector<1x2x50xf32> to vector<2x50xf32>
    %cst_200 = arith.constant dense<0.000000e+00> : vector<2x50xf32>
    %1086 = tpu.matmul %783, %1085, %cst_200 {dimension_numbers = #tpu.dot_dimension_numbers<[1], [0], [0], [1], [0, 0, 1, 1], [], []>, precision = #tpu.contract_precision<fp32>} : vector<2x2xf32>, vector<2x50xf32>, vector<2x50xf32> -> vector<2x50xf32>
    %c6_201 = arith.constant 6 : index
    %c0_202 = arith.constant 0 : index
    %c0_203 = arith.constant 0 : index
    %1087 = vector.load %arg15[%c6_201, %c0_202, %c0_203] : memref<8x2x50xf32, #tpu.memory_space<vmem>>, vector<1x2x50xf32>
    %1088 = vector.shape_cast %1087 : vector<1x2x50xf32> to vector<2x50xf32>
    %cst_204 = arith.constant dense<0.000000e+00> : vector<2x50xf32>
    %1089 = tpu.matmul %868, %1088, %cst_204 {dimension_numbers = #tpu.dot_dimension_numbers<[1], [0], [0], [1], [0, 0, 1, 1], [], []>, precision = #tpu.contract_precision<fp32>} : vector<2x2xf32>, vector<2x50xf32>, vector<2x50xf32> -> vector<2x50xf32>
    %1090 = arith.addf %1086, %1089 : vector<2x50xf32>
    %1091 = arith.addf %1083, %1090 : vector<2x50xf32>
    %c7_205 = arith.constant 7 : index
    %c0_206 = arith.constant 0 : index
    %c0_207 = arith.constant 0 : index
    %1092 = vector.load %arg14[%c7_205, %c0_206, %c0_207] : memref<8x2x50xf32, #tpu.memory_space<vmem>>, vector<1x2x50xf32>
    %1093 = vector.shape_cast %1092 : vector<1x2x50xf32> to vector<2x50xf32>
    %cst_208 = arith.constant dense<0.000000e+00> : vector<2x50xf32>
    %1094 = tpu.matmul %811, %1093, %cst_208 {dimension_numbers = #tpu.dot_dimension_numbers<[1], [0], [0], [1], [0, 0, 1, 1], [], []>, precision = #tpu.contract_precision<fp32>} : vector<2x2xf32>, vector<2x50xf32>, vector<2x50xf32> -> vector<2x50xf32>
    %c7_209 = arith.constant 7 : index
    %c0_210 = arith.constant 0 : index
    %c0_211 = arith.constant 0 : index
    %1095 = vector.load %arg15[%c7_209, %c0_210, %c0_211] : memref<8x2x50xf32, #tpu.memory_space<vmem>>, vector<1x2x50xf32>
    %1096 = vector.shape_cast %1095 : vector<1x2x50xf32> to vector<2x50xf32>
    %cst_212 = arith.constant dense<0.000000e+00> : vector<2x50xf32>
    %1097 = tpu.matmul %840, %1096, %cst_212 {dimension_numbers = #tpu.dot_dimension_numbers<[1], [0], [0], [1], [0, 0, 1, 1], [], []>, precision = #tpu.contract_precision<fp32>} : vector<2x2xf32>, vector<2x50xf32>, vector<2x50xf32> -> vector<2x50xf32>
    %1098 = arith.addf %1094, %1097 : vector<2x50xf32>
    %1099 = arith.addf %1091, %1098 : vector<2x50xf32>
    %c0_213 = arith.constant 0 : index
    %c0_214 = arith.constant 0 : index
    %1100 = vector.load %arg16[%c0_213, %c0_214] : memref<1x50xf32, #tpu.memory_space<vmem>>, vector<1x50xf32>
    %1101 = vector.broadcast %1100 : vector<1x50xf32> to vector<2x50xf32>
    %1102 = arith.addf %1099, %1101 : vector<2x50xf32>
    %cst_215 = arith.constant 0.000000e+00 : f32
    %1103 = vector.broadcast %cst_215 : f32 to vector<2x50xf32>
    %1104 = arith.maximumf %1102, %1103 : vector<2x50xf32>
    %c0_216 = arith.constant 0 : index
    %c0_217 = arith.constant 0 : index
    %1105 = vector.load %arg17[%c0_216, %c0_217] : memref<50x50xf32, #tpu.memory_space<vmem>>, vector<50x50xf32>
    %cst_218 = arith.constant dense<0.000000e+00> : vector<2x50xf32>
    %1106 = tpu.matmul %1104, %1105, %cst_218 {dimension_numbers = #tpu.dot_dimension_numbers<[1], [0], [0], [1], [0, 0, 1, 1], [], []>, precision = #tpu.contract_precision<fp32>} : vector<2x50xf32>, vector<50x50xf32>, vector<2x50xf32> -> vector<2x50xf32>
    %c0_219 = arith.constant 0 : index
    %c0_220 = arith.constant 0 : index
    %1107 = vector.load %arg18[%c0_219, %c0_220] : memref<1x50xf32, #tpu.memory_space<vmem>>, vector<1x50xf32>
    %1108 = vector.broadcast %1107 : vector<1x50xf32> to vector<2x50xf32>
    %1109 = arith.addf %1106, %1108 : vector<2x50xf32>
    %cst_221 = arith.constant 0.000000e+00 : f32
    %1110 = vector.broadcast %cst_221 : f32 to vector<2x50xf32>
    %1111 = arith.maximumf %1109, %1110 : vector<2x50xf32>
    %c0_222 = arith.constant 0 : index
    %c0_223 = arith.constant 0 : index
    %1112 = vector.load %arg19[%c0_222, %c0_223] : memref<50x3xf32, #tpu.memory_space<vmem>>, vector<50x3xf32>
    %cst_224 = arith.constant dense<0.000000e+00> : vector<2x3xf32>
    %1113 = tpu.matmul %1111, %1112, %cst_224 {dimension_numbers = #tpu.dot_dimension_numbers<[1], [0], [0], [1], [0, 0, 1, 1], [], []>, precision = #tpu.contract_precision<fp32>} : vector<2x50xf32>, vector<50x3xf32>, vector<2x3xf32> -> vector<2x3xf32>
    %c0_225 = arith.constant 0 : index
    %c0_226 = arith.constant 0 : index
    %1114 = vector.load %arg20[%c0_225, %c0_226] : memref<1x3xf32, #tpu.memory_space<vmem>>, vector<1x3xf32>
    %1115 = vector.broadcast %1114 : vector<1x3xf32> to vector<2x3xf32>
    %1116 = arith.addf %1113, %1115 : vector<2x3xf32>
    %cst_227 = arith.constant dense<0xFF800000> : vector<2xf32>
    %1117 = vector.multi_reduction <maximumf>, %1116, %cst_227 [1] : vector<2x3xf32> to vector<2xf32>
    %1118 = vector.shape_cast %1117 : vector<2xf32> to vector<2x1xf32>
    %1119 = vector.broadcast %1118 : vector<2x1xf32> to vector<2x3xf32>
    %1120 = arith.subf %1116, %1119 : vector<2x3xf32>
    %1121 = math.exp %1120 : vector<2x3xf32>
    %cst_228 = arith.constant dense<0.000000e+00> : vector<2xf32>
    %1122 = vector.multi_reduction <add>, %1121, %cst_228 [1] : vector<2x3xf32> to vector<2xf32>
    %1123 = vector.shape_cast %1122 : vector<2xf32> to vector<2x1xf32>
    %1124 = vector.broadcast %1123 : vector<2x1xf32> to vector<2x3xf32>
    %1125 = arith.divf %1121, %1124 : vector<2x3xf32>
    %c0_229 = arith.constant 0 : index
    %c0_230 = arith.constant 0 : index
    %1126 = vector.load %arg21[%c0_229, %c0_230] : memref<2x3xf32, #tpu.memory_space<vmem>>, vector<2x3xf32>
    tpu.vector_store %arg21[%c0_229, %c0_230], %1125 {strides = array<i32>} : memref<2x3xf32, #tpu.memory_space<vmem>>, vector<2x3xf32>,
    return
  }
}

</mosaic_0001>

<bundles_post_ra>
// kernel: tpu_custom_call.1
= control target key start
LH: loop header
LB: loop body
LE: loop exit
PB: predicated region body
PF: predicated region fallthrough
CT: control target
= control target key end

     0   :  { %s11112_s0 = inlined_call_operand.vmem [shape: f32[8,2,5], index: 0, kind: input, shape index: {}]   ;;  %s11113_s1 = inlined_call_operand.vmem [shape: f32[5,12], index: 1, kind: input, shape index: {}]   ;;  %s11114_s2 = inlined_call_operand.hbm [shape: f32[1,12], index: 2, kind: input, shape index: {}]   ;;  %s11115_s3 = inlined_call_operand.vmem [shape: f32[2,2,6], index: 3, kind: input, shape index: {}]   ;;  %s11116_s4 = inlined_call_operand.hbm [shape: f32[2,6], index: 4, kind: input, shape index: {}]   ;;  %s11117_s5 = inlined_call_operand.hbm [shape: f32[2,2,6], index: 5, kind: input, shape index: {}]   ;;  %s11118_s6 = inlined_call_operand.hbm [shape: f32[2,6], index: 6, kind: input, shape index: {}]   ;;  %s11119_s7 = inlined_call_operand.hbm [shape: f32[2,12], index: 7, kind: input, shape index: {}]   ;;  %s11120_s8 = inlined_call_operand.hbm [shape: f32[2,12], index: 8, kind: input, shape index: {}]   ;;  %s11121_s9 = inlined_call_operand.hbm [shape: f32[1,12], index: 9, kind: input, shape index: {}]   ;;  %s11122_s10 = inlined_call_operand.hbm [shape: f32[2,2,6], index: 10, kind: input, shape index: {}]   ;;  %s11123_s11 = inlined_call_operand.hbm [shape: f32[2,6], index: 11, kind: input, shape index: {}]   ;;  %s11124_s12 = inlined_call_operand.hbm [shape: f32[2,2,6], index: 12, kind: input, shape index: {}]   ;;  %s11125_s13 = inlined_call_operand.hbm [shape: f32[2,6], index: 13, kind: input, shape index: {}]   ;;  %s11126_s14 = inlined_call_operand.vmem [shape: f32[8,2,50], index: 14, kind: input, shape index: {}]   ;;  %s11127_s15 = inlined_call_operand.vmem [shape: f32[8,2,50], index: 15, kind: input, shape index: {}]   ;;  %s11128_s16 = inlined_call_operand.hbm [shape: f32[1,50], index: 16, kind: input, shape index: {}]   ;;  %s11129_s17 = inlined_call_operand.vmem [shape: f32[50,50], index: 17, kind: input, shape index: {}]   ;;  %s11130_s18 = inlined_call_operand.hbm [shape: f32[1,50], index: 18, kind: input, shape index: {}]   ;;  %s11131_s19 = inlined_call_operand.vmem [shape: f32[50,3], index: 19, kind: input, shape index: {}]   ;;  %s11132_s20 = inlined_call_operand.vmem [shape: f32[1,3], index: 20, kind: input, shape index: {}]   ;;  %s11133_s21 = inlined_call_operand.hbm [shape: f32[2,3], index: 21, kind: output, shape index: {}]  }
   0x1   :  { %11144 = sst [smem:[#allocation77_spill]] %s11112_s0 }
   0x2   :  { %11145 = sst [smem:[#allocation78_spill]] %s11113_s1 }
   0x3   :  { %11146 = sst [smem:[#allocation79_spill]] %s11114_s2 }
   0x4   :  { %11147 = sst [smem:[#allocation80_spill]] %s11115_s3 }
   0x5   :  { %11148 = sst [smem:[#allocation81_spill]] %s11116_s4 }
   0x6   :  { %11149 = sst [smem:[#allocation82_spill]] %s11117_s5 }
   0x7   :  { %26 = vsyncpa [#allocation3], 0 }
   0x8   :  { %27 = vsyncpa [#allocation6], 0 }
   0x9   :  { %28 = vsyncpa [#allocation9], 0 }
   0xa   :  { %29 = vsyncpa [#allocation12], 0 }
   0xb   :  { %30 = vsyncpa [#allocation15], 0 }
   0xc   :  { %31 = vsyncpa [#allocation18], 0 }
   0xd   :  { %32 = vsyncpa [#allocation21], 0  ;;  %s11150_s26 = sld [smem:[#allocation81_spill]] }
  0x13   :  { %s56_s27 = sshll.u32 %s11150_s26, 4  ;;  %s57_s27 = int_to_ptr.hbm [resolvable:$true] %s56_s27 }
  0x14   :  { %33 = vsyncpa [#allocation4], 0  ;;  %s9308_s3 = smov [#allocation5]   ;;  %s80_s4 = sshll.u32 %s11118_s6, 4  ;;  %s81_s4 = int_to_ptr.hbm [resolvable:$true] %s80_s4 }
  0x15   :  { %s58_s28 = sshll.u32 %s9308_s3, 4  ;;  %s9309_s30 = smov [#allocation8]   ;;  %s59_s28 = int_to_ptr.vmem [resolvable:$true] %s58_s28 }
  0x16   :  { %61 = dma.hbm_to_vmem [thread:$0]  %s57_s27, 32, %s59_s28, [#allocation6]  }
  0x17   :  { %s82_s5 = sshll.u32 %s9309_s30, 4  ;;  %s102_s1 = sshll.u32 %s11120_s8, 4  ;;  %s83_s5 = int_to_ptr.vmem [resolvable:$true] %s82_s5  ;;  %s103_s1 = int_to_ptr.hbm [resolvable:$true] %s102_s1 }
  0x18   :  { %85 = dma.hbm_to_vmem [thread:$0]  %s81_s4, 32, %s83_s5, [#allocation9]  }
  0x19   :  { %s9310_s24 = smov [#allocation11]   ;;  %s123_s3 = sshll.u32 %s11122_s10, 4  ;;  %s124_s3 = int_to_ptr.hbm [resolvable:$true] %s123_s3 }
  0x1a   :  { %s104_s2 = sshll.u32 %s9310_s24, 4  ;;  %s9311_s6 = smov [#allocation14]   ;;  %s105_s2 = int_to_ptr.vmem [resolvable:$true] %s104_s2 }
  0x1b   :  { %107 = dma.hbm_to_vmem [thread:$0]  %s103_s1, 32, %s105_s2, [#allocation12]  }
  0x1c   :  { %s125_s27 = sshll.u32 %s9311_s6, 4  ;;  %s147_s0 = sshll.u32 %s11124_s12, 4  ;;  %s126_s27 = int_to_ptr.vmem [resolvable:$true] %s125_s27  ;;  %s148_s0 = int_to_ptr.hbm [resolvable:$true] %s147_s0 }
  0x1d   :  { %s9312_s8 = smov 32   ;;  %s9313_s30 = smov 2  }
  0x1e   :  { %131 = dma.hbm_to_vmem [thread:$0]  %s124_s3, 64, %s126_s27, [#allocation15], %s9312_s8, %s9312_s8, %s9313_s30  }
  0x1f   :  { %s176_s22 = sshll.u32 %s11128_s16, 4  ;;  %s9314_s23 = smov [#allocation17]   ;;  %s177_s22 = int_to_ptr.hbm [resolvable:$true] %s176_s22 }
  0x20   :  { %s149_s10 = sshll.u32 %s9314_s23, 4  ;;  %s9315_s1 = smov [#allocation20]   ;;  %s150_s10 = int_to_ptr.vmem [resolvable:$true] %s149_s10 }
  0x21   :  { %155 = dma.hbm_to_vmem [thread:$0]  %s148_s0, 64, %s150_s10, [#allocation18], %s9312_s8, %s9312_s8, %s9313_s30  }
  0x22   :  { %s178_s24 = sshll.u32 %s9315_s1, 4  ;;  %s11151_s25 = sld [smem:[#allocation79_spill]]  ;;  %s179_s24 = int_to_ptr.vmem [resolvable:$true] %s178_s24 }
  0x23   :  { %181 = dma.hbm_to_vmem [thread:$0]  %s177_s22, 16, %s179_s24, [#allocation21]  }
  0x24   :  { %s11152_s27 = sld [smem:[#allocation82_spill]]  ;;  %s9316_s16 = smov [#allocation2]  }
  0x25   :  { %s45_s29 = sshll.u32 %s9316_s16, 4  ;;  %s9317_s4 = smov [#allocation7]   ;;  %s46_s29 = int_to_ptr.vmem [resolvable:$true] %s45_s29 }
  0x26   :  { %s68_s0 = sshll.u32 %s9317_s4, 4  ;;  %s91_s10 = sshll.u32 %s11119_s7, 4  ;;  %s69_s0 = int_to_ptr.vmem [resolvable:$true] %s68_s0  ;;  %s92_s10 = int_to_ptr.hbm [resolvable:$true] %s91_s10 }
  0x27   :  { %s113_s24 = sshll.u32 %s11121_s9, 4  ;;  %s9318_s2 = smov [#allocation10]   ;;  %s114_s24 = int_to_ptr.hbm [resolvable:$true] %s113_s24 }
  0x28   :  { %s43_s26 = sshll.u32 %s11151_s25, 4  ;;  %s93_s12 = sshll.u32 %s9318_s2, 4  ;;  %s44_s26 = int_to_ptr.hbm [resolvable:$true] %s43_s26  ;;  %s94_s12 = int_to_ptr.vmem [resolvable:$true] %s93_s12 }
  0x29   :  { %48 = dma.hbm_to_vmem [thread:$0]  %s44_s26, 16, %s46_s29, [#allocation3]  }
  0x2a   :  { %s66_s28 = sshll.u32 %s11152_s27, 4  ;;  %s9319_s25 = smov [#allocation13]   ;;  %s67_s28 = int_to_ptr.hbm [resolvable:$true] %s66_s28 }
  0x2b   :  { %74 = dma.hbm_to_vmem [thread:$0]  %s67_s28, 64, %s69_s0, [#allocation6], %s9312_s8, %s9312_s8, %s9313_s30  }
  0x2c   :  { %96 = dma.hbm_to_vmem [thread:$0]  %s92_s10, 32, %s94_s12, [#allocation9]  }
  0x2d   :  { %s115_s26 = sshll.u32 %s9319_s25, 4  ;;  %s137_s27 = sshll.u32 %s11123_s11, 4  ;;  %s116_s26 = int_to_ptr.vmem [resolvable:$true] %s115_s26  ;;  %s138_s27 = int_to_ptr.hbm [resolvable:$true] %s137_s27 }
  0x2e   :  { %118 = dma.hbm_to_vmem [thread:$0]  %s114_s24, 16, %s116_s26, [#allocation12]  }
  0x2f   :  { %s161_s28 = sshll.u32 %s11125_s13, 4  ;;  %s9320_s16 = smov [#allocation16]   ;;  %s162_s28 = int_to_ptr.hbm [resolvable:$true] %s161_s28 }
  0x30   :  { %s139_s9 = sshll.u32 %s9320_s16, 4  ;;  %s9321_s29 = smov [#allocation19]   ;;  %s140_s9 = int_to_ptr.vmem [resolvable:$true] %s139_s9 }
  0x31   :  { %142 = dma.hbm_to_vmem [thread:$0]  %s138_s27, 32, %s140_s9, [#allocation15]  }
  0x32   :  { %s163_s4 = sshll.u32 %s9321_s29, 4  ;;  %s189_s23 = sshll.u32 %s11130_s18, 4  ;;  %s164_s4 = int_to_ptr.vmem [resolvable:$true] %s163_s4  ;;  %s190_s23 = int_to_ptr.hbm [resolvable:$true] %s189_s23 }
  0x33   :  { %166 = dma.hbm_to_vmem [thread:$0]  %s162_s28, 32, %s164_s4, [#allocation18]  }
  0x34   :  { %s9322_s11 = smov [#allocation22]  }
  0x35   :  { %s191_s10 = sshll.u32 %s9322_s11, 4  ;;  %s192_s10 = int_to_ptr.vmem [resolvable:$true] %s191_s10 }
  0x36   :  { %194 = dma.hbm_to_vmem [thread:$0]  %s190_s23, 16, %s192_s10, [#allocation21]  }
  0x37   :  { %9292 = dma.done.wait [#allocation3], 16  }
  0x38   :  { %9293 = vsyncadd [#allocation3], 4294967280 }
  0x39   :  { %9294 = dma.done.wait [#allocation6], 96  }
  0x3a   :  { %9295 = vsyncadd [#allocation6], 4294967200 }
  0x3b   :  { %9296 = dma.done.wait [#allocation9], 64  }
  0x3c   :  { %9297 = vsyncadd [#allocation9], 4294967232 }
  0x3d   :  { %9298 = dma.done.wait [#allocation12], 48  }
  0x3e   :  { %9299 = vsyncadd [#allocation12], 4294967248 }
  0x3f   :  { %9300 = dma.done.wait [#allocation15], 96  }
  0x40   :  { %9301 = vsyncadd [#allocation15], 4294967200 }
  0x41   :  { %9302 = dma.done.wait [#allocation18], 96  }
  0x42   :  { %9303 = vsyncadd [#allocation18], 4294967200 }
  0x43   :  { %9304 = dma.done.wait [#allocation21], 32  }
  0x44   :  { %9305 = vsyncadd [#allocation21], 4294967264  ;;  %vm261_vm0 = vcmask 1044480   ;;  %vm257_vm1 = vcmask 39936   ;;  %s11153_s22 = sld [smem:[#allocation78_spill]]  ;;  %s9323_s5 = smov 6  }
  0x45   :  { %s11154_s2 = sld [smem:[#allocation77_spill]]  ;;  %v9571_v56 = vld [vmem:[#allocation7] sm:$0x3]  ;;  %v9573_v57 = vld [vmem:[#allocation7 + $0x2] sm:$0x3]  ;;  %s9324_s23 = smov 4  }
  0x46   :  { %v9575_v58 = vld [vmem:[#allocation8] sm:$0x3]  ;;  %v1891_v60 = vmul.f32 0.0, %v9571_v56  ;;  %v1893_v61 = vmul.f32 0.0, %v9573_v57  ;;  %s9325_s11 = smov 126   ;;  %s11155_s18 = sld [smem:[#allocation80_spill]] }
  0x47   :  { %s9328_s24 = smov 124   ;;  %s9331_s3 = smov 120  }
  0x48   :  { %v1892_v63 = vadd.f32 %v1891_v60, %v9575_v58  ;;  %s8594_s4 = sshll.u32 %s11133_s21, 4  ;;  %s8595_s4 = int_to_ptr.hbm [resolvable:$true] %s8594_s4 }
  0x4a   :  { %v251_v0 = vld [vmem:[%s11153_s22] sm:$0x1f] }
  0x4b   :  { %v253_v1 = vld [vmem:[%s11154_s2] sm:$0x3]  ;;  %v8610_v2 = vld [vmem:[%s11154_s2 + $0x2] sm:$0x3]  ;;  %v263_v3 = vsel %vm261_vm0, %v251_v0, 0 }
  0x4c   :  { %v259_v4 = vsel %vm257_vm1, %v253_v1, 0  ;;  %v414_v5 = vsel %vm257_vm1, %v8610_v2, 0  ;;  %v9496_v6 = vand.u32 4294901760, %v263_v3  ;;  %v8611_v20 = vld [vmem:[%s11154_s2 + $0x4] sm:$0x3]  ;;  %v1894_v1 = vadd.f32 %v1893_v61, %v1892_v63 }
  0x4d   :  { %v282_v7 = vand.u32 4294901760, %v259_v4  ;;  %v433_v8 = vand.u32 4294901760, %v414_v5  ;;  %v565_v22 = vsel %vm257_vm1, %v8611_v20, 0  ;;  %v8612_v23 = vld [vmem:[%s11154_s2 + $0x6] sm:$0x3] }
  0x4e   :  { %v9499_v9 = vsub.f32 %v263_v3, %v9496_v6  ;;  %281 = vmatpush.msra.mxu0 %v9496_v6  ;;  %357 = vmatpush.msra.mxu3 %v9496_v6  ;;  %v584_v24 = vand.u32 4294901760, %v565_v22  ;;  %v716_v25 = vsel %vm257_vm1, %v8612_v23, 0  ;;  %v8613_v34 = vld [vmem:[%s11154_s2 + $0x8] sm:$0x3]  ;;  %v8614_v37 = vld [vmem:[%s11154_s2 + $0xa] sm:$0x3] }
  0x4f   :  { %v283_v10 = vsub.f32 %v259_v4, %v282_v7  ;;  %v434_v11 = vsub.f32 %v414_v5, %v433_v8  ;;  %v735_v26 = vand.u32 4294901760, %v716_v25  ;;  %v867_v36 = vsel %vm257_vm1, %v8613_v34, 0  ;;  %v8615_v48 = vld [vmem:[%s11154_s2 + $0xc] sm:$0x3]  ;;  %v8616_v51 = vld [vmem:[%s11154_s2 + $0xe] sm:$0x3]  ;;  %1896 = vrot.lane.b32.xlu0 %v1894_v1, %s9323_s5 }
  0x50   :  { %334 = vmatpush.msra.mxu2 %v9499_v9  ;;  %v9505_v13 = vand.u32 4294901760, %v9499_v9  ;;  %v585_v27 = vsub.f32 %v565_v22, %v584_v24  ;;  %v886_v38 = vand.u32 4294901760, %v867_v36  ;;  %v1018_v39 = vsel %vm257_vm1, %v8614_v37, 0 }
  0x51   :  { %v284_v12 = vand.u32 4294901760, %v283_v10  ;;  %v435_v14 = vand.u32 4294901760, %v434_v11  ;;  %337 = vmatmul.f32.vlgmr.msra.gmra.mxu2 %v283_v10  ;;  %v736_v28 = vsub.f32 %v716_v25, %v735_v26  ;;  %v1037_v40 = vand.u32 4294901760, %v1018_v39 }
  0x52   :  { %432 = vmatpush.msrb.mxu2 %v9496_v6  ;;  %v309_v16 = vsub.f32 %v9499_v9, %v9505_v13  ;;  %383 = vmatpush.msrb.mxu0 %v9505_v13  ;;  %v586_v29 = vand.u32 4294901760, %v585_v27  ;;  %v887_v41 = vsub.f32 %v867_v36, %v886_v38  ;;  %v1169_v50 = vsel %vm257_vm1, %v8615_v48, 0 }
  0x53   :  { %v285_v15 = vsub.f32 %v283_v10, %v284_v12  ;;  %361 = vmatmul.f32.vlgmr.msra.gmra.mxu3 %v284_v12  ;;  %v436_v17 = vsub.f32 %v434_v11, %v435_v14  ;;  %v737_v30 = vand.u32 4294901760, %v736_v28  ;;  %v1038_v42 = vsub.f32 %v1018_v39, %v1037_v40 }
  0x54   :  { %534 = vmatpush.msra.mxu2 %v9505_v13  ;;  %v9512_v19 = vand.u32 4294901760, %v309_v16  ;;  %v587_v31 = vsub.f32 %v585_v27, %v586_v29  ;;  %v888_v43 = vand.u32 4294901760, %v887_v41  ;;  %v1188_v52 = vand.u32 4294901760, %v1169_v50 }
  0x55   :  { %v286_v18 = vand.u32 4294901760, %v285_v15  ;;  %v437_v21 = vand.u32 4294901760, %v436_v17  ;;  %v738_v32 = vsub.f32 %v736_v28, %v737_v30  ;;  %v1039_v44 = vand.u32 4294901760, %v1038_v42 }
  0x56   :  { %462 = vmatpush.msrb.mxu3 %v9512_v19  ;;  %311 = vmatpush.msra.mxu1 %v9512_v19  ;;  %v588_v33 = vand.u32 4294901760, %v587_v31  ;;  %v889_v45 = vsub.f32 %v887_v41, %v888_v43  ;;  %v1320_v53 = vsel %vm257_vm1, %v8616_v51, 0  ;;  %v1189_v55 = vsub.f32 %v1169_v50, %v1188_v52 }
  0x57   :  { %287 = vmatmul.f32.vlgmr.msra.gmra.mxu0 %v286_v18  ;;  %313 = vmatmul.f32.vlgmr.msra.gmra.mxu1 %v282_v7  ;;  %v739_v35 = vand.u32 4294901760, %v738_v32  ;;  %v1040_v46 = vsub.f32 %v1038_v42, %v1039_v44  ;;  %v1339_v54 = vand.u32 4294901760, %v1320_v53 }
  0x58   :  { %485 = vmatpush.msra.mxu0 %v9499_v9  ;;  %556 = vmatpush.msra.mxu3 %v9496_v6  ;;  %v890_v47 = vand.u32 4294901760, %v889_v45  ;;  %v1190_v62 = vand.u32 4294901760, %v1189_v55 }
  0x59   :  { %405 = vmatpush.msrb.mxu1 %v9496_v6  ;;  %438 = vmatmul.f32.vlgmr.msrb.gmra.mxu2 %v437_v21  ;;  %v1041_v49 = vand.u32 4294901760, %v1040_v46  ;;  %v1340_v59 = vsub.f32 %v1320_v53, %v1339_v54  ;;  %v9671_v46 = vld [vmem:[#allocation2] ss:$0 sm:$0xff] }
  0x5a   :  { %636 = vmatpush.msrb.mxu2 %v9499_v9  ;;  %v1191_v2 = vsub.f32 %v1189_v55, %v1190_v62  ;;  %1919 = vrot.lane.b32.xlu0 %v1894_v1, %s9313_s30 }
  0x5b   :  { %464 = vmatmul.f32.vlgmr.msrb.gmra.mxu3 %v433_v8  ;;  %508 = vmatpush.msra.mxu1 %v9496_v6  ;;  %v1341_v0 = vand.u32 4294901760, %v1340_v59 }
  0x5c   :  { %659 = vmatpush.msrb.mxu3 %v9496_v6  ;;  %v1192_v4 = vand.u32 4294901760, %v1191_v2 }
  0x5d   :  { %v1342_v3 = vsub.f32 %v1340_v59, %v1341_v0 }
  0x5f   :  { %385 = vmatmul.f32.vlgmr.msrb.gmra.mxu0 %v282_v7  ;;  %407 = vmatmul.f32.vlgmr.msrb.gmra.mxu1 %v282_v7  ;;  %v1343_v5 = vand.u32 4294901760, %v1342_v3 }
  0x60   :  { %583 = vmatpush.msrb.mxu0 %v9496_v6  ;;  %613 = vmatpush.msrb.mxu1 %v9512_v19 }
  0x61   :  { %536 = vmatmul.f32.vlgmr.msra.gmra.mxu2 %v433_v8 }
  0x62   :  { %734 = vmatpush.msra.mxu2 %v9496_v6 }
  0x63   :  { %558 = vmatmul.f32.vlgmr.msra.gmra.mxu3 %v433_v8 }
  0x64   :  { %764 = vmatpush.msra.mxu3 %v9512_v19 }
  0x67   :  { %488 = vmatmul.f32.vlgmr.msra.gmra.mxu0 %v434_v11  ;;  %512 = vmatmul.f32.vlgmr.msra.gmra.mxu1 %v435_v14 }
  0x68   :  { %685 = vmatpush.msra.mxu0 %v9505_v13  ;;  %707 = vmatpush.msra.mxu1 %v9496_v6 }
  0x69   :  { %639 = vmatmul.f32.vlgmr.msrb.gmra.mxu2 %v585_v27 }
  0x6a   :  { %836 = vmatpush.msrb.mxu2 %v9505_v13 }
  0x6b   :  { %663 = vmatmul.f32.vlgmr.msrb.gmra.mxu3 %v586_v29 }
  0x6c   :  { %858 = vmatpush.msrb.mxu3 %v9496_v6 }
  0x6f   :  { %589 = vmatmul.f32.vlgmr.msrb.gmra.mxu0 %v588_v33  ;;  %615 = vmatmul.f32.vlgmr.msrb.gmra.mxu1 %v584_v24 }
  0x70   :  { %787 = vmatpush.msrb.mxu0 %v9499_v9  ;;  %810 = vmatpush.msrb.mxu1 %v9496_v6 }
  0x71   :  { %740 = vmatmul.f32.vlgmr.msra.gmra.mxu2 %v739_v35 }
  0x72   :  { %938 = vmatpush.msra.mxu2 %v9499_v9 }
  0x73   :  { %766 = vmatmul.f32.vlgmr.msra.gmra.mxu3 %v735_v26 }
  0x74   :  { %961 = vmatpush.msra.mxu3 %v9496_v6 }
  0x77   :  { %687 = vmatmul.f32.vlgmr.msra.gmra.mxu0 %v584_v24  ;;  %709 = vmatmul.f32.vlgmr.msra.gmra.mxu1 %v584_v24 }
  0x78   :  { %885 = vmatpush.msra.mxu0 %v9496_v6  ;;  %915 = vmatpush.msra.mxu1 %v9512_v19 }
  0x79   :  { %838 = vmatmul.f32.vlgmr.msrb.gmra.mxu2 %v735_v26 }
  0x7a   :  { %1036 = vmatpush.msrb.mxu2 %v9496_v6 }
  0x7b   :  { %860 = vmatmul.f32.vlgmr.msrb.gmra.mxu3 %v735_v26 }
  0x7c   :  { %1066 = vmatpush.msrb.mxu3 %v9512_v19 }
  0x7f   :  { %790 = vmatmul.f32.vlgmr.msrb.gmra.mxu0 %v736_v28  ;;  %814 = vmatmul.f32.vlgmr.msrb.gmra.mxu1 %v737_v30 }
  0x80   :  { %987 = vmatpush.msrb.mxu0 %v9505_v13  ;;  %1009 = vmatpush.msrb.mxu1 %v9496_v6 }
  0x81   :  { %941 = vmatmul.f32.vlgmr.msra.gmra.mxu2 %v887_v41 }
  0x82   :  { %1138 = vmatpush.msra.mxu2 %v9505_v13 }
  0x83   :  { %965 = vmatmul.f32.vlgmr.msra.gmra.mxu3 %v888_v43 }
  0x84   :  { %1160 = vmatpush.msra.mxu3 %v9496_v6 }
  0x87   :  { %891 = vmatmul.f32.vlgmr.msra.gmra.mxu0 %v890_v47  ;;  %917 = vmatmul.f32.vlgmr.msra.gmra.mxu1 %v886_v38 }
  0x88   :  { %1089 = vmatpush.msra.mxu0 %v9499_v9  ;;  %1112 = vmatpush.msra.mxu1 %v9496_v6 }
  0x89   :  { %1042 = vmatmul.f32.vlgmr.msrb.gmra.mxu2 %v1041_v49 }
  0x8a   :  { %1240 = vmatpush.msrb.mxu2 %v9499_v9 }
  0x8b   :  { %1068 = vmatmul.f32.vlgmr.msrb.gmra.mxu3 %v1037_v40 }
  0x8c   :  { %1263 = vmatpush.msrb.mxu3 %v9496_v6 }
  0x8f   :  { %989 = vmatmul.f32.vlgmr.msrb.gmra.mxu0 %v886_v38  ;;  %1011 = vmatmul.f32.vlgmr.msrb.gmra.mxu1 %v886_v38 }
  0x90   :  { %1187 = vmatpush.msrb.mxu0 %v9496_v6  ;;  %1217 = vmatpush.msrb.mxu1 %v9512_v19 }
  0x91   :  { %1140 = vmatmul.f32.vlgmr.msra.gmra.mxu2 %v1037_v40 }
  0x92   :  { %1338 = vmatpush.msra.mxu2 %v9496_v6 }
  0x93   :  { %1162 = vmatmul.f32.vlgmr.msra.gmra.mxu3 %v1037_v40 }
  0x94   :  { %1368 = vmatpush.msra.mxu3 %v9512_v19 }
  0x97   :  { %1092 = vmatmul.f32.vlgmr.msra.gmra.mxu0 %v1038_v42  ;;  %1116 = vmatmul.f32.vlgmr.msra.gmra.mxu1 %v1039_v44 }
  0x98   :  { %1289 = vmatpush.msra.mxu0 %v9505_v13  ;;  %1311 = vmatpush.msra.mxu1 %v9496_v6 }
  0x99   :  { %1243 = vmatmul.f32.vlgmr.msrb.gmra.mxu2 %v1189_v55 }
  0x9a   :  { %1440 = vmatpush.msrb.mxu2 %v9505_v13 }
  0x9b   :  { %1267 = vmatmul.f32.vlgmr.msrb.gmra.mxu3 %v1190_v62 }
  0x9c   :  { %1462 = vmatpush.msrb.mxu3 %v9496_v6 }
  0x9f   :  { %1193 = vmatmul.f32.vlgmr.msrb.gmra.mxu0 %v1192_v4  ;;  %1219 = vmatmul.f32.vlgmr.msrb.gmra.mxu1 %v1188_v52 }
  0xa0   :  { %1391 = vmatpush.msrb.mxu0 %v9499_v9  ;;  %1414 = vmatpush.msrb.mxu1 %v9496_v6 }
  0xa1   :  { %1344 = vmatmul.f32.vlgmr.msra.gmra.mxu2 %v1343_v5 }
  0xa3   :  { %1370 = vmatmul.f32.vlgmr.msra.gmra.mxu3 %v1339_v54 }
  0xa7   :  { %1291 = vmatmul.f32.vlgmr.msra.gmra.mxu0 %v1188_v52  ;;  %1313 = vmatmul.f32.vlgmr.msra.gmra.mxu1 %v1188_v52 }
  0xa9   :  { %1442 = vmatmul.f32.vlgmr.msrb.gmra.mxu2 %v1339_v54 }
  0xab   :  { %1464 = vmatmul.f32.vlgmr.msrb.gmra.mxu3 %v1339_v54 }
  0xaf   :  { %1394 = vmatmul.f32.vlgmr.msrb.gmra.mxu0 %v1340_v59  ;;  %1418 = vmatmul.f32.vlgmr.msrb.gmra.mxu1 %v1341_v0 }
  0xc1   :  { %v1897_v63 = vpop.permute.xlu0 %1896 }
  0xd4   :  { %v9591_v7 = vpop.f32.mrf.mxu0  ;;  %v9593_v8 = vpop.f32.mrf.mxu2 }
  0xd5   :  { %v9595_v10 = vpop.f32.mrf.mxu1 }
  0xd6   :  { %v9597_v9 = vpop.f32.mrf.mxu3 }
  0xdc   :  { %v9599_v11 = vpop.f32.mrf.mxu0  ;;  %v9601_v12 = vpop.f32.mrf.mxu2 }
  0xdd   :  { %v9603_v6 = vpop.f32.mrf.mxu1 }
  0xde   :  { %v9605_v13 = vpop.f32.mrf.mxu3 }
  0xe4   :  { %v9607_v14 = vpop.f32.mrf.mxu0  ;;  %v9609_v15 = vpop.f32.mrf.mxu2 }
  0xe5   :  { %v9611_v16 = vpop.f32.mrf.mxu1 }
  0xe6   :  { %v9613_v17 = vpop.f32.mrf.mxu3 }
  0xec   :  { %v9615_v18 = vpop.f32.mrf.mxu0  ;;  %v9617_v19 = vpop.f32.mrf.mxu2 }
  0xed   :  { %v9619_v20 = vpop.f32.mrf.mxu1 }
  0xee   :  { %v9621_v21 = vpop.f32.mrf.mxu3 }
  0xf4   :  { %v9623_v22 = vpop.f32.mrf.mxu0  ;;  %v9625_v23 = vpop.f32.mrf.mxu2 }
  0xf5   :  { %v9627_v24 = vpop.f32.mrf.mxu1 }
  0xf6   :  { %v9629_v25 = vpop.f32.mrf.mxu3 }
  0xfc   :  { %v9631_v26 = vpop.f32.mrf.mxu0  ;;  %v9633_v27 = vpop.f32.mrf.mxu2 }
  0xfd   :  { %v9635_v28 = vpop.f32.mrf.mxu1 }
  0xfe   :  { %v9637_v29 = vpop.f32.mrf.mxu3 }
 0x104   :  { %v9639_v30 = vpop.f32.mrf.mxu0  ;;  %v9641_v31 = vpop.f32.mrf.mxu2 }
 0x105   :  { %v9643_v32 = vpop.f32.mrf.mxu1 }
 0x106   :  { %v9645_v33 = vpop.f32.mrf.mxu3 }
 0x10c   :  { %v9647_v34 = vpop.f32.mrf.mxu0  ;;  %v9649_v35 = vpop.f32.mrf.mxu2 }
 0x10d   :  { %v9651_v36 = vpop.f32.mrf.mxu1 }
 0x10e   :  { %v9653_v37 = vpop.f32.mrf.mxu3 }
 0x114   :  { %v9655_v38 = vpop.f32.mrf.mxu0  ;;  %v9657_v39 = vpop.f32.mrf.mxu2 }
 0x115   :  { %v9659_v40 = vpop.f32.mrf.mxu1 }
 0x116   :  { %v9661_v41 = vpop.f32.mrf.mxu3 }
 0x11c   :  { %v9663_v42 = vpop.f32.mrf.mxu0  ;;  %v9665_v43 = vpop.f32.mrf.mxu2 }
 0x11d   :  { %v9667_v44 = vpop.f32.mrf.mxu1 }
 0x11e   :  { %v9669_v45 = vpop.f32.mrf.mxu3 }
 0x124   :  { %v9673_v47 = vpop.f32.mrf.mxu0  ;;  %v1345_v48 = vpop.f32.mrf.mxu2 }
 0x125   :  { %v9675_v49 = vpop.f32.mrf.mxu1  ;;  %v1346_v50 = vadd.f32 %v9671_v46, %v1345_v48 }
 0x126   :  { %v1371_v51 = vpop.f32.mrf.mxu3 }
 0x127   :  { %v1372_v52 = vadd.f32 %v1371_v51, %v1346_v50 }
 0x12c   :  { %v1395_v53 = vpop.f32.mrf.mxu0  ;;  %v1443_v59 = vpop.f32.mrf.mxu2 }
 0x12d   :  { %v1396_v54 = vadd.f32 %v1395_v53, %v1372_v52  ;;  %v1419_v55 = vpop.f32.mrf.mxu1 }
 0x12e   :  { %v1465_v61 = vpop.f32.mrf.mxu3 }
 0x12f   :  { %v1420_v60 = vadd.f32 %v1419_v55, %v1396_v54  ;;  %v1920_v55 = vpop.permute.xlu0 %1919 }
 0x131   :  { %v1444_v62 = vadd.f32 %v1443_v59, %v1420_v60 }
 0x133   :  { %v9678_v0 = vadd.f32 %v1465_v61, %v1444_v62 }
 0x135   :  { %v1899_v1 = vadd.f32 %v1897_v63, %v9678_v0 }
 0x137   :  { %v8626_v2 = vmul.f32 -1.442695, %v1899_v1 }
 0x139   :  { %8748 = vpow2.f32 %v8626_v2 }
 0x13f   :  { %v8749_v3 = vpop.eup %8748 }
 0x140   :  { %v1903_v4 = vadd.f32 1.0, %v8749_v3  ;;  %v11138_v3 = vmov 8  }
 0x141   :  { %8689 = vset.pattern.permute.xlu2 %v11138_v3  ;;  %8691 = vset.pattern.permute.xlu1 %v11138_v3 }
 0x142   :  { %8750 = vrcp.f32 %v1903_v4  ;;  %v1915_v51 = vand.u32 2147483648, %v1903_v4  ;;  %v1913_v53 = vand.u32 2147483647, %v1903_v4  ;;  %vm1909_vm3 = vweird.f32 %v1903_v4  ;;  %8694 = vset.pattern.permute.xlu0 %v11138_v3 }
 0x144   :  { %v1916_v59 = vor.u32 1.1754944e-38, %v1915_v51  ;;  %vm1914_vm5 = vcmp.eq.f32.partialorder %v1913_v53, 8.507059e+37 }
 0x148   :  { %v8751_v5 = vpop.eup %8750 }
 0x149   :  { %v1905_v48 = vmul.f32 %v8751_v5, %v1903_v4  ;;  %vm1910_vm2 = vweird.f32 %v8751_v5 }
 0x14a   :  { %vm1911_vm4 = vmor %vm1909_vm3, %vm1910_vm2 }
 0x14b   :  { %v1906_v50 = vsub.f32 1.0, %v1905_v48 }
 0x14d   :  { %v1907_v52 = vmul.f32 %v8751_v5, %v1906_v50 }
 0x14f   :  { %v1908_v54 = vadd.f32 %v8751_v5, %v1907_v52  ;;  %v11136_v52 = vmov 9  }
 0x151   :  { %v1912_v60 = vsel %vm1911_vm4, %v8751_v5, %v1908_v54 }
 0x152   :  { %v1917_v61 = vsel %vm1914_vm5, %v1916_v59, %v1912_v60 }
 0x153   :  { %v1922_v62 = vmul.f32 %v1920_v55, %v1917_v61  ;;  %v1929_v4 = vsub.f32 1.0, %v1917_v61  ;;  %v1935_v48 = vmul.f32 0.0, %v1917_v61  ;;  %v1195_v61 = vadd.f32 %v9671_v46, %v9663_v42 }
 0x155   :  { %1924 = vrot.lane.b32.xlu1 %v1922_v62, %s9324_s23 }
 0x1c7   :  { %v1925_v63 = vpop.permute.xlu1 %1924 }
 0x1c8   :  { %v1927_v1 = vadd.f32 %v1925_v63, %v9678_v0  ;;  %v1221_v63 = vadd.f32 %v9667_v44, %v1195_v61 }
 0x1ca   :  { %8752 = vtanh.f32 %v1927_v1  ;;  %v1245_v1 = vadd.f32 %v9665_v43, %v1221_v63 }
 0x1d0   :  { %v8753_v2 = vpop.eup %8752 }
 0x1d1   :  { %1931 = vrot.lane.b32.xlu1 %v8753_v2, %s9325_s11  ;;  %v1269_v2 = vadd.f32 %v9669_v45, %v1245_v1 }
 0x243   :  { %v1932_v5 = vpop.permute.xlu1 %1931 }
 0x244   :  { %v1934_v50 = vmul.f32 %v1932_v5, %v1929_v4  ;;  %v1293_v4 = vadd.f32 %v9673_v47, %v1269_v2 }
 0x246   :  { %v9687_v51 = vadd.f32 %v1935_v48, %v1934_v50  ;;  %v9704_v5 = vadd.f32 %v9675_v49, %v1293_v4 }
 0x248   :  { %1939 = vperm.xlu2 %8689, %v9687_v51  }
 0x250   :  { %8690 = vset.pattern.permute.xlu2 %v11136_v52 }
 0x251   :  { %1945 = vperm.xlu2 %8690, %v9687_v51  }
 0x2a2   :  { %v1940_v53 = vpop.permute.xlu2 %1939 }
 0x2a3   :  { %v1942_v54 = vmul.f32 %v1940_v53, %v9571_v56 }
 0x2a5   :  { %v1943_v60 = vadd.f32 %v1942_v54, %v9575_v58 }
 0x2ab   :  { %v1946_v55 = vpop.permute.xlu2 %1945 }
 0x2ac   :  { %v1948_v59 = vmul.f32 %v1946_v55, %v9573_v57 }
 0x2ae   :  { %v1949_v62 = vadd.f32 %v1948_v59, %v1943_v60 }
 0x2b0   :  { %1974 = vrot.lane.b32.xlu1 %v1949_v62, %s9313_s30  ;;  %1951 = vrot.lane.b32.xlu0 %v1949_v62, %s9323_s5 }
 0x322   :  { %v1952_v48 = vpop.permute.xlu0 %1951  ;;  %v1975_v61 = vpop.permute.xlu1 %1974 }
 0x323   :  { %v1954_v50 = vadd.f32 %v1952_v48, %v9704_v5  ;;  %v9712_v48 = vld [vmem:[%s11155_s18] sm:$0x3] }
 0x325   :  { %v8627_v53 = vmul.f32 -1.442695, %v1954_v50  ;;  %v1484_v50 = vmul.f32 0.0, %v9712_v48 }
 0x327   :  { %8754 = vpow2.f32 %v8627_v53 }
 0x32d   :  { %v8755_v54 = vpop.eup %8754 }
 0x32e   :  { %v1958_v55 = vadd.f32 1.0, %v8755_v54  ;;  %v9718_v54 = vld [vmem:[%s11155_s18 + $0x2] sm:$0x3] }
 0x330   :  { %8756 = vrcp.f32 %v1958_v55  ;;  %v1970_v60 = vand.u32 2147483648, %v1958_v55  ;;  %v1968_v45 = vand.u32 2147483647, %v1958_v55  ;;  %vm1964_vm7 = vweird.f32 %v1958_v55 }
 0x332   :  { %v1971_v47 = vor.u32 1.1754944e-38, %v1970_v60  ;;  %vm1969_vm9 = vcmp.eq.f32.partialorder %v1968_v45, 8.507059e+37  ;;  %v289_v60 = vadd.f32 %v9671_v46, %v9591_v7 }
 0x336   :  { %v8757_v42 = vpop.eup %8756 }
 0x337   :  { %v1960_v59 = vmul.f32 %v8757_v42, %v1958_v55  ;;  %vm1965_vm6 = vweird.f32 %v8757_v42  ;;  %v9720_v55 = vld [vmem:[#allocation5] sm:$0x3] }
 0x338   :  { %vm1966_vm8 = vmor %vm1964_vm7, %vm1965_vm6 }
 0x339   :  { %v1961_v44 = vsub.f32 1.0, %v1960_v59  ;;  %v1486_v59 = vmul.f32 0.0, %v9718_v54 }
 0x33b   :  { %v1962_v43 = vmul.f32 %v8757_v42, %v1961_v44 }
 0x33d   :  { %v1963_v62 = vadd.f32 %v8757_v42, %v1962_v43  ;;  %v315_v43 = vadd.f32 %v9595_v10, %v289_v60 }
 0x33f   :  { %v1967_v49 = vsel %vm1966_vm8, %v8757_v42, %v1963_v62  ;;  %v1485_v42 = vadd.f32 %v1484_v50, %v9720_v55  ;;  %v339_v45 = vadd.f32 %v9593_v8, %v315_v43 }
 0x340   :  { %v1972_v63 = vsel %vm1969_vm9, %v1971_v47, %v1967_v49 }
 0x341   :  { %v1977_v1 = vmul.f32 %v1975_v61, %v1972_v63  ;;  %v1487_v44 = vadd.f32 %v1486_v59, %v1485_v42  ;;  %v363_v62 = vadd.f32 %v9597_v9, %v339_v45  ;;  %v1984_v42 = vsub.f32 1.0, %v1972_v63 }
 0x342   :  { %v1990_v9 = vmul.f32 %v1972_v63, %v9687_v51 }
 0x343   :  { %1979 = vrot.lane.b32.xlu2 %v1977_v1, %s9324_s23  ;;  %v387_v47 = vadd.f32 %v9599_v11, %v363_v62 }
 0x345   :  { %v9733_v49 = vadd.f32 %v9603_v6, %v387_v47 }
 0x347   :  { %v1488_v61 = vadd.f32 %v1487_v44, %v9733_v49 }
 0x349   :  { %v8618_v1 = vmul.f32 -1.442695, %v1488_v61 }
 0x39d   :  { %v1980_v2 = vpop.permute.xlu2 %1979 }
 0x39e   :  { %v1982_v4 = vadd.f32 %v1980_v2, %v9704_v5 }
 0x3a0   :  { %8758 = vtanh.f32 %v1982_v4 }
 0x3a1   :  { %8760 = vpow2.f32 %v8618_v1 }
 0x3a6   :  { %v8759_v53 = vpop.eup %8758 }
 0x3a7   :  { %1986 = vrot.lane.b32.xlu0 %v8759_v53, %s9325_s11  ;;  %v8761_v2 = vpop.eup %8760 }
 0x3a8   :  { %v1492_v4 = vadd.f32 1.0, %v8761_v2 }
 0x3aa   :  { %8762 = vrcp.f32 %v1492_v4  ;;  %v1504_v6 = vand.u32 2147483648, %v1492_v4  ;;  %vm1498_vm11 = vweird.f32 %v1492_v4 }
 0x3ac   :  { %v1505_v45 = vor.u32 1.1754944e-38, %v1504_v6 }
 0x3af   :  { %1509 = vrot.lane.b32.xlu0 %v1487_v44, %s9328_s24  ;;  %v1502_v44 = vand.u32 2147483647, %v1492_v4 }
 0x3b0   :  { %v8763_v50 = vpop.eup %8762 }
 0x3b1   :  { %v1494_v7 = vmul.f32 %v8763_v50, %v1492_v4  ;;  %vm1499_vm10 = vweird.f32 %v8763_v50  ;;  %vm1503_vm13 = vcmp.eq.f32.partialorder %v1502_v44, 8.507059e+37 }
 0x3b2   :  { %vm1500_vm12 = vmor %vm1498_vm11, %vm1499_vm10 }
 0x3b3   :  { %v1495_v53 = vsub.f32 1.0, %v1494_v7 }
 0x3b5   :  { %v1496_v10 = vmul.f32 %v8763_v50, %v1495_v53 }
 0x3b7   :  { %v1497_v11 = vadd.f32 %v8763_v50, %v1496_v10 }
 0x3b9   :  { %v1501_v43 = vsel %vm1500_vm12, %v8763_v50, %v1497_v11 }
 0x3ba   :  { %v1506_v47 = vsel %vm1503_vm13, %v1505_v45, %v1501_v43 }
 0x3bb   :  { %v1519_v6 = vsub.f32 1.0, %v1506_v47  ;;  %v1525_v43 = vmul.f32 0.0, %v1506_v47 }
 0x419   :  { %v1987_v8 = vpop.permute.xlu0 %1986 }
 0x41a   :  { %v1989_v59 = vmul.f32 %v1987_v8, %v1984_v42  ;;  %v11142_v8 = vmov 3  }
 0x41c   :  { %v9737_v60 = vadd.f32 %v1990_v9, %v1989_v59  ;;  %v1044_v59 = vadd.f32 %v9671_v46, %v9649_v35 }
 0x41e   :  { %2000 = vperm.xlu2 %8690, %v9737_v60   ;;  %1994 = vperm.xlu1 %8691, %v9737_v60   ;;  %v1070_v11 = vadd.f32 %v9653_v37, %v1044_v59 }
 0x421   :  { %v1510_v62 = vpop.permute.xlu0 %1509 }
 0x422   :  { %v1512_v61 = vmul.f32 %v1510_v62, %v1506_v47  ;;  %v1094_v62 = vadd.f32 %v9655_v38, %v1070_v11  ;;  %v11140_v47 = vmov 2  }
 0x424   :  { %1514 = vrot.lane.b32.xlu0 %v1512_v61, %s9324_s23 }
 0x426   :  { %8693 = vset.pattern.permute.xlu2 %v11142_v8  ;;  %8692 = vset.pattern.permute.xlu1 %v11140_v47 }
 0x478   :  { %v2001_v63 = vpop.permute.xlu2 %2000 }
 0x479   :  { %v2003_v7 = vmul.f32 %v2001_v63, %v9573_v57  ;;  %v1118_v63 = vadd.f32 %v9659_v40, %v1094_v62 }
 0x490   :  { %v1995_v1 = vpop.permute.xlu1 %1994 }
 0x491   :  { %v1997_v2 = vmul.f32 %v1995_v1, %v9571_v56  ;;  %v1142_v1 = vadd.f32 %v9657_v39, %v1118_v63 }
 0x493   :  { %v1998_v4 = vadd.f32 %v1997_v2, %v9575_v58  ;;  %v9761_v35 = vadd.f32 %v9661_v41, %v1142_v1 }
 0x495   :  { %v2004_v53 = vadd.f32 %v2003_v7, %v1998_v4 }
 0x496   :  { %v1515_v10 = vpop.permute.xlu0 %1514 }
 0x497   :  { %v1517_v42 = vadd.f32 %v1515_v10, %v9733_v49  ;;  %2029 = vrot.lane.b32.xlu2 %v2004_v53, %s9313_s30  ;;  %2006 = vrot.lane.b32.xlu1 %v2004_v53, %s9323_s5 }
 0x499   :  { %8764 = vtanh.f32 %v1517_v42 }
 0x49f   :  { %v8765_v50 = vpop.eup %8764 }
 0x4a0   :  { %1521 = vrot.lane.b32.xlu2 %v8765_v50, %s9325_s11 }
 0x4f1   :  { %v2030_v9 = vpop.permute.xlu2 %2029 }
 0x4fa   :  { %v1522_v44 = vpop.permute.xlu2 %1521 }
 0x4fb   :  { %v1524_v45 = vmul.f32 %v1522_v44, %v1519_v6 }
 0x4fd   :  { %v9754_v61 = vadd.f32 %v1525_v43, %v1524_v45 }
 0x4ff   :  { %1535 = vperm.xlu2 %8693, %v9754_v61  }
 0x507   :  { %8698 = vset.pattern.permute.xlu2 %v11138_v3 }
 0x509   :  { %v2007_v37 = vpop.permute.xlu1 %2006 }
 0x50a   :  { %v2009_v2 = vadd.f32 %v2007_v37, %v9761_v35 }
 0x50c   :  { %v8628_v38 = vmul.f32 -1.442695, %v2009_v2 }
 0x50e   :  { %8766 = vpow2.f32 %v8628_v38 }
 0x514   :  { %v8767_v7 = vpop.eup %8766 }
 0x515   :  { %v2013_v4 = vadd.f32 1.0, %v8767_v7  ;;  %v440_v7 = vadd.f32 %v9671_v46, %v9601_v12 }
 0x517   :  { %8768 = vrcp.f32 %v2013_v4  ;;  %v2025_v39 = vand.u32 2147483648, %v2013_v4  ;;  %v2023_v50 = vand.u32 2147483647, %v2013_v4  ;;  %vm2019_vm15 = vweird.f32 %v2013_v4 }
 0x519   :  { %v2026_v59 = vor.u32 1.1754944e-38, %v2025_v39  ;;  %vm2024_vm1 = vcmp.eq.f32.partialorder %v2023_v50, 8.507059e+37 }
 0x51d   :  { %v8769_v53 = vpop.eup %8768 }
 0x51e   :  { %v2015_v40 = vmul.f32 %v8769_v53, %v2013_v4  ;;  %vm2020_vm14 = vweird.f32 %v8769_v53  ;;  %v466_v4 = vadd.f32 %v9605_v13, %v440_v7 }
 0x51f   :  { %vm2021_vm0 = vmor %vm2019_vm15, %vm2020_vm14 }
 0x520   :  { %v2016_v10 = vsub.f32 1.0, %v2015_v40 }
 0x522   :  { %v2017_v42 = vmul.f32 %v8769_v53, %v2016_v10 }
 0x524   :  { %v2018_v41 = vadd.f32 %v8769_v53, %v2017_v42 }
 0x526   :  { %v2022_v11 = vsel %vm2021_vm0, %v8769_v53, %v2018_v41  ;;  %v490_v53 = vadd.f32 %v9607_v14, %v466_v4 }
 0x527   :  { %v2027_v6 = vsel %vm2024_vm1, %v2026_v59, %v2022_v11 }
 0x528   :  { %v2032_v44 = vmul.f32 %v2030_v9, %v2027_v6  ;;  %v514_v40 = vadd.f32 %v9611_v16, %v490_v53 }
 0x52a   :  { %2034 = vrot.lane.b32.xlu1 %v2032_v44, %s9324_s23  ;;  %v538_v10 = vadd.f32 %v9609_v15, %v514_v40 }
 0x52c   :  { %v9781_v39 = vadd.f32 %v9613_v17, %v538_v10 }
 0x532   :  { %1529 = vperm.xlu1 %8692, %v9754_v61  }
 0x53a   :  { %8695 = vset.pattern.permute.xlu1 %v11136_v52 }
 0x559   :  { %v1536_v62 = vpop.permute.xlu2 %1535 }
 0x55a   :  { %v1538_v2 = vmul.f32 %v9718_v54, %v1536_v62 }
 0x59c   :  { %v2035_v43 = vpop.permute.xlu1 %2034 }
 0x59d   :  { %v2037_v45 = vadd.f32 %v2035_v43, %v9761_v35 }
 0x59f   :  { %8770 = vtanh.f32 %v2037_v45 }
 0x5a4   :  { %v1530_v63 = vpop.permute.xlu1 %1529 }
 0x5a5   :  { %v8771_v1 = vpop.eup %8770  ;;  %v1532_v37 = vmul.f32 %v1530_v63, %v9712_v48 }
 0x5a6   :  { %2041 = vrot.lane.b32.xlu0 %v8771_v1, %s9325_s11  ;;  %v2039_v1 = vsub.f32 1.0, %v2027_v6 }
 0x5a7   :  { %v1533_v9 = vadd.f32 %v1532_v37, %v9720_v55 }
 0x5a9   :  { %v1539_v38 = vadd.f32 %v1538_v2, %v1533_v9  ;;  %v2045_v2 = vmul.f32 %v2027_v6, %v9737_v60 }
 0x5ab   :  { %1561 = vrot.lane.b32.xlu2 %v1539_v38, %s9328_s24  ;;  %v1540_v42 = vadd.f32 %v1539_v38, %v9781_v39 }
 0x5ad   :  { %v8619_v50 = vmul.f32 -1.442695, %v1540_v42 }
 0x5af   :  { %8772 = vpow2.f32 %v8619_v50 }
 0x5b5   :  { %v8773_v41 = vpop.eup %8772 }
 0x5b6   :  { %v1544_v59 = vadd.f32 1.0, %v8773_v41 }
 0x5b8   :  { %8774 = vrcp.f32 %v1544_v59  ;;  %v1556_v14 = vand.u32 2147483648, %v1544_v59  ;;  %vm1550_vm3 = vweird.f32 %v1544_v59  ;;  %v1554_v16 = vand.u32 2147483647, %v1544_v59 }
 0x5ba   :  { %v1557_v17 = vor.u32 1.1754944e-38, %v1556_v14  ;;  %vm1555_vm5 = vcmp.eq.f32.partialorder %v1554_v16, 8.507059e+37 }
 0x5be   :  { %v8775_v11 = vpop.eup %8774 }
 0x5bf   :  { %v1546_v12 = vmul.f32 %v8775_v11, %v1544_v59  ;;  %vm1551_vm2 = vweird.f32 %v8775_v11  ;;  %v893_v59 = vadd.f32 %v9671_v46, %v9639_v30 }
 0x5c0   :  { %vm1552_vm4 = vmor %vm1550_vm3, %vm1551_vm2 }
 0x5c1   :  { %v1547_v44 = vsub.f32 1.0, %v1546_v12 }
 0x5c3   :  { %v1548_v13 = vmul.f32 %v8775_v11, %v1547_v44 }
 0x5c5   :  { %v1549_v43 = vadd.f32 %v8775_v11, %v1548_v13 }
 0x5c7   :  { %v1553_v15 = vsel %vm1552_vm4, %v8775_v11, %v1549_v43  ;;  %v919_v11 = vadd.f32 %v9643_v32, %v893_v59 }
 0x5c8   :  { %v1558_v62 = vsel %vm1555_vm5, %v1557_v17, %v1553_v15 }
 0x5c9   :  { %v943_v12 = vadd.f32 %v9641_v31, %v919_v11  ;;  %v1571_v17 = vsub.f32 1.0, %v1558_v62  ;;  %v1577_v30 = vmul.f32 %v1558_v62, %v9754_v61 }
 0x5cb   :  { %v967_v44 = vadd.f32 %v9645_v33, %v943_v12 }
 0x5cd   :  { %v991_v13 = vadd.f32 %v9647_v34, %v967_v44 }
 0x5cf   :  { %v9806_v43 = vadd.f32 %v9651_v36, %v991_v13 }
 0x605   :  { %v1562_v45 = vpop.permute.xlu2 %1561 }
 0x606   :  { %v1564_v63 = vmul.f32 %v1562_v45, %v1558_v62 }
 0x608   :  { %1566 = vrot.lane.b32.xlu2 %v1564_v63, %s9324_s23 }
 0x618   :  { %v2042_v37 = vpop.permute.xlu0 %2041 }
 0x619   :  { %v2044_v9 = vmul.f32 %v2042_v37, %v2039_v1 }
 0x61b   :  { %v9786_v38 = vadd.f32 %v2045_v2, %v2044_v9 }
 0x61d   :  { %2055 = vperm.xlu1 %8695, %v9786_v38   ;;  %2049 = vperm.xlu0 %8694, %v9786_v38  }
 0x625   :  { %8697 = vset.pattern.permute.xlu1 %v11142_v8  ;;  %8696 = vset.pattern.permute.xlu0 %v11140_v47 }
 0x662   :  { %v1567_v53 = vpop.permute.xlu2 %1566 }
 0x663   :  { %v1569_v42 = vadd.f32 %v1567_v53, %v9781_v39 }
 0x665   :  { %8776 = vtanh.f32 %v1569_v42 }
 0x66b   :  { %v8777_v41 = vpop.eup %8776 }
 0x68f   :  { %v2056_v7 = vpop.permute.xlu1 %2055  ;;  %v2050_v4 = vpop.permute.xlu0 %2049 }
 0x690   :  { %v2052_v40 = vmul.f32 %v2050_v4, %v9571_v56  ;;  %v2058_v10 = vmul.f32 %v2056_v7, %v9573_v57 }
 0x692   :  { %v2053_v6 = vadd.f32 %v2052_v40, %v9575_v58 }
 0x694   :  { %v2059_v50 = vadd.f32 %v2058_v10, %v2053_v6 }
 0x696   :  { %2084 = vrot.lane.b32.xlu0 %v2059_v50, %s9313_s30  ;;  %2061 = vrot.lane.b32.xlu1 %v2059_v50, %s9323_s5 }
 0x69e   :  { %1573 = vrot.lane.b32.xlu1 %v8777_v41, %s9325_s11 }
 0x708   :  { %v2062_v14 = vpop.permute.xlu1 %2061  ;;  %v2085_v53 = vpop.permute.xlu0 %2084 }
 0x709   :  { %v2064_v16 = vadd.f32 %v2062_v14, %v9806_v43  ;;  %v591_v14 = vadd.f32 %v9671_v46, %v9615_v18 }
 0x70b   :  { %v8629_v15 = vmul.f32 -1.442695, %v2064_v16  ;;  %v617_v16 = vadd.f32 %v9619_v20, %v591_v14 }
 0x70d   :  { %8778 = vpow2.f32 %v8629_v15  ;;  %v641_v15 = vadd.f32 %v9617_v19, %v617_v16 }
 0x710   :  { %v1574_v45 = vpop.permute.xlu1 %1573 }
 0x711   :  { %v1576_v63 = vmul.f32 %v1574_v45, %v1571_v17  ;;  %v665_v17 = vadd.f32 %v9621_v21, %v641_v15 }
 0x713   :  { %v8779_v32 = vpop.eup %8778  ;;  %v9810_v1 = vadd.f32 %v1577_v30, %v1576_v63  ;;  %v689_v45 = vadd.f32 %v9623_v22, %v665_v17 }
 0x714   :  { %v2068_v31 = vadd.f32 1.0, %v8779_v32 }
 0x715   :  { %1587 = vperm.xlu1 %8697, %v9810_v1   ;;  %1581 = vperm.xlu0 %8696, %v9810_v1   ;;  %v9830_v30 = vadd.f32 %v9627_v24, %v689_v45 }
 0x716   :  { %8780 = vrcp.f32 %v2068_v31  ;;  %v2080_v37 = vand.u32 2147483648, %v2068_v31  ;;  %v2078_v62 = vand.u32 2147483647, %v2068_v31  ;;  %vm2074_vm7 = vweird.f32 %v2068_v31 }
 0x718   :  { %v2081_v7 = vor.u32 1.1754944e-38, %v2080_v37  ;;  %vm2079_vm9 = vcmp.eq.f32.partialorder %v2078_v62, 8.507059e+37 }
 0x71c   :  { %v8781_v33 = vpop.eup %8780 }
 0x71d   :  { %v2070_v34 = vmul.f32 %v8781_v33, %v2068_v31  ;;  %8699 = vset.pattern.permute.xlu0 %v11136_v52  ;;  %8700 = vset.pattern.permute.xlu1 %v11140_v47  ;;  %vm2075_vm6 = vweird.f32 %v8781_v33 }
 0x71e   :  { %vm2076_vm8 = vmor %vm2074_vm7, %vm2075_vm6 }
 0x71f   :  { %v2071_v36 = vsub.f32 1.0, %v2070_v34 }
 0x721   :  { %v2072_v2 = vmul.f32 %v8781_v33, %v2071_v36 }
 0x723   :  { %v2073_v9 = vadd.f32 %v8781_v33, %v2072_v2 }
 0x725   :  { %v2077_v4 = vsel %vm2076_vm8, %v8781_v33, %v2073_v9 }
 0x726   :  { %v2082_v40 = vsel %vm2079_vm9, %v2081_v7, %v2077_v4 }
 0x727   :  { %v2087_v10 = vmul.f32 %v2085_v53, %v2082_v40  ;;  %v2094_v34 = vsub.f32 1.0, %v2082_v40  ;;  %v2100_v20 = vmul.f32 %v2082_v40, %v9786_v38 }
 0x729   :  { %2089 = vrot.lane.b32.xlu2 %v2087_v10, %s9324_s23 }
 0x783   :  { %v2090_v6 = vpop.permute.xlu2 %2089 }
 0x784   :  { %v2092_v42 = vadd.f32 %v2090_v6, %v9806_v43 }
 0x786   :  { %8782 = vtanh.f32 %v2092_v42 }
 0x787   :  { %v1588_v50 = vpop.permute.xlu1 %1587  ;;  %v1582_v41 = vpop.permute.xlu0 %1581 }
 0x788   :  { %v1584_v59 = vmul.f32 %v1582_v41, %v9712_v48  ;;  %v1590_v11 = vmul.f32 %v9718_v54, %v1588_v50 }
 0x78a   :  { %v1585_v12 = vadd.f32 %v1584_v59, %v9720_v55 }
 0x78c   :  { %v8783_v44 = vpop.eup %8782  ;;  %v1591_v13 = vadd.f32 %v1590_v11, %v1585_v12 }
 0x78d   :  { %2096 = vrot.lane.b32.xlu2 %v8783_v44, %s9325_s11 }
 0x78e   :  { %1613 = vrot.lane.b32.xlu1 %v1591_v13, %s9328_s24  ;;  %v1592_v63 = vadd.f32 %v1591_v13, %v9830_v30 }
 0x790   :  { %v8620_v32 = vmul.f32 -1.442695, %v1592_v63 }
 0x792   :  { %8784 = vpow2.f32 %v8620_v32 }
 0x798   :  { %v8785_v31 = vpop.eup %8784 }
 0x799   :  { %v1596_v33 = vadd.f32 1.0, %v8785_v31 }
 0x79b   :  { %8786 = vrcp.f32 %v1596_v33  ;;  %v1608_v62 = vand.u32 2147483648, %v1596_v33  ;;  %vm1602_vm11 = vweird.f32 %v1596_v33  ;;  %v1606_v9 = vand.u32 2147483647, %v1596_v33 }
 0x79d   :  { %v1609_v4 = vor.u32 1.1754944e-38, %v1608_v62  ;;  %vm1607_vm13 = vcmp.eq.f32.partialorder %v1606_v9, 8.507059e+37 }
 0x7a1   :  { %v8787_v19 = vpop.eup %8786 }
 0x7a2   :  { %v1598_v21 = vmul.f32 %v8787_v19, %v1596_v33  ;;  %vm1603_vm10 = vweird.f32 %v8787_v19 }
 0x7a3   :  { %vm1604_vm12 = vmor %vm1602_vm11, %vm1603_vm10 }
 0x7a4   :  { %v1599_v22 = vsub.f32 1.0, %v1598_v21 }
 0x7a6   :  { %v1600_v24 = vmul.f32 %v8787_v19, %v1599_v22 }
 0x7a8   :  { %v1601_v2 = vadd.f32 %v8787_v19, %v1600_v24 }
 0x7aa   :  { %v1605_v7 = vsel %vm1604_vm12, %v8787_v19, %v1601_v2 }
 0x7ab   :  { %v1610_v40 = vsel %vm1607_vm13, %v1609_v4, %v1605_v7 }
 0x7ac   :  { %v1623_v19 = vsub.f32 1.0, %v1610_v40  ;;  %v1629_v22 = vmul.f32 %v1610_v40, %v9810_v1 }
 0x7e7   :  { %v2097_v18 = vpop.permute.xlu2 %2096 }
 0x7e8   :  { %v2099_v36 = vmul.f32 %v2097_v18, %v2094_v34 }
 0x7ea   :  { %v9834_v37 = vadd.f32 %v2100_v20, %v2099_v36 }
 0x7ec   :  { %2104 = vperm.xlu2 %8698, %v9834_v37   ;;  %2110 = vperm.xlu0 %8699, %v9834_v37  }
 0x7f4   :  { %8701 = vset.pattern.permute.xlu2 %v11142_v8  ;;  %8702 = vset.pattern.permute.xlu0 %v11138_v3 }
 0x800   :  { %v1614_v53 = vpop.permute.xlu1 %1613 }
 0x801   :  { %v1616_v10 = vmul.f32 %v1614_v53, %v1610_v40 }
 0x803   :  { %1618 = vrot.lane.b32.xlu1 %v1616_v10, %s9324_s23 }
 0x846   :  { %v2105_v6 = vpop.permute.xlu2 %2104 }
 0x847   :  { %v2107_v42 = vmul.f32 %v2105_v6, %v9571_v56  ;;  %v742_v56 = vadd.f32 %v9671_v46, %v9625_v23 }
 0x849   :  { %v2108_v41 = vadd.f32 %v2107_v42, %v9575_v58  ;;  %v768_v14 = vadd.f32 %v9629_v25, %v742_v56 }
 0x84b   :  { %v792_v58 = vadd.f32 %v9631_v26, %v768_v14 }
 0x85e   :  { %v2111_v50 = vpop.permute.xlu0 %2110 }
 0x85f   :  { %v2113_v59 = vmul.f32 %v2111_v50, %v9573_v57  ;;  %v816_v57 = vadd.f32 %v9635_v28, %v792_v58 }
 0x861   :  { %v2114_v11 = vadd.f32 %v2113_v59, %v2108_v41  ;;  %v840_v16 = vadd.f32 %v9633_v27, %v816_v57 }
 0x863   :  { %2116 = vrot.lane.b32.xlu2 %v2114_v11, %s9323_s5  ;;  %v9855_v15 = vadd.f32 %v9637_v29, %v840_v16 }
 0x86b   :  { %2139 = vrot.lane.b32.xlu2 %v2114_v11, %s9313_s30 }
 0x875   :  { %v1619_v12 = vpop.permute.xlu1 %1618 }
 0x876   :  { %v1621_v44 = vadd.f32 %v1619_v12, %v9830_v30 }
 0x878   :  { %8788 = vtanh.f32 %v1621_v44 }
 0x87e   :  { %v8789_v13 = vpop.eup %8788 }
 0x87f   :  { %1625 = vrot.lane.b32.xlu1 %v8789_v13, %s9325_s11 }
 0x8bd   :  { %v2117_v17 = vpop.permute.xlu2 %2116 }
 0x8be   :  { %v2119_v45 = vadd.f32 %v2117_v17, %v9855_v15 }
 0x8c0   :  { %v8630_v63 = vmul.f32 -1.442695, %v2119_v45 }
 0x8c2   :  { %8790 = vpow2.f32 %v8630_v63 }
 0x8c5   :  { %v2140_v20 = vpop.permute.xlu2 %2139 }
 0x8c8   :  { %v8791_v32 = vpop.eup %8790 }
 0x8c9   :  { %v2123_v31 = vadd.f32 1.0, %v8791_v32 }
 0x8cb   :  { %8792 = vrcp.f32 %v2123_v31  ;;  %v2135_v33 = vand.u32 2147483648, %v2123_v31  ;;  %v2133_v28 = vand.u32 2147483647, %v2123_v31  ;;  %vm2129_vm15 = vweird.f32 %v2123_v31 }
 0x8cd   :  { %v2136_v27 = vor.u32 1.1754944e-38, %v2135_v33  ;;  %vm2134_vm1 = vcmp.eq.f32.partialorder %v2133_v28, 8.507059e+37 }
 0x8d1   :  { %v8793_v23 = vpop.eup %8792 }
 0x8d2   :  { %v2125_v46 = vmul.f32 %v8793_v23, %v2123_v31  ;;  %vm2130_vm14 = vweird.f32 %v8793_v23 }
 0x8d3   :  { %vm2131_vm0 = vmor %vm2129_vm15, %vm2130_vm14 }
 0x8d4   :  { %v2126_v25 = vsub.f32 1.0, %v2125_v46 }
 0x8d6   :  { %v2127_v26 = vmul.f32 %v8793_v23, %v2126_v25 }
 0x8d8   :  { %v2128_v34 = vadd.f32 %v8793_v23, %v2127_v26 }
 0x8da   :  { %v2132_v29 = vsel %vm2131_vm0, %v8793_v23, %v2128_v34 }
 0x8db   :  { %v2137_v18 = vsel %vm2134_vm1, %v2136_v27, %v2132_v29  ;;  %v9882_v29 = vld [vmem:[#allocation7] sm:$0x3] }
 0x8dc   :  { %v2142_v36 = vmul.f32 %v2140_v20, %v2137_v18  ;;  %v2149_v44 = vsub.f32 1.0, %v2137_v18  ;;  %v2155_v56 = vmul.f32 %v2137_v18, %v9834_v37  ;;  %v9885_v20 = vld [vmem:[#allocation7 + $0x2] sm:$0x3] }
 0x8de   :  { %2144 = vrot.lane.b32.xlu0 %v2142_v36, %s9324_s23 }
 0x8f1   :  { %v1626_v21 = vpop.permute.xlu1 %1625 }
 0x8f2   :  { %v1628_v24 = vmul.f32 %v1626_v21, %v1623_v19  ;;  %v9888_v19 = vld [vmem:[#allocation8] sm:$0x3] }
 0x8f4   :  { %v9860_v2 = vadd.f32 %v1629_v22, %v1628_v24 }
 0x8f6   :  { %1633 = vperm.xlu1 %8700, %v9860_v2   ;;  %1639 = vperm.xlu2 %8701, %v9860_v2  }
 0x8fe   :  { %8703 = vset.pattern.permute.xlu1 %v11136_v52  ;;  %8707 = vset.pattern.permute.xlu2 %v11136_v52 }
 0x950   :  { %v2145_v62 = vpop.permute.xlu0 %2144  ;;  %v1640_v4 = vpop.permute.xlu2 %1639 }
 0x951   :  { %v2147_v9 = vadd.f32 %v2145_v62, %v9855_v15  ;;  %v1642_v10 = vmul.f32 %v9718_v54, %v1640_v4 }
 0x953   :  { %8794 = vtanh.f32 %v2147_v9 }
 0x959   :  { %v8795_v7 = vpop.eup %8794 }
 0x95a   :  { %2151 = vrot.lane.b32.xlu1 %v8795_v7, %s9325_s11 }
 0x968   :  { %v1634_v53 = vpop.permute.xlu1 %1633 }
 0x969   :  { %v1636_v40 = vmul.f32 %v1634_v53, %v9712_v48 }
 0x96b   :  { %v1637_v6 = vadd.f32 %v1636_v40, %v9720_v55 }
 0x96d   :  { %v1643_v42 = vadd.f32 %v1642_v10, %v1637_v6 }
 0x96f   :  { %1665 = vrot.lane.b32.xlu0 %v1643_v42, %s9328_s24  ;;  %v1644_v50 = vadd.f32 %v1643_v42, %v9855_v15 }
 0x971   :  { %v8621_v41 = vmul.f32 -1.442695, %v1644_v50 }
 0x973   :  { %8796 = vpow2.f32 %v8621_v41 }
 0x979   :  { %v8797_v59 = vpop.eup %8796 }
 0x97a   :  { %v1648_v11 = vadd.f32 1.0, %v8797_v59 }
 0x97c   :  { %8798 = vrcp.f32 %v1648_v11  ;;  %v1660_v63 = vand.u32 2147483648, %v1648_v11  ;;  %vm1654_vm3 = vweird.f32 %v1648_v11  ;;  %v1658_v32 = vand.u32 2147483647, %v1648_v11 }
 0x97e   :  { %v1661_v23 = vor.u32 1.1754944e-38, %v1660_v63  ;;  %vm1659_vm5 = vcmp.eq.f32.partialorder %v1658_v32, 8.507059e+37 }
 0x982   :  { %v8799_v12 = vpop.eup %8798 }
 0x983   :  { %v1650_v58 = vmul.f32 %v8799_v12, %v1648_v11  ;;  %vm1655_vm2 = vweird.f32 %v8799_v12 }
 0x984   :  { %vm1656_vm4 = vmor %vm1654_vm3, %vm1655_vm2 }
 0x985   :  { %v1651_v16 = vsub.f32 1.0, %v1650_v58 }
 0x987   :  { %v1652_v17 = vmul.f32 %v8799_v12, %v1651_v16 }
 0x989   :  { %v1653_v45 = vadd.f32 %v8799_v12, %v1652_v17 }
 0x98b   :  { %v1657_v31 = vsel %vm1656_vm4, %v8799_v12, %v1653_v45 }
 0x98c   :  { %v1662_v25 = vsel %vm1659_vm5, %v1661_v23, %v1657_v31 }
 0x98d   :  { %v1681_v9 = vmul.f32 %v1662_v25, %v9860_v2 }
 0x9cc   :  { %v2152_v13 = vpop.permute.xlu1 %2151 }
 0x9cd   :  { %v2154_v14 = vmul.f32 %v2152_v13, %v2149_v44 }
 0x9cf   :  { %v9874_v57 = vadd.f32 %v2155_v56, %v2154_v14 }
 0x9d1   :  { %2165 = vperm.xlu1 %8703, %v9874_v57   ;;  %2159 = vperm.xlu0 %8702, %v9874_v57  }
 0x9d9   :  { %8705 = vset.pattern.permute.xlu1 %v11142_v8  ;;  %8704 = vset.pattern.permute.xlu0 %v11140_v47 }
 0x9e1   :  { %v1666_v46 = vpop.permute.xlu0 %1665 }
 0x9e2   :  { %v1668_v33 = vmul.f32 %v1666_v46, %v1662_v25 }
 0x9e4   :  { %1670 = vrot.lane.b32.xlu2 %v1668_v33, %s9324_s23 }
 0xa3e   :  { %v1671_v26 = vpop.permute.xlu2 %1670 }
 0xa3f   :  { %v1673_v28 = vadd.f32 %v1671_v26, %v9855_v15  ;;  %v1675_v15 = vsub.f32 1.0, %v1662_v25 }
 0xa41   :  { %8800 = vtanh.f32 %v1673_v28 }
 0xa43   :  { %v2166_v34 = vpop.permute.xlu1 %2165  ;;  %v2160_v27 = vpop.permute.xlu0 %2159 }
 0xa44   :  { %v2162_v18 = vmul.f32 %v9882_v29, %v2160_v27  ;;  %v2168_v36 = vmul.f32 %v9885_v20, %v2166_v34 }
 0xa46   :  { %v2163_v21 = vadd.f32 %v9888_v19, %v2162_v18 }
 0xa47   :  { %v8801_v22 = vpop.eup %8800 }
 0xa48   :  { %1677 = vrot.lane.b32.xlu2 %v8801_v22, %s9325_s11  ;;  %v2169_v24 = vadd.f32 %v2168_v36, %v2163_v21 }
 0xa4a   :  { %2171 = vrot.lane.b32.xlu1 %v2169_v24, %s9323_s5 }
 0xa50   :  { %2194 = vrot.lane.b32.xlu2 %v2169_v24, %s9313_s30 }
 0xaa2   :  { %v1678_v62 = vpop.permute.xlu2 %1677 }
 0xaa3   :  { %v1680_v7 = vmul.f32 %v1678_v62, %v1675_v15 }
 0xaa5   :  { %v9895_v4 = vadd.f32 %v1681_v9, %v1680_v7 }
 0xaa7   :  { %1691 = vperm.xlu1 %8705, %v9895_v4   ;;  %1685 = vperm.xlu0 %8704, %v9895_v4  }
 0xaaa   :  { %v2195_v58 = vpop.permute.xlu2 %2194 }
 0xaaf   :  { %8706 = vset.pattern.permute.xlu1 %v11138_v3  ;;  %8709 = vset.pattern.permute.xlu0 %v11142_v8 }
 0xabc   :  { %v2172_v53 = vpop.permute.xlu1 %2171 }
 0xabd   :  { %v2174_v40 = vadd.f32 %v2172_v53, %v9830_v30 }
 0xabf   :  { %v8631_v10 = vmul.f32 -1.442695, %v2174_v40 }
 0xac1   :  { %8802 = vpow2.f32 %v8631_v10 }
 0xac7   :  { %v8803_v6 = vpop.eup %8802 }
 0xac8   :  { %v2178_v42 = vadd.f32 1.0, %v8803_v6 }
 0xaca   :  { %8804 = vrcp.f32 %v2178_v42  ;;  %v2190_v11 = vand.u32 2147483648, %v2178_v42  ;;  %v2188_v44 = vand.u32 2147483647, %v2178_v42  ;;  %vm2184_vm7 = vweird.f32 %v2178_v42 }
 0xacc   :  { %v2191_v56 = vor.u32 1.1754944e-38, %v2190_v11  ;;  %vm2189_vm9 = vcmp.eq.f32.partialorder %v2188_v44, 8.507059e+37 }
 0xad0   :  { %v8805_v50 = vpop.eup %8804 }
 0xad1   :  { %v2180_v41 = vmul.f32 %v8805_v50, %v2178_v42  ;;  %vm2185_vm6 = vweird.f32 %v8805_v50 }
 0xad2   :  { %vm2186_vm8 = vmor %vm2184_vm7, %vm2185_vm6 }
 0xad3   :  { %v2181_v59 = vsub.f32 1.0, %v2180_v41 }
 0xad5   :  { %v2182_v12 = vmul.f32 %v8805_v50, %v2181_v59 }
 0xad7   :  { %v2183_v13 = vadd.f32 %v8805_v50, %v2182_v12 }
 0xad9   :  { %v2187_v14 = vsel %vm2186_vm8, %v8805_v50, %v2183_v13 }
 0xada   :  { %v2192_v16 = vsel %vm2189_vm9, %v2191_v56, %v2187_v14 }
 0xadb   :  { %v2197_v17 = vmul.f32 %v2195_v58, %v2192_v16  ;;  %v2204_v6 = vsub.f32 1.0, %v2192_v16  ;;  %v2210_v50 = vmul.f32 %v2192_v16, %v9874_v57 }
 0xadd   :  { %2199 = vrot.lane.b32.xlu2 %v2197_v17, %s9324_s23 }
 0xb19   :  { %v1692_v45 = vpop.permute.xlu1 %1691  ;;  %v1686_v63 = vpop.permute.xlu0 %1685 }
 0xb1a   :  { %v1688_v32 = vmul.f32 %v1686_v63, %v9712_v48  ;;  %v1694_v31 = vmul.f32 %v9718_v54, %v1692_v45 }
 0xb1c   :  { %v1689_v23 = vadd.f32 %v1688_v32, %v9720_v55 }
 0xb1e   :  { %v1695_v46 = vadd.f32 %v1694_v31, %v1689_v23 }
 0xb20   :  { %1717 = vrot.lane.b32.xlu1 %v1695_v46, %s9328_s24  ;;  %v1696_v28 = vadd.f32 %v1695_v46, %v9806_v43 }
 0xb22   :  { %v8622_v34 = vmul.f32 -1.442695, %v1696_v28 }
 0xb37   :  { %v2200_v25 = vpop.permute.xlu2 %2199 }
 0xb38   :  { %v2202_v33 = vadd.f32 %v2200_v25, %v9830_v30 }
 0xb3a   :  { %8806 = vtanh.f32 %v2202_v33 }
 0xb3b   :  { %8808 = vpow2.f32 %v8622_v34 }
 0xb40   :  { %v8807_v26 = vpop.eup %8806 }
 0xb41   :  { %2206 = vrot.lane.b32.xlu2 %v8807_v26, %s9325_s11  ;;  %v8809_v27 = vpop.eup %8808 }
 0xb42   :  { %v1700_v18 = vadd.f32 1.0, %v8809_v27 }
 0xb44   :  { %8810 = vrcp.f32 %v1700_v18  ;;  %v1712_v62 = vand.u32 2147483648, %v1700_v18  ;;  %vm1706_vm11 = vweird.f32 %v1700_v18  ;;  %v1710_v30 = vand.u32 2147483647, %v1700_v18 }
 0xb46   :  { %v1713_v7 = vor.u32 1.1754944e-38, %v1712_v62  ;;  %vm1711_vm13 = vcmp.eq.f32.partialorder %v1710_v30, 8.507059e+37 }
 0xb4a   :  { %v8811_v36 = vpop.eup %8810 }
 0xb4b   :  { %v1702_v21 = vmul.f32 %v8811_v36, %v1700_v18  ;;  %vm1707_vm10 = vweird.f32 %v8811_v36 }
 0xb4c   :  { %vm1708_vm12 = vmor %vm1706_vm11, %vm1707_vm10 }
 0xb4d   :  { %v1703_v22 = vsub.f32 1.0, %v1702_v21 }
 0xb4f   :  { %v1704_v24 = vmul.f32 %v8811_v36, %v1703_v22 }
 0xb51   :  { %v1705_v15 = vadd.f32 %v8811_v36, %v1704_v24 }
 0xb53   :  { %v1709_v9 = vsel %vm1708_vm12, %v8811_v36, %v1705_v15 }
 0xb54   :  { %v1714_v40 = vsel %vm1711_vm13, %v1713_v7, %v1709_v9 }
 0xb55   :  { %v1727_v45 = vsub.f32 1.0, %v1714_v40 }
 0xb92   :  { %v1718_v53 = vpop.permute.xlu1 %1717 }
 0xb93   :  { %v1720_v10 = vmul.f32 %v1718_v53, %v1714_v40 }
 0xb95   :  { %1722 = vrot.lane.b32.xlu0 %v1720_v10, %s9324_s23 }
 0xb9b   :  { %v2207_v42 = vpop.permute.xlu2 %2206 }
 0xb9c   :  { %v2209_v41 = vmul.f32 %v2207_v42, %v2204_v6 }
 0xb9e   :  { %v9912_v59 = vadd.f32 %v2210_v50, %v2209_v41 }
 0xba0   :  { %2220 = vperm.xlu2 %8707, %v9912_v59   ;;  %2214 = vperm.xlu1 %8706, %v9912_v59  }
 0xba8   :  { %8708 = vset.pattern.permute.xlu2 %v11140_v47  ;;  %8712 = vset.pattern.permute.xlu1 %v11140_v47 }
 0xbfa   :  { %v2221_v13 = vpop.permute.xlu2 %2220 }
 0xbfb   :  { %v2223_v58 = vmul.f32 %v9885_v20, %v2221_v13 }
 0xc07   :  { %v1723_v11 = vpop.permute.xlu0 %1722 }
 0xc08   :  { %v1725_v12 = vadd.f32 %v1723_v11, %v9806_v43  ;;  %v1733_v43 = vmul.f32 %v1714_v40, %v9895_v4 }
 0xc0a   :  { %8812 = vtanh.f32 %v1725_v12 }
 0xc10   :  { %v8813_v44 = vpop.eup %8812 }
 0xc11   :  { %1729 = vrot.lane.b32.xlu0 %v8813_v44, %s9325_s11 }
 0xc12   :  { %v2215_v56 = vpop.permute.xlu1 %2214 }
 0xc13   :  { %v2217_v14 = vmul.f32 %v9882_v29, %v2215_v56 }
 0xc15   :  { %v2218_v16 = vadd.f32 %v9888_v19, %v2217_v14 }
 0xc17   :  { %v2224_v17 = vadd.f32 %v2223_v58, %v2218_v16 }
 0xc19   :  { %2226 = vrot.lane.b32.xlu1 %v2224_v17, %s9323_s5 }
 0xc21   :  { %2249 = vrot.lane.b32.xlu1 %v2224_v17, %s9313_s30 }
 0xc83   :  { %v1730_v63 = vpop.permute.xlu0 %1729 }
 0xc84   :  { %v1732_v32 = vmul.f32 %v1730_v63, %v1727_v45 }
 0xc86   :  { %v9926_v31 = vadd.f32 %v1733_v43, %v1732_v32 }
 0xc88   :  { %1743 = vperm.xlu0 %8709, %v9926_v31   ;;  %1737 = vperm.xlu2 %8708, %v9926_v31  }
 0xc8b   :  { %v2227_v23 = vpop.permute.xlu1 %2226 }
 0xc8c   :  { %v2229_v46 = vadd.f32 %v2227_v23, %v9781_v39 }
 0xc8e   :  { %v8632_v25 = vmul.f32 -1.442695, %v2229_v46 }
 0xc90   :  { %8814 = vpow2.f32 %v8632_v25  ;;  %8711 = vset.pattern.permute.xlu0 %v11136_v52  ;;  %8710 = vset.pattern.permute.xlu2 %v11138_v3 }
 0xc93   :  { %v2250_v30 = vpop.permute.xlu1 %2249 }
 0xc96   :  { %v8815_v33 = vpop.eup %8814 }
 0xc97   :  { %v2233_v26 = vadd.f32 1.0, %v8815_v33 }
 0xc99   :  { %8816 = vrcp.f32 %v2233_v26  ;;  %v2245_v18 = vand.u32 2147483648, %v2233_v26  ;;  %v2243_v21 = vand.u32 2147483647, %v2233_v26  ;;  %vm2239_vm15 = vweird.f32 %v2233_v26 }
 0xc9b   :  { %v2246_v24 = vor.u32 1.1754944e-38, %v2245_v18  ;;  %vm2244_vm1 = vcmp.eq.f32.partialorder %v2243_v21, 8.507059e+37 }
 0xc9f   :  { %v8817_v28 = vpop.eup %8816 }
 0xca0   :  { %v2235_v34 = vmul.f32 %v8817_v28, %v2233_v26  ;;  %vm2240_vm14 = vweird.f32 %v8817_v28 }
 0xca1   :  { %vm2241_vm0 = vmor %vm2239_vm15, %vm2240_vm14  ;;  %vm2331_vm14 = vcmask 1041408   ;;  %vm2328_vm15 = vcmask 15360  }
 0xca2   :  { %v2236_v27 = vsub.f32 1.0, %v2235_v34 }
 0xca4   :  { %v2237_v36 = vmul.f32 %v8817_v28, %v2236_v27 }
 0xca6   :  { %v2238_v22 = vadd.f32 %v8817_v28, %v2237_v36 }
 0xca8   :  { %v2242_v15 = vsel %vm2241_vm0, %v8817_v28, %v2238_v22 }
 0xca9   :  { %v2247_v62 = vsel %vm2244_vm1, %v2246_v24, %v2242_v15 }
 0xcaa   :  { %v2252_v9 = vmul.f32 %v2250_v30, %v2247_v62  ;;  %v2259_v23 = vsub.f32 1.0, %v2247_v62  ;;  %v2265_v25 = vmul.f32 %v2247_v62, %v9912_v59 }
 0xcac   :  { %2254 = vrot.lane.b32.xlu1 %v2252_v9, %s9324_s23 }
 0xce2   :  { %v1738_v7 = vpop.permute.xlu2 %1737 }
 0xce3   :  { %v1740_v53 = vmul.f32 %v1738_v7, %v9712_v48 }
 0xce5   :  { %v1741_v10 = vadd.f32 %v1740_v53, %v9720_v55 }
 0xcfa   :  { %v1744_v40 = vpop.permute.xlu0 %1743 }
 0xcfb   :  { %v1746_v6 = vmul.f32 %v9718_v54, %v1744_v40  ;;  %v9972_v40 = vld [vmem:[%s11155_s18 + $0x2] sm:$0x3] }
 0xcfd   :  { %v1747_v42 = vadd.f32 %v1746_v6, %v1741_v10  ;;  %v9975_v6 = vld [vmem:[#allocation5] sm:$0x3] }
 0xcff   :  { %1769 = vrot.lane.b32.xlu2 %v1747_v42, %s9328_s24  ;;  %v1748_v12 = vadd.f32 %v1747_v42, %v9761_v35 }
 0xd01   :  { %v8623_v44 = vmul.f32 -1.442695, %v1748_v12 }
 0xd1e   :  { %v2255_v50 = vpop.permute.xlu1 %2254 }
 0xd1f   :  { %v2257_v41 = vadd.f32 %v2255_v50, %v9781_v39 }
 0xd21   :  { %8818 = vtanh.f32 %v2257_v41 }
 0xd22   :  { %8820 = vpow2.f32 %v8623_v44 }
 0xd27   :  { %v8819_v11 = vpop.eup %8818 }
 0xd28   :  { %2261 = vrot.lane.b32.xlu0 %v8819_v11, %s9325_s11  ;;  %v8821_v48 = vpop.eup %8820 }
 0xd29   :  { %v1752_v13 = vadd.f32 1.0, %v8821_v48 }
 0xd2b   :  { %8822 = vrcp.f32 %v1752_v13  ;;  %v1764_v16 = vand.u32 2147483648, %v1752_v13  ;;  %vm1758_vm3 = vweird.f32 %v1752_v13  ;;  %v1762_v39 = vand.u32 2147483647, %v1752_v13 }
 0xd2d   :  { %v1765_v45 = vor.u32 1.1754944e-38, %v1764_v16  ;;  %vm1763_vm5 = vcmp.eq.f32.partialorder %v1762_v39, 8.507059e+37 }
 0xd31   :  { %v8823_v55 = vpop.eup %8822 }
 0xd32   :  { %v1754_v56 = vmul.f32 %v8823_v55, %v1752_v13  ;;  %vm1759_vm2 = vweird.f32 %v8823_v55 }
 0xd33   :  { %vm1760_vm4 = vmor %vm1758_vm3, %vm1759_vm2 }
 0xd34   :  { %v1755_v54 = vsub.f32 1.0, %v1754_v56 }
 0xd36   :  { %v1756_v14 = vmul.f32 %v8823_v55, %v1755_v54 }
 0xd38   :  { %v1757_v58 = vadd.f32 %v8823_v55, %v1756_v14 }
 0xd3a   :  { %v1761_v17 = vsel %vm1760_vm4, %v8823_v55, %v1757_v58 }
 0xd3b   :  { %v1766_v43 = vsel %vm1763_vm5, %v1765_v45, %v1761_v17 }
 0xd3c   :  { %v1779_v62 = vsub.f32 1.0, %v1766_v43  ;;  %v1785_v9 = vmul.f32 %v1766_v43, %v9926_v31 }
 0xd59   :  { %v1770_v63 = vpop.permute.xlu2 %1769 }
 0xd5a   :  { %v1772_v32 = vmul.f32 %v1770_v63, %v1766_v43 }
 0xd5c   :  { %1774 = vrot.lane.b32.xlu2 %v1772_v32, %s9324_s23 }
 0xd9a   :  { %v2262_v46 = vpop.permute.xlu0 %2261 }
 0xd9b   :  { %v2264_v33 = vmul.f32 %v2262_v46, %v2259_v23 }
 0xd9d   :  { %v9943_v26 = vadd.f32 %v2265_v25, %v2264_v33 }
 0xd9f   :  { %2275 = vperm.xlu0 %8711, %v9943_v26   ;;  %2269 = vperm.xlu2 %8710, %v9943_v26  }
 0xda7   :  { %8713 = vset.pattern.permute.xlu2 %v11142_v8  ;;  %8715 = vset.pattern.permute.xlu0 %v11142_v8 }
 0xdb6   :  { %v1775_v28 = vpop.permute.xlu2 %1774 }
 0xdb7   :  { %v1777_v34 = vadd.f32 %v1775_v28, %v9761_v35 }
 0xdb9   :  { %8824 = vtanh.f32 %v1777_v34 }
 0xdbf   :  { %v8825_v27 = vpop.eup %8824 }
 0xdc0   :  { %1781 = vrot.lane.b32.xlu1 %v8825_v27, %s9325_s11 }
 0xdf9   :  { %v2270_v18 = vpop.permute.xlu2 %2269 }
 0xdfa   :  { %v2272_v36 = vmul.f32 %v9882_v29, %v2270_v18 }
 0xdfc   :  { %v2273_v22 = vadd.f32 %v9888_v19, %v2272_v36  ;;  %v9966_v19 = vld [vmem:[%s11155_s18] sm:$0x3] }
 0xe11   :  { %v2276_v21 = vpop.permute.xlu0 %2275 }
 0xe12   :  { %v2278_v24 = vmul.f32 %v9885_v20, %v2276_v21 }
 0xe14   :  { %v2279_v15 = vadd.f32 %v2278_v24, %v2273_v22 }
 0xe16   :  { %2304 = vrot.lane.b32.xlu0 %v2279_v15, %s9313_s30 }
 0xe32   :  { %v1782_v30 = vpop.permute.xlu1 %1781 }
 0xe33   :  { %v1784_v35 = vmul.f32 %v1782_v30, %v1779_v62 }
 0xe35   :  { %v9956_v7 = vadd.f32 %v1785_v9, %v1784_v35 }
 0xe37   :  { %1795 = vperm.xlu2 %8713, %v9956_v7   ;;  %1789 = vperm.xlu1 %8712, %v9956_v7  }
 0xe3f   :  { %2281 = vrot.lane.b32.xlu1 %v2279_v15, %s9323_s5  ;;  %8714 = vset.pattern.permute.xlu2 %v11140_v47 }
 0xe40   :  { %8716 = vset.pattern.permute.xlu1 %v11138_v3 }
 0xe88   :  { %v2305_v45 = vpop.permute.xlu0 %2304 }
 0xe91   :  { %v1796_v29 = vpop.permute.xlu2 %1795 }
 0xe92   :  { %v1798_v10 = vmul.f32 %v9972_v40, %v1796_v29 }
 0xea9   :  { %v1790_v20 = vpop.permute.xlu1 %1789 }
 0xeaa   :  { %v1792_v53 = vmul.f32 %v9966_v19, %v1790_v20 }
 0xeac   :  { %v1793_v42 = vadd.f32 %v9975_v6, %v1792_v53 }
 0xeae   :  { %v1799_v50 = vadd.f32 %v1798_v10, %v1793_v42 }
 0xeb0   :  { %1821 = vrot.lane.b32.xlu2 %v1799_v50, %s9328_s24  ;;  %v1800_v32 = vadd.f32 %v1799_v50, %v9704_v5 }
 0xeb1   :  { %v2282_v41 = vpop.permute.xlu1 %2281 }
 0xeb2   :  { %v2284_v11 = vadd.f32 %v2282_v41, %v9733_v49  ;;  %v8624_v23 = vmul.f32 -1.442695, %v1800_v32 }
 0xeb4   :  { %v8633_v12 = vmul.f32 -1.442695, %v2284_v11 }
 0xeb6   :  { %8826 = vpow2.f32 %v8633_v12 }
 0xebc   :  { %v8827_v44 = vpop.eup %8826 }
 0xebd   :  { %v2288_v48 = vadd.f32 1.0, %v8827_v44 }
 0xebf   :  { %8828 = vrcp.f32 %v2288_v48  ;;  %v2300_v54 = vand.u32 2147483648, %v2288_v48  ;;  %v2298_v58 = vand.u32 2147483647, %v2288_v48  ;;  %vm2294_vm7 = vweird.f32 %v2288_v48 }
 0xec0   :  { %8830 = vpow2.f32 %v8624_v23 }
 0xec1   :  { %v2301_v39 = vor.u32 1.1754944e-38, %v2300_v54  ;;  %vm2299_vm9 = vcmp.eq.f32.partialorder %v2298_v58, 8.507059e+37 }
 0xec5   :  { %v8829_v13 = vpop.eup %8828 }
 0xec6   :  { %v2290_v55 = vmul.f32 %v8829_v13, %v2288_v48  ;;  %vm2295_vm6 = vweird.f32 %v8829_v13  ;;  %v8831_v46 = vpop.eup %8830 }
 0xec7   :  { %vm2296_vm8 = vmor %vm2294_vm7, %vm2295_vm6  ;;  %v1804_v25 = vadd.f32 1.0, %v8831_v46 }
 0xec8   :  { %v2291_v56 = vsub.f32 1.0, %v2290_v55 }
 0xec9   :  { %8832 = vrcp.f32 %v1804_v25  ;;  %v1816_v36 = vand.u32 2147483648, %v1804_v25  ;;  %vm1810_vm11 = vweird.f32 %v1804_v25  ;;  %v1814_v21 = vand.u32 2147483647, %v1804_v25 }
 0xeca   :  { %v2292_v14 = vmul.f32 %v8829_v13, %v2291_v56 }
 0xecb   :  { %v1817_v24 = vor.u32 1.1754944e-38, %v1816_v36  ;;  %vm1815_vm13 = vcmp.eq.f32.partialorder %v1814_v21, 8.507059e+37 }
 0xecc   :  { %v2293_v16 = vadd.f32 %v8829_v13, %v2292_v14 }
 0xece   :  { %v2297_v17 = vsel %vm2296_vm8, %v8829_v13, %v2293_v16 }
 0xecf   :  { %v2302_v63 = vsel %vm2299_vm9, %v2301_v39, %v2297_v17  ;;  %v8833_v33 = vpop.eup %8832 }
 0xed0   :  { %v2307_v43 = vmul.f32 %v2305_v45, %v2302_v63  ;;  %v1806_v28 = vmul.f32 %v8833_v33, %v1804_v25  ;;  %vm1811_vm10 = vweird.f32 %v8833_v33  ;;  %v2314_v42 = vsub.f32 1.0, %v2302_v63 }
 0xed1   :  { %vm1812_vm12 = vmor %vm1810_vm11, %vm1811_vm10  ;;  %v2320_v41 = vmul.f32 %v2302_v63, %v9943_v26  ;;  %v2322_v63 = vld [vmem:[#allocation10] sm:$0x3] }
 0xed2   :  { %2309 = vrot.lane.b32.xlu2 %v2307_v43, %s9324_s23  ;;  %v1807_v34 = vsub.f32 1.0, %v1806_v28 }
 0xed4   :  { %v1808_v27 = vmul.f32 %v8833_v33, %v1807_v34 }
 0xed6   :  { %v1809_v18 = vadd.f32 %v8833_v33, %v1808_v27 }
 0xed8   :  { %v1813_v22 = vsel %vm1812_vm12, %v8833_v33, %v1809_v18 }
 0xed9   :  { %v1818_v62 = vsel %vm1815_vm13, %v1817_v24, %v1813_v22 }
 0xeda   :  { %v1831_v48 = vsub.f32 1.0, %v1818_v62 }
 0xf0a   :  { %v1822_v15 = vpop.permute.xlu2 %1821 }
 0xf0b   :  { %v1824_v30 = vmul.f32 %v1822_v15, %v1818_v62 }
 0xf0d   :  { %1826 = vrot.lane.b32.xlu1 %v1824_v30, %s9324_s23 }
 0xf2c   :  { %v2310_v9 = vpop.permute.xlu2 %2309 }
 0xf2d   :  { %v2312_v35 = vadd.f32 %v2310_v9, %v9733_v49 }
 0xf2f   :  { %8834 = vtanh.f32 %v2312_v35 }
 0xf35   :  { %v8835_v29 = vpop.eup %8834 }
 0xf36   :  { %2316 = vrot.lane.b32.xlu1 %v8835_v29, %s9325_s11 }
 0xf7f   :  { %v1827_v20 = vpop.permute.xlu1 %1826 }
 0xf80   :  { %v1829_v53 = vadd.f32 %v1827_v20, %v9704_v5  ;;  %v2323_v5 = vld [vmem:[#allocation11] sm:$0x3] }
 0xf81   :  { %v2333_v49 = vsel %vm2331_vm14, %v2323_v5, 0 }
 0xf82   :  { %8836 = vtanh.f32 %v1829_v53  ;;  %v9998_v44 = vand.u32 4294901760, %v2333_v49 }
 0xf84   :  { %v10001_v55 = vsub.f32 %v2333_v49, %v9998_v44  ;;  %2427 = vmatpush.msra.mxu3 %v9998_v44  ;;  %2351 = vmatpush.msra.mxu0 %v9998_v44 }
 0xf86   :  { %2404 = vmatpush.msra.mxu2 %v10001_v55 }
 0xf88   :  { %v8837_v10 = vpop.eup %8836 }
 0xf89   :  { %1833 = vrot.lane.b32.xlu0 %v8837_v10, %s9325_s11 }
 0xfa8   :  { %v2317_v50 = vpop.permute.xlu1 %2316 }
 0xfa9   :  { %v2319_v11 = vmul.f32 %v2317_v50, %v2314_v42 }
 0xfab   :  { %v2321_v12 = vadd.f32 %v2320_v41, %v2319_v11 }
 0xfad   :  { %2326 = vrot.lane.b32.xlu1 %v2321_v12, %s9331_s3 }
 0xfb5   :  { %2638 = vrot.lane.b32.xlu1 %v9943_v26, %s9331_s3 }
 0xfbd   :  { %2939 = vrot.lane.b32.xlu1 %v9912_v59, %s9331_s3 }
 0xfc5   :  { %3390 = vrot.lane.b32.xlu1 %v9895_v4, %s9325_s11  ;;  %v1837_v4 = vmul.f32 %v1818_v62, %v9956_v7 }
 0xfcd   :  { %3691 = vrot.lane.b32.xlu1 %v9926_v31, %s9325_s11  ;;  %v10007_v31 = vand.u32 4294901760, %v10001_v55 }
 0xfcf   :  { %v2379_v56 = vsub.f32 %v10001_v55, %v10007_v31  ;;  %2453 = vmatpush.msrb.mxu0 %v10007_v31 }
 0xfd1   :  { %v10017_v54 = vand.u32 4294901760, %v2379_v56 }
 0xfd3   :  { %2381 = vmatpush.msra.mxu1 %v10017_v54 }
 0xfd5   :  { %2475 = vmatpush.msrb.mxu1 %v9998_v44 }
 0xffb   :  { %v1834_v13 = vpop.permute.xlu0 %1833 }
 0xffc   :  { %v1836_v59 = vmul.f32 %v1834_v13, %v1831_v48 }
 0xffe   :  { %v10010_v26 = vadd.f32 %v1837_v4, %v1836_v59 }
0x1000   :  { %1847 = vperm.xlu0 %8715, %v10010_v26   ;;  %1841 = vperm.xlu2 %8714, %v10010_v26  }
0x1008   :  { %2481 = vrot.lane.b32.xlu2 %v9754_v61, %s9325_s11  ;;  %8720 = vset.pattern.permute.xlu0 %v11138_v3 }
0x1009   :  { %8717 = vset.pattern.permute.xlu2 %v11136_v52 }
0x1010   :  { %2788 = vrot.lane.b32.xlu2 %v9810_v1, %s9325_s11  ;;  %v2486_v1 = vsel %vm2331_vm14, %v2322_v63, 0 }
0x1011   :  { %v10031_v43 = vand.u32 4294901760, %v2486_v1 }
0x1013   :  { %2504 = vmatpush.msrb.mxu2 %v10031_v43 }
0x1018   :  { %3089 = vrot.lane.b32.xlu2 %v9860_v2, %s9325_s11  ;;  %v10034_v2 = vsub.f32 %v2486_v1, %v10031_v43 }
0x101a   :  { %v10040_v32 = vand.u32 4294901760, %v10034_v2 }
0x101c   :  { %v2532_v23 = vsub.f32 %v10034_v2, %v10040_v32 }
0x101e   :  { %v10047_v46 = vand.u32 4294901760, %v2532_v23 }
0x101f   :  { %v2327_v14 = vpop.permute.xlu1 %2326 }
0x1020   :  { %v2329_v58 = vsel %vm2328_vm15, %v2327_v14, 0  ;;  %2534 = vmatpush.msrb.mxu3 %v10047_v46 }
0x1021   :  { %v2352_v16 = vand.u32 4294901760, %v2329_v58 }
0x1023   :  { %v2353_v39 = vsub.f32 %v2329_v58, %v2352_v16  ;;  %2383 = vmatmul.f32.vlgmr.msra.gmra.mxu1 %v2352_v16 }
0x1024   :  { %2580 = vmatpush.msra.mxu1 %v10031_v43 }
0x1025   :  { %v2354_v17 = vand.u32 4294901760, %v2353_v39  ;;  %2407 = vmatmul.f32.vlgmr.msra.gmra.mxu2 %v2353_v39 }
0x1026   :  { %2606 = vmatpush.msra.mxu2 %v10040_v32 }
0x1027   :  { %v2355_v61 = vsub.f32 %v2353_v39, %v2354_v17  ;;  %2431 = vmatmul.f32.vlgmr.msra.gmra.mxu3 %v2354_v17  ;;  %v2639_v25 = vpop.permute.xlu1 %2638 }
0x1028   :  { %2628 = vmatpush.msra.mxu3 %v10031_v43  ;;  %v2640_v28 = vsel %vm2328_vm15, %v2639_v25, 0 }
0x1029   :  { %v2356_v45 = vand.u32 4294901760, %v2355_v61  ;;  %v2659_v34 = vand.u32 4294901760, %v2640_v28 }
0x102b   :  { %2357 = vmatmul.f32.vlgmr.msra.gmra.mxu0 %v2356_v45  ;;  %2477 = vmatmul.f32.vlgmr.msrb.gmra.mxu1 %v2352_v16  ;;  %v2660_v27 = vsub.f32 %v2640_v28, %v2659_v34 }
0x102c   :  { %2688 = vmatpush.msrb.mxu1 %v10017_v54  ;;  %2557 = vmatpush.msra.mxu0 %v10034_v2 }
0x102d   :  { %v2661_v22 = vand.u32 4294901760, %v2660_v27 }
0x102f   :  { %v2662_v62 = vsub.f32 %v2660_v27, %v2661_v22  ;;  %v2940_v53 = vpop.permute.xlu1 %2939 }
0x1030   :  { %v2941_v50 = vsel %vm2328_vm15, %v2940_v53, 0 }
0x1031   :  { %v2663_v35 = vand.u32 4294901760, %v2662_v62  ;;  %v2960_v5 = vand.u32 4294901760, %v2941_v50 }
0x1033   :  { %2455 = vmatmul.f32.vlgmr.msrb.gmra.mxu0 %v2352_v16 }
0x1034   :  { %2658 = vmatpush.msrb.mxu0 %v9998_v44 }
0x105a   :  { %v1842_v33 = vpop.permute.xlu2 %1841 }
0x105b   :  { %v1844_v20 = vmul.f32 %v9966_v19, %v1842_v33 }
0x105d   :  { %v1845_v41 = vadd.f32 %v9975_v6, %v1844_v20 }
0x1062   :  { %v2482_v18 = vpop.permute.xlu2 %2481 }
0x1063   :  { %v2483_v36 = vsel %vm2328_vm15, %v2482_v18, 0 }
0x1064   :  { %v2505_v21 = vand.u32 4294901760, %v2483_v36 }
0x1066   :  { %v2506_v24 = vsub.f32 %v2483_v36, %v2505_v21  ;;  %2536 = vmatmul.f32.vlgmr.msrb.gmra.mxu3 %v2505_v21  ;;  %v3391_v36 = vpop.permute.xlu1 %3390 }
0x1067   :  { %2734 = vmatpush.msrb.mxu3 %v9998_v44 }
0x1068   :  { %v2507_v15 = vand.u32 4294901760, %v2506_v24  ;;  %2560 = vmatmul.f32.vlgmr.msra.gmra.mxu0 %v2506_v24 }
0x1069   :  { %2760 = vmatpush.msra.mxu0 %v10007_v31 }
0x106a   :  { %v2508_v30 = vsub.f32 %v2506_v24, %v2507_v15  ;;  %2584 = vmatmul.f32.vlgmr.msra.gmra.mxu1 %v2507_v15  ;;  %v2789_v29 = vpop.permute.xlu2 %2788  ;;  %v3392_v15 = vsel %vm2328_vm15, %v3391_v36, 0 }
0x106b   :  { %2782 = vmatpush.msra.mxu1 %v9998_v44  ;;  %v2790_v10 = vsel %vm2328_vm15, %v2789_v29, 0 }
0x106c   :  { %v2509_v9 = vand.u32 4294901760, %v2508_v30  ;;  %v2809_v19 = vand.u32 4294901760, %v2790_v10  ;;  %v3411_v30 = vand.u32 4294901760, %v3392_v15 }
0x106e   :  { %2510 = vmatmul.f32.vlgmr.msrb.gmra.mxu2 %v2509_v9  ;;  %2630 = vmatmul.f32.vlgmr.msra.gmra.mxu3 %v2505_v21  ;;  %v2810_v49 = vsub.f32 %v2790_v10, %v2809_v19  ;;  %v3412_v9 = vsub.f32 %v3392_v15, %v3411_v30 }
0x106f   :  { %2711 = vmatpush.msrb.mxu2 %v10001_v55  ;;  %2838 = vmatpush.msra.mxu3 %v10047_v46 }
0x1070   :  { %2664 = vmatmul.f32.vlgmr.msrb.gmra.mxu0 %v2663_v35  ;;  %v2811_v6 = vand.u32 4294901760, %v2810_v49  ;;  %v3413_v53 = vand.u32 4294901760, %v3412_v9 }
0x1071   :  { %2861 = vmatpush.msrb.mxu0 %v10034_v2 }
0x1072   :  { %v1848_v42 = vpop.permute.xlu0 %1847  ;;  %2690 = vmatmul.f32.vlgmr.msrb.gmra.mxu1 %v2659_v34  ;;  %v2812_v13 = vsub.f32 %v2810_v49, %v2811_v6  ;;  %v3090_v14 = vpop.permute.xlu2 %3089 }
0x1073   :  { %v1850_v11 = vmul.f32 %v9972_v40, %v1848_v42  ;;  %2884 = vmatpush.msrb.mxu1 %v10031_v43  ;;  %v2961_v40 = vsub.f32 %v2941_v50, %v2960_v5  ;;  %v3414_v50 = vsub.f32 %v3412_v9, %v3413_v53 }
0x1074   :  { %v2813_v59 = vand.u32 4294901760, %v2812_v13 }
0x1075   :  { %v10065_v12 = vadd.f32 %v1850_v11, %v1845_v41  ;;  %v2962_v48 = vand.u32 4294901760, %v2961_v40 }
0x1076   :  { %2608 = vmatmul.f32.vlgmr.msra.gmra.mxu2 %v2505_v21  ;;  %2738 = vmatmul.f32.vlgmr.msrb.gmra.mxu3 %v2661_v22 }
0x1077   :  { %1873 = vrot.lane.b32.xlu0 %v10065_v12, %s9328_s24  ;;  %2808 = vmatpush.msra.mxu2 %v10031_v43  ;;  %v2963_v4 = vsub.f32 %v2961_v40, %v2962_v48  ;;  %v1852_v17 = vadd.f32 %v10065_v12, %v9678_v0  ;;  %v3692_v12 = vpop.permute.xlu1 %3691 }
0x1078   :  { %2762 = vmatmul.f32.vlgmr.msra.gmra.mxu0 %v2659_v34  ;;  %2932 = vmatpush.msrb.mxu3 %v10031_v43 }
0x1079   :  { %2959 = vmatpush.msra.mxu0 %v9998_v44  ;;  %v2964_v56 = vand.u32 4294901760, %v2963_v4  ;;  %v8625_v61 = vmul.f32 -1.442695, %v1852_v17 }
0x107a   :  { %2784 = vmatmul.f32.vlgmr.msra.gmra.mxu1 %v2659_v34 }
0x107b   :  { %2989 = vmatpush.msra.mxu1 %v10017_v54  ;;  %8838 = vpow2.f32 %v8625_v61 }
0x107e   :  { %2714 = vmatmul.f32.vlgmr.msrb.gmra.mxu2 %v2660_v27  ;;  %2840 = vmatmul.f32.vlgmr.msra.gmra.mxu3 %v2809_v19 }
0x107f   :  { %3240 = vrot.lane.b32.xlu0 %v9874_v57, %s9331_s3  ;;  %2910 = vmatpush.msrb.mxu2 %v10040_v32  ;;  %v3091_v57 = vsel %vm2328_vm15, %v3090_v14, 0 }
0x1080   :  { %2864 = vmatmul.f32.vlgmr.msrb.gmra.mxu0 %v2810_v49  ;;  %3035 = vmatpush.msra.mxu3 %v9998_v44  ;;  %v3110_v58 = vand.u32 4294901760, %v3091_v57  ;;  %v3693_v49 = vsel %vm2328_vm15, %v3692_v12, 0 }
0x1081   :  { %3061 = vmatpush.msrb.mxu0 %v10007_v31  ;;  %v8839_v45 = vpop.eup %8838 }
0x1082   :  { %2888 = vmatmul.f32.vlgmr.msrb.gmra.mxu1 %v2811_v6  ;;  %v1856_v63 = vadd.f32 1.0, %v8839_v45 }
0x1083   :  { %3083 = vmatpush.msrb.mxu1 %v9998_v44 }
0x1084   :  { %8840 = vrcp.f32 %v1856_v63  ;;  %v1868_v34 = vand.u32 2147483648, %v1856_v63  ;;  %vm1862_vm1 = vweird.f32 %v1856_v63  ;;  %v1866_v27 = vand.u32 2147483647, %v1856_v63 }
0x1086   :  { %2814 = vmatmul.f32.vlgmr.msra.gmra.mxu2 %v2813_v59  ;;  %2934 = vmatmul.f32.vlgmr.msrb.gmra.mxu3 %v2809_v19  ;;  %v1869_v21 = vor.u32 1.1754944e-38, %v1868_v34  ;;  %vm1867_vm3 = vcmp.eq.f32.partialorder %v1866_v27, 8.507059e+37 }
0x1087   :  { %3541 = vrot.lane.b32.xlu0 %v9834_v37, %s9331_s3  ;;  %3012 = vmatpush.msra.mxu2 %v10001_v55  ;;  %v3111_v37 = vsub.f32 %v3091_v57, %v3110_v58 }
0x1088   :  { %2965 = vmatmul.f32.vlgmr.msra.gmra.mxu0 %v2964_v56  ;;  %3139 = vmatpush.msrb.mxu3 %v10047_v46 }
0x1089   :  { %3162 = vmatpush.msra.mxu0 %v10034_v2  ;;  %v3112_v16 = vand.u32 4294901760, %v3111_v37 }
0x108a   :  { %2991 = vmatmul.f32.vlgmr.msra.gmra.mxu1 %v2960_v5  ;;  %v8841_v1 = vpop.eup %8840 }
0x108b   :  { %3185 = vmatpush.msra.mxu1 %v10031_v43  ;;  %v1858_v23 = vmul.f32 %v8841_v1, %v1856_v63  ;;  %vm1863_vm0 = vweird.f32 %v8841_v1 }
0x108c   :  { %vm1864_vm2 = vmor %vm1862_vm1, %vm1863_vm0 }
0x108d   :  { %v1859_v25 = vsub.f32 1.0, %v1858_v23 }
0x108e   :  { %2912 = vmatmul.f32.vlgmr.msrb.gmra.mxu2 %v2809_v19  ;;  %3039 = vmatmul.f32.vlgmr.msra.gmra.mxu3 %v2962_v48  ;;  %v3415_v19 = vand.u32 4294901760, %v3414_v50 }
0x108f   :  { %3992 = vrot.lane.b32.xlu0 %v9956_v7, %s9325_s11  ;;  %3109 = vmatpush.msrb.mxu2 %v10031_v43  ;;  %v3113_v7 = vsub.f32 %v3111_v37, %v3112_v16  ;;  %v1860_v33 = vmul.f32 %v8841_v1, %v1859_v25 }
0x1090   :  { %3063 = vmatmul.f32.vlgmr.msrb.gmra.mxu0 %v2960_v5  ;;  %3233 = vmatpush.msra.mxu3 %v10031_v43 }
0x1091   :  { %3260 = vmatpush.msrb.mxu0 %v9998_v44  ;;  %v3114_v39 = vand.u32 4294901760, %v3113_v7  ;;  %v1861_v28 = vadd.f32 %v8841_v1, %v1860_v33 }
0x1092   :  { %3085 = vmatmul.f32.vlgmr.msrb.gmra.mxu1 %v2960_v5 }
0x1093   :  { %3290 = vmatpush.msrb.mxu1 %v10017_v54  ;;  %v1865_v18 = vsel %vm1864_vm2, %v8841_v1, %v1861_v28 }
0x1094   :  { %v10103_v24 = vsel %vm1867_vm3, %v1869_v21, %v1865_v18 }
0x1096   :  { %3015 = vmatmul.f32.vlgmr.msra.gmra.mxu2 %v2961_v40  ;;  %3141 = vmatmul.f32.vlgmr.msrb.gmra.mxu3 %v3110_v58  ;;  %v3712_v40 = vand.u32 4294901760, %v3693_v49 }
0x1097   :  { %4293 = vrot.lane.b32.xlu0 %v10010_v26, %s9325_s11  ;;  %3211 = vmatpush.msra.mxu2 %v10040_v32 }
0x1098   :  { %3165 = vmatmul.f32.vlgmr.msra.gmra.mxu0 %v3111_v37  ;;  %3336 = vmatpush.msrb.mxu3 %v9998_v44  ;;  %v3713_v48 = vsub.f32 %v3693_v49, %v3712_v40 }
0x1099   :  { %3362 = vmatpush.msra.mxu0 %v10007_v31 }
0x109a   :  { %3189 = vmatmul.f32.vlgmr.msra.gmra.mxu1 %v3112_v16  ;;  %v3714_v4 = vand.u32 4294901760, %v3713_v48 }
0x109b   :  { %3384 = vmatpush.msra.mxu1 %v9998_v44 }
0x109c   :  { %v3715_v56 = vsub.f32 %v3713_v48, %v3714_v4 }
0x109e   :  { %3115 = vmatmul.f32.vlgmr.msrb.gmra.mxu2 %v3114_v39  ;;  %3235 = vmatmul.f32.vlgmr.msra.gmra.mxu3 %v3110_v58  ;;  %v3716_v57 = vand.u32 4294901760, %v3715_v56 }
0x109f   :  { %3313 = vmatpush.msrb.mxu2 %v10001_v55  ;;  %3440 = vmatpush.msra.mxu3 %v10047_v46 }
0x10a0   :  { %v10181_v12 = vpop.f32.mrf.mxu1 }
0x10a6   :  { %3213 = vmatmul.f32.vlgmr.msra.gmra.mxu2 %v3110_v58 }
0x10a7   :  { %3410 = vmatpush.msra.mxu2 %v10031_v43 }
0x10aa   :  { %v10186_v49 = vpop.f32.mrf.mxu3 }
0x10e9   :  { %v1874_v22 = vpop.permute.xlu0 %1873 }
0x10ea   :  { %v1876_v62 = vmul.f32 %v1874_v22, %v10103_v24 }
0x10ec   :  { %1878 = vrot.lane.b32.xlu2 %v1876_v62, %s9324_s23 }
0x10f1   :  { %v3241_v35 = vpop.permute.xlu0 %3240 }
0x10f2   :  { %v3242_v29 = vsel %vm2328_vm15, %v3241_v35, 0 }
0x10f3   :  { %v3261_v20 = vand.u32 4294901760, %v3242_v29 }
0x10f4   :  { %3842 = vrot.lane.b32.xlu2 %v9786_v38, %s9331_s3 }
0x10f5   :  { %v3262_v10 = vsub.f32 %v3242_v29, %v3261_v20  ;;  %3292 = vmatmul.f32.vlgmr.msrb.gmra.mxu1 %v3261_v20 }
0x10f6   :  { %3486 = vmatpush.msrb.mxu1 %v10031_v43 }
0x10f7   :  { %v3263_v42 = vand.u32 4294901760, %v3262_v10  ;;  %3316 = vmatmul.f32.vlgmr.msrb.gmra.mxu2 %v3262_v10 }
0x10f8   :  { %3512 = vmatpush.msrb.mxu2 %v10040_v32 }
0x10f9   :  { %v3264_v41 = vsub.f32 %v3262_v10, %v3263_v42  ;;  %3340 = vmatmul.f32.vlgmr.msrb.gmra.mxu3 %v3263_v42  ;;  %v3542_v38 = vpop.permute.xlu0 %3541  ;;  %v1889_v42 = vmul.f32 %v10103_v24, %v10010_v26  ;;  %v10179_v26 = vpop.f32.mrf.mxu0 }
0x10fa   :  { %3534 = vmatpush.msrb.mxu3 %v10031_v43  ;;  %v3543_v5 = vsel %vm2328_vm15, %v3542_v38, 0 }
0x10fb   :  { %v3265_v11 = vand.u32 4294901760, %v3264_v41 }
0x10fc   :  { %4143 = vrot.lane.b32.xlu2 %v9737_v60, %s9331_s3  ;;  %v3562_v60 = vand.u32 4294901760, %v3543_v5 }
0x10fd   :  { %3266 = vmatmul.f32.vlgmr.msrb.gmra.mxu0 %v3265_v11  ;;  %3386 = vmatmul.f32.vlgmr.msra.gmra.mxu1 %v3261_v20 }
0x10fe   :  { %3463 = vmatpush.msrb.mxu0 %v10034_v2  ;;  %3591 = vmatpush.msra.mxu1 %v10017_v54  ;;  %v3563_v6 = vsub.f32 %v3543_v5, %v3562_v60  ;;  %v10184_v5 = vpop.f32.mrf.mxu2 }
0x10ff   :  { %3416 = vmatmul.f32.vlgmr.msra.gmra.mxu2 %v3415_v19 }
0x1100   :  { %3614 = vmatpush.msra.mxu2 %v10001_v55  ;;  %v3564_v13 = vand.u32 4294901760, %v3563_v6 }
0x1101   :  { %3442 = vmatmul.f32.vlgmr.msra.gmra.mxu3 %v3411_v30  ;;  %v3993_v58 = vpop.permute.xlu0 %3992 }
0x1102   :  { %3637 = vmatpush.msra.mxu3 %v9998_v44  ;;  %v3565_v59 = vsub.f32 %v3563_v6, %v3564_v13  ;;  %v3994_v16 = vsel %vm2328_vm15, %v3993_v58, 0 }
0x1103   :  { %v4013_v39 = vand.u32 4294901760, %v3994_v16 }
0x1104   :  { %v3566_v14 = vand.u32 4294901760, %v3565_v59 }
0x1105   :  { %3364 = vmatmul.f32.vlgmr.msra.gmra.mxu0 %v3261_v20  ;;  %3490 = vmatmul.f32.vlgmr.msrb.gmra.mxu1 %v3413_v53  ;;  %v4014_v17 = vsub.f32 %v3994_v16, %v4013_v39 }
0x1106   :  { %3561 = vmatpush.msra.mxu0 %v9998_v44  ;;  %3685 = vmatpush.msrb.mxu1 %v9998_v44 }
0x1107   :  { %3514 = vmatmul.f32.vlgmr.msrb.gmra.mxu2 %v3411_v30  ;;  %v4015_v23 = vand.u32 4294901760, %v4014_v17 }
0x1108   :  { %3711 = vmatpush.msrb.mxu2 %v10031_v43 }
0x1109   :  { %3536 = vmatmul.f32.vlgmr.msrb.gmra.mxu3 %v3411_v30  ;;  %v4294_v36 = vpop.permute.xlu0 %4293 }
0x110a   :  { %3741 = vmatpush.msrb.mxu3 %v10047_v46  ;;  %v4295_v22 = vsel %vm2328_vm15, %v4294_v36, 0 }
0x110b   :  { %v4314_v15 = vand.u32 4294901760, %v4295_v22 }
0x110d   :  { %3466 = vmatmul.f32.vlgmr.msrb.gmra.mxu0 %v3412_v9  ;;  %3593 = vmatmul.f32.vlgmr.msra.gmra.mxu1 %v3562_v60  ;;  %v4315_v30 = vsub.f32 %v4295_v22, %v4314_v15 }
0x110e   :  { %3663 = vmatpush.msrb.mxu0 %v10007_v31  ;;  %3787 = vmatpush.msra.mxu1 %v10031_v43 }
0x110f   :  { %3617 = vmatmul.f32.vlgmr.msra.gmra.mxu2 %v3563_v6  ;;  %v4316_v35 = vand.u32 4294901760, %v4315_v30  ;;  %v10196_v6 = vpop.f32.mrf.mxu3 }
0x1110   :  { %3813 = vmatpush.msra.mxu2 %v10040_v32 }
0x1111   :  { %3641 = vmatmul.f32.vlgmr.msra.gmra.mxu3 %v3564_v13  ;;  %v4317_v20 = vsub.f32 %v4315_v30, %v4316_v35 }
0x1112   :  { %3835 = vmatpush.msra.mxu3 %v10031_v43 }
0x1113   :  { %v4318_v10 = vand.u32 4294901760, %v4317_v20 }
0x1115   :  { %3567 = vmatmul.f32.vlgmr.msra.gmra.mxu0 %v3566_v14  ;;  %3687 = vmatmul.f32.vlgmr.msrb.gmra.mxu1 %v3562_v60 }
0x1116   :  { %3764 = vmatpush.msra.mxu0 %v10034_v2  ;;  %3892 = vmatpush.msrb.mxu1 %v10017_v54 }
0x1117   :  { %3717 = vmatmul.f32.vlgmr.msrb.gmra.mxu2 %v3716_v57 }
0x1118   :  { %3915 = vmatpush.msrb.mxu2 %v10001_v55 }
0x1119   :  { %3743 = vmatmul.f32.vlgmr.msrb.gmra.mxu3 %v3712_v40 }
0x111a   :  { %3938 = vmatpush.msrb.mxu3 %v9998_v44 }
0x111d   :  { %3665 = vmatmul.f32.vlgmr.msrb.gmra.mxu0 %v3562_v60  ;;  %3791 = vmatmul.f32.vlgmr.msra.gmra.mxu1 %v3714_v4  ;;  %v10188_v60 = vpop.f32.mrf.mxu0  ;;  %v10204_v4 = vpop.f32.mrf.mxu3 }
0x111e   :  { %3862 = vmatpush.msrb.mxu0 %v9998_v44  ;;  %3986 = vmatpush.msra.mxu1 %v9998_v44 }
0x111f   :  { %3815 = vmatmul.f32.vlgmr.msra.gmra.mxu2 %v3712_v40 }
0x1120   :  { %4012 = vmatpush.msra.mxu2 %v10031_v43 }
0x1121   :  { %3837 = vmatmul.f32.vlgmr.msra.gmra.mxu3 %v3712_v40  ;;  %v10192_v40 = vpop.f32.mrf.mxu2 }
0x1122   :  { %4042 = vmatpush.msra.mxu3 %v10047_v46 }
0x1125   :  { %3767 = vmatmul.f32.vlgmr.msra.gmra.mxu0 %v3713_v48  ;;  %v10212_v57 = vpop.f32.mrf.mxu3 }
0x1126   :  { %3964 = vmatpush.msra.mxu0 %v10007_v31  ;;  %11157 = vst [vmem:[#allocation33_spill] sm:$0xff] %v10212_v57 }
0x1129   :  { %v10200_v13 = vpop.f32.mrf.mxu2 }
0x1131   :  { %v10208_v56 = vpop.f32.mrf.mxu2 }
0x1146   :  { %v1879_v37 = vpop.permute.xlu2 %1878 }
0x1147   :  { %v1881_v7 = vadd.f32 %v1879_v37, %v9678_v0  ;;  %v4016_v0 = vsub.f32 %v4014_v17, %v4015_v23  ;;  %v10216_v37 = vpop.f32.mrf.mxu2 }
0x1148   :  { %11159 = vst [vmem:[#allocation35_spill] sm:$0xff] %v10216_v37 }
0x1149   :  { %8842 = vtanh.f32 %v1881_v7  ;;  %v4017_v27 = vand.u32 4294901760, %v4016_v0  ;;  %v10220_v7 = vpop.f32.mrf.mxu3 }
0x114a   :  { %11161 = vst [vmem:[#allocation37_spill] sm:$0xff] %v10220_v7 }
0x114e   :  { %v3843_v61 = vpop.permute.xlu2 %3842 }
0x114f   :  { %v8843_v45 = vpop.eup %8842  ;;  %v3844_v63 = vsel %vm2328_vm15, %v3843_v61, 0 }
0x1150   :  { %v3863_v1 = vand.u32 4294901760, %v3844_v63  ;;  %1885 = vrot.lane.b32.xlu1 %v8843_v45, %s9325_s11 }
0x1151   :  { %v10228_v45 = vpop.f32.mrf.mxu3 }
0x1152   :  { %v3864_v25 = vsub.f32 %v3844_v63, %v3863_v1  ;;  %3894 = vmatmul.f32.vlgmr.msrb.gmra.mxu1 %v3863_v1  ;;  %11165 = vst [vmem:[#allocation41_spill] sm:$0xff] %v10228_v45 }
0x1153   :  { %4088 = vmatpush.msrb.mxu1 %v10031_v43 }
0x1154   :  { %v3865_v33 = vand.u32 4294901760, %v3864_v25  ;;  %3918 = vmatmul.f32.vlgmr.msrb.gmra.mxu2 %v3864_v25 }
0x1155   :  { %4114 = vmatpush.msrb.mxu2 %v10040_v32 }
0x1156   :  { %v3866_v28 = vsub.f32 %v3864_v25, %v3865_v33  ;;  %3942 = vmatmul.f32.vlgmr.msrb.gmra.mxu3 %v3865_v33  ;;  %v4144_v18 = vpop.permute.xlu2 %4143 }
0x1157   :  { %4136 = vmatpush.msrb.mxu3 %v10031_v43  ;;  %v4145_v21 = vsel %vm2328_vm15, %v4144_v18, 0 }
0x1158   :  { %v3867_v34 = vand.u32 4294901760, %v3866_v28  ;;  %4444 = vrot.lane.b32.xlu1 %v9687_v51, %s9331_s3  ;;  %v4164_v51 = vand.u32 4294901760, %v4145_v21 }
0x1159   :  { %v10236_v25 = vpop.f32.mrf.mxu3 }
0x115a   :  { %3868 = vmatmul.f32.vlgmr.msrb.gmra.mxu0 %v3867_v34  ;;  %3988 = vmatmul.f32.vlgmr.msra.gmra.mxu1 %v3863_v1  ;;  %v4165_v62 = vsub.f32 %v4145_v21, %v4164_v51  ;;  %11169 = vst [vmem:[#allocation45_spill] sm:$0xff] %v10236_v25 }
0x115b   :  { %4065 = vmatpush.msrb.mxu0 %v10034_v2  ;;  %4193 = vmatpush.msra.mxu1 %v10017_v54 }
0x115c   :  { %4018 = vmatmul.f32.vlgmr.msra.gmra.mxu2 %v4017_v27  ;;  %v4166_v9 = vand.u32 4294901760, %v4165_v62 }
0x115d   :  { %4216 = vmatpush.msra.mxu2 %v10001_v55 }
0x115e   :  { %4044 = vmatmul.f32.vlgmr.msra.gmra.mxu3 %v4013_v39  ;;  %v4167_v29 = vsub.f32 %v4165_v62, %v4166_v9 }
0x115f   :  { %4239 = vmatpush.msra.mxu3 %v9998_v44 }
0x1160   :  { %v4168_v53 = vand.u32 4294901760, %v4167_v29 }
0x1161   :  { %v10244_v27 = vpop.f32.mrf.mxu3 }
0x1162   :  { %3966 = vmatmul.f32.vlgmr.msra.gmra.mxu0 %v3863_v1  ;;  %4092 = vmatmul.f32.vlgmr.msrb.gmra.mxu1 %v4015_v23  ;;  %11173 = vst [vmem:[#allocation49_spill] sm:$0xff] %v10244_v27 }
0x1163   :  { %4163 = vmatpush.msra.mxu0 %v9998_v44  ;;  %4287 = vmatpush.msrb.mxu1 %v9998_v44 }
0x1164   :  { %4116 = vmatmul.f32.vlgmr.msrb.gmra.mxu2 %v4013_v39 }
0x1165   :  { %4313 = vmatpush.msrb.mxu2 %v10031_v43 }
0x1166   :  { %4138 = vmatmul.f32.vlgmr.msrb.gmra.mxu3 %v4013_v39 }
0x1167   :  { %4343 = vmatpush.msrb.mxu3 %v10047_v46 }
0x116a   :  { %4068 = vmatmul.f32.vlgmr.msrb.gmra.mxu0 %v4014_v17  ;;  %4195 = vmatmul.f32.vlgmr.msra.gmra.mxu1 %v4164_v51  ;;  %v10224_v17 = vpop.f32.mrf.mxu2 }
0x116b   :  { %4265 = vmatpush.msrb.mxu0 %v10007_v31  ;;  %4389 = vmatpush.msra.mxu1 %v10031_v43  ;;  %11163 = vst [vmem:[#allocation39_spill] sm:$0xff] %v10224_v17 }
0x116c   :  { %4219 = vmatmul.f32.vlgmr.msra.gmra.mxu2 %v4165_v62 }
0x116d   :  { %4415 = vmatpush.msra.mxu2 %v10040_v32 }
0x116e   :  { %4243 = vmatmul.f32.vlgmr.msra.gmra.mxu3 %v4166_v9  ;;  %v10254_v9 = vld [vmem:[#allocation17 + $0x2] sm:$0x3] }
0x116f   :  { %4437 = vmatpush.msra.mxu3 %v10031_v43 }
0x1172   :  { %4169 = vmatmul.f32.vlgmr.msra.gmra.mxu0 %v4168_v53  ;;  %4289 = vmatmul.f32.vlgmr.msrb.gmra.mxu1 %v4164_v51  ;;  %v10232_v1 = vpop.f32.mrf.mxu2  ;;  %v5155_v53 = vmul.f32 0.0, %v10254_v9 }
0x1173   :  { %4366 = vmatpush.msra.mxu0 %v10034_v2  ;;  %4494 = vmatpush.msrb.mxu1 %v10017_v54  ;;  %11167 = vst [vmem:[#allocation43_spill] sm:$0xff] %v10232_v1 }
0x1174   :  { %4319 = vmatmul.f32.vlgmr.msrb.gmra.mxu2 %v4318_v10 }
0x1175   :  { %4517 = vmatpush.msrb.mxu2 %v10001_v55  ;;  %v1883_v55 = vsub.f32 1.0, %v10103_v24 }
0x1176   :  { %4345 = vmatmul.f32.vlgmr.msrb.gmra.mxu3 %v4314_v15 }
0x1177   :  { %4540 = vmatpush.msrb.mxu3 %v9998_v44 }
0x117a   :  { %4267 = vmatmul.f32.vlgmr.msrb.gmra.mxu0 %v4164_v51  ;;  %4393 = vmatmul.f32.vlgmr.msra.gmra.mxu1 %v4316_v35  ;;  %v10240_v0 = vpop.f32.mrf.mxu2  ;;  %v10249_v51 = vld [vmem:[#allocation17] sm:$0x3]  ;;  %v10256_v35 = vld [vmem:[#allocation19] sm:$0x3] }
0x117b   :  { %4464 = vmatpush.msrb.mxu0 %v9998_v44  ;;  %4588 = vmatpush.msra.mxu1 %v9998_v44  ;;  %11171 = vst [vmem:[#allocation47_spill] sm:$0xff] %v10240_v0  ;;  %v5153_v62 = vmul.f32 0.0, %v10249_v51 }
0x117c   :  { %4417 = vmatmul.f32.vlgmr.msra.gmra.mxu2 %v4314_v15 }
0x117d   :  { %4615 = vmatpush.msra.mxu2 %v10031_v43  ;;  %v5154_v20 = vadd.f32 %v5153_v62, %v10256_v35 }
0x117e   :  { %4439 = vmatmul.f32.vlgmr.msra.gmra.mxu3 %v4314_v15 }
0x117f   :  { %4645 = vmatpush.msra.mxu3 %v10047_v46 }
0x1182   :  { %4369 = vmatmul.f32.vlgmr.msra.gmra.mxu0 %v4315_v30  ;;  %v10252_v30 = vpop.f32.mrf.mxu2 }
0x1183   :  { %4566 = vmatpush.msra.mxu0 %v10007_v31  ;;  %11175 = vst [vmem:[#allocation51_spill] sm:$0xff] %v10252_v30 }
0x11c2   :  { %v1886_v54 = vpop.permute.xlu1 %1885 }
0x11c3   :  { %v1888_v50 = vmul.f32 %v1886_v54, %v1883_v55  ;;  %v5156_v54 = vadd.f32 %v5155_v53, %v5154_v20 }
0x11c5   :  { %v1890_v41 = vadd.f32 %v1889_v42, %v1888_v50  ;;  %v10262_v42 = vpop.f32.mrf.mxu3  ;;  %5158 = vrot.lane.b32.xlu0 %v5156_v54, %s9323_s5  ;;  %5181 = vrot.lane.b32.xlu1 %v5156_v54, %s9313_s30 }
0x11c6   :  { %11177 = vst [vmem:[#allocation53_spill] sm:$0xff] %v10262_v42 }
0x11c7   :  { %4595 = vrot.lane.b32.xlu2 %v1890_v41, %s9325_s11  ;;  %v10268_v41 = vpop.f32.mrf.mxu2 }
0x11c8   :  { %11179 = vst [vmem:[#allocation55_spill] sm:$0xff] %v10268_v41 }
0x11ca   :  { %v4445_v44 = vpop.permute.xlu1 %4444 }
0x11cb   :  { %v4446_v11 = vsel %vm2328_vm15, %v4445_v44, 0 }
0x11cc   :  { %v4465_v19 = vand.u32 4294901760, %v4446_v11 }
0x11cd   :  { %v10270_v44 = vpop.f32.mrf.mxu3 }
0x11ce   :  { %v4466_v38 = vsub.f32 %v4446_v11, %v4465_v19  ;;  %4496 = vmatmul.f32.vlgmr.msrb.gmra.mxu1 %v4465_v19  ;;  %11180 = vst [vmem:[#allocation56_spill] sm:$0xff] %v10270_v44 }
0x11cf   :  { %4691 = vmatpush.msrb.mxu1 %v10031_v43 }
0x11d0   :  { %v4467_v46 = vand.u32 4294901760, %v4466_v38  ;;  %4520 = vmatmul.f32.vlgmr.msrb.gmra.mxu2 %v4466_v38 }
0x11d1   :  { %4717 = vmatpush.msrb.mxu2 %v10040_v32  ;;  %v10190_v32 = vpop.f32.mrf.mxu1 }
0x11d2   :  { %v4468_v31 = vsub.f32 %v4466_v38, %v4467_v46  ;;  %4544 = vmatmul.f32.vlgmr.msrb.gmra.mxu3 %v4467_v46  ;;  %v10276_v38 = vpop.f32.mrf.mxu2 }
0x11d3   :  { %4739 = vmatpush.msrb.mxu3 %v10031_v43  ;;  %v10194_v43 = vpop.f32.mrf.mxu0  ;;  %11183 = vst [vmem:[#allocation59_spill] sm:$0xff] %v10276_v38 }
0x11d4   :  { %v4469_v24 = vand.u32 4294901760, %v4468_v31 }
0x11d5   :  { %v10278_v46 = vpop.f32.mrf.mxu3 }
0x11d6   :  { %4470 = vmatmul.f32.vlgmr.msrb.gmra.mxu0 %v4469_v24  ;;  %4590 = vmatmul.f32.vlgmr.msra.gmra.mxu1 %v4465_v19  ;;  %11184 = vst [vmem:[#allocation60_spill] sm:$0xff] %v10278_v46 }
0x11d7   :  { %4668 = vmatpush.msrb.mxu0 %v10034_v2 }
0x11d9   :  { %v10198_v48 = vpop.f32.mrf.mxu1 }
0x11db   :  { %v10202_v2 = vpop.f32.mrf.mxu0 }
0x11de   :  { %4568 = vmatmul.f32.vlgmr.msra.gmra.mxu0 %v4465_v19 }
0x11e1   :  { %v10206_v59 = vpop.f32.mrf.mxu1 }
0x11e3   :  { %v10210_v14 = vpop.f32.mrf.mxu0 }
0x11e4   :  { %11156 = vst [vmem:[#allocation32_spill] sm:$0xff] %v10210_v14 }
0x11e9   :  { %v10214_v58 = vpop.f32.mrf.mxu1 }
0x11ea   :  { %11158 = vst [vmem:[#allocation34_spill] sm:$0xff] %v10214_v58 }
0x11eb   :  { %v10218_v16 = vpop.f32.mrf.mxu0 }
0x11ec   :  { %11160 = vst [vmem:[#allocation36_spill] sm:$0xff] %v10218_v16 }
0x11f1   :  { %v10222_v39 = vpop.f32.mrf.mxu1 }
0x11f2   :  { %11162 = vst [vmem:[#allocation38_spill] sm:$0xff] %v10222_v39 }
0x11f3   :  { %v10226_v61 = vpop.f32.mrf.mxu0 }
0x11f4   :  { %11164 = vst [vmem:[#allocation40_spill] sm:$0xff] %v10226_v61 }
0x11f9   :  { %v10230_v63 = vpop.f32.mrf.mxu1 }
0x11fa   :  { %11166 = vst [vmem:[#allocation42_spill] sm:$0xff] %v10230_v63 }
0x11fb   :  { %v10234_v23 = vpop.f32.mrf.mxu0 }
0x11fc   :  { %11168 = vst [vmem:[#allocation44_spill] sm:$0xff] %v10234_v23 }
0x1201   :  { %v10238_v33 = vpop.f32.mrf.mxu1 }
0x1202   :  { %11170 = vst [vmem:[#allocation46_spill] sm:$0xff] %v10238_v33 }
0x1203   :  { %v10242_v34 = vpop.f32.mrf.mxu0 }
0x1204   :  { %11172 = vst [vmem:[#allocation48_spill] sm:$0xff] %v10242_v34 }
0x1209   :  { %v10247_v21 = vpop.f32.mrf.mxu1 }
0x120a   :  { %11174 = vst [vmem:[#allocation50_spill] sm:$0xff] %v10247_v21 }
0x120b   :  { %v10260_v10 = vpop.f32.mrf.mxu0 }
0x120c   :  { %11176 = vst [vmem:[#allocation52_spill] sm:$0xff] %v10260_v10 }
0x1211   :  { %v10264_v50 = vpop.f32.mrf.mxu1 }
0x1212   :  { %11178 = vst [vmem:[#allocation54_spill] sm:$0xff] %v10264_v50 }
0x1213   :  { %v10272_v11 = vpop.f32.mrf.mxu0 }
0x1214   :  { %11181 = vst [vmem:[#allocation57_spill] sm:$0xff] %v10272_v11 }
0x1219   :  { %v10274_v19 = vpop.f32.mrf.mxu1 }
0x121a   :  { %11182 = vst [vmem:[#allocation58_spill] sm:$0xff] %v10274_v19 }
0x121b   :  { %v10280_v31 = vpop.f32.mrf.mxu0 }
0x121c   :  { %11185 = vst [vmem:[#allocation61_spill] sm:$0xff] %v10280_v31 }
0x1221   :  { %v4596_v28 = vpop.permute.xlu2 %4595  ;;  %v10282_v24 = vpop.f32.mrf.mxu1 }
0x1222   :  { %v4597_v18 = vsel %vm2328_vm15, %v4596_v28, 0  ;;  %11186 = vst [vmem:[#allocation62_spill] sm:$0xff] %v10282_v24  ;;  %v10284_v28 = vpop.f32.mrf.mxu2 }
0x1223   :  { %v4616_v36 = vand.u32 4294901760, %v4597_v18  ;;  %11187 = vst [vmem:[#allocation63_spill] sm:$0xff] %v10284_v28 }
0x1225   :  { %v4617_v22 = vsub.f32 %v4597_v18, %v4616_v36  ;;  %4647 = vmatmul.f32.vlgmr.msra.gmra.mxu3 %v4616_v36  ;;  %v10286_v18 = vpop.f32.mrf.mxu3 }
0x1226   :  { %11188 = vst [vmem:[#allocation64_spill] sm:$0xff] %v10286_v18 }
0x1227   :  { %v4618_v15 = vand.u32 4294901760, %v4617_v22  ;;  %4671 = vmatmul.f32.vlgmr.msrb.gmra.mxu0 %v4617_v22 }
0x1229   :  { %v4619_v29 = vsub.f32 %v4617_v22, %v4618_v15  ;;  %4695 = vmatmul.f32.vlgmr.msrb.gmra.mxu1 %v4618_v15  ;;  %v10288_v22 = vpop.f32.mrf.mxu0  ;;  %v10290_v15 = vpop.f32.mrf.mxu1 }
0x122a   :  { %11189 = vst [vmem:[#allocation65_spill] sm:$0xff] %v10288_v22  ;;  %v10292_v62 = vpop.f32.mrf.mxu2 }
0x122b   :  { %v4620_v55 = vand.u32 4294901760, %v4619_v29  ;;  %11190 = vst [vmem:[#allocation66_spill] sm:$0xff] %v10290_v15 }
0x122c   :  { %11191 = vst [vmem:[#allocation67_spill] sm:$0xff] %v10292_v62 }
0x122d   :  { %4621 = vmatmul.f32.vlgmr.msra.gmra.mxu2 %v4620_v55  ;;  %4741 = vmatmul.f32.vlgmr.msrb.gmra.mxu3 %v4616_v36 }
0x1231   :  { %v10296_v29 = vpop.f32.mrf.mxu0  ;;  %v10298_v20 = vpop.f32.mrf.mxu1 }
0x1232   :  { %11193 = vst [vmem:[#allocation69_spill] sm:$0xff] %v10296_v29  ;;  %v10300_v53 = vpop.f32.mrf.mxu2 }
0x1233   :  { %11194 = vst [vmem:[#allocation70_spill] sm:$0xff] %v10298_v20 }
0x1234   :  { %11195 = vst [vmem:[#allocation71_spill] sm:$0xff] %v10300_v53 }
0x1235   :  { %4719 = vmatmul.f32.vlgmr.msrb.gmra.mxu2 %v4616_v36  ;;  %v10294_v36 = vpop.f32.mrf.mxu3 }
0x1236   :  { %11192 = vst [vmem:[#allocation68_spill] sm:$0xff] %v10294_v36 }
0x1239   :  { %v10304_v54 = vpop.f32.mrf.mxu0  ;;  %v10306_v52 = vpop.f32.mrf.mxu1 }
0x123a   :  { %11197 = vst [vmem:[#allocation73_spill] sm:$0xff] %v10304_v54  ;;  %v10308_v3 = vpop.f32.mrf.mxu2 }
0x123b   :  { %11198 = vst [vmem:[#allocation74_spill] sm:$0xff] %v10306_v52 }
0x123c   :  { %11199 = vst [vmem:[#allocation75_spill] sm:$0xff] %v10308_v3 }
0x123d   :  { %v10302_v55 = vpop.f32.mrf.mxu3 }
0x123e   :  { %11196 = vst [vmem:[#allocation72_spill] sm:$0xff] %v10302_v55 }
0x1241   :  { %v10310_v47 = vpop.f32.mrf.mxu0  ;;  %v10314_v18 = vpop.f32.mrf.mxu1 }
0x1242   :  { %v10316_v28 = vpop.f32.mrf.mxu2 }
0x1245   :  { %v10312_v8 = vpop.f32.mrf.mxu3 }
0x1246   :  { %11200 = vst [vmem:[#allocation76_spill] sm:$0xff] %v10312_v8 }
0x1249   :  { %v10320_v31 = vpop.f32.mrf.mxu0  ;;  %v10322_v46 = vpop.f32.mrf.mxu1 }
0x124a   :  { %v10324_v38 = vpop.f32.mrf.mxu2 }
0x124d   :  { %v10318_v24 = vpop.f32.mrf.mxu3 }
0x1251   :  { %v10328_v11 = vpop.f32.mrf.mxu0  ;;  %v10330_v44 = vpop.f32.mrf.mxu1 }
0x1252   :  { %v10332_v41 = vpop.f32.mrf.mxu2 }
0x1255   :  { %v10326_v19 = vpop.f32.mrf.mxu3 }
0x1259   :  { %v10336_v10 = vpop.f32.mrf.mxu0  ;;  %v10338_v42 = vpop.f32.mrf.mxu1 }
0x125a   :  { %v10340_v30 = vpop.f32.mrf.mxu2 }
0x125d   :  { %v10334_v50 = vpop.f32.mrf.mxu3 }
0x1261   :  { %v10344_v34 = vpop.f32.mrf.mxu0  ;;  %v10346_v27 = vpop.f32.mrf.mxu1 }
0x1262   :  { %v10348_v0 = vpop.f32.mrf.mxu2 }
0x1265   :  { %v10342_v21 = vpop.f32.mrf.mxu3 }
0x1269   :  { %v10352_v23 = vpop.f32.mrf.mxu0  ;;  %v10354_v25 = vpop.f32.mrf.mxu1 }
0x126a   :  { %v10356_v1 = vpop.f32.mrf.mxu2 }
0x126d   :  { %v10350_v33 = vpop.f32.mrf.mxu3 }
0x1271   :  { %v4471_v63 = vpop.f32.mrf.mxu0  ;;  %v4497_v8 = vpop.f32.mrf.mxu1 }
0x1272   :  { %v4498_v3 = vadd.f32 %v4497_v8, %v4471_v63  ;;  %v4521_v52 = vpop.f32.mrf.mxu2  ;;  %v10360_v8 = vld [vmem:[#allocation13] ss:$0 sm:$0xff] }
0x1274   :  { %v4522_v54 = vadd.f32 %v4521_v52, %v4498_v3  ;;  %v5159_v52 = vpop.permute.xlu0 %5158 }
0x1275   :  { %v10358_v61 = vpop.f32.mrf.mxu3 }
0x1279   :  { %v4569_v53 = vpop.f32.mrf.mxu0  ;;  %v4591_v36 = vpop.f32.mrf.mxu1 }
0x127d   :  { %v4545_v55 = vpop.f32.mrf.mxu3 }
0x127e   :  { %v4546_v20 = vadd.f32 %v4545_v55, %v4522_v54 }
0x1280   :  { %v4570_v29 = vadd.f32 %v4569_v53, %v4546_v20 }
0x1282   :  { %v4592_v62 = vadd.f32 %v4591_v36, %v4570_v29 }
0x12a4   :  { %v4672_v39 = vpop.f32.mrf.mxu0 }
0x12a6   :  { %v4696_v7 = vpop.f32.mrf.mxu1 }
0x12a8   :  { %v4648_v15 = vpop.f32.mrf.mxu3 }
0x12b0   :  { %v4622_v22 = vpop.f32.mrf.mxu2  ;;  %v4742_v57 = vpop.f32.mrf.mxu3 }
0x12b1   :  { %v4623_v45 = vadd.f32 %v4622_v22, %v4592_v62 }
0x12b3   :  { %v4649_v17 = vadd.f32 %v4648_v15, %v4623_v45 }
0x12b5   :  { %v4673_v16 = vadd.f32 %v4672_v39, %v4649_v17 }
0x12b7   :  { %v4697_v37 = vadd.f32 %v4696_v7, %v4673_v16 }
0x12b8   :  { %v4720_v58 = vpop.f32.mrf.mxu2 }
0x12b9   :  { %v4721_v14 = vadd.f32 %v4720_v58, %v4697_v37 }
0x12bb   :  { %v4743_v3 = vadd.f32 %v4742_v57, %v4721_v14  ;;  %v5182_v57 = vpop.permute.xlu1 %5181 }
0x12bd   :  { %v10363_v63 = vadd.f32 %v10360_v8, %v4743_v3 }
0x12bf   :  { %v5161_v36 = vadd.f32 %v5159_v52, %v10363_v63 }
0x12c1   :  { %v8642_v29 = vmul.f32 -1.442695, %v5161_v36 }
0x12c3   :  { %8844 = vpow2.f32 %v8642_v29 }
0x12c9   :  { %v8845_v22 = vpop.eup %8844 }
0x12ca   :  { %v5165_v45 = vadd.f32 1.0, %v8845_v22 }
0x12cc   :  { %8846 = vrcp.f32 %v5165_v45  ;;  %v5177_v7 = vand.u32 2147483648, %v5165_v45  ;;  %v5175_v37 = vand.u32 2147483647, %v5165_v45  ;;  %vm5171_vm5 = vweird.f32 %v5165_v45 }
0x12ce   :  { %v5178_v14 = vor.u32 1.1754944e-38, %v5177_v7  ;;  %vm5176_vm7 = vcmp.eq.f32.partialorder %v5175_v37, 8.507059e+37 }
0x12d2   :  { %v8847_v39 = vpop.eup %8846 }
0x12d3   :  { %v5167_v17 = vmul.f32 %v8847_v39, %v5165_v45  ;;  %vm5172_vm4 = vweird.f32 %v8847_v39 }
0x12d4   :  { %vm5173_vm6 = vmor %vm5171_vm5, %vm5172_vm4 }
0x12d5   :  { %v5168_v16 = vsub.f32 1.0, %v5167_v17 }
0x12d7   :  { %v5169_v58 = vmul.f32 %v8847_v39, %v5168_v16 }
0x12d9   :  { %v5170_v15 = vadd.f32 %v8847_v39, %v5169_v58 }
0x12db   :  { %v5174_v62 = vsel %vm5173_vm6, %v8847_v39, %v5170_v15  ;;  %v4197_v15 = vadd.f32 %v10338_v42, %v10336_v10 }
0x12dc   :  { %v5179_v20 = vsel %vm5176_vm7, %v5178_v14, %v5174_v62 }
0x12dd   :  { %v5184_v53 = vmul.f32 %v5182_v57, %v5179_v20  ;;  %v5191_v52 = vsub.f32 1.0, %v5179_v20  ;;  %v5197_v29 = vmul.f32 0.0, %v5179_v20  ;;  %v4221_v14 = vadd.f32 %v10340_v30, %v4197_v15  ;;  %v10396_v15 = vld [vmem:[#allocation14] sm:$0x3] }
0x12df   :  { %5186 = vrot.lane.b32.xlu2 %v5184_v53, %s9324_s23  ;;  %v4245_v57 = vadd.f32 %v10342_v21, %v4221_v14  ;;  %v4746_v14 = vmul.f32 0.0, %v10396_v15 }
0x12e1   :  { %v4269_v62 = vadd.f32 %v10344_v34, %v4245_v57 }
0x12e3   :  { %v4291_v20 = vadd.f32 %v10346_v27, %v4269_v62  ;;  %v10399_v62 = vld [vmem:[#allocation14 + $0x2] sm:$0x3] }
0x12e5   :  { %v4321_v53 = vadd.f32 %v10348_v0, %v4291_v20  ;;  %v10401_v20 = vld [vmem:[#allocation16] sm:$0x3] }
0x1339   :  { %v5187_v55 = vpop.permute.xlu2 %5186 }
0x133a   :  { %v5189_v54 = vadd.f32 %v5187_v55, %v10363_v63  ;;  %v4347_v55 = vadd.f32 %v10350_v33, %v4321_v53  ;;  %v4747_v53 = vadd.f32 %v4746_v14, %v10401_v20  ;;  %v11202_v14 = vmov 2  }
0x133c   :  { %8848 = vtanh.f32 %v5189_v54  ;;  %v4371_v54 = vadd.f32 %v10352_v23, %v4347_v55  ;;  %v4748_v55 = vmul.f32 0.0, %v10399_v62 }
0x1342   :  { %v8849_v3 = vpop.eup %8848 }
0x1343   :  { %5193 = vrot.lane.b32.xlu0 %v8849_v3, %s9325_s11  ;;  %v4395_v3 = vadd.f32 %v10354_v25, %v4371_v54  ;;  %v4749_v54 = vadd.f32 %v4748_v55, %v4747_v53 }
0x13b5   :  { %v5194_v36 = vpop.permute.xlu0 %5193 }
0x13b6   :  { %v5196_v22 = vmul.f32 %v5194_v36, %v5191_v52  ;;  %v4419_v52 = vadd.f32 %v10356_v1, %v4395_v3  ;;  %v2385_v3 = vadd.f32 %v10181_v12, %v10179_v26 }
0x13b8   :  { %v10369_v45 = vadd.f32 %v5197_v29, %v5196_v22  ;;  %v4441_v10 = vadd.f32 %v10358_v61, %v4419_v52  ;;  %v2409_v52 = vadd.f32 %v10184_v5, %v2385_v3 }
0x13ba   :  { %5207 = vperm.xlu2 %8717, %v10369_v45   ;;  %5201 = vperm.xlu1 %8716, %v10369_v45   ;;  %v10391_v30 = vadd.f32 %v10360_v8, %v4441_v10  ;;  %v2433_v10 = vadd.f32 %v10186_v49, %v2409_v52 }
0x1414   :  { %v5208_v39 = vpop.permute.xlu2 %5207 }
0x1415   :  { %v5210_v7 = vmul.f32 %v5208_v39, %v10254_v9 }
0x142c   :  { %v5202_v17 = vpop.permute.xlu1 %5201 }
0x142d   :  { %v5204_v16 = vmul.f32 %v5202_v17, %v10249_v51 }
0x142f   :  { %v5205_v58 = vadd.f32 %v5204_v16, %v10256_v35 }
0x1431   :  { %v5211_v37 = vadd.f32 %v5210_v7, %v5205_v58 }
0x1433   :  { %5236 = vrot.lane.b32.xlu1 %v5211_v37, %s9313_s30  ;;  %5213 = vrot.lane.b32.xlu0 %v5211_v37, %s9323_s5 }
0x14a5   :  { %v5214_v21 = vpop.permute.xlu0 %5213  ;;  %v5237_v17 = vpop.permute.xlu1 %5236 }
0x14a6   :  { %v5216_v34 = vadd.f32 %v5214_v21, %v10391_v30  ;;  %v2457_v21 = vadd.f32 %v10188_v60, %v2433_v10 }
0x14a8   :  { %v8643_v42 = vmul.f32 -1.442695, %v5216_v34  ;;  %v2479_v34 = vadd.f32 %v10190_v32, %v2457_v21 }
0x14aa   :  { %8850 = vpow2.f32 %v8643_v42  ;;  %v2512_v42 = vadd.f32 %v10192_v40, %v2479_v34 }
0x14b0   :  { %v8851_v27 = vpop.eup %8850 }
0x14b1   :  { %v5220_v0 = vadd.f32 1.0, %v8851_v27  ;;  %v2538_v27 = vadd.f32 %v10196_v6, %v2512_v42  ;;  %v3896_v42 = vadd.f32 %v10314_v18, %v10310_v47 }
0x14b3   :  { %8852 = vrcp.f32 %v5220_v0  ;;  %v5232_v29 = vand.u32 2147483648, %v5220_v0  ;;  %v5230_v1 = vand.u32 2147483647, %v5220_v0  ;;  %vm5226_vm9 = vweird.f32 %v5220_v0 }
0x14b5   :  { %v5233_v61 = vor.u32 1.1754944e-38, %v5232_v29  ;;  %vm5231_vm11 = vcmp.eq.f32.partialorder %v5230_v1, 8.507059e+37 }
0x14b9   :  { %v8853_v33 = vpop.eup %8852 }
0x14ba   :  { %v5222_v36 = vmul.f32 %v8853_v33, %v5220_v0  ;;  %vm5227_vm8 = vweird.f32 %v8853_v33  ;;  %v2562_v0 = vadd.f32 %v10194_v43, %v2538_v27  ;;  %v3920_v27 = vadd.f32 %v10316_v28, %v3896_v42  ;;  %v11205_v42 = vld [vmem:[#allocation33_spill] sm:$0xff] }
0x14bb   :  { %vm5228_vm10 = vmor %vm5226_vm9, %vm5227_vm8 }
0x14bc   :  { %v5223_v23 = vsub.f32 1.0, %v5222_v36 }
0x14be   :  { %v5224_v25 = vmul.f32 %v8853_v33, %v5223_v23 }
0x14c0   :  { %v5225_v22 = vadd.f32 %v8853_v33, %v5224_v25 }
0x14c2   :  { %v5229_v39 = vsel %vm5228_vm10, %v8853_v33, %v5225_v22  ;;  %v2586_v33 = vadd.f32 %v10198_v48, %v2562_v0  ;;  %v3944_v0 = vadd.f32 %v10318_v24, %v3920_v27 }
0x14c3   :  { %v5234_v16 = vsel %vm5231_vm11, %v5233_v61, %v5229_v39 }
0x14c4   :  { %v5239_v7 = vmul.f32 %v5237_v17, %v5234_v16  ;;  %v2610_v36 = vadd.f32 %v10200_v13, %v2586_v33  ;;  %v5246_v29 = vsub.f32 1.0, %v5234_v16  ;;  %v5252_v13 = vmul.f32 %v5234_v16, %v10369_v45 }
0x14c5   :  { %v11201_v16 = vmov 3   ;;  %v3968_v33 = vadd.f32 %v10320_v31, %v3944_v0  ;;  %v11206_v0 = vld [vmem:[#allocation32_spill] sm:$0xff] }
0x14c6   :  { %5241 = vrot.lane.b32.xlu2 %v5239_v7, %s9324_s23  ;;  %v2632_v26 = vadd.f32 %v10204_v4, %v2610_v36 }
0x14c7   :  { %v3990_v36 = vadd.f32 %v10322_v46, %v3968_v33 }
0x14c8   :  { %v10420_v12 = vadd.f32 %v10360_v8, %v2632_v26 }
0x14c9   :  { %v4020_v26 = vadd.f32 %v10324_v38, %v3990_v36  ;;  %v11203_v38 = vmov 8   ;;  %v11207_v36 = vld [vmem:[#allocation34_spill] sm:$0xff] }
0x14ca   :  { %v4750_v5 = vadd.f32 %v4749_v54, %v10420_v12 }
0x14cc   :  { %v8634_v49 = vmul.f32 -1.442695, %v4750_v5 }
0x1520   :  { %v5242_v58 = vpop.permute.xlu2 %5241 }
0x1521   :  { %v5244_v37 = vadd.f32 %v5242_v58, %v10391_v30 }
0x1523   :  { %8854 = vtanh.f32 %v5244_v37 }
0x1524   :  { %8856 = vpow2.f32 %v8634_v49  ;;  %v4046_v49 = vadd.f32 %v10326_v19, %v4020_v26 }
0x1529   :  { %v8855_v57 = vpop.eup %8854 }
0x152a   :  { %5248 = vrot.lane.b32.xlu0 %v8855_v57, %s9325_s11  ;;  %v8857_v60 = vpop.eup %8856 }
0x152b   :  { %v4754_v32 = vadd.f32 1.0, %v8857_v60  ;;  %v4070_v60 = vadd.f32 %v10328_v11, %v4046_v49 }
0x152d   :  { %8858 = vrcp.f32 %v4754_v32  ;;  %v4766_v1 = vand.u32 2147483648, %v4754_v32  ;;  %vm4760_vm13 = vweird.f32 %v4754_v32  ;;  %v4764_v61 = vand.u32 2147483647, %v4754_v32 }
0x152e   :  { %v4094_v47 = vadd.f32 %v10330_v44, %v4070_v60  ;;  %v11209_v60 = vld [vmem:[#allocation37_spill] sm:$0xff] }
0x152f   :  { %v4767_v17 = vor.u32 1.1754944e-38, %v4766_v1  ;;  %vm4765_vm1 = vcmp.eq.f32.partialorder %v4764_v61, 8.507059e+37 }
0x1530   :  { %v4118_v31 = vadd.f32 %v10332_v41, %v4094_v47 }
0x1532   :  { %4771 = vrot.lane.b32.xlu0 %v4749_v54, %s9328_s24  ;;  %v4140_v46 = vadd.f32 %v10334_v50, %v4118_v31  ;;  %v11213_v31 = vld [vmem:[#allocation41_spill] sm:$0xff] }
0x1533   :  { %v8859_v40 = vpop.eup %8858 }
0x1534   :  { %v4756_v6 = vmul.f32 %v8859_v40, %v4754_v32  ;;  %vm4761_vm12 = vweird.f32 %v8859_v40  ;;  %v10455_v19 = vadd.f32 %v10360_v8, %v4140_v46 }
0x1535   :  { %vm4762_vm0 = vmor %vm4760_vm13, %vm4761_vm12 }
0x1536   :  { %v4757_v23 = vsub.f32 1.0, %v4756_v6 }
0x1538   :  { %v4758_v43 = vmul.f32 %v8859_v40, %v4757_v23 }
0x153a   :  { %v4759_v4 = vadd.f32 %v8859_v40, %v4758_v43 }
0x153c   :  { %v4763_v39 = vsel %vm4762_vm0, %v8859_v40, %v4759_v4 }
0x153d   :  { %v4768_v7 = vsel %vm4765_vm1, %v4767_v17, %v4763_v39 }
0x153e   :  { %v4781_v32 = vsub.f32 1.0, %v4768_v7  ;;  %v4787_v6 = vmul.f32 0.0, %v4768_v7 }
0x159c   :  { %v5249_v48 = vpop.permute.xlu0 %5248 }
0x159d   :  { %v5251_v25 = vmul.f32 %v5249_v48, %v5246_v29 }
0x159f   :  { %v10424_v22 = vadd.f32 %v5252_v13, %v5251_v25 }
0x15a1   :  { %5262 = vperm.xlu2 %8717, %v10424_v22   ;;  %5256 = vperm.xlu1 %8716, %v10424_v22  }
0x15a4   :  { %v4772_v58 = vpop.permute.xlu0 %4771 }
0x15a5   :  { %v4774_v37 = vmul.f32 %v4772_v58, %v4768_v7  ;;  %v11204_v7 = vmov 9  }
0x15a7   :  { %4776 = vrot.lane.b32.xlu0 %v4774_v37, %s9324_s23 }
0x15a9   :  { %8719 = vset.pattern.permute.xlu2 %v11201_v16  ;;  %8718 = vset.pattern.permute.xlu1 %v11202_v14 }
0x15fb   :  { %v5263_v57 = vpop.permute.xlu2 %5262 }
0x15fc   :  { %v5265_v54 = vmul.f32 %v5263_v57, %v10254_v9 }
0x1613   :  { %v5257_v53 = vpop.permute.xlu1 %5256 }
0x1614   :  { %v5259_v55 = vmul.f32 %v5257_v53, %v10249_v51 }
0x1616   :  { %v5260_v3 = vadd.f32 %v5259_v55, %v10256_v35 }
0x1618   :  { %v5266_v52 = vadd.f32 %v5265_v54, %v5260_v3 }
0x1619   :  { %v4777_v10 = vpop.permute.xlu0 %4776 }
0x161a   :  { %v4779_v21 = vadd.f32 %v4777_v10, %v10420_v12  ;;  %5291 = vrot.lane.b32.xlu2 %v5266_v52, %s9313_s30  ;;  %5268 = vrot.lane.b32.xlu1 %v5266_v52, %s9323_s5  ;;  %v2692_v10 = vadd.f32 %v10206_v59, %v10202_v2  ;;  %v11212_v2 = vld [vmem:[#allocation39_spill] sm:$0xff] }
0x161c   :  { %8860 = vtanh.f32 %v4779_v21 }
0x1622   :  { %v8861_v34 = vpop.eup %8860 }
0x1623   :  { %4783 = vrot.lane.b32.xlu2 %v8861_v34, %s9325_s11  ;;  %v2716_v34 = vadd.f32 %v10208_v56, %v2692_v10 }
0x1625   :  { %v2740_v27 = vadd.f32 %v11205_v42, %v2716_v34 }
0x1627   :  { %v2764_v33 = vadd.f32 %v11206_v0, %v2740_v27 }
0x1629   :  { %v2786_v26 = vadd.f32 %v11207_v36, %v2764_v33  ;;  %v11214_v33 = vld [vmem:[#allocation65_spill] sm:$0xff]  ;;  %v11215_v36 = vld [vmem:[#allocation66_spill] sm:$0xff] }
0x1674   :  { %v5292_v5 = vpop.permute.xlu2 %5291 }
0x167d   :  { %v4784_v40 = vpop.permute.xlu2 %4783 }
0x167e   :  { %v4786_v23 = vmul.f32 %v4784_v40, %v4781_v32  ;;  %v11210_v40 = vld [vmem:[#allocation36_spill] sm:$0xff] }
0x1680   :  { %v10448_v28 = vadd.f32 %v4787_v6, %v4786_v23  ;;  %v11211_v23 = vld [vmem:[#allocation38_spill] sm:$0xff] }
0x1682   :  { %4797 = vperm.xlu2 %8719, %v10448_v28  }
0x168a   :  { %8724 = vset.pattern.permute.xlu2 %v11203_v38 }
0x168c   :  { %v5269_v11 = vpop.permute.xlu1 %5268 }
0x168d   :  { %v5271_v24 = vadd.f32 %v5269_v11, %v10455_v19 }
0x168f   :  { %v8644_v18 = vmul.f32 -1.442695, %v5271_v24 }
0x1691   :  { %8862 = vpow2.f32 %v8644_v18 }
0x1697   :  { %v8863_v43 = vpop.eup %8862 }
0x1698   :  { %v5275_v44 = vadd.f32 1.0, %v8863_v43 }
0x169a   :  { %8864 = vrcp.f32 %v5275_v44  ;;  %v5287_v25 = vand.u32 2147483648, %v5275_v44  ;;  %v5285_v50 = vand.u32 2147483647, %v5275_v44  ;;  %vm5281_vm3 = vweird.f32 %v5275_v44 }
0x169c   :  { %v5288_v1 = vor.u32 1.1754944e-38, %v5287_v25  ;;  %vm5286_vm5 = vcmp.eq.f32.partialorder %v5285_v50, 8.507059e+37 }
0x16a0   :  { %v8865_v29 = vpop.eup %8864 }
0x16a1   :  { %v5277_v48 = vmul.f32 %v8865_v29, %v5275_v44  ;;  %vm5282_vm2 = vweird.f32 %v8865_v29 }
0x16a2   :  { %vm5283_vm4 = vmor %vm5281_vm3, %vm5282_vm2 }
0x16a3   :  { %v5278_v13 = vsub.f32 1.0, %v5277_v48 }
0x16a5   :  { %v5279_v41 = vmul.f32 %v8865_v29, %v5278_v13 }
0x16a7   :  { %v5280_v4 = vadd.f32 %v8865_v29, %v5279_v41 }
0x16a9   :  { %v5284_v61 = vsel %vm5283_vm4, %v8865_v29, %v5280_v4 }
0x16aa   :  { %v5289_v39 = vsel %vm5286_vm5, %v5288_v1, %v5284_v61 }
0x16ab   :  { %v5294_v17 = vmul.f32 %v5292_v5, %v5289_v39  ;;  %v11208_v5 = vld [vmem:[#allocation35_spill] sm:$0xff] }
0x16ac   :  { %v2816_v49 = vadd.f32 %v11208_v5, %v2786_v26  ;;  %v3595_v26 = vadd.f32 %v11215_v36, %v11214_v33  ;;  %v11216_v5 = vld [vmem:[#allocation67_spill] sm:$0xff] }
0x16ad   :  { %5296 = vrot.lane.b32.xlu1 %v5294_v17, %s9324_s23 }
0x16ae   :  { %v2842_v32 = vadd.f32 %v11209_v60, %v2816_v49  ;;  %v3619_v49 = vadd.f32 %v11216_v5, %v3595_v26  ;;  %v11217_v60 = vld [vmem:[#allocation68_spill] sm:$0xff] }
0x16b0   :  { %v2866_v6 = vadd.f32 %v11210_v40, %v2842_v32  ;;  %v3643_v32 = vadd.f32 %v11217_v60, %v3619_v49  ;;  %v11218_v40 = vld [vmem:[#allocation69_spill] sm:$0xff] }
0x16b2   :  { %v2890_v47 = vadd.f32 %v11211_v23, %v2866_v6  ;;  %v3667_v6 = vadd.f32 %v11218_v40, %v3643_v32  ;;  %v11219_v23 = vld [vmem:[#allocation70_spill] sm:$0xff] }
0x16b4   :  { %v2914_v59 = vadd.f32 %v11212_v2, %v2890_v47  ;;  %v3689_v47 = vadd.f32 %v11219_v23, %v3667_v6  ;;  %v11220_v2 = vld [vmem:[#allocation71_spill] sm:$0xff] }
0x16b5   :  { %4791 = vperm.xlu1 %8718, %v10448_v28  }
0x16b6   :  { %v2936_v56 = vadd.f32 %v11213_v31, %v2914_v59  ;;  %v3719_v59 = vadd.f32 %v11220_v2, %v3689_v47  ;;  %v11221_v31 = vld [vmem:[#allocation72_spill] sm:$0xff] }
0x16b7   :  { %v11226_v2 = vld [vmem:[#allocation40_spill] sm:$0xff] }
0x16b8   :  { %v10480_v46 = vadd.f32 %v10360_v8, %v2936_v56  ;;  %v3745_v56 = vadd.f32 %v11221_v31, %v3719_v59  ;;  %v11227_v59 = vld [vmem:[#allocation42_spill] sm:$0xff] }
0x16b9   :  { %v2993_v31 = vadd.f32 %v11227_v59, %v11226_v2 }
0x16bd   :  { %8721 = vset.pattern.permute.xlu1 %v11204_v7 }
0x16dc   :  { %v4798_v57 = vpop.permute.xlu2 %4797 }
0x16dd   :  { %v4800_v3 = vmul.f32 %v4798_v57, %v10399_v62 }
0x171f   :  { %v5297_v58 = vpop.permute.xlu1 %5296 }
0x1720   :  { %v5299_v37 = vadd.f32 %v5297_v58, %v10455_v19 }
0x1722   :  { %8866 = vtanh.f32 %v5299_v37  ;;  %v5301_v37 = vsub.f32 1.0, %v5289_v39 }
0x1727   :  { %v4792_v53 = vpop.permute.xlu1 %4791 }
0x1728   :  { %v8867_v55 = vpop.eup %8866  ;;  %v4794_v54 = vmul.f32 %v4792_v53, %v10396_v15  ;;  %v5307_v53 = vmul.f32 %v5289_v39, %v10424_v22 }
0x1729   :  { %5303 = vrot.lane.b32.xlu0 %v8867_v55, %s9325_s11 }
0x172a   :  { %v4795_v52 = vadd.f32 %v4794_v54, %v10401_v20 }
0x172c   :  { %v4801_v21 = vadd.f32 %v4800_v3, %v4795_v52 }
0x172e   :  { %4823 = vrot.lane.b32.xlu2 %v4801_v21, %s9328_s24  ;;  %v4802_v11 = vadd.f32 %v4801_v21, %v10480_v46 }
0x1730   :  { %v8635_v24 = vmul.f32 -1.442695, %v4802_v11  ;;  %v11222_v11 = vld [vmem:[#allocation73_spill] sm:$0xff] }
0x1732   :  { %8868 = vpow2.f32 %v8635_v24  ;;  %v3769_v24 = vadd.f32 %v11222_v11, %v3745_v56  ;;  %v11228_v56 = vld [vmem:[#allocation43_spill] sm:$0xff] }
0x1733   :  { %v3017_v11 = vadd.f32 %v11228_v56, %v2993_v31 }
0x1738   :  { %v8869_v18 = vpop.eup %8868 }
0x1739   :  { %v4806_v43 = vadd.f32 1.0, %v8869_v18  ;;  %v11223_v18 = vld [vmem:[#allocation74_spill] sm:$0xff] }
0x173b   :  { %8870 = vrcp.f32 %v4806_v43  ;;  %v4818_v41 = vand.u32 2147483648, %v4806_v43  ;;  %vm4812_vm7 = vweird.f32 %v4806_v43  ;;  %v4816_v50 = vand.u32 2147483647, %v4806_v43 }
0x173d   :  { %v4819_v1 = vor.u32 1.1754944e-38, %v4818_v41  ;;  %vm4817_vm9 = vcmp.eq.f32.partialorder %v4816_v50, 8.507059e+37 }
0x1741   :  { %v8871_v44 = vpop.eup %8870 }
0x1742   :  { %v4808_v29 = vmul.f32 %v8871_v44, %v4806_v43  ;;  %vm4813_vm6 = vweird.f32 %v8871_v44  ;;  %v3793_v43 = vadd.f32 %v11223_v18, %v3769_v24  ;;  %v11229_v24 = vld [vmem:[#allocation45_spill] sm:$0xff] }
0x1743   :  { %vm4814_vm8 = vmor %vm4812_vm7, %vm4813_vm6  ;;  %v3041_v18 = vadd.f32 %v11229_v24, %v3017_v11 }
0x1744   :  { %v4809_v48 = vsub.f32 1.0, %v4808_v29 }
0x1746   :  { %v4810_v13 = vmul.f32 %v8871_v44, %v4809_v48  ;;  %v11225_v48 = vld [vmem:[#allocation76_spill] sm:$0xff] }
0x1748   :  { %v4811_v25 = vadd.f32 %v8871_v44, %v4810_v13 }
0x174a   :  { %v4815_v4 = vsel %vm4814_vm8, %v8871_v44, %v4811_v25  ;;  %v11224_v44 = vld [vmem:[#allocation75_spill] sm:$0xff] }
0x174b   :  { %v4820_v17 = vsel %vm4817_vm9, %v4819_v1, %v4815_v4  ;;  %v3817_v29 = vadd.f32 %v11224_v44, %v3793_v43  ;;  %v11230_v43 = vld [vmem:[#allocation44_spill] sm:$0xff] }
0x174c   :  { %v4833_v1 = vsub.f32 1.0, %v4820_v17  ;;  %v3065_v44 = vadd.f32 %v11230_v43, %v3041_v18 }
0x174d   :  { %v3839_v13 = vadd.f32 %v11225_v48, %v3817_v29  ;;  %v11231_v29 = vld [vmem:[#allocation46_spill] sm:$0xff] }
0x174e   :  { %v3087_v48 = vadd.f32 %v11231_v29, %v3065_v44 }
0x174f   :  { %v10511_v25 = vadd.f32 %v10360_v8, %v3839_v13  ;;  %v11232_v13 = vld [vmem:[#allocation47_spill] sm:$0xff] }
0x1788   :  { %v4824_v61 = vpop.permute.xlu2 %4823 }
0x1789   :  { %v4826_v58 = vmul.f32 %v4824_v61, %v4820_v17 }
0x178b   :  { %4828 = vrot.lane.b32.xlu2 %v4826_v58, %s9324_s23  ;;  %v4839_v58 = vmul.f32 %v4820_v17, %v10448_v28 }
0x179b   :  { %v5304_v57 = vpop.permute.xlu0 %5303 }
0x179c   :  { %v5306_v55 = vmul.f32 %v5304_v57, %v5301_v37 }
0x179e   :  { %v10485_v54 = vadd.f32 %v5307_v53, %v5306_v55 }
0x17a0   :  { %5317 = vperm.xlu1 %8721, %v10485_v54   ;;  %5311 = vperm.xlu0 %8720, %v10485_v54  }
0x17a8   :  { %8723 = vset.pattern.permute.xlu1 %v11201_v16  ;;  %8722 = vset.pattern.permute.xlu0 %v11202_v14 }
0x17e5   :  { %v4829_v10 = vpop.permute.xlu2 %4828 }
0x17e6   :  { %v4831_v42 = vadd.f32 %v4829_v10, %v10480_v46 }
0x17e8   :  { %8872 = vtanh.f32 %v4831_v42 }
0x17ee   :  { %v8873_v0 = vpop.eup %8872 }
0x1812   :  { %v5318_v3 = vpop.permute.xlu1 %5317  ;;  %v5312_v52 = vpop.permute.xlu0 %5311 }
0x1813   :  { %v5314_v21 = vmul.f32 %v5312_v52, %v10249_v51  ;;  %v5320_v34 = vmul.f32 %v5318_v3, %v10254_v9 }
0x1815   :  { %v5315_v39 = vadd.f32 %v5314_v21, %v10256_v35 }
0x1817   :  { %v5321_v27 = vadd.f32 %v5320_v34, %v5315_v39 }
0x1819   :  { %5346 = vrot.lane.b32.xlu0 %v5321_v27, %s9313_s30  ;;  %5323 = vrot.lane.b32.xlu1 %v5321_v27, %s9323_s5 }
0x1821   :  { %4835 = vrot.lane.b32.xlu1 %v8873_v0, %s9325_s11 }
0x188b   :  { %v5324_v41 = vpop.permute.xlu1 %5323  ;;  %v5347_v0 = vpop.permute.xlu0 %5346 }
0x188c   :  { %v5326_v50 = vadd.f32 %v5324_v41, %v10511_v25  ;;  %v3117_v41 = vadd.f32 %v11232_v13, %v3087_v48 }
0x188e   :  { %v8645_v4 = vmul.f32 -1.442695, %v5326_v50  ;;  %v11233_v50 = vld [vmem:[#allocation49_spill] sm:$0xff] }
0x1890   :  { %8874 = vpow2.f32 %v8645_v4  ;;  %v3143_v4 = vadd.f32 %v11233_v50, %v3117_v41  ;;  %v11238_v41 = vld [vmem:[#allocation52_spill] sm:$0xff]  ;;  %v11239_v50 = vld [vmem:[#allocation54_spill] sm:$0xff] }
0x1893   :  { %v4836_v61 = vpop.permute.xlu1 %4835 }
0x1894   :  { %v4838_v37 = vmul.f32 %v4836_v61, %v4833_v1  ;;  %v11234_v1 = vld [vmem:[#allocation48_spill] sm:$0xff] }
0x1895   :  { %v3167_v61 = vadd.f32 %v11234_v1, %v3143_v4  ;;  %v11240_v4 = vld [vmem:[#allocation55_spill] sm:$0xff] }
0x1896   :  { %v8875_v57 = vpop.eup %8874  ;;  %v10515_v53 = vadd.f32 %v4839_v58, %v4838_v37  ;;  %v11235_v58 = vld [vmem:[#allocation50_spill] sm:$0xff] }
0x1897   :  { %v5330_v55 = vadd.f32 1.0, %v8875_v57  ;;  %v3191_v37 = vadd.f32 %v11235_v58, %v3167_v61  ;;  %v11236_v57 = vld [vmem:[#allocation51_spill] sm:$0xff] }
0x1898   :  { %4849 = vperm.xlu1 %8723, %v10515_v53   ;;  %4843 = vperm.xlu0 %8722, %v10515_v53  }
0x1899   :  { %8876 = vrcp.f32 %v5330_v55  ;;  %v5342_v21 = vand.u32 2147483648, %v5330_v55  ;;  %v5340_v17 = vand.u32 2147483647, %v5330_v55  ;;  %vm5336_vm11 = vweird.f32 %v5330_v55 }
0x189b   :  { %v5343_v42 = vor.u32 1.1754944e-38, %v5342_v21  ;;  %vm5341_vm13 = vcmp.eq.f32.partialorder %v5340_v17, 8.507059e+37 }
0x189f   :  { %v8877_v3 = vpop.eup %8876 }
0x18a0   :  { %v5332_v52 = vmul.f32 %v8877_v3, %v5330_v55  ;;  %8725 = vset.pattern.permute.xlu0 %v11204_v7  ;;  %8726 = vset.pattern.permute.xlu1 %v11202_v14  ;;  %vm5337_vm10 = vweird.f32 %v8877_v3  ;;  %v3215_v55 = vadd.f32 %v11236_v57, %v3191_v37  ;;  %v11243_v37 = vld [vmem:[#allocation58_spill] sm:$0xff] }
0x18a1   :  { %vm5338_vm12 = vmor %vm5336_vm11, %vm5337_vm10 }
0x18a2   :  { %v5333_v10 = vsub.f32 1.0, %v5332_v52 }
0x18a4   :  { %v5334_v34 = vmul.f32 %v8877_v3, %v5333_v10 }
0x18a6   :  { %v5335_v39 = vadd.f32 %v8877_v3, %v5334_v34 }
0x18a8   :  { %v5339_v27 = vsel %vm5338_vm12, %v8877_v3, %v5335_v39  ;;  %v11237_v3 = vld [vmem:[#allocation53_spill] sm:$0xff] }
0x18a9   :  { %v5344_v33 = vsel %vm5341_vm13, %v5343_v42, %v5339_v27  ;;  %v3237_v52 = vadd.f32 %v11237_v3, %v3215_v55  ;;  %v11244_v55 = vld [vmem:[#allocation59_spill] sm:$0xff] }
0x18aa   :  { %v5349_v36 = vmul.f32 %v5347_v0, %v5344_v33  ;;  %v5356_v42 = vsub.f32 1.0, %v5344_v33  ;;  %v5362_v0 = vmul.f32 %v5344_v33, %v10485_v54 }
0x18ab   :  { %v10541_v10 = vadd.f32 %v10360_v8, %v3237_v52  ;;  %v11245_v52 = vld [vmem:[#allocation60_spill] sm:$0xff] }
0x18ac   :  { %5351 = vrot.lane.b32.xlu2 %v5349_v36, %s9324_s23 }
0x1906   :  { %v5352_v26 = vpop.permute.xlu2 %5351 }
0x1907   :  { %v5354_v5 = vadd.f32 %v5352_v26, %v10511_v25 }
0x1909   :  { %8878 = vtanh.f32 %v5354_v5 }
0x190a   :  { %v4850_v49 = vpop.permute.xlu1 %4849  ;;  %v4844_v60 = vpop.permute.xlu0 %4843 }
0x190b   :  { %v4846_v32 = vmul.f32 %v4844_v60, %v10396_v15  ;;  %v4852_v40 = vmul.f32 %v4850_v49, %v10399_v62 }
0x190d   :  { %v4847_v6 = vadd.f32 %v4846_v32, %v10401_v20 }
0x190f   :  { %v8879_v23 = vpop.eup %8878  ;;  %v4853_v47 = vadd.f32 %v4852_v40, %v4847_v6 }
0x1910   :  { %5358 = vrot.lane.b32.xlu2 %v8879_v23, %s9325_s11 }
0x1911   :  { %4875 = vrot.lane.b32.xlu1 %v4853_v47, %s9328_s24  ;;  %v4854_v21 = vadd.f32 %v4853_v47, %v10541_v10 }
0x1913   :  { %v8636_v34 = vmul.f32 -1.442695, %v4854_v21 }
0x1915   :  { %8880 = vpow2.f32 %v8636_v34  ;;  %v11246_v34 = vld [vmem:[#allocation61_spill] sm:$0xff] }
0x191b   :  { %v8881_v17 = vpop.eup %8880 }
0x191c   :  { %v4858_v39 = vadd.f32 1.0, %v8881_v17 }
0x191e   :  { %8882 = vrcp.f32 %v4858_v39  ;;  %v4870_v6 = vand.u32 2147483648, %v4858_v39  ;;  %vm4864_vm1 = vweird.f32 %v4858_v39  ;;  %v4868_v33 = vand.u32 2147483647, %v4858_v39 }
0x1920   :  { %v4871_v47 = vor.u32 1.1754944e-38, %v4870_v6  ;;  %vm4869_vm3 = vcmp.eq.f32.partialorder %v4868_v33, 8.507059e+37 }
0x1924   :  { %v8883_v26 = vpop.eup %8882 }
0x1925   :  { %v4860_v49 = vmul.f32 %v8883_v26, %v4858_v39  ;;  %vm4865_vm0 = vweird.f32 %v8883_v26  ;;  %v11247_v39 = vld [vmem:[#allocation62_spill] sm:$0xff] }
0x1926   :  { %vm4866_vm2 = vmor %vm4864_vm1, %vm4865_vm0 }
0x1927   :  { %v4861_v60 = vsub.f32 1.0, %v4860_v49 }
0x1929   :  { %v4862_v32 = vmul.f32 %v8883_v26, %v4861_v60 }
0x192b   :  { %v4863_v40 = vadd.f32 %v8883_v26, %v4862_v32 }
0x192d   :  { %v4867_v23 = vsel %vm4866_vm2, %v8883_v26, %v4863_v40 }
0x192e   :  { %v4872_v59 = vsel %vm4869_vm3, %v4871_v47, %v4867_v23 }
0x196a   :  { %v5359_v27 = vpop.permute.xlu2 %5358 }
0x196b   :  { %v5361_v36 = vmul.f32 %v5359_v27, %v5356_v42  ;;  %v11248_v27 = vld [vmem:[#allocation63_spill] sm:$0xff] }
0x196d   :  { %v10545_v5 = vadd.f32 %v5362_v0, %v5361_v36  ;;  %v11249_v36 = vld [vmem:[#allocation64_spill] sm:$0xff] }
0x196f   :  { %5366 = vperm.xlu2 %8724, %v10545_v5   ;;  %5372 = vperm.xlu0 %8725, %v10545_v5  }
0x1977   :  { %8727 = vset.pattern.permute.xlu2 %v11201_v16  ;;  %8728 = vset.pattern.permute.xlu0 %v11203_v38 }
0x1983   :  { %v4876_v2 = vpop.permute.xlu1 %4875 }
0x1984   :  { %v4878_v31 = vmul.f32 %v4876_v2, %v4872_v59 }
0x1986   :  { %4880 = vrot.lane.b32.xlu1 %v4878_v31, %s9324_s23 }
0x19c9   :  { %v5367_v56 = vpop.permute.xlu2 %5366 }
0x19ca   :  { %v5369_v11 = vmul.f32 %v5367_v56, %v10249_v51  ;;  %v3294_v51 = vadd.f32 %v11239_v50, %v11238_v41  ;;  %v4891_v41 = vmul.f32 %v4872_v59, %v10515_v53 }
0x19cc   :  { %v5370_v18 = vadd.f32 %v5369_v11, %v10256_v35  ;;  %v3318_v1 = vadd.f32 %v11240_v4, %v3294_v51  ;;  %v11241_v35 = vld [vmem:[#allocation56_spill] sm:$0xff] }
0x19ce   :  { %v3342_v61 = vadd.f32 %v11241_v35, %v3318_v1 }
0x19e1   :  { %v5373_v24 = vpop.permute.xlu0 %5372 }
0x19e2   :  { %v5375_v43 = vmul.f32 %v5373_v24, %v10254_v9  ;;  %v11242_v9 = vld [vmem:[#allocation57_spill] sm:$0xff] }
0x19e3   :  { %v3366_v58 = vadd.f32 %v11242_v9, %v3342_v61 }
0x19e4   :  { %v5376_v44 = vadd.f32 %v5375_v43, %v5370_v18 }
0x19e5   :  { %v3388_v57 = vadd.f32 %v11243_v37, %v3366_v58 }
0x19e6   :  { %5378 = vrot.lane.b32.xlu2 %v5376_v44, %s9323_s5 }
0x19e7   :  { %v3418_v3 = vadd.f32 %v11244_v55, %v3388_v57 }
0x19e9   :  { %v3444_v21 = vadd.f32 %v11245_v52, %v3418_v3 }
0x19eb   :  { %v3468_v17 = vadd.f32 %v11246_v34, %v3444_v21 }
0x19ed   :  { %v3492_v42 = vadd.f32 %v11247_v39, %v3468_v17 }
0x19ee   :  { %5401 = vrot.lane.b32.xlu2 %v5376_v44, %s9313_s30 }
0x19ef   :  { %v3516_v0 = vadd.f32 %v11248_v27, %v3492_v42 }
0x19f1   :  { %v3538_v26 = vadd.f32 %v11249_v36, %v3516_v0 }
0x19f3   :  { %v10572_v49 = vadd.f32 %v10360_v8, %v3538_v26 }
0x19f8   :  { %v4881_v29 = vpop.permute.xlu1 %4880 }
0x19f9   :  { %v4883_v48 = vadd.f32 %v4881_v29, %v10541_v10 }
0x19fb   :  { %8884 = vtanh.f32 %v4883_v48  ;;  %v4885_v48 = vsub.f32 1.0, %v4872_v59 }
0x1a01   :  { %v8885_v13 = vpop.eup %8884 }
0x1a02   :  { %4887 = vrot.lane.b32.xlu1 %v8885_v13, %s9325_s11 }
0x1a40   :  { %v5379_v60 = vpop.permute.xlu2 %5378 }
0x1a41   :  { %v5381_v32 = vadd.f32 %v5379_v60, %v10572_v49 }
0x1a43   :  { %v8646_v40 = vmul.f32 -1.442695, %v5381_v32 }
0x1a45   :  { %8886 = vpow2.f32 %v8646_v40 }
0x1a48   :  { %v5402_v44 = vpop.permute.xlu2 %5401 }
0x1a4b   :  { %v8887_v6 = vpop.eup %8886 }
0x1a4c   :  { %v5385_v33 = vadd.f32 1.0, %v8887_v6 }
0x1a4e   :  { %8888 = vrcp.f32 %v5385_v33  ;;  %v5397_v31 = vand.u32 2147483648, %v5385_v33  ;;  %v5395_v11 = vand.u32 2147483647, %v5385_v33  ;;  %vm5391_vm5 = vweird.f32 %v5385_v33 }
0x1a50   :  { %v5398_v8 = vor.u32 1.1754944e-38, %v5397_v31  ;;  %vm5396_vm7 = vcmp.eq.f32.partialorder %v5395_v11, 8.507059e+37 }
0x1a54   :  { %v8889_v23 = vpop.eup %8888 }
0x1a55   :  { %v5387_v47 = vmul.f32 %v8889_v23, %v5385_v33  ;;  %vm5392_vm4 = vweird.f32 %v8889_v23 }
0x1a56   :  { %vm5393_vm6 = vmor %vm5391_vm5, %vm5392_vm4 }
0x1a57   :  { %v5388_v2 = vsub.f32 1.0, %v5387_v47 }
0x1a59   :  { %v5389_v56 = vmul.f32 %v8889_v23, %v5388_v2 }
0x1a5b   :  { %v5390_v24 = vadd.f32 %v8889_v23, %v5389_v56 }
0x1a5d   :  { %v5394_v18 = vsel %vm5393_vm6, %v8889_v23, %v5390_v24 }
0x1a5e   :  { %v5399_v43 = vsel %vm5396_vm7, %v5398_v8, %v5394_v18  ;;  %v10599_v18 = vld [vmem:[#allocation17] sm:$0x3] }
0x1a5f   :  { %v5404_v29 = vmul.f32 %v5402_v44, %v5399_v43  ;;  %v5411_v17 = vsub.f32 1.0, %v5399_v43  ;;  %v5417_v42 = vmul.f32 %v5399_v43, %v10545_v5  ;;  %v10602_v44 = vld [vmem:[#allocation17 + $0x2] sm:$0x3] }
0x1a61   :  { %5406 = vrot.lane.b32.xlu0 %v5404_v29, %s9324_s23 }
0x1a74   :  { %v4888_v13 = vpop.permute.xlu1 %4887 }
0x1a75   :  { %v4890_v50 = vmul.f32 %v4888_v13, %v4885_v48  ;;  %v10605_v48 = vld [vmem:[#allocation19] sm:$0x3] }
0x1a77   :  { %v10577_v51 = vadd.f32 %v4891_v41, %v4890_v50 }
0x1a79   :  { %4895 = vperm.xlu1 %8726, %v10577_v51   ;;  %4901 = vperm.xlu2 %8727, %v10577_v51  }
0x1a81   :  { %8729 = vset.pattern.permute.xlu1 %v11204_v7  ;;  %8733 = vset.pattern.permute.xlu2 %v11204_v7 }
0x1ad3   :  { %v5407_v4 = vpop.permute.xlu0 %5406  ;;  %v4902_v61 = vpop.permute.xlu2 %4901 }
0x1ad4   :  { %v5409_v1 = vadd.f32 %v5407_v4, %v10572_v49  ;;  %v4904_v58 = vmul.f32 %v4902_v61, %v10399_v62 }
0x1ad6   :  { %8890 = vtanh.f32 %v5409_v1 }
0x1adc   :  { %v8891_v35 = vpop.eup %8890 }
0x1add   :  { %5413 = vrot.lane.b32.xlu1 %v8891_v35, %s9325_s11 }
0x1aeb   :  { %v4896_v59 = vpop.permute.xlu1 %4895 }
0x1aec   :  { %v4898_v9 = vmul.f32 %v4896_v59, %v10396_v15 }
0x1aee   :  { %v4899_v37 = vadd.f32 %v4898_v9, %v10401_v20 }
0x1af0   :  { %v4905_v57 = vadd.f32 %v4904_v58, %v4899_v37 }
0x1af2   :  { %4927 = vrot.lane.b32.xlu0 %v4905_v57, %s9328_s24  ;;  %v4906_v55 = vadd.f32 %v4905_v57, %v10572_v49 }
0x1af4   :  { %v8637_v3 = vmul.f32 -1.442695, %v4906_v55 }
0x1af6   :  { %8892 = vpow2.f32 %v8637_v3 }
0x1afc   :  { %v8893_v52 = vpop.eup %8892 }
0x1afd   :  { %v4910_v21 = vadd.f32 1.0, %v8893_v52 }
0x1aff   :  { %8894 = vrcp.f32 %v4910_v21  ;;  %v4922_v40 = vand.u32 2147483648, %v4910_v21  ;;  %vm4916_vm9 = vweird.f32 %v4910_v21  ;;  %v4920_v6 = vand.u32 2147483647, %v4910_v21 }
0x1b01   :  { %v4923_v23 = vor.u32 1.1754944e-38, %v4922_v40  ;;  %vm4921_vm11 = vcmp.eq.f32.partialorder %v4920_v6, 8.507059e+37 }
0x1b05   :  { %v8895_v34 = vpop.eup %8894 }
0x1b06   :  { %v4912_v0 = vmul.f32 %v8895_v34, %v4910_v21  ;;  %vm4917_vm8 = vweird.f32 %v8895_v34 }
0x1b07   :  { %vm4918_vm10 = vmor %vm4916_vm9, %vm4917_vm8 }
0x1b08   :  { %v4913_v26 = vsub.f32 1.0, %v4912_v0 }
0x1b0a   :  { %v4914_v60 = vmul.f32 %v8895_v34, %v4913_v26 }
0x1b0c   :  { %v4915_v32 = vadd.f32 %v8895_v34, %v4914_v60 }
0x1b0e   :  { %v4919_v33 = vsel %vm4918_vm10, %v8895_v34, %v4915_v32 }
0x1b0f   :  { %v4924_v2 = vsel %vm4921_vm11, %v4923_v23, %v4919_v33 }
0x1b10   :  { %v4943_v1 = vmul.f32 %v4924_v2, %v10577_v51 }
0x1b4f   :  { %v5414_v39 = vpop.permute.xlu1 %5413 }
0x1b50   :  { %v5416_v27 = vmul.f32 %v5414_v39, %v5411_v17 }
0x1b52   :  { %v10591_v36 = vadd.f32 %v5417_v42, %v5416_v27 }
0x1b54   :  { %5427 = vperm.xlu1 %8729, %v10591_v36   ;;  %5421 = vperm.xlu0 %8728, %v10591_v36  }
0x1b5c   :  { %8731 = vset.pattern.permute.xlu1 %v11201_v16  ;;  %8730 = vset.pattern.permute.xlu0 %v11202_v14 }
0x1b64   :  { %v4928_v47 = vpop.permute.xlu0 %4927 }
0x1b65   :  { %v4930_v31 = vmul.f32 %v4928_v47, %v4924_v2 }
0x1b67   :  { %4932 = vrot.lane.b32.xlu2 %v4930_v31, %s9324_s23 }
0x1bc1   :  { %v4933_v56 = vpop.permute.xlu2 %4932 }
0x1bc2   :  { %v4935_v11 = vadd.f32 %v4933_v56, %v10572_v49  ;;  %v4937_v49 = vsub.f32 1.0, %v4924_v2 }
0x1bc4   :  { %8896 = vtanh.f32 %v4935_v11 }
0x1bc6   :  { %v5428_v24 = vpop.permute.xlu1 %5427  ;;  %v5422_v8 = vpop.permute.xlu0 %5421 }
0x1bc7   :  { %v5424_v43 = vmul.f32 %v10599_v18, %v5422_v8  ;;  %v5430_v29 = vmul.f32 %v10602_v44, %v5428_v24 }
0x1bc9   :  { %v5425_v13 = vadd.f32 %v10605_v48, %v5424_v43 }
0x1bca   :  { %v8897_v41 = vpop.eup %8896 }
0x1bcb   :  { %v5431_v50 = vadd.f32 %v5430_v29, %v5425_v13  ;;  %4939 = vrot.lane.b32.xlu2 %v8897_v41, %s9325_s11 }
0x1bcd   :  { %5433 = vrot.lane.b32.xlu1 %v5431_v50, %s9323_s5 }
0x1bd3   :  { %5456 = vrot.lane.b32.xlu2 %v5431_v50, %s9313_s30 }
0x1c25   :  { %v4940_v4 = vpop.permute.xlu2 %4939 }
0x1c26   :  { %v4942_v35 = vmul.f32 %v4940_v4, %v4937_v49 }
0x1c28   :  { %v10612_v61 = vadd.f32 %v4943_v1, %v4942_v35 }
0x1c2a   :  { %4953 = vperm.xlu1 %8731, %v10612_v61   ;;  %4947 = vperm.xlu0 %8730, %v10612_v61  }
0x1c2d   :  { %v5457_v0 = vpop.permute.xlu2 %5456 }
0x1c32   :  { %8732 = vset.pattern.permute.xlu1 %v11203_v38  ;;  %8735 = vset.pattern.permute.xlu0 %v11201_v16 }
0x1c3f   :  { %v5434_v59 = vpop.permute.xlu1 %5433 }
0x1c40   :  { %v5436_v9 = vadd.f32 %v5434_v59, %v10541_v10 }
0x1c42   :  { %v8647_v58 = vmul.f32 -1.442695, %v5436_v9 }
0x1c44   :  { %8898 = vpow2.f32 %v8647_v58 }
0x1c4a   :  { %v8899_v37 = vpop.eup %8898 }
0x1c4b   :  { %v5440_v57 = vadd.f32 1.0, %v8899_v37 }
0x1c4d   :  { %8900 = vrcp.f32 %v5440_v57  ;;  %v5452_v21 = vand.u32 2147483648, %v5440_v57  ;;  %v5450_v17 = vand.u32 2147483647, %v5440_v57  ;;  %vm5446_vm13 = vweird.f32 %v5440_v57 }
0x1c4f   :  { %v5453_v42 = vor.u32 1.1754944e-38, %v5452_v21  ;;  %vm5451_vm1 = vcmp.eq.f32.partialorder %v5450_v17, 8.507059e+37 }
0x1c53   :  { %v8901_v55 = vpop.eup %8900 }
0x1c54   :  { %v5442_v3 = vmul.f32 %v8901_v55, %v5440_v57  ;;  %vm5447_vm12 = vweird.f32 %v8901_v55 }
0x1c55   :  { %vm5448_vm0 = vmor %vm5446_vm13, %vm5447_vm12 }
0x1c56   :  { %v5443_v52 = vsub.f32 1.0, %v5442_v3 }
0x1c58   :  { %v5444_v34 = vmul.f32 %v8901_v55, %v5443_v52 }
0x1c5a   :  { %v5445_v39 = vadd.f32 %v8901_v55, %v5444_v34 }
0x1c5c   :  { %v5449_v27 = vsel %vm5448_vm0, %v8901_v55, %v5445_v39 }
0x1c5d   :  { %v5454_v26 = vsel %vm5451_vm1, %v5453_v42, %v5449_v27 }
0x1c5e   :  { %v5459_v60 = vmul.f32 %v5457_v0, %v5454_v26  ;;  %v5466_v59 = vsub.f32 1.0, %v5454_v26  ;;  %v5472_v58 = vmul.f32 %v5454_v26, %v10591_v36 }
0x1c60   :  { %5461 = vrot.lane.b32.xlu2 %v5459_v60, %s9324_s23 }
0x1c9c   :  { %v4954_v32 = vpop.permute.xlu1 %4953  ;;  %v4948_v40 = vpop.permute.xlu0 %4947 }
0x1c9d   :  { %v4950_v6 = vmul.f32 %v4948_v40, %v10396_v15  ;;  %v4956_v33 = vmul.f32 %v4954_v32, %v10399_v62 }
0x1c9f   :  { %v4951_v23 = vadd.f32 %v4950_v6, %v10401_v20 }
0x1ca1   :  { %v4957_v47 = vadd.f32 %v4956_v33, %v4951_v23 }
0x1ca3   :  { %4979 = vrot.lane.b32.xlu1 %v4957_v47, %s9328_s24  ;;  %v4958_v11 = vadd.f32 %v4957_v47, %v10511_v25 }
0x1ca5   :  { %v8638_v24 = vmul.f32 -1.442695, %v4958_v11 }
0x1cba   :  { %v5462_v2 = vpop.permute.xlu2 %5461 }
0x1cbb   :  { %v5464_v31 = vadd.f32 %v5462_v2, %v10541_v10 }
0x1cbd   :  { %8902 = vtanh.f32 %v5464_v31 }
0x1cbe   :  { %8904 = vpow2.f32 %v8638_v24 }
0x1cc3   :  { %v8903_v56 = vpop.eup %8902 }
0x1cc4   :  { %5468 = vrot.lane.b32.xlu2 %v8903_v56, %s9325_s11  ;;  %v8905_v8 = vpop.eup %8904 }
0x1cc5   :  { %v4962_v15 = vadd.f32 1.0, %v8905_v8 }
0x1cc7   :  { %8906 = vrcp.f32 %v4962_v15  ;;  %v4974_v41 = vand.u32 2147483648, %v4962_v15  ;;  %vm4968_vm3 = vweird.f32 %v4962_v15  ;;  %v4972_v10 = vand.u32 2147483647, %v4962_v15 }
0x1cc9   :  { %v4975_v49 = vor.u32 1.1754944e-38, %v4974_v41  ;;  %vm4973_vm5 = vcmp.eq.f32.partialorder %v4972_v10, 8.507059e+37  ;;  %v10651_v41 = vld [vmem:[#allocation14] sm:$0x3] }
0x1ccd   :  { %v8907_v62 = vpop.eup %8906 }
0x1cce   :  { %v4964_v43 = vmul.f32 %v8907_v62, %v4962_v15  ;;  %vm4969_vm2 = vweird.f32 %v8907_v62 }
0x1ccf   :  { %vm4970_vm4 = vmor %vm4968_vm3, %vm4969_vm2 }
0x1cd0   :  { %v4965_v20 = vsub.f32 1.0, %v4964_v43 }
0x1cd2   :  { %v4966_v29 = vmul.f32 %v8907_v62, %v4965_v20 }
0x1cd4   :  { %v4967_v13 = vadd.f32 %v8907_v62, %v4966_v29 }
0x1cd6   :  { %v4971_v50 = vsel %vm4970_vm4, %v8907_v62, %v4967_v13 }
0x1cd7   :  { %v4976_v1 = vsel %vm4973_vm5, %v4975_v49, %v4971_v50  ;;  %v10654_v49 = vld [vmem:[#allocation16] sm:$0x3] }
0x1cd8   :  { %v4989_v0 = vsub.f32 1.0, %v4976_v1 }
0x1d15   :  { %v4980_v4 = vpop.permute.xlu1 %4979 }
0x1d16   :  { %v4982_v35 = vmul.f32 %v4980_v4, %v4976_v1 }
0x1d18   :  { %4984 = vrot.lane.b32.xlu0 %v4982_v35, %s9324_s23 }
0x1d1e   :  { %v5469_v9 = vpop.permute.xlu2 %5468 }
0x1d1f   :  { %v5471_v37 = vmul.f32 %v5469_v9, %v5466_v59 }
0x1d21   :  { %v10629_v57 = vadd.f32 %v5472_v58, %v5471_v37 }
0x1d23   :  { %5482 = vperm.xlu2 %8733, %v10629_v57   ;;  %5476 = vperm.xlu1 %8732, %v10629_v57  }
0x1d2b   :  { %8734 = vset.pattern.permute.xlu2 %v11202_v14  ;;  %8738 = vset.pattern.permute.xlu1 %v11202_v14 }
0x1d7d   :  { %v5483_v21 = vpop.permute.xlu2 %5482 }
0x1d7e   :  { %v5485_v39 = vmul.f32 %v10602_v44, %v5483_v21 }
0x1d8a   :  { %v4985_v55 = vpop.permute.xlu0 %4984 }
0x1d8b   :  { %v4987_v3 = vadd.f32 %v4985_v55, %v10511_v25  ;;  %v4995_v25 = vmul.f32 %v4976_v1, %v10612_v61  ;;  %v10657_v1 = vld [vmem:[#allocation14 + $0x2] sm:$0x3] }
0x1d8d   :  { %8908 = vtanh.f32 %v4987_v3 }
0x1d93   :  { %v8909_v52 = vpop.eup %8908 }
0x1d94   :  { %4991 = vrot.lane.b32.xlu0 %v8909_v52, %s9325_s11 }
0x1d95   :  { %v5477_v34 = vpop.permute.xlu1 %5476 }
0x1d96   :  { %v5479_v17 = vmul.f32 %v10599_v18, %v5477_v34 }
0x1d98   :  { %v5480_v42 = vadd.f32 %v10605_v48, %v5479_v17 }
0x1d9a   :  { %v5486_v27 = vadd.f32 %v5485_v39, %v5480_v42 }
0x1d9c   :  { %5488 = vrot.lane.b32.xlu1 %v5486_v27, %s9323_s5 }
0x1da4   :  { %5511 = vrot.lane.b32.xlu1 %v5486_v27, %s9313_s30 }
0x1e06   :  { %v4992_v26 = vpop.permute.xlu0 %4991 }
0x1e07   :  { %v4994_v60 = vmul.f32 %v4992_v26, %v4989_v0 }
0x1e09   :  { %v10643_v32 = vadd.f32 %v4995_v25, %v4994_v60 }
0x1e0b   :  { %5005 = vperm.xlu0 %8735, %v10643_v32   ;;  %4999 = vperm.xlu2 %8734, %v10643_v32  }
0x1e0e   :  { %v5489_v40 = vpop.permute.xlu1 %5488 }
0x1e0f   :  { %v5491_v6 = vadd.f32 %v5489_v40, %v10480_v46 }
0x1e11   :  { %v8648_v33 = vmul.f32 -1.442695, %v5491_v6 }
0x1e13   :  { %8910 = vpow2.f32 %v8648_v33  ;;  %8737 = vset.pattern.permute.xlu0 %v11204_v7  ;;  %8736 = vset.pattern.permute.xlu2 %v11203_v38 }
0x1e16   :  { %v5512_v29 = vpop.permute.xlu1 %5511 }
0x1e19   :  { %v8911_v23 = vpop.eup %8910 }
0x1e1a   :  { %v5495_v47 = vadd.f32 1.0, %v8911_v23 }
0x1e1c   :  { %8912 = vrcp.f32 %v5495_v47  ;;  %v5507_v11 = vand.u32 2147483648, %v5495_v47  ;;  %v5505_v8 = vand.u32 2147483647, %v5495_v47  ;;  %vm5501_vm7 = vweird.f32 %v5495_v47 }
0x1e1e   :  { %v5508_v62 = vor.u32 1.1754944e-38, %v5507_v11  ;;  %vm5506_vm9 = vcmp.eq.f32.partialorder %v5505_v8, 8.507059e+37 }
0x1e22   :  { %v8913_v2 = vpop.eup %8912 }
0x1e23   :  { %v5497_v31 = vmul.f32 %v8913_v2, %v5495_v47  ;;  %vm5502_vm6 = vweird.f32 %v8913_v2 }
0x1e24   :  { %vm5503_vm8 = vmor %vm5501_vm7, %vm5502_vm6 }
0x1e25   :  { %v5498_v56 = vsub.f32 1.0, %v5497_v31 }
0x1e27   :  { %v5499_v24 = vmul.f32 %v8913_v2, %v5498_v56 }
0x1e29   :  { %v5500_v15 = vadd.f32 %v8913_v2, %v5499_v24 }
0x1e2b   :  { %v5504_v43 = vsel %vm5503_vm8, %v8913_v2, %v5500_v15 }
0x1e2c   :  { %v5509_v20 = vsel %vm5506_vm9, %v5508_v62, %v5504_v43 }
0x1e2d   :  { %v5514_v13 = vmul.f32 %v5512_v29, %v5509_v20  ;;  %v5521_v33 = vsub.f32 1.0, %v5509_v20  ;;  %v5527_v47 = vmul.f32 %v5509_v20, %v10629_v57 }
0x1e2f   :  { %5516 = vrot.lane.b32.xlu1 %v5514_v13, %s9324_s23 }
0x1e65   :  { %v5000_v38 = vpop.permute.xlu2 %4999 }
0x1e66   :  { %v5002_v10 = vmul.f32 %v10651_v41, %v5000_v38 }
0x1e68   :  { %v5003_v4 = vadd.f32 %v10654_v49, %v5002_v10 }
0x1e7d   :  { %v5006_v50 = vpop.permute.xlu0 %5005 }
0x1e7e   :  { %v5008_v35 = vmul.f32 %v10657_v1, %v5006_v50 }
0x1e80   :  { %v5009_v59 = vadd.f32 %v5008_v35, %v5003_v4 }
0x1e82   :  { %5031 = vrot.lane.b32.xlu2 %v5009_v59, %s9328_s24  ;;  %v5010_v55 = vadd.f32 %v5009_v59, %v10455_v19 }
0x1e84   :  { %v8639_v3 = vmul.f32 -1.442695, %v5010_v55 }
0x1ea1   :  { %v5517_v9 = vpop.permute.xlu1 %5516 }
0x1ea2   :  { %v5519_v58 = vadd.f32 %v5517_v9, %v10480_v46 }
0x1ea4   :  { %8914 = vtanh.f32 %v5519_v58 }
0x1ea5   :  { %8916 = vpow2.f32 %v8639_v3 }
0x1eaa   :  { %v8915_v37 = vpop.eup %8914 }
0x1eab   :  { %5523 = vrot.lane.b32.xlu0 %v8915_v37, %s9325_s11  ;;  %v8917_v52 = vpop.eup %8916 }
0x1eac   :  { %v5014_v21 = vadd.f32 1.0, %v8917_v52 }
0x1eae   :  { %8918 = vrcp.f32 %v5014_v21  ;;  %v5026_v0 = vand.u32 2147483648, %v5014_v21  ;;  %vm5020_vm11 = vweird.f32 %v5014_v21  ;;  %v5024_v46 = vand.u32 2147483647, %v5014_v21 }
0x1eb0   :  { %v5027_v25 = vor.u32 1.1754944e-38, %v5026_v0  ;;  %vm5025_vm13 = vcmp.eq.f32.partialorder %v5024_v46, 8.507059e+37 }
0x1eb4   :  { %v8919_v34 = vpop.eup %8918 }
0x1eb5   :  { %v5016_v17 = vmul.f32 %v8919_v34, %v5014_v21  ;;  %vm5021_vm10 = vweird.f32 %v8919_v34 }
0x1eb6   :  { %vm5022_vm12 = vmor %vm5020_vm11, %vm5021_vm10 }
0x1eb7   :  { %v5017_v39 = vsub.f32 1.0, %v5016_v17 }
0x1eb9   :  { %v5018_v42 = vmul.f32 %v8919_v34, %v5017_v39 }
0x1ebb   :  { %v5019_v27 = vadd.f32 %v8919_v34, %v5018_v42 }
0x1ebd   :  { %v5023_v26 = vsel %vm5022_vm12, %v8919_v34, %v5019_v27 }
0x1ebe   :  { %v5028_v40 = vsel %vm5025_vm13, %v5027_v25, %v5023_v26 }
0x1ebf   :  { %v5041_v13 = vsub.f32 1.0, %v5028_v40  ;;  %v5047_v38 = vmul.f32 %v5028_v40, %v10643_v32 }
0x1edc   :  { %v5032_v60 = vpop.permute.xlu2 %5031 }
0x1edd   :  { %v5034_v6 = vmul.f32 %v5032_v60, %v5028_v40 }
0x1edf   :  { %5036 = vrot.lane.b32.xlu2 %v5034_v6, %s9324_s23 }
0x1f1d   :  { %v5524_v23 = vpop.permute.xlu0 %5523 }
0x1f1e   :  { %v5526_v2 = vmul.f32 %v5524_v23, %v5521_v33 }
0x1f20   :  { %v10666_v31 = vadd.f32 %v5527_v47, %v5526_v2 }
0x1f22   :  { %5537 = vperm.xlu0 %8737, %v10666_v31   ;;  %5531 = vperm.xlu2 %8736, %v10666_v31  }
0x1f2a   :  { %8739 = vset.pattern.permute.xlu2 %v11201_v16  ;;  %8741 = vset.pattern.permute.xlu0 %v11201_v16 }
0x1f39   :  { %v5037_v56 = vpop.permute.xlu2 %5036 }
0x1f3a   :  { %v5039_v11 = vadd.f32 %v5037_v56, %v10455_v19 }
0x1f3c   :  { %8920 = vtanh.f32 %v5039_v11 }
0x1f42   :  { %v8921_v24 = vpop.eup %8920 }
0x1f43   :  { %5043 = vrot.lane.b32.xlu1 %v8921_v24, %s9325_s11 }
0x1f7c   :  { %v5532_v8 = vpop.permute.xlu2 %5531 }
0x1f7d   :  { %v5534_v15 = vmul.f32 %v10599_v18, %v5532_v8 }
0x1f7f   :  { %v5535_v43 = vadd.f32 %v10605_v48, %v5534_v15 }
0x1f94   :  { %v5538_v62 = vpop.permute.xlu0 %5537 }
0x1f95   :  { %v5540_v20 = vmul.f32 %v10602_v44, %v5538_v62 }
0x1f97   :  { %v5541_v29 = vadd.f32 %v5540_v20, %v5535_v43 }
0x1f99   :  { %5566 = vrot.lane.b32.xlu0 %v5541_v29, %s9313_s30 }
0x1fb5   :  { %v5044_v16 = vpop.permute.xlu1 %5043 }
0x1fb6   :  { %v5046_v19 = vmul.f32 %v5044_v16, %v5041_v13 }
0x1fb8   :  { %v10679_v10 = vadd.f32 %v5047_v38, %v5046_v19 }
0x1fba   :  { %5057 = vperm.xlu2 %8739, %v10679_v10   ;;  %5051 = vperm.xlu1 %8738, %v10679_v10  }
0x1fc2   :  { %5543 = vrot.lane.b32.xlu1 %v5541_v29, %s9323_s5  ;;  %8740 = vset.pattern.permute.xlu2 %v11202_v14 }
0x200b   :  { %v5567_v0 = vpop.permute.xlu0 %5566 }
0x2014   :  { %v5058_v18 = vpop.permute.xlu2 %5057 }
0x2015   :  { %v5060_v50 = vmul.f32 %v10657_v1, %v5058_v18 }
0x202c   :  { %v5052_v44 = vpop.permute.xlu1 %5051 }
0x202d   :  { %v5054_v48 = vmul.f32 %v10651_v41, %v5052_v44 }
0x202f   :  { %v5055_v4 = vadd.f32 %v10654_v49, %v5054_v48 }
0x2031   :  { %v5061_v35 = vadd.f32 %v5060_v50, %v5055_v4 }
0x2033   :  { %5083 = vrot.lane.b32.xlu2 %v5061_v35, %s9328_s24  ;;  %v5062_v25 = vadd.f32 %v5061_v35, %v10391_v30 }
0x2034   :  { %v5544_v59 = vpop.permute.xlu1 %5543 }
0x2035   :  { %v5546_v9 = vadd.f32 %v5544_v59, %v10420_v12  ;;  %v8640_v60 = vmul.f32 -1.442695, %v5062_v25 }
0x2037   :  { %v8649_v58 = vmul.f32 -1.442695, %v5546_v9 }
0x2039   :  { %8922 = vpow2.f32 %v8649_v58 }
0x203f   :  { %v8923_v37 = vpop.eup %8922 }
0x2040   :  { %v5550_v55 = vadd.f32 1.0, %v8923_v37 }
0x2042   :  { %8924 = vrcp.f32 %v5550_v55  ;;  %v5562_v21 = vand.u32 2147483648, %v5550_v55  ;;  %v5560_v17 = vand.u32 2147483647, %v5550_v55  ;;  %vm5556_vm1 = vweird.f32 %v5550_v55 }
0x2043   :  { %8926 = vpow2.f32 %v8640_v60 }
0x2044   :  { %v5563_v42 = vor.u32 1.1754944e-38, %v5562_v21  ;;  %vm5561_vm3 = vcmp.eq.f32.partialorder %v5560_v17, 8.507059e+37 }
0x2048   :  { %v8925_v14 = vpop.eup %8924 }
0x2049   :  { %v5552_v3 = vmul.f32 %v8925_v14, %v5550_v55  ;;  %vm5557_vm0 = vweird.f32 %v8925_v14  ;;  %v8927_v40 = vpop.eup %8926 }
0x204a   :  { %vm5558_vm2 = vmor %vm5556_vm1, %vm5557_vm0  ;;  %v5066_v6 = vadd.f32 1.0, %v8927_v40 }
0x204b   :  { %v5553_v52 = vsub.f32 1.0, %v5552_v3 }
0x204c   :  { %8928 = vrcp.f32 %v5066_v6  ;;  %v5078_v11 = vand.u32 2147483648, %v5066_v6  ;;  %vm5072_vm5 = vweird.f32 %v5066_v6  ;;  %v5076_v24 = vand.u32 2147483647, %v5066_v6 }
0x204d   :  { %v5554_v34 = vmul.f32 %v8925_v14, %v5553_v52 }
0x204e   :  { %v5079_v15 = vor.u32 1.1754944e-38, %v5078_v11  ;;  %vm5077_vm7 = vcmp.eq.f32.partialorder %v5076_v24, 8.507059e+37 }
0x204f   :  { %v5555_v39 = vadd.f32 %v8925_v14, %v5554_v34 }
0x2051   :  { %v5559_v27 = vsel %vm5558_vm2, %v8925_v14, %v5555_v39 }
0x2052   :  { %v5564_v46 = vsel %vm5561_vm3, %v5563_v42, %v5559_v27  ;;  %v8929_v33 = vpop.eup %8928 }
0x2053   :  { %v5569_v26 = vmul.f32 %v5567_v0, %v5564_v46  ;;  %v5068_v23 = vmul.f32 %v8929_v33, %v5066_v6  ;;  %vm5073_vm4 = vweird.f32 %v8929_v33  ;;  %v5576_v44 = vsub.f32 1.0, %v5564_v46 }
0x2054   :  { %vm5074_vm6 = vmor %vm5072_vm5, %vm5073_vm4  ;;  %v5582_v50 = vmul.f32 %v5564_v46, %v10666_v31 }
0x2055   :  { %5571 = vrot.lane.b32.xlu2 %v5569_v26, %s9324_s23  ;;  %v5069_v47 = vsub.f32 1.0, %v5068_v23  ;;  %v8651_v26 = vld [vmem:[%s11127_s15 + $0x2] sm:$0x3] }
0x2056   :  { %v5902_v25 = vsel %vm2331_vm14, %v8651_v26, 0 }
0x2057   :  { %v5070_v2 = vmul.f32 %v8929_v33, %v5069_v47  ;;  %v5919_v60 = vand.u32 4294901760, %v5902_v25  ;;  %v8650_v47 = vld [vmem:[%s11126_s14 + $0x2] sm:$0x3] }
0x2059   :  { %v5071_v56 = vadd.f32 %v8929_v33, %v5070_v2  ;;  %v5946_v40 = vsub.f32 %v5902_v25, %v5919_v60 }
0x205b   :  { %v5075_v8 = vsel %vm5074_vm6, %v8929_v33, %v5071_v56  ;;  %v5947_v6 = vand.u32 4294901760, %v5946_v40  ;;  %v6055_v56 = vsel %vm2331_vm14, %v8650_v47, 0 }
0x205c   :  { %v5080_v43 = vsel %vm5077_vm7, %v5079_v15, %v5075_v8  ;;  %v6072_v8 = vand.u32 4294901760, %v6055_v56 }
0x205d   :  { %v5093_v9 = vsub.f32 1.0, %v5080_v43  ;;  %v5948_v33 = vsub.f32 %v5946_v40, %v5947_v6 }
0x205f   :  { %v5949_v23 = vand.u32 4294901760, %v5948_v33 }
0x208d   :  { %v5084_v62 = vpop.permute.xlu2 %5083 }
0x208e   :  { %v5086_v20 = vmul.f32 %v5084_v62, %v5080_v43  ;;  %v10737_v62 = vsub.f32 %v6055_v56, %v6072_v8 }
0x2090   :  { %5088 = vrot.lane.b32.xlu1 %v5086_v20, %s9324_s23 }
0x20af   :  { %v5572_v29 = vpop.permute.xlu2 %5571 }
0x20b0   :  { %v5574_v13 = vadd.f32 %v5572_v29, %v10420_v12 }
0x20b2   :  { %8930 = vtanh.f32 %v5574_v13 }
0x20b8   :  { %v8931_v16 = vpop.eup %8930 }
0x20b9   :  { %5578 = vrot.lane.b32.xlu1 %v8931_v16, %s9325_s11  ;;  %v6100_v16 = vand.u32 4294901760, %v10737_v62 }
0x2102   :  { %v5089_v38 = vpop.permute.xlu1 %5088 }
0x2103   :  { %v5091_v19 = vadd.f32 %v5089_v38, %v10391_v30  ;;  %v5585_v30 = vld [vmem:[%s11127_s15] sm:$0x3] }
0x2104   :  { %v5592_v12 = vsel %vm2331_vm14, %v5585_v30, 0 }
0x2105   :  { %8932 = vtanh.f32 %v5091_v19  ;;  %v5609_v59 = vand.u32 4294901760, %v5592_v12 }
0x2107   :  { %v5636_v37 = vsub.f32 %v5592_v12, %v5609_v59  ;;  %5686 = vmatpush.msra.mxu3 %v5609_v59  ;;  %5610 = vmatpush.msra.mxu0 %v5609_v59 }
0x2109   :  { %v5637_v55 = vand.u32 4294901760, %v5636_v37  ;;  %5663 = vmatpush.msra.mxu2 %v5636_v37 }
0x210b   :  { %v8933_v18 = vpop.eup %8932  ;;  %5712 = vmatpush.msrb.mxu0 %v5637_v55 }
0x210c   :  { %5095 = vrot.lane.b32.xlu0 %v8933_v18, %s9325_s11 }
0x212b   :  { %v5579_v48 = vpop.permute.xlu1 %5578 }
0x212c   :  { %v5581_v4 = vmul.f32 %v5579_v48, %v5576_v44  ;;  %v6101_v48 = vsub.f32 %v10737_v62, %v6100_v16 }
0x212e   :  { %v5583_v35 = vadd.f32 %v5582_v50, %v5581_v4  ;;  %v6102_v12 = vand.u32 4294901760, %v6101_v48  ;;  %v8654_v48 = vld [vmem:[%s11126_s14 + $0x6] sm:$0x3] }
0x2130   :  { %5587 = vrot.lane.b32.xlu1 %v5583_v35, %s9331_s3 }
0x2138   :  { %5897 = vrot.lane.b32.xlu1 %v10666_v31, %s9331_s3 }
0x2140   :  { %6208 = vrot.lane.b32.xlu1 %v10629_v57, %s9331_s3  ;;  %v5099_v57 = vmul.f32 %v5080_v43, %v10679_v10  ;;  %v8653_v43 = vld [vmem:[%s11127_s15 + $0x4] sm:$0x3] }
0x2141   :  { %v6213_v19 = vsel %vm2331_vm14, %v8653_v43, 0 }
0x2142   :  { %v6230_v50 = vand.u32 4294901760, %v6213_v19 }
0x2148   :  { %6672 = vrot.lane.b32.xlu1 %v10612_v61, %s9325_s11 }
0x2150   :  { %6983 = vrot.lane.b32.xlu1 %v10643_v32, %s9325_s11  ;;  %v5638_v32 = vsub.f32 %v5636_v37, %v5637_v55 }
0x2152   :  { %v5639_v14 = vand.u32 4294901760, %v5638_v32 }
0x2154   :  { %5640 = vmatpush.msra.mxu1 %v5639_v14 }
0x2156   :  { %5734 = vmatpush.msrb.mxu1 %v5609_v59  ;;  %v6257_v59 = vsub.f32 %v6213_v19, %v6230_v50 }
0x2158   :  { %v6258_v55 = vand.u32 4294901760, %v6257_v59 }
0x217e   :  { %v5096_v58 = vpop.permute.xlu0 %5095 }
0x217f   :  { %v5098_v31 = vmul.f32 %v5096_v58, %v5093_v9 }
0x2181   :  { %v10712_v61 = vadd.f32 %v5099_v57, %v5098_v31  ;;  %v8652_v57 = vld [vmem:[%s11126_s14 + $0x4] sm:$0x3] }
0x2183   :  { %5109 = vperm.xlu0 %8741, %v10712_v61   ;;  %5103 = vperm.xlu2 %8740, %v10712_v61  }
0x218b   :  { %5740 = vrot.lane.b32.xlu2 %v10448_v28, %s9325_s11  ;;  %8742 = vset.pattern.permute.xlu0 %v11204_v7  ;;  %v5584_v28 = vld [vmem:[%s11126_s14] sm:$0x3] }
0x218c   :  { %v5745_v7 = vsel %vm2331_vm14, %v5584_v28, 0 }
0x2193   :  { %6050 = vrot.lane.b32.xlu2 %v10515_v53, %s9325_s11  ;;  %v5762_v53 = vand.u32 4294901760, %v5745_v7 }
0x2195   :  { %5763 = vmatpush.msrb.mxu2 %v5762_v53 }
0x219b   :  { %6361 = vrot.lane.b32.xlu2 %v10577_v51, %s9325_s11  ;;  %v5789_v51 = vsub.f32 %v5745_v7, %v5762_v53 }
0x219d   :  { %v5790_v27 = vand.u32 4294901760, %v5789_v51 }
0x219f   :  { %v5791_v0 = vsub.f32 %v5789_v51, %v5790_v27 }
0x21a1   :  { %v5792_v46 = vand.u32 4294901760, %v5791_v0 }
0x21a2   :  { %v5588_v3 = vpop.permute.xlu1 %5587 }
0x21a3   :  { %v5589_v52 = vsel %vm2328_vm15, %v5588_v3, 0  ;;  %5793 = vmatpush.msrb.mxu3 %v5792_v46  ;;  %v6366_v3 = vsel %vm2331_vm14, %v8652_v57, 0 }
0x21a4   :  { %v5611_v21 = vand.u32 4294901760, %v5589_v52 }
0x21a6   :  { %v5612_v34 = vsub.f32 %v5589_v52, %v5611_v21  ;;  %5642 = vmatmul.f32.vlgmr.msra.gmra.mxu1 %v5611_v21 }
0x21a7   :  { %5839 = vmatpush.msra.mxu1 %v5762_v53 }
0x21a8   :  { %v5613_v17 = vand.u32 4294901760, %v5612_v34  ;;  %5666 = vmatmul.f32.vlgmr.msra.gmra.mxu2 %v5612_v34 }
0x21a9   :  { %5865 = vmatpush.msra.mxu2 %v5790_v27 }
0x21aa   :  { %v5614_v39 = vsub.f32 %v5612_v34, %v5613_v17  ;;  %5690 = vmatmul.f32.vlgmr.msra.gmra.mxu3 %v5613_v17  ;;  %v5898_v2 = vpop.permute.xlu1 %5897 }
0x21ab   :  { %5887 = vmatpush.msra.mxu3 %v5762_v53  ;;  %v5899_v24 = vsel %vm2328_vm15, %v5898_v2, 0 }
0x21ac   :  { %v5615_v42 = vand.u32 4294901760, %v5614_v39  ;;  %v5921_v15 = vand.u32 4294901760, %v5899_v24 }
0x21ae   :  { %5616 = vmatmul.f32.vlgmr.msra.gmra.mxu0 %v5615_v42  ;;  %5736 = vmatmul.f32.vlgmr.msrb.gmra.mxu1 %v5611_v21  ;;  %v5922_v20 = vsub.f32 %v5899_v24, %v5921_v15  ;;  %v6383_v42 = vand.u32 4294901760, %v6366_v3 }
0x21af   :  { %5816 = vmatpush.msra.mxu0 %v5789_v51  ;;  %5950 = vmatpush.msrb.mxu1 %v5949_v23 }
0x21b0   :  { %v5923_v18 = vand.u32 4294901760, %v5922_v20 }
0x21b2   :  { %v5924_v35 = vsub.f32 %v5922_v20, %v5923_v18  ;;  %v6209_v32 = vpop.permute.xlu1 %6208 }
0x21b4   :  { %v5925_v58 = vand.u32 4294901760, %v5924_v35 }
0x21b6   :  { %5714 = vmatmul.f32.vlgmr.msrb.gmra.mxu0 %v5611_v21  ;;  %v6210_v21 = vsel %vm2328_vm15, %v6209_v32, 0 }
0x21b7   :  { %5920 = vmatpush.msrb.mxu0 %v5919_v60  ;;  %v6232_v7 = vand.u32 4294901760, %v6210_v21 }
0x21dd   :  { %v5104_v11 = vpop.permute.xlu2 %5103 }
0x21de   :  { %v5106_v31 = vmul.f32 %v10651_v41, %v5104_v11  ;;  %v6259_v41 = vsub.f32 %v6257_v59, %v6258_v55 }
0x21e0   :  { %v5107_v34 = vadd.f32 %v10654_v49, %v5106_v31  ;;  %v6260_v53 = vand.u32 4294901760, %v6259_v41  ;;  %v6410_v49 = vsub.f32 %v6366_v3, %v6383_v42 }
0x21e2   :  { %v6411_v0 = vand.u32 4294901760, %v6410_v49 }
0x21e4   :  { %v6412_v25 = vsub.f32 %v6410_v49, %v6411_v0 }
0x21e5   :  { %v5741_v29 = vpop.permute.xlu2 %5740 }
0x21e6   :  { %v5742_v13 = vsel %vm2328_vm15, %v5741_v29, 0 }
0x21e7   :  { %v5764_v38 = vand.u32 4294901760, %v5742_v13 }
0x21e9   :  { %v5765_v44 = vsub.f32 %v5742_v13, %v5764_v38  ;;  %5795 = vmatmul.f32.vlgmr.msrb.gmra.mxu3 %v5764_v38 }
0x21ea   :  { %5996 = vmatpush.msrb.mxu3 %v5919_v60 }
0x21eb   :  { %v5766_v4 = vand.u32 4294901760, %v5765_v44  ;;  %5819 = vmatmul.f32.vlgmr.msra.gmra.mxu0 %v5765_v44 }
0x21ec   :  { %6022 = vmatpush.msra.mxu0 %v5947_v6  ;;  %v6413_v6 = vand.u32 4294901760, %v6412_v25 }
0x21ed   :  { %v5767_v30 = vsub.f32 %v5765_v44, %v5766_v4  ;;  %5843 = vmatmul.f32.vlgmr.msra.gmra.mxu1 %v5766_v4  ;;  %v6051_v37 = vpop.permute.xlu2 %6050  ;;  %v6677_v4 = vsel %vm2331_vm14, %v8654_v48, 0 }
0x21ee   :  { %6044 = vmatpush.msra.mxu1 %v5919_v60  ;;  %v6052_v14 = vsel %vm2328_vm15, %v6051_v37, 0  ;;  %v10783_v35 = vand.u32 4294901760, %v6677_v4 }
0x21ef   :  { %v5768_v9 = vand.u32 4294901760, %v5767_v30  ;;  %v6074_v39 = vand.u32 4294901760, %v6052_v14 }
0x21f0   :  { %v10787_v30 = vsub.f32 %v6677_v4, %v10783_v35 }
0x21f1   :  { %5769 = vmatmul.f32.vlgmr.msrb.gmra.mxu2 %v5768_v9  ;;  %5889 = vmatmul.f32.vlgmr.msra.gmra.mxu3 %v5764_v38  ;;  %v6075_v51 = vsub.f32 %v6052_v14, %v6074_v39 }
0x21f2   :  { %5973 = vmatpush.msrb.mxu2 %v5946_v40  ;;  %6103 = vmatpush.msra.mxu3 %v6102_v12 }
0x21f3   :  { %5926 = vmatmul.f32.vlgmr.msrb.gmra.mxu0 %v5925_v58  ;;  %v6076_v27 = vand.u32 4294901760, %v6075_v51 }
0x21f4   :  { %6126 = vmatpush.msrb.mxu0 %v10737_v62  ;;  %v8655_v62 = vld [vmem:[%s11127_s15 + $0x6] sm:$0x3] }
0x21f5   :  { %v5110_v52 = vpop.permute.xlu0 %5109  ;;  %5952 = vmatmul.f32.vlgmr.msrb.gmra.mxu1 %v5921_v15  ;;  %v6077_v26 = vsub.f32 %v6075_v51, %v6076_v27  ;;  %v6362_v23 = vpop.permute.xlu2 %6361  ;;  %v6524_v43 = vsel %vm2331_vm14, %v8655_v62, 0 }
0x21f6   :  { %v5112_v17 = vmul.f32 %v10657_v1, %v5110_v52  ;;  %6149 = vmatpush.msrb.mxu1 %v6072_v8  ;;  %v6233_v1 = vsub.f32 %v6210_v21, %v6232_v7  ;;  %v8657_v52 = vld [vmem:[%s11127_s15 + $0x8] sm:$0x3] }
0x21f7   :  { %v6078_v40 = vand.u32 4294901760, %v6077_v26 }
0x21f8   :  { %v10756_v28 = vadd.f32 %v5112_v17, %v5107_v34  ;;  %v6234_v46 = vand.u32 4294901760, %v6233_v1  ;;  %v6673_v17 = vpop.permute.xlu1 %6672 }
0x21f9   :  { %5867 = vmatmul.f32.vlgmr.msra.gmra.mxu2 %v5764_v38  ;;  %6000 = vmatmul.f32.vlgmr.msrb.gmra.mxu3 %v5923_v18 }
0x21fa   :  { %5135 = vrot.lane.b32.xlu0 %v10756_v28, %s9328_s24  ;;  %6073 = vmatpush.msra.mxu2 %v6072_v8  ;;  %v6235_v60 = vsub.f32 %v6233_v1, %v6234_v46 }
0x21fb   :  { %6024 = vmatmul.f32.vlgmr.msra.gmra.mxu0 %v5921_v15  ;;  %6197 = vmatpush.msrb.mxu3 %v6072_v8 }
0x21fc   :  { %6231 = vmatpush.msra.mxu0 %v6230_v50  ;;  %v6236_v33 = vand.u32 4294901760, %v6235_v60 }
0x21fd   :  { %6046 = vmatmul.f32.vlgmr.msra.gmra.mxu1 %v5921_v15 }
0x21fe   :  { %6261 = vmatpush.msra.mxu1 %v6260_v53 }
0x2201   :  { %5976 = vmatmul.f32.vlgmr.msrb.gmra.mxu2 %v5922_v20  ;;  %6105 = vmatmul.f32.vlgmr.msra.gmra.mxu3 %v6074_v39  ;;  %v6541_v20 = vand.u32 4294901760, %v6524_v43 }
0x2202   :  { %6519 = vrot.lane.b32.xlu0 %v10591_v36, %s9331_s3  ;;  %6175 = vmatpush.msrb.mxu2 %v6100_v16  ;;  %v6363_v36 = vsel %vm2328_vm15, %v6362_v23, 0 }
0x2203   :  { %6129 = vmatmul.f32.vlgmr.msrb.gmra.mxu0 %v6075_v51  ;;  %6307 = vmatpush.msra.mxu3 %v6230_v50  ;;  %v6385_v47 = vand.u32 4294901760, %v6363_v36  ;;  %v6568_v29 = vsub.f32 %v6524_v43, %v6541_v20 }
0x2204   :  { %6333 = vmatpush.msrb.mxu0 %v6258_v55 }
0x2205   :  { %6153 = vmatmul.f32.vlgmr.msrb.gmra.mxu1 %v6076_v27  ;;  %v6386_v2 = vsub.f32 %v6363_v36, %v6385_v47  ;;  %v6569_v13 = vand.u32 4294901760, %v6568_v29 }
0x2206   :  { %6355 = vmatpush.msrb.mxu1 %v6230_v50 }
0x2207   :  { %v6570_v16 = vsub.f32 %v6568_v29, %v6569_v13 }
0x2209   :  { %6079 = vmatmul.f32.vlgmr.msra.gmra.mxu2 %v6078_v40  ;;  %6199 = vmatmul.f32.vlgmr.msrb.gmra.mxu3 %v6074_v39  ;;  %v6571_v18 = vand.u32 4294901760, %v6570_v16  ;;  %v8656_v40 = vld [vmem:[%s11126_s14 + $0x8] sm:$0x3] }
0x220a   :  { %6830 = vrot.lane.b32.xlu0 %v10545_v5, %s9331_s3  ;;  %6284 = vmatpush.msra.mxu2 %v6257_v59  ;;  %v6387_v5 = vand.u32 4294901760, %v6386_v2  ;;  %v6722_v59 = vand.u32 4294901760, %v10787_v30 }
0x220b   :  { %6237 = vmatmul.f32.vlgmr.msra.gmra.mxu0 %v6236_v33  ;;  %6414 = vmatpush.msrb.mxu3 %v6413_v6 }
0x220c   :  { %6437 = vmatpush.msra.mxu0 %v6410_v49  ;;  %v6388_v56 = vsub.f32 %v6386_v2, %v6387_v5  ;;  %v6723_v58 = vsub.f32 %v10787_v30, %v6722_v59  ;;  %v6674_v49 = vsel %vm2328_vm15, %v6673_v17, 0 }
0x220d   :  { %6263 = vmatmul.f32.vlgmr.msra.gmra.mxu1 %v6232_v7 }
0x220e   :  { %6460 = vmatpush.msra.mxu1 %v6383_v42  ;;  %v6389_v11 = vand.u32 4294901760, %v6388_v56  ;;  %v6724_v31 = vand.u32 4294901760, %v6723_v58  ;;  %v6988_v56 = vsel %vm2331_vm14, %v8656_v40, 0 }
0x2211   :  { %6177 = vmatmul.f32.vlgmr.msrb.gmra.mxu2 %v6074_v39  ;;  %6311 = vmatmul.f32.vlgmr.msra.gmra.mxu3 %v6234_v46 }
0x2212   :  { %7294 = vrot.lane.b32.xlu0 %v10679_v10, %s9325_s11  ;;  %6384 = vmatpush.msrb.mxu2 %v6383_v42  ;;  %v5114_v10 = vadd.f32 %v10756_v28, %v10363_v63 }
0x2213   :  { %6335 = vmatmul.f32.vlgmr.msrb.gmra.mxu0 %v6232_v7  ;;  %6508 = vmatpush.msra.mxu3 %v6383_v42  ;;  %v6835_v42 = vsel %vm2331_vm14, %v8657_v52, 0 }
0x2214   :  { %v8641_v24 = vmul.f32 -1.442695, %v5114_v10  ;;  %6542 = vmatpush.msrb.mxu0 %v6541_v20  ;;  %v10813_v27 = vand.u32 4294901760, %v6835_v42 }
0x2215   :  { %6357 = vmatmul.f32.vlgmr.msrb.gmra.mxu1 %v6232_v7 }
0x2216   :  { %8934 = vpow2.f32 %v8641_v24  ;;  %6572 = vmatpush.msrb.mxu1 %v6571_v18  ;;  %v10819_v26 = vsub.f32 %v6835_v42, %v10813_v27 }
0x2219   :  { %6287 = vmatmul.f32.vlgmr.msra.gmra.mxu2 %v6233_v1  ;;  %6416 = vmatmul.f32.vlgmr.msrb.gmra.mxu3 %v6385_v47 }
0x221a   :  { %7605 = vrot.lane.b32.xlu0 %v10712_v61, %s9325_s11  ;;  %6486 = vmatpush.msra.mxu2 %v6411_v0  ;;  %v10816_v0 = vand.u32 4294901760, %v6674_v49 }
0x221b   :  { %6440 = vmatmul.f32.vlgmr.msra.gmra.mxu0 %v6386_v2  ;;  %6618 = vmatpush.msrb.mxu3 %v6541_v20  ;;  %v6880_v2 = vand.u32 4294901760, %v10819_v26 }
0x221c   :  { %v8935_v8 = vpop.eup %8934  ;;  %6644 = vmatpush.msra.mxu0 %v6569_v13  ;;  %v10825_v6 = vsub.f32 %v6674_v49, %v10816_v0 }
0x221d   :  { %6464 = vmatmul.f32.vlgmr.msra.gmra.mxu1 %v6387_v5  ;;  %v5118_v15 = vadd.f32 1.0, %v8935_v8  ;;  %v6881_v8 = vsub.f32 %v10819_v26, %v6880_v2 }
0x221e   :  { %6666 = vmatpush.msra.mxu1 %v6541_v20 }
0x221f   :  { %8936 = vrcp.f32 %v5118_v15  ;;  %v5130_v14 = vand.u32 2147483648, %v5118_v15  ;;  %vm5124_vm9 = vweird.f32 %v5118_v15  ;;  %v5128_v3 = vand.u32 2147483647, %v5118_v15 }
0x2220   :  { %v6882_v16 = vand.u32 4294901760, %v6881_v8 }
0x2221   :  { %6390 = vmatmul.f32.vlgmr.msrb.gmra.mxu2 %v6389_v11  ;;  %6510 = vmatmul.f32.vlgmr.msra.gmra.mxu3 %v6385_v47  ;;  %v5131_v39 = vor.u32 1.1754944e-38, %v5130_v14  ;;  %vm5129_vm11 = vcmp.eq.f32.partialorder %v5128_v3, 8.507059e+37  ;;  %v6698_v11 = vand.u32 4294901760, %v10825_v6 }
0x2222   :  { %6595 = vmatpush.msrb.mxu2 %v6568_v29  ;;  %6725 = vmatpush.msra.mxu3 %v6724_v31 }
0x2223   :  { %v10777_v44 = vpop.f32.mrf.mxu1  ;;  %v6699_v20 = vsub.f32 %v10825_v6, %v6698_v11 }
0x2225   :  { %v8937_v38 = vpop.eup %8936  ;;  %v6700_v48 = vand.u32 4294901760, %v6699_v20 }
0x2226   :  { %v5120_v50 = vmul.f32 %v8937_v38, %v5118_v15  ;;  %vm5125_vm8 = vweird.f32 %v8937_v38  ;;  %v10841_v15 = vand.u32 4294901760, %v6988_v56 }
0x2227   :  { %vm5126_vm10 = vmor %vm5124_vm9, %vm5125_vm8 }
0x2228   :  { %v5121_v12 = vsub.f32 1.0, %v5120_v50 }
0x2229   :  { %6488 = vmatmul.f32.vlgmr.msra.gmra.mxu2 %v6385_v47 }
0x222a   :  { %6695 = vmatpush.msra.mxu2 %v10783_v35  ;;  %v5122_v37 = vmul.f32 %v8937_v38, %v5121_v12 }
0x222b   :  { %v10775_v19 = vpop.f32.mrf.mxu0  ;;  %v10793_v57 = vpop.f32.mrf.mxu1 }
0x222c   :  { %v5123_v32 = vadd.f32 %v8937_v38, %v5122_v37  ;;  %v10805_v28 = vpop.f32.mrf.mxu2 }
0x222d   :  { %v10795_v55 = vpop.f32.mrf.mxu3 }
0x222e   :  { %v5127_v34 = vsel %vm5126_vm10, %v8937_v38, %v5123_v32  ;;  %v10848_v38 = vsub.f32 %v6988_v56, %v10841_v15 }
0x222f   :  { %v10807_v53 = vsel %vm5129_vm11, %v5131_v39, %v5127_v34  ;;  %v5644_v34 = vadd.f32 %v10777_v44, %v10775_v19 }
0x2230   :  { %v7033_v12 = vand.u32 4294901760, %v10848_v38 }
0x2231   :  { %v5668_v19 = vadd.f32 %v10805_v28, %v5644_v34 }
0x2233   :  { %v10790_v9 = vpop.f32.mrf.mxu0 }
0x2268   :  { %v10800_v21 = vpop.f32.mrf.mxu0 }
0x226a   :  { %v10802_v41 = vpop.f32.mrf.mxu1 }
0x226c   :  { %v5136_v7 = vpop.permute.xlu0 %5135  ;;  %v10809_v51 = vpop.f32.mrf.mxu3 }
0x226d   :  { %v5138_v1 = vmul.f32 %v5136_v7, %v10807_v53 }
0x226f   :  { %5140 = vrot.lane.b32.xlu2 %v5138_v1, %s9324_s23 }
0x2270   :  { %v5927_v46 = vpop.f32.mrf.mxu0 }
0x2272   :  { %v5953_v25 = vpop.f32.mrf.mxu1 }
0x2273   :  { %v5954_v60 = vadd.f32 %v5953_v25, %v5927_v46 }
0x2274   :  { %v6520_v33 = vpop.permute.xlu0 %6519  ;;  %v10827_v23 = vpop.f32.mrf.mxu2 }
0x2275   :  { %v6521_v36 = vsel %vm2328_vm15, %v6520_v33, 0  ;;  %v10830_v47 = vpop.f32.mrf.mxu3 }
0x2276   :  { %v6543_v5 = vand.u32 4294901760, %v6521_v36 }
0x2277   :  { %7141 = vrot.lane.b32.xlu2 %v10485_v54, %s9331_s3 }
0x2278   :  { %v6544_v10 = vsub.f32 %v6521_v36, %v6543_v5  ;;  %v6025_v24 = vpop.f32.mrf.mxu0  ;;  %6574 = vmatmul.f32.vlgmr.msrb.gmra.mxu1 %v6543_v5 }
0x2279   :  { %6771 = vmatpush.msrb.mxu1 %v10783_v35 }
0x227a   :  { %v6545_v62 = vand.u32 4294901760, %v6544_v10  ;;  %v6047_v43 = vpop.f32.mrf.mxu1  ;;  %6598 = vmatmul.f32.vlgmr.msrb.gmra.mxu2 %v6544_v10 }
0x227b   :  { %6797 = vmatpush.msrb.mxu2 %v6722_v59  ;;  %v6984_v59 = vpop.permute.xlu1 %6983 }
0x227c   :  { %v6546_v54 = vsub.f32 %v6544_v10, %v6545_v62  ;;  %v10844_v29 = vpop.f32.mrf.mxu2  ;;  %6622 = vmatmul.f32.vlgmr.msrb.gmra.mxu3 %v6545_v62  ;;  %v6831_v50 = vpop.permute.xlu0 %6830 }
0x227d   :  { %v6001_v13 = vpop.f32.mrf.mxu3  ;;  %6819 = vmatpush.msrb.mxu3 %v10783_v35  ;;  %v6832_v58 = vsel %vm2328_vm15, %v6831_v50, 0 }
0x227e   :  { %v6547_v18 = vand.u32 4294901760, %v6546_v54  ;;  %v6854_v32 = vand.u32 4294901760, %v6832_v58 }
0x227f   :  { %7452 = vrot.lane.b32.xlu2 %v10424_v22, %s9331_s3  ;;  %v6985_v22 = vsel %vm2328_vm15, %v6984_v59, 0 }
0x2280   :  { %v6130_v4 = vpop.f32.mrf.mxu0  ;;  %6548 = vmatmul.f32.vlgmr.msrb.gmra.mxu0 %v6547_v18  ;;  %6668 = vmatmul.f32.vlgmr.msra.gmra.mxu1 %v6543_v5  ;;  %v10860_v52 = vand.u32 4294901760, %v6985_v22  ;;  %v6855_v42 = vsub.f32 %v6832_v58, %v6854_v32 }
0x2281   :  { %6748 = vmatpush.msrb.mxu0 %v10787_v30  ;;  %6883 = vmatpush.msra.mxu1 %v6882_v16  ;;  %v7034_v30 = vsub.f32 %v10848_v38, %v7033_v12 }
0x2282   :  { %v6154_v35 = vpop.f32.mrf.mxu1  ;;  %6701 = vmatmul.f32.vlgmr.msra.gmra.mxu2 %v6700_v48  ;;  %v7008_v25 = vsub.f32 %v6985_v22, %v10860_v52 }
0x2283   :  { %6906 = vmatpush.msra.mxu2 %v10819_v26  ;;  %v7035_v39 = vand.u32 4294901760, %v7034_v30 }
0x2284   :  { %v5977_v37 = vpop.f32.mrf.mxu2  ;;  %6727 = vmatmul.f32.vlgmr.msra.gmra.mxu3 %v10816_v0  ;;  %v7009_v33 = vand.u32 4294901760, %v7008_v25 }
0x2285   :  { %v5978_v31 = vadd.f32 %v5977_v37, %v5954_v60  ;;  %6929 = vmatpush.msra.mxu3 %v10813_v27  ;;  %v6106_v14 = vpop.f32.mrf.mxu3 }
0x2286   :  { %v7010_v10 = vsub.f32 %v7008_v25, %v7009_v33 }
0x2287   :  { %v6002_v3 = vadd.f32 %v6001_v13, %v5978_v31 }
0x2288   :  { %6646 = vmatmul.f32.vlgmr.msra.gmra.mxu0 %v6543_v5  ;;  %6775 = vmatmul.f32.vlgmr.msrb.gmra.mxu1 %v6698_v11  ;;  %v6238_v7 = vpop.f32.mrf.mxu0  ;;  %v5692_v5 = vadd.f32 %v10795_v55, %v5668_v19  ;;  %v7011_v26 = vand.u32 4294901760, %v7010_v10  ;;  %v8661_v19 = vld [vmem:[%s11127_s15 + $0xc] sm:$0x3] }
0x2289   :  { %v6026_v17 = vadd.f32 %v6025_v24, %v6002_v3  ;;  %6853 = vmatpush.msra.mxu0 %v10813_v27  ;;  %6977 = vmatpush.msrb.mxu1 %v10813_v27  ;;  %v6856_v27 = vand.u32 4294901760, %v6855_v42 }
0x228a   :  { %v6264_v49 = vpop.f32.mrf.mxu1  ;;  %6799 = vmatmul.f32.vlgmr.msrb.gmra.mxu2 %v10816_v0  ;;  %v5716_v28 = vadd.f32 %v10790_v9, %v5692_v5 }
0x228b   :  { %v6265_v1 = vadd.f32 %v6264_v49, %v6238_v7  ;;  %v6048_v46 = vadd.f32 %v6047_v43, %v6026_v17  ;;  %7006 = vmatpush.msrb.mxu2 %v10841_v15  ;;  %v8658_v7 = vld [vmem:[%s11126_s14 + $0xa] sm:$0x3] }
0x228c   :  { %v6080_v60 = vpop.f32.mrf.mxu2  ;;  %6821 = vmatmul.f32.vlgmr.msrb.gmra.mxu3 %v10816_v0  ;;  %v6857_v0 = vsub.f32 %v6855_v42, %v6856_v27  ;;  %v5738_v55 = vadd.f32 %v10793_v57, %v5716_v28  ;;  %v8660_v28 = vld [vmem:[%s11126_s14 + $0xc] sm:$0x3] }
0x228d   :  { %v6081_v44 = vadd.f32 %v6080_v60, %v6048_v46  ;;  %7036 = vmatpush.msrb.mxu3 %v7035_v39  ;;  %v6200_v36 = vpop.f32.mrf.mxu3 }
0x228f   :  { %v6107_v40 = vadd.f32 %v6106_v14, %v6081_v44  ;;  %v7295_v44 = vpop.permute.xlu0 %7294 }
0x2290   :  { %6751 = vmatmul.f32.vlgmr.msrb.gmra.mxu0 %v10825_v6  ;;  %6885 = vmatmul.f32.vlgmr.msra.gmra.mxu1 %v6854_v32  ;;  %v6858_v6 = vand.u32 4294901760, %v6857_v0 }
0x2291   :  { %v6131_v56 = vadd.f32 %v6130_v4, %v6107_v40  ;;  %6955 = vmatpush.msrb.mxu0 %v6880_v2  ;;  %7082 = vmatpush.msra.mxu1 %v10841_v15  ;;  %v5771_v2 = vadd.f32 %v10827_v23, %v5738_v55 }
0x2292   :  { %6909 = vmatmul.f32.vlgmr.msra.gmra.mxu2 %v6855_v42  ;;  %v6358_v16 = vpop.f32.mrf.mxu1 }
0x2293   :  { %v6155_v11 = vadd.f32 %v6154_v35, %v6131_v56  ;;  %7108 = vmatpush.msra.mxu2 %v7033_v12  ;;  %v5797_v20 = vadd.f32 %v10809_v51, %v5771_v2 }
0x2294   :  { %v6178_v24 = vpop.f32.mrf.mxu2  ;;  %6933 = vmatmul.f32.vlgmr.msra.gmra.mxu3 %v6856_v27  ;;  %v7457_v27 = vsel %vm2331_vm14, %v8661_v19, 0 }
0x2295   :  { %v6179_v8 = vadd.f32 %v6178_v24, %v6155_v11  ;;  %7130 = vmatpush.msra.mxu3 %v10841_v15  ;;  %v6312_v9 = vpop.f32.mrf.mxu3  ;;  %v6336_v15 = vpop.f32.mrf.mxu0  ;;  %v5821_v57 = vadd.f32 %v10800_v21, %v5797_v20  ;;  %v8659_v21 = vld [vmem:[%s11127_s15 + $0xa] sm:$0x3]  ;;  %v7474_v5 = vand.u32 4294901760, %v7457_v27 }
0x2296   :  { %v7146_v37 = vsel %vm2331_vm14, %v8659_v21, 0 }
0x2297   :  { %v6201_v62 = vadd.f32 %v6200_v36, %v6179_v8  ;;  %v5845_v50 = vadd.f32 %v10802_v41, %v5821_v57  ;;  %v7163_v31 = vand.u32 4294901760, %v7146_v37  ;;  %v7501_v0 = vsub.f32 %v7457_v27, %v7474_v5 }
0x2298   :  { %6859 = vmatmul.f32.vlgmr.msra.gmra.mxu0 %v6858_v6  ;;  %6979 = vmatmul.f32.vlgmr.msrb.gmra.mxu1 %v6854_v32 }
0x2299   :  { %7059 = vmatpush.msra.mxu0 %v10848_v38  ;;  %v5869_v59 = vadd.f32 %v10844_v29, %v5845_v50  ;;  %v7190_v14 = vsub.f32 %v7146_v37, %v7163_v31  ;;  %v7502_v6 = vand.u32 4294901760, %v7501_v0 }
0x229a   :  { %7012 = vmatmul.f32.vlgmr.msrb.gmra.mxu2 %v7011_v26  ;;  %v6465_v58 = vpop.f32.mrf.mxu1 }
0x229b   :  { %v7191_v34 = vand.u32 4294901760, %v7190_v14  ;;  %7217 = vmatpush.msrb.mxu2 %v7190_v14  ;;  %v7503_v2 = vsub.f32 %v7501_v0, %v7502_v6 }
0x229c   :  { %v6288_v43 = vpop.f32.mrf.mxu2  ;;  %7038 = vmatmul.f32.vlgmr.msrb.gmra.mxu3 %v10860_v52 }
0x229d   :  { %v6289_v54 = vadd.f32 %v6288_v43, %v6265_v1  ;;  %v6417_v38 = vpop.f32.mrf.mxu3  ;;  %v6441_v12 = vpop.f32.mrf.mxu0  ;;  %7240 = vmatpush.msrb.mxu3 %v7163_v31  ;;  %v7192_v17 = vsub.f32 %v7190_v14, %v7191_v34 }
0x229f   :  { %v6313_v13 = vadd.f32 %v6312_v9, %v6289_v54  ;;  %v7193_v42 = vand.u32 4294901760, %v7192_v17 }
0x22a0   :  { %6957 = vmatmul.f32.vlgmr.msrb.gmra.mxu0 %v6854_v32  ;;  %7086 = vmatmul.f32.vlgmr.msra.gmra.mxu1 %v7009_v33  ;;  %v5891_v32 = vadd.f32 %v10830_v47, %v5869_v59  ;;  %v7299_v47 = vsel %vm2331_vm14, %v8658_v7, 0  ;;  %v7296_v33 = vsel %vm2328_vm15, %v7295_v44, 0 }
0x22a1   :  { %v6337_v18 = vadd.f32 %v6336_v15, %v6313_v13  ;;  %7164 = vmatpush.msrb.mxu0 %v7163_v31  ;;  %7194 = vmatpush.msrb.mxu1 %v7193_v42  ;;  %v7316_v49 = vand.u32 4294901760, %v7299_v47  ;;  %v7318_v56 = vand.u32 4294901760, %v7296_v33  ;;  %v7504_v15 = vand.u32 4294901760, %v7503_v2 }
0x22a2   :  { %7110 = vmatmul.f32.vlgmr.msra.gmra.mxu2 %v10860_v52 }
0x22a3   :  { %v6359_v23 = vadd.f32 %v6358_v16, %v6337_v18  ;;  %7288 = vmatpush.msra.mxu1 %v7163_v31  ;;  %7317 = vmatpush.msra.mxu2 %v7316_v49  ;;  %v7343_v1 = vsub.f32 %v7299_v47, %v7316_v49  ;;  %v7319_v11 = vsub.f32 %v7296_v33, %v7318_v56 }
0x22a4   :  { %v6391_v48 = vpop.f32.mrf.mxu2  ;;  %7132 = vmatmul.f32.vlgmr.msra.gmra.mxu3 %v10860_v52  ;;  %v6203_v52 = vadd.f32 %v6201_v62, %v5891_v32  ;;  %v7610_v62 = vsel %vm2331_vm14, %v8660_v28, 0 }
0x22a5   :  { %v6392_v4 = vadd.f32 %v6391_v48, %v6359_v23  ;;  %v6511_v3 = vpop.f32.mrf.mxu3  ;;  %v7344_v46 = vand.u32 4294901760, %v7343_v1  ;;  %v7627_v9 = vand.u32 4294901760, %v7610_v62 }
0x22a7   :  { %v6418_v51 = vadd.f32 %v6417_v38, %v6392_v4  ;;  %v7654_v13 = vsub.f32 %v7610_v62, %v7627_v9  ;;  %v7606_v38 = vpop.permute.xlu0 %7605 }
0x22a8   :  { %7062 = vmatmul.f32.vlgmr.msra.gmra.mxu0 %v7008_v25  ;;  %v7345_v25 = vsub.f32 %v7343_v1, %v7344_v46  ;;  %v7607_v50 = vsel %vm2328_vm15, %v7606_v38, 0 }
0x22a9   :  { %v6442_v35 = vadd.f32 %v6441_v12, %v6418_v51  ;;  %7266 = vmatpush.msra.mxu0 %v7191_v34  ;;  %v7655_v23 = vand.u32 4294901760, %v7654_v13  ;;  %v7629_v12 = vand.u32 4294901760, %v7607_v50 }
0x22aa   :  { %v7346_v60 = vand.u32 4294901760, %v7345_v25 }
0x22ab   :  { %v6466_v22 = vadd.f32 %v6465_v58, %v6442_v35  ;;  %v7656_v4 = vsub.f32 %v7654_v13, %v7655_v23  ;;  %v7630_v35 = vsub.f32 %v7607_v50, %v7629_v12 }
0x22ac   :  { %v6489_v30 = vpop.f32.mrf.mxu2  ;;  %7347 = vmatpush.msra.mxu3 %v7346_v60 }
0x22ad   :  { %v6490_v41 = vadd.f32 %v6489_v30, %v6466_v22  ;;  %v7631_v58 = vand.u32 4294901760, %v7630_v35 }
0x22af   :  { %v6512_v29 = vadd.f32 %v6511_v3, %v6490_v41  ;;  %v7632_v22 = vsub.f32 %v7630_v35, %v7631_v58 }
0x22b1   :  { %v10893_v39 = vadd.f32 %v6512_v29, %v6203_v52  ;;  %v7633_v30 = vand.u32 4294901760, %v7632_v22 }
0x22c9   :  { %v5141_v40 = vpop.permute.xlu2 %5140 }
0x22ca   :  { %v5143_v36 = vadd.f32 %v5141_v40, %v10363_v63  ;;  %v7320_v63 = vand.u32 4294901760, %v7319_v11 }
0x22cc   :  { %8938 = vtanh.f32 %v5143_v36  ;;  %v7321_v20 = vsub.f32 %v7319_v11, %v7320_v63 }
0x22ce   :  { %v7322_v57 = vand.u32 4294901760, %v7321_v20 }
0x22d1   :  { %v7142_v10 = vpop.permute.xlu2 %7141 }
0x22d2   :  { %v8939_v24 = vpop.eup %8938  ;;  %v7143_v8 = vsel %vm2328_vm15, %v7142_v10, 0 }
0x22d3   :  { %v7165_v55 = vand.u32 4294901760, %v7143_v8  ;;  %5147 = vrot.lane.b32.xlu1 %v8939_v24, %s9325_s11 }
0x22d5   :  { %v7166_v26 = vsub.f32 %v7143_v8, %v7165_v55  ;;  %7196 = vmatmul.f32.vlgmr.msrb.gmra.mxu1 %v7165_v55 }
0x22d6   :  { %7393 = vmatpush.msrb.mxu1 %v7316_v49 }
0x22d7   :  { %v7167_v43 = vand.u32 4294901760, %v7166_v26  ;;  %7220 = vmatmul.f32.vlgmr.msrb.gmra.mxu2 %v7166_v26 }
0x22d8   :  { %7419 = vmatpush.msrb.mxu2 %v7344_v46 }
0x22d9   :  { %v7168_v54 = vsub.f32 %v7166_v26, %v7167_v43  ;;  %7244 = vmatmul.f32.vlgmr.msrb.gmra.mxu3 %v7167_v43  ;;  %v7453_v18 = vpop.permute.xlu2 %7452 }
0x22da   :  { %7441 = vmatpush.msrb.mxu3 %v7316_v49  ;;  %v7454_v48 = vsel %vm2328_vm15, %v7453_v18, 0 }
0x22db   :  { %v7169_v16 = vand.u32 4294901760, %v7168_v54  ;;  %7763 = vrot.lane.b32.xlu1 %v10369_v45, %s9331_s3  ;;  %v7476_v51 = vand.u32 4294901760, %v7454_v48  ;;  %v7657_v45 = vand.u32 4294901760, %v7656_v4 }
0x22dd   :  { %7170 = vmatmul.f32.vlgmr.msrb.gmra.mxu0 %v7169_v16  ;;  %7290 = vmatmul.f32.vlgmr.msra.gmra.mxu1 %v7165_v55  ;;  %v7477_v59 = vsub.f32 %v7454_v48, %v7476_v51 }
0x22de   :  { %7370 = vmatpush.msrb.mxu0 %v7343_v1  ;;  %7505 = vmatpush.msra.mxu1 %v7504_v15  ;;  %v8663_v15 = vld [vmem:[%s11127_s15 + $0xe] sm:$0x3] }
0x22df   :  { %7323 = vmatmul.f32.vlgmr.msra.gmra.mxu2 %v7322_v57  ;;  %v7478_v21 = vand.u32 4294901760, %v7477_v59 }
0x22e0   :  { %7528 = vmatpush.msra.mxu2 %v7501_v0 }
0x22e1   :  { %7349 = vmatmul.f32.vlgmr.msra.gmra.mxu3 %v7318_v56  ;;  %v7479_v37 = vsub.f32 %v7477_v59, %v7478_v21 }
0x22e2   :  { %7551 = vmatpush.msra.mxu3 %v7474_v5 }
0x22e3   :  { %v7480_v31 = vand.u32 4294901760, %v7479_v37 }
0x22e5   :  { %7268 = vmatmul.f32.vlgmr.msra.gmra.mxu0 %v7165_v55  ;;  %7397 = vmatmul.f32.vlgmr.msrb.gmra.mxu1 %v7320_v63 }
0x22e6   :  { %7475 = vmatpush.msra.mxu0 %v7474_v5  ;;  %7599 = vmatpush.msrb.mxu1 %v7474_v5 }
0x22e7   :  { %7421 = vmatmul.f32.vlgmr.msrb.gmra.mxu2 %v7318_v56 }
0x22e8   :  { %7628 = vmatpush.msrb.mxu2 %v7627_v9 }
0x22e9   :  { %7443 = vmatmul.f32.vlgmr.msrb.gmra.mxu3 %v7318_v56 }
0x22ea   :  { %7658 = vmatpush.msrb.mxu3 %v7657_v45 }
0x22ed   :  { %7373 = vmatmul.f32.vlgmr.msrb.gmra.mxu0 %v7319_v11  ;;  %7507 = vmatmul.f32.vlgmr.msra.gmra.mxu1 %v7476_v51 }
0x22ee   :  { %7577 = vmatpush.msrb.mxu0 %v7502_v6  ;;  %7704 = vmatpush.msra.mxu1 %v7627_v9 }
0x22ef   :  { %7531 = vmatmul.f32.vlgmr.msra.gmra.mxu2 %v7477_v59 }
0x22f0   :  { %7730 = vmatpush.msra.mxu2 %v7655_v23 }
0x22f1   :  { %7555 = vmatmul.f32.vlgmr.msra.gmra.mxu3 %v7478_v21 }
0x22f2   :  { %7752 = vmatpush.msra.mxu3 %v7627_v9 }
0x22f5   :  { %v6575_v32 = vpop.f32.mrf.mxu1  ;;  %7481 = vmatmul.f32.vlgmr.msra.gmra.mxu0 %v7480_v31  ;;  %7601 = vmatmul.f32.vlgmr.msrb.gmra.mxu1 %v7476_v51 }
0x22f6   :  { %7681 = vmatpush.msra.mxu0 %v7654_v13 }
0x22f7   :  { %7634 = vmatmul.f32.vlgmr.msrb.gmra.mxu2 %v7633_v30 }
0x22f9   :  { %7660 = vmatmul.f32.vlgmr.msrb.gmra.mxu3 %v7629_v12 }
0x22fd   :  { %v6549_v41 = vpop.f32.mrf.mxu0  ;;  %v6599_v14 = vpop.f32.mrf.mxu2  ;;  %7579 = vmatmul.f32.vlgmr.msrb.gmra.mxu0 %v7476_v51  ;;  %7708 = vmatmul.f32.vlgmr.msra.gmra.mxu1 %v7631_v58  ;;  %v5151_v58 = vmul.f32 %v10807_v53, %v10712_v61  ;;  %v8662_v61 = vld [vmem:[%s11126_s14 + $0xe] sm:$0x3] }
0x22fe   :  { %v6576_v3 = vadd.f32 %v6575_v32, %v6549_v41  ;;  %v6669_v52 = vpop.f32.mrf.mxu1 }
0x22ff   :  { %v6623_v29 = vpop.f32.mrf.mxu3  ;;  %7732 = vmatmul.f32.vlgmr.msra.gmra.mxu2 %v7629_v12 }
0x2300   :  { %v6600_v34 = vadd.f32 %v6599_v14, %v6576_v3 }
0x2301   :  { %7754 = vmatmul.f32.vlgmr.msra.gmra.mxu3 %v7629_v12 }
0x2302   :  { %v6624_v17 = vadd.f32 %v6623_v29, %v6600_v34 }
0x2305   :  { %v6647_v42 = vpop.f32.mrf.mxu0  ;;  %v6702_v7 = vpop.f32.mrf.mxu2  ;;  %7684 = vmatmul.f32.vlgmr.msra.gmra.mxu0 %v7630_v35  ;;  %v5145_v35 = vsub.f32 1.0, %v10807_v53  ;;  %v7922_v53 = vsel %vm2331_vm14, %v8662_v61, 0 }
0x2306   :  { %v6648_v47 = vadd.f32 %v6647_v42, %v6624_v17  ;;  %v6776_v46 = vpop.f32.mrf.mxu1  ;;  %v7939_v29 = vand.u32 4294901760, %v7922_v53 }
0x2307   :  { %v6728_v49 = vpop.f32.mrf.mxu3 }
0x2308   :  { %v6670_v1 = vadd.f32 %v6669_v52, %v6648_v47  ;;  %v7966_v34 = vsub.f32 %v7922_v53, %v7939_v29 }
0x230a   :  { %v6703_v25 = vadd.f32 %v6702_v7, %v6670_v1  ;;  %v7967_v17 = vand.u32 4294901760, %v7966_v34 }
0x230c   :  { %v6729_v60 = vadd.f32 %v6728_v49, %v6703_v25  ;;  %v7968_v42 = vsub.f32 %v7966_v34, %v7967_v17 }
0x230d   :  { %v6752_v19 = vpop.f32.mrf.mxu0  ;;  %v6800_v44 = vpop.f32.mrf.mxu2 }
0x230e   :  { %v6753_v27 = vadd.f32 %v6752_v19, %v6729_v60  ;;  %v6886_v5 = vpop.f32.mrf.mxu1  ;;  %v7969_v7 = vand.u32 4294901760, %v7968_v42 }
0x230f   :  { %v6822_v40 = vpop.f32.mrf.mxu3 }
0x2310   :  { %v6777_v33 = vadd.f32 %v6776_v46, %v6753_v27 }
0x2312   :  { %v6801_v36 = vadd.f32 %v6800_v44, %v6777_v33 }
0x2314   :  { %v6823_v56 = vadd.f32 %v6822_v40, %v6801_v36 }
0x2315   :  { %v6860_v0 = vpop.f32.mrf.mxu0  ;;  %v6910_v28 = vpop.f32.mrf.mxu2 }
0x2316   :  { %v6825_v11 = vadd.f32 %v6823_v56, %v10893_v39  ;;  %v6887_v10 = vadd.f32 %v6886_v5, %v6860_v0  ;;  %v6980_v55 = vpop.f32.mrf.mxu1  ;;  %v7768_v39 = vsel %vm2331_vm14, %v8663_v15, 0 }
0x2317   :  { %v6934_v24 = vpop.f32.mrf.mxu3  ;;  %v7785_v57 = vand.u32 4294901760, %v7768_v39 }
0x2318   :  { %v6911_v8 = vadd.f32 %v6910_v28, %v6887_v10 }
0x2319   :  { %v7812_v38 = vsub.f32 %v7768_v39, %v7785_v57  ;;  %7862 = vmatpush.msrb.mxu3 %v7785_v57  ;;  %7786 = vmatpush.msrb.mxu0 %v7785_v57  ;;  %v8081_v39 = vld [vmem:[%s11129_s17 + $0x20] sm:$0xff] }
0x231a   :  { %v6935_v6 = vadd.f32 %v6934_v24, %v6911_v8 }
0x231b   :  { %v7813_v4 = vand.u32 4294901760, %v7812_v38  ;;  %7839 = vmatpush.msrb.mxu2 %v7812_v38  ;;  %7970 = vmatpush.msra.mxu3 %v7969_v7 }
0x231d   :  { %v6958_v62 = vpop.f32.mrf.mxu0  ;;  %v7013_v26 = vpop.f32.mrf.mxu2  ;;  %v7814_v12 = vsub.f32 %v7812_v38, %v7813_v4  ;;  %7888 = vmatpush.msra.mxu0 %v7813_v4  ;;  %7940 = vmatpush.msra.mxu2 %v7939_v29  ;;  %v8080_v38 = vld [vmem:[%s11129_s17 + $0x18] sm:$0xff] }
0x231e   :  { %v6959_v63 = vadd.f32 %v6958_v62, %v6935_v6  ;;  %v7087_v16 = vpop.f32.mrf.mxu1  ;;  %v8083_v62 = vld [vmem:[%s11129_s17 + $0x30] sm:$0x3] }
0x231f   :  { %v7039_v9 = vpop.f32.mrf.mxu3  ;;  %v7815_v59 = vand.u32 4294901760, %v7814_v12 }
0x2320   :  { %v6981_v2 = vadd.f32 %v6980_v55, %v6959_v63  ;;  %v8093_v63 = vsel %vm2331_vm14, %v8083_v62, 0 }
0x2321   :  { %7816 = vmatpush.msrb.mxu1 %v7815_v59 }
0x2322   :  { %v7014_v43 = vadd.f32 %v7013_v26, %v6981_v2  ;;  %v10952_v26 = vand.u32 4294901760, %v8093_v63 }
0x2323   :  { %7910 = vmatpush.msra.mxu1 %v7785_v57 }
0x2324   :  { %v7040_v20 = vadd.f32 %v7039_v9, %v7014_v43  ;;  %v8082_v43 = vld [vmem:[%s11129_s17 + $0x28] sm:$0xff] }
0x2325   :  { %v7063_v54 = vpop.f32.mrf.mxu0  ;;  %v7111_v23 = vpop.f32.mrf.mxu2 }
0x2326   :  { %v7064_v13 = vadd.f32 %v7063_v54, %v7040_v20  ;;  %v10960_v20 = vsub.f32 %v8093_v63, %v10952_v26  ;;  %v10962_v54 = vand.u32 4294901760, %v8082_v43 }
0x2327   :  { %v7133_v50 = vpop.f32.mrf.mxu3 }
0x2328   :  { %v7088_v18 = vadd.f32 %v7087_v16, %v7064_v13  ;;  %v8138_v16 = vand.u32 4294901760, %v10960_v20  ;;  %v10973_v57 = vsub.f32 %v8082_v43, %v10962_v54 }
0x232a   :  { %v7112_v48 = vadd.f32 %v7111_v23, %v7088_v18  ;;  %v10975_v18 = vand.u32 4294901760, %v8081_v39 }
0x232c   :  { %v7134_v51 = vadd.f32 %v7133_v50, %v7112_v48  ;;  %v8139_v48 = vsub.f32 %v10960_v20, %v8138_v16  ;;  %v8144_v50 = vand.u32 4294901760, %v10973_v57  ;;  %v10988_v4 = vsub.f32 %v8081_v39, %v10975_v18 }
0x232e   :  { %v10920_v45 = vadd.f32 %v7134_v51, %v6825_v11  ;;  %v10990_v51 = vand.u32 4294901760, %v8080_v38 }
0x2345   :  { %v5148_v21 = vpop.permute.xlu1 %5147 }
0x2346   :  { %v5150_v37 = vmul.f32 %v5148_v21, %v5145_v35  ;;  %v8079_v35 = vld [vmem:[%s11129_s17 + $0x10] sm:$0xff]  ;;  %v8140_v21 = vand.u32 4294901760, %v8139_v48 }
0x2348   :  { %v5152_v22 = vadd.f32 %v5151_v58, %v5150_v37  ;;  %v8145_v58 = vsub.f32 %v10973_v57, %v8144_v50  ;;  %v8150_v37 = vand.u32 4294901760, %v10988_v4 }
0x234a   :  { %7917 = vrot.lane.b32.xlu2 %v5152_v22, %s9325_s11  ;;  %v11005_v22 = vsub.f32 %v8080_v38, %v10990_v51 }
0x234d   :  { %v7764_v31 = vpop.permute.xlu1 %7763 }
0x234e   :  { %v7765_v30 = vsel %vm2328_vm15, %v7764_v31, 0 }
0x234f   :  { %v7787_v32 = vand.u32 4294901760, %v7765_v30 }
0x2351   :  { %v7788_v41 = vsub.f32 %v7765_v30, %v7787_v32  ;;  %7818 = vmatmul.f32.vlgmr.msrb.gmra.mxu1 %v7787_v32  ;;  %v11009_v30 = vand.u32 4294901760, %v8079_v35 }
0x2352   :  { %8016 = vmatpush.msrb.mxu1 %v7939_v29  ;;  %v7197_v27 = vpop.f32.mrf.mxu1 }
0x2353   :  { %v7789_v14 = vand.u32 4294901760, %v7788_v41  ;;  %7842 = vmatmul.f32.vlgmr.msrb.gmra.mxu2 %v7788_v41 }
0x2354   :  { %8042 = vmatpush.msrb.mxu2 %v7967_v17  ;;  %v8077_v17 = vld [vmem:[%s11129_s17] sm:$0xff] }
0x2355   :  { %v7790_v3 = vsub.f32 %v7788_v41, %v7789_v14  ;;  %7866 = vmatmul.f32.vlgmr.msrb.gmra.mxu3 %v7789_v14  ;;  %v8146_v41 = vand.u32 4294901760, %v8145_v58  ;;  %v8151_v14 = vsub.f32 %v10988_v4, %v8150_v37 }
0x2356   :  { %8064 = vmatpush.msrb.mxu3 %v7939_v29 }
0x2357   :  { %v7791_v52 = vand.u32 4294901760, %v7790_v3  ;;  %v8156_v3 = vand.u32 4294901760, %v11005_v22  ;;  %v8152_v42 = vand.u32 4294901760, %v8151_v14 }
0x2359   :  { %7792 = vmatmul.f32.vlgmr.msrb.gmra.mxu0 %v7791_v52  ;;  %7912 = vmatmul.f32.vlgmr.msra.gmra.mxu1 %v7787_v32  ;;  %v8157_v7 = vsub.f32 %v11005_v22, %v8156_v3 }
0x235a   :  { %7993 = vmatpush.msrb.mxu0 %v7966_v34  ;;  %v7171_v44 = vpop.f32.mrf.mxu0  ;;  %v7221_v40 = vpop.f32.mrf.mxu2  ;;  %8141 = vmatpush.msra.mxu1 %v8140_v21  ;;  %v8161_v34 = vsub.f32 %v8079_v35, %v11009_v30 }
0x235b   :  { %v10934_v5 = vpop.f32.mrf.mxu1  ;;  %v7198_v15 = vadd.f32 %v7197_v27, %v7171_v44 }
0x235c   :  { %v7245_v33 = vpop.f32.mrf.mxu3  ;;  %8147 = vmatpush.msra.mxu1 %v8146_v41 }
0x235d   :  { %v7222_v12 = vadd.f32 %v7221_v40, %v7198_v15 }
0x235e   :  { %8153 = vmatpush.msra.mxu1 %v8152_v42 }
0x235f   :  { %v7246_v61 = vadd.f32 %v7245_v33, %v7222_v12 }
0x2361   :  { %7890 = vmatmul.f32.vlgmr.msra.gmra.mxu0 %v7787_v32  ;;  %v8078_v32 = vld [vmem:[%s11129_s17 + $0x8] sm:$0xff] }
0x2362   :  { %v10932_v36 = vpop.f32.mrf.mxu0  ;;  %v10936_v56 = vpop.f32.mrf.mxu2  ;;  %8105 = vmatpush.msra.mxu0 %v10952_v26  ;;  %v11017_v52 = vand.u32 4294901760, %v8078_v32 }
0x2363   :  { %v10942_v11 = vpop.f32.mrf.mxu1 }
0x2364   :  { %v10938_v0 = vpop.f32.mrf.mxu3  ;;  %8107 = vmatpush.msra.mxu0 %v10962_v54 }
0x2366   :  { %8109 = vmatpush.msra.mxu0 %v10975_v18 }
0x2368   :  { %8111 = vmatpush.msra.mxu0 %v10990_v51 }
0x236a   :  { %v10940_v28 = vpop.f32.mrf.mxu0  ;;  %v10944_v10 = vpop.f32.mrf.mxu2  ;;  %8113 = vmatpush.msra.mxu0 %v11009_v30 }
0x236b   :  { %v7508_v6 = vpop.f32.mrf.mxu1 }
0x236c   :  { %v10946_v24 = vpop.f32.mrf.mxu3  ;;  %8115 = vmatpush.msra.mxu0 %v11017_v52 }
0x2372   :  { %v7482_v8 = vpop.f32.mrf.mxu0  ;;  %v7532_v55 = vpop.f32.mrf.mxu2 }
0x2373   :  { %v10966_v13 = vpop.f32.mrf.mxu1  ;;  %v7509_v23 = vadd.f32 %v7508_v6, %v7482_v8 }
0x2374   :  { %v7556_v2 = vpop.f32.mrf.mxu3 }
0x2375   :  { %v7533_v31 = vadd.f32 %v7532_v55, %v7509_v23 }
0x237a   :  { %v10954_v9 = vpop.f32.mrf.mxu0  ;;  %v10994_v59 = vpop.f32.mrf.mxu2 }
0x237c   :  { %v7661_v53 = vpop.f32.mrf.mxu3 }
0x2382   :  { %v11020_v29 = vpop.f32.mrf.mxu0  ;;  %v7733_v6 = vpop.f32.mrf.mxu2 }
0x2384   :  { %v7755_v39 = vpop.f32.mrf.mxu3 }
0x23a4   :  { %v7918_v47 = vpop.permute.xlu2 %7917 }
0x23a5   :  { %v7919_v49 = vsel %vm2328_vm15, %v7918_v47, 0  ;;  %v8167_v47 = vsub.f32 %v8078_v32, %v11017_v52  ;;  %vm8088_vm15 = vcmask 408576  }
0x23a6   :  { %v7941_v1 = vand.u32 4294901760, %v7919_v49 }
0x23a7   :  { %v8168_v44 = vand.u32 4294901760, %v8167_v47 }
0x23a8   :  { %v7942_v46 = vsub.f32 %v7919_v49, %v7941_v1  ;;  %7972 = vmatmul.f32.vlgmr.msra.gmra.mxu3 %v7941_v1  ;;  %v11030_v49 = vand.u32 4294901760, %v8077_v17 }
0x23a9   :  { %8229 = vmatpush.msra.mxu3 %v10952_v26 }
0x23aa   :  { %v7943_v25 = vand.u32 4294901760, %v7942_v46  ;;  %7996 = vmatmul.f32.vlgmr.msrb.gmra.mxu0 %v7942_v46  ;;  %v8173_v27 = vsub.f32 %v8077_v17, %v11030_v49  ;;  %v8745_v17 = vld [vmem:[#allocation20] ss:$0 sm:$0xff] }
0x23ab   :  { %8231 = vmatpush.msra.mxu3 %v10962_v54  ;;  %8117 = vmatpush.msra.mxu0 %v11030_v49 }
0x23ac   :  { %v7944_v60 = vsub.f32 %v7942_v46, %v7943_v25  ;;  %8020 = vmatmul.f32.vlgmr.msrb.gmra.mxu1 %v7943_v25  ;;  %v7709_v46 = vpop.f32.mrf.mxu1  ;;  %v8162_v25 = vand.u32 4294901760, %v8161_v34  ;;  %v8174_v8 = vand.u32 4294901760, %v8173_v27 }
0x23ad   :  { %8233 = vmatpush.msra.mxu3 %v10975_v18  ;;  %8261 = vmatpush.msrb.mxu0 %v8138_v16 }
0x23ae   :  { %v7945_v19 = vand.u32 4294901760, %v7944_v60  ;;  %v7557_v60 = vadd.f32 %v7556_v2, %v7533_v31  ;;  %v8163_v40 = vsub.f32 %v8161_v34, %v8162_v25  ;;  %v8175_v2 = vsub.f32 %v8173_v27, %v8174_v8 }
0x23af   :  { %8235 = vmatpush.msra.mxu3 %v10990_v51  ;;  %8265 = vmatpush.msrb.mxu0 %v8144_v50 }
0x23b0   :  { %7946 = vmatmul.f32.vlgmr.msra.gmra.mxu2 %v7945_v19  ;;  %8066 = vmatmul.f32.vlgmr.msrb.gmra.mxu3 %v7941_v1  ;;  %v8158_v19 = vand.u32 4294901760, %v8157_v7  ;;  %v7581_v33 = vadd.f32 %v10954_v9, %v7557_v60  ;;  %v8164_v55 = vand.u32 4294901760, %v8163_v40  ;;  %v8176_v15 = vand.u32 4294901760, %v8175_v2 }
0x23b1   :  { %8194 = vmatpush.msra.mxu2 %v10960_v20  ;;  %8237 = vmatpush.msra.mxu3 %v11009_v30 }
0x23b2   :  { %8159 = vmatpush.msra.mxu1 %v8158_v19  ;;  %v7603_v9 = vadd.f32 %v10966_v13, %v7581_v33  ;;  %8269 = vmatpush.msrb.mxu0 %v8150_v37  ;;  %v8324_v33 = vld [vmem:[%s11131_s19 + $0x20] sm:$0xff] }
0x23b3   :  { %8197 = vmatpush.msra.mxu2 %v10973_v57  ;;  %8239 = vmatpush.msra.mxu3 %v11017_v52 }
0x23b4   :  { %8165 = vmatpush.msra.mxu1 %v8164_v55  ;;  %8273 = vmatpush.msrb.mxu0 %v8156_v3  ;;  %v8323_v55 = vld [vmem:[%s11131_s19 + $0x18] sm:$0xff] }
0x23b5   :  { %8200 = vmatpush.msra.mxu2 %v10988_v4  ;;  %8241 = vmatpush.msra.mxu3 %v11030_v49 }
0x23b6   :  { %8277 = vmatpush.msrb.mxu0 %v8162_v25 }
0x23b7   :  { %8203 = vmatpush.msra.mxu2 %v11005_v22 }
0x23b8   :  { %8044 = vmatmul.f32.vlgmr.msrb.gmra.mxu2 %v7941_v1  ;;  %v7270_v1 = vadd.f32 %v10932_v36, %v7246_v61  ;;  %v8169_v36 = vsub.f32 %v8167_v47, %v8168_v44  ;;  %8281 = vmatpush.msrb.mxu0 %v8168_v44  ;;  %v8325_v44 = vld [vmem:[%s11131_s19 + $0x28] sm:$0xff] }
0x23b9   :  { %8206 = vmatpush.msra.mxu2 %v8161_v34  ;;  %v11072_v40 = vand.u32 4294901760, %v8325_v44 }
0x23ba   :  { %v7292_v62 = vadd.f32 %v10934_v5, %v7270_v1  ;;  %v8170_v63 = vand.u32 4294901760, %v8169_v36  ;;  %v7636_v5 = vadd.f32 %v10994_v59, %v7603_v9  ;;  %8285 = vmatpush.msrb.mxu0 %v8174_v8  ;;  %v8322_v9 = vld [vmem:[%s11131_s19 + $0x10] sm:$0xff] }
0x23bb   :  { %8209 = vmatpush.msra.mxu2 %v8167_v47  ;;  %v8385_v8 = vsub.f32 %v8325_v44, %v11072_v40 }
0x23bc   :  { %8171 = vmatpush.msra.mxu1 %v8170_v63  ;;  %v7325_v38 = vadd.f32 %v10936_v56, %v7292_v62  ;;  %v7662_v13 = vadd.f32 %v7661_v53, %v7636_v5  ;;  %v8321_v5 = vld [vmem:[%s11131_s19 + $0x8] sm:$0xff] }
0x23bd   :  { %8212 = vmatpush.msra.mxu2 %v8173_v27  ;;  %v8386_v63 = vand.u32 4294901760, %v8385_v8 }
0x23be   :  { %8177 = vmatpush.msra.mxu1 %v8176_v15  ;;  %v7351_v57 = vadd.f32 %v10938_v0, %v7325_v38 }
0x23c0   :  { %8301 = vmatpush.msrb.mxu1 %v10952_v26  ;;  %v7375_v4 = vadd.f32 %v10940_v28, %v7351_v57  ;;  %v7686_v26 = vadd.f32 %v11020_v29, %v7662_v13  ;;  %v8356_v13 = vand.u32 4294901760, %v8321_v5 }
0x23c2   :  { %8303 = vmatpush.msrb.mxu1 %v10962_v54  ;;  %v7399_v0 = vadd.f32 %v10942_v11, %v7375_v4  ;;  %v7710_v35 = vadd.f32 %v7709_v46, %v7686_v26  ;;  %v8409_v26 = vsub.f32 %v8321_v5, %v8356_v13 }
0x23c4   :  { %8305 = vmatpush.msrb.mxu1 %v10975_v18  ;;  %v7423_v28 = vadd.f32 %v10944_v10, %v7399_v0 }
0x23c6   :  { %8307 = vmatpush.msrb.mxu1 %v10990_v51  ;;  %v7734_v51 = vadd.f32 %v7733_v6, %v7710_v35  ;;  %v7445_v32 = vadd.f32 %v10946_v24, %v7423_v28  ;;  %v11080_v6 = vand.u32 4294901760, %v8324_v33  ;;  %v8410_v35 = vand.u32 4294901760, %v8409_v26 }
0x23c8   :  { %8309 = vmatpush.msrb.mxu1 %v11009_v30  ;;  %v7756_v11 = vadd.f32 %v7755_v39, %v7734_v51  ;;  %v8391_v2 = vsub.f32 %v8324_v33, %v11080_v6  ;;  %v8387_v39 = vsub.f32 %v8385_v8, %v8386_v63 }
0x23ca   :  { %8311 = vmatpush.msrb.mxu1 %v11017_v52  ;;  %v7447_v52 = vadd.f32 %v7445_v32, %v10920_v45  ;;  %v8326_v45 = vld [vmem:[%s11131_s19 + $0x30] sm:$0x3]  ;;  %v8746_v32 = vld [vmem:[#allocation22] ss:$0 sm:$0xff] }
0x23cb   :  { %v8335_v60 = vsel %vm2331_vm14, %v8326_v45, 0  ;;  %vm8561_vm14 = vcmask 17408  }
0x23cc   :  { %8313 = vmatpush.msrb.mxu1 %v11030_v49  ;;  %v7758_v29 = vadd.f32 %v7756_v11, %v7447_v52  ;;  %v11066_v19 = vand.u32 4294901760, %v8335_v60 }
0x23ce   :  { %v7819_v23 = vpop.f32.mrf.mxu1  ;;  %v8379_v27 = vsub.f32 %v8335_v60, %v11066_v19  ;;  %8347 = vmatpush.msrb.mxu2 %v11066_v19 }
0x23d0   :  { %v8380_v36 = vand.u32 4294901760, %v8379_v27  ;;  %8349 = vmatpush.msrb.mxu2 %v11072_v40 }
0x23d2   :  { %v8381_v62 = vsub.f32 %v8379_v27, %v8380_v36  ;;  %8351 = vmatpush.msrb.mxu2 %v11080_v6 }
0x23d4   :  { %v8382_v15 = vand.u32 4294901760, %v8381_v62 }
0x23d6   :  { %v7793_v43 = vpop.f32.mrf.mxu0  ;;  %v7843_v16 = vpop.f32.mrf.mxu2  ;;  %8383 = vmatpush.msrb.mxu3 %v8382_v15 }
0x23d7   :  { %v7820_v20 = vadd.f32 %v7819_v23, %v7793_v43  ;;  %v7913_v54 = vpop.f32.mrf.mxu1  ;;  %v8352_v43 = vand.u32 4294901760, %v8323_v55  ;;  %v8392_v23 = vand.u32 4294901760, %v8391_v2 }
0x23d8   :  { %v7867_v50 = vpop.f32.mrf.mxu3 }
0x23d9   :  { %v7844_v48 = vadd.f32 %v7843_v16, %v7820_v20  ;;  %v8397_v38 = vsub.f32 %v8323_v55, %v8352_v43  ;;  %8353 = vmatpush.msrb.mxu2 %v8352_v43  ;;  %v8354_v20 = vand.u32 4294901760, %v8322_v9  ;;  %v8388_v16 = vand.u32 4294901760, %v8387_v39 }
0x23da   :  { %v8393_v57 = vsub.f32 %v8391_v2, %v8392_v23 }
0x23db   :  { %v7868_v12 = vadd.f32 %v7867_v50, %v7844_v48  ;;  %v8398_v48 = vand.u32 4294901760, %v8397_v38  ;;  %v8403_v50 = vsub.f32 %v8322_v9, %v8354_v20  ;;  %8355 = vmatpush.msrb.mxu2 %v8354_v20  ;;  %8389 = vmatpush.msrb.mxu3 %v8388_v16 }
0x23dc   :  { %v8394_v4 = vand.u32 4294901760, %v8393_v57 }
0x23dd   :  { %v8404_v0 = vand.u32 4294901760, %v8403_v50  ;;  %8357 = vmatpush.msrb.mxu2 %v8356_v13 }
0x23de   :  { %v7891_v56 = vpop.f32.mrf.mxu0  ;;  %8395 = vmatpush.msrb.mxu3 %v8394_v4 }
0x23df   :  { %v7892_v59 = vadd.f32 %v7891_v56, %v7868_v12  ;;  %v8320_v56 = vld [vmem:[%s11131_s19] sm:$0xff]  ;;  %v8399_v12 = vsub.f32 %v8397_v38, %v8398_v48 }
0x23e1   :  { %v7914_v18 = vadd.f32 %v7913_v54, %v7892_v59  ;;  %v8358_v59 = vand.u32 4294901760, %v8320_v56  ;;  %v8400_v54 = vand.u32 4294901760, %v8399_v12 }
0x23e3   :  { %8359 = vmatpush.msrb.mxu2 %v8358_v59  ;;  %8401 = vmatpush.msrb.mxu3 %v8400_v54 }
0x2427   :  { %v7997_v31 = vpop.f32.mrf.mxu0 }
0x2429   :  { %v8021_v41 = vpop.f32.mrf.mxu1 }
0x242b   :  { %v7973_v21 = vpop.f32.mrf.mxu3 }
0x2433   :  { %v7947_v58 = vpop.f32.mrf.mxu2  ;;  %v8067_v53 = vpop.f32.mrf.mxu3 }
0x2434   :  { %v7948_v37 = vadd.f32 %v7947_v58, %v7914_v18  ;;  %v8415_v18 = vsub.f32 %v8320_v56, %v8358_v59  ;;  %v8411_v58 = vsub.f32 %v8409_v26, %v8410_v35 }
0x2436   :  { %v7974_v22 = vadd.f32 %v7973_v21, %v7948_v37  ;;  %v8405_v21 = vsub.f32 %v8403_v50, %v8404_v0  ;;  %v8416_v28 = vand.u32 4294901760, %v8415_v18  ;;  %v8412_v51 = vand.u32 4294901760, %v8411_v58 }
0x2438   :  { %v7998_v30 = vadd.f32 %v7997_v31, %v7974_v22  ;;  %v8406_v37 = vand.u32 4294901760, %v8405_v21  ;;  %v8417_v22 = vsub.f32 %v8415_v18, %v8416_v28 }
0x243a   :  { %v8022_v14 = vadd.f32 %v8021_v41, %v7998_v30  ;;  %8407 = vmatpush.msrb.mxu3 %v8406_v37  ;;  %v8418_v31 = vand.u32 4294901760, %v8417_v22 }
0x243b   :  { %v8045_v3 = vpop.f32.mrf.mxu2 }
0x243c   :  { %v8046_v61 = vadd.f32 %v8045_v3, %v8022_v14  ;;  %8413 = vmatpush.msrb.mxu3 %v8412_v51 }
0x243e   :  { %v8068_v34 = vadd.f32 %v8067_v53, %v8046_v61  ;;  %8419 = vmatpush.msrb.mxu3 %v8418_v31 }
0x2440   :  { %v8070_v42 = vadd.f32 %v8068_v34, %v7758_v29 }
0x2442   :  { %v8075_v10 = vadd.f32 %v8745_v17, %v8070_v42 }
0x2444   :  { %v8076_v7 = vmax.f32 %v8075_v10, 0.0 }
0x2446   :  { %v8090_v47 = vsel %vm8088_vm15, %v8076_v7, 0 }
0x2447   :  { %v8118_v49 = vand.u32 4294901760, %v8090_v47 }
0x2449   :  { %v8119_v24 = vsub.f32 %v8090_v47, %v8118_v49  ;;  %8179 = vmatmul.f32.vlgmr.msra.gmra.mxu1 %v8118_v49 }
0x244a   :  { %8471 = vmatpush.msra.mxu1 %v11066_v19 }
0x244b   :  { %8215 = vmatmul.f32.vlgmr.msra.gmra.mxu2 %v8119_v24  ;;  %v8120_v1 = vand.u32 4294901760, %v8119_v24 }
0x244c   :  { %8473 = vmatpush.msra.mxu1 %v11072_v40  ;;  %8503 = vmatpush.msra.mxu2 %v8380_v36 }
0x244d   :  { %8245 = vmatmul.f32.vlgmr.msra.gmra.mxu3 %v8120_v1  ;;  %v8121_v46 = vsub.f32 %v8119_v24, %v8120_v1 }
0x244e   :  { %8475 = vmatpush.msra.mxu1 %v11080_v6  ;;  %8507 = vmatpush.msra.mxu2 %v8386_v63 }
0x244f   :  { %v8122_v25 = vand.u32 4294901760, %v8121_v46  ;;  %8543 = vmatpush.msra.mxu3 %v11066_v19 }
0x2450   :  { %8477 = vmatpush.msra.mxu1 %v8352_v43  ;;  %8511 = vmatpush.msra.mxu2 %v8392_v23 }
0x2451   :  { %8123 = vmatmul.f32.vlgmr.msra.gmra.mxu0 %v8122_v25  ;;  %8315 = vmatmul.f32.vlgmr.msrb.gmra.mxu1 %v8118_v49  ;;  %v8747_v25 = vld [vmem:[%s11132_s20] ss:$0 sm:$0xff]  ;;  %s9332_s20 = smov [#allocation23]  }
0x2452   :  { %8436 = vmatpush.msra.mxu0 %v8379_v27  ;;  %8479 = vmatpush.msra.mxu1 %v8354_v20  ;;  %s8592_s11 = sshll.u32 %s9332_s20, 4  ;;  %s8593_s11 = int_to_ptr.vmem [resolvable:$true] %s8592_s11 }
0x2453   :  { %8515 = vmatpush.msra.mxu2 %v8398_v48  ;;  %8545 = vmatpush.msra.mxu3 %v11072_v40 }
0x2454   :  { %8439 = vmatpush.msra.mxu0 %v8385_v8  ;;  %8481 = vmatpush.msra.mxu1 %v8356_v13 }
0x2455   :  { %8519 = vmatpush.msra.mxu2 %v8404_v0  ;;  %8547 = vmatpush.msra.mxu3 %v11080_v6 }
0x2456   :  { %8442 = vmatpush.msra.mxu0 %v8391_v2  ;;  %8483 = vmatpush.msra.mxu1 %v8358_v59 }
0x2457   :  { %8523 = vmatpush.msra.mxu2 %v8410_v35  ;;  %8549 = vmatpush.msra.mxu3 %v8352_v43 }
0x2458   :  { %8445 = vmatpush.msra.mxu0 %v8397_v38 }
0x2459   :  { %8287 = vmatmul.f32.vlgmr.msrb.gmra.mxu0 %v8118_v49  ;;  %8527 = vmatpush.msra.mxu2 %v8416_v28 }
0x245a   :  { %8448 = vmatpush.msra.mxu0 %v8403_v50  ;;  %8551 = vmatpush.msra.mxu3 %v8354_v20 }
0x245c   :  { %8451 = vmatpush.msra.mxu0 %v8409_v26  ;;  %8553 = vmatpush.msra.mxu3 %v8356_v13 }
0x245e   :  { %8454 = vmatpush.msra.mxu0 %v8415_v18  ;;  %8555 = vmatpush.msra.mxu3 %v8358_v59 }
0x24c6   :  { %v8180_v30 = vpop.f32.mrf.mxu1 }
0x24ce   :  { %v8124_v41 = vpop.f32.mrf.mxu0  ;;  %v8216_v3 = vpop.f32.mrf.mxu2 }
0x24cf   :  { %v8125_v11 = vadd.f32 %v8746_v32, %v8124_v41  ;;  %v8316_v17 = vpop.f32.mrf.mxu1 }
0x24d0   :  { %v8246_v61 = vpop.f32.mrf.mxu3 }
0x24d1   :  { %v8181_v14 = vadd.f32 %v8180_v30, %v8125_v11 }
0x24d3   :  { %v8217_v52 = vadd.f32 %v8216_v3, %v8181_v14 }
0x24d5   :  { %v8247_v53 = vadd.f32 %v8246_v61, %v8217_v52 }
0x24d6   :  { %v8288_v29 = vpop.f32.mrf.mxu0 }
0x24d7   :  { %v8289_v34 = vadd.f32 %v8288_v29, %v8247_v53 }
0x24d9   :  { %v8317_v42 = vadd.f32 %v8316_v17, %v8289_v34 }
0x24db   :  { %v8319_v10 = vmax.f32 %v8317_v42, 0.0 }
0x24dd   :  { %v8332_v7 = vsel %vm8088_vm15, %v8319_v10, 0 }
0x24de   :  { %v8360_v47 = vand.u32 4294901760, %v8332_v7 }
0x24e0   :  { %v8361_v49 = vsub.f32 %v8332_v7, %v8360_v47  ;;  %8421 = vmatmul.f32.vlgmr.msrb.gmra.mxu3 %v8360_v47 }
0x24e2   :  { %v8362_v24 = vand.u32 4294901760, %v8361_v49  ;;  %8457 = vmatmul.f32.vlgmr.msra.gmra.mxu0 %v8361_v49 }
0x24e4   :  { %v8363_v1 = vsub.f32 %v8361_v49, %v8362_v24  ;;  %8487 = vmatmul.f32.vlgmr.msra.gmra.mxu1 %v8362_v24 }
0x24e6   :  { %v8364_v46 = vand.u32 4294901760, %v8363_v1 }
0x24e8   :  { %8365 = vmatmul.f32.vlgmr.msrb.gmra.mxu2 %v8364_v46  ;;  %8557 = vmatmul.f32.vlgmr.msra.gmra.mxu3 %v8360_v47 }
0x24f0   :  { %8529 = vmatmul.f32.vlgmr.msra.gmra.mxu2 %v8360_v47 }
0x255f   :  { %v8458_v27 = vpop.f32.mrf.mxu0 }
0x2561   :  { %v8488_v33 = vpop.f32.mrf.mxu1 }
0x2563   :  { %v8422_v45 = vpop.f32.mrf.mxu3 }
0x256b   :  { %v8366_v60 = vpop.f32.mrf.mxu2  ;;  %v8558_v55 = vpop.f32.mrf.mxu3 }
0x256c   :  { %v8367_v19 = vadd.f32 %v8747_v25, %v8366_v60 }
0x256e   :  { %v8423_v44 = vadd.f32 %v8422_v45, %v8367_v19 }
0x2570   :  { %v8459_v40 = vadd.f32 %v8458_v27, %v8423_v44 }
0x2572   :  { %v8489_v36 = vadd.f32 %v8488_v33, %v8459_v40 }
0x2573   :  { %v8530_v8 = vpop.f32.mrf.mxu2 }
0x2574   :  { %v8531_v6 = vadd.f32 %v8530_v8, %v8489_v36 }
0x2576   :  { %v8559_v62 = vadd.f32 %v8558_v55, %v8531_v6 }
0x2578   :  { %v8562_v63 = vsel %vm8561_vm14, %v8559_v62, -inf }
0x2579   :  { %8563 = vmax.xlane.f32.xlu0 %v8562_v63 }
0x25ec   :  { %v8564_v2 = vpop.xlane.xlu0 %8563 }
0x25ed   :  { %v8565_v43 = vsub.f32 %v8559_v62, %v8564_v2 }
0x25ef   :  { %v8566_v9 = vmul.f32 1.442695, %v8565_v43 }
0x25f1   :  { %8940 = vpow2.f32 %v8566_v9 }
0x25f7   :  { %v8941_v15 = vpop.eup %8940 }
0x25f8   :  { %v8568_v39 = vsel %vm8561_vm14, %v8941_v15, 0.0 }
0x25f9   :  { %8569 = vadd.xlane.f32.xlu1 %v8568_v39 }
0x266c   :  { %v8570_v23 = vpop.xlane.xlu1 %8569 }
0x266d   :  { %8942 = vrcp.f32 %v8570_v23  ;;  %v8582_v16 = vand.u32 2147483648, %v8570_v23  ;;  %v8580_v48 = vand.u32 2147483647, %v8570_v23  ;;  %vm8576_vm13 = vweird.f32 %v8570_v23 }
0x266f   :  { %v8583_v50 = vor.u32 1.1754944e-38, %v8582_v16  ;;  %vm8581_vm1 = vcmp.eq.f32.partialorder %v8580_v48, 8.507059e+37 }
0x2673   :  { %v8943_v38 = vpop.eup %8942 }
0x2674   :  { %v8572_v20 = vmul.f32 %v8943_v38, %v8570_v23  ;;  %vm8577_vm12 = vweird.f32 %v8943_v38 }
0x2675   :  { %vm8578_vm0 = vmor %vm8576_vm13, %vm8577_vm12 }
0x2676   :  { %v8573_v5 = vsub.f32 1.0, %v8572_v20 }
0x2678   :  { %v8574_v57 = vmul.f32 %v8943_v38, %v8573_v5 }
0x267a   :  { %v8575_v13 = vadd.f32 %v8943_v38, %v8574_v57 }
0x267c   :  { %v8579_v56 = vsel %vm8578_vm0, %v8943_v38, %v8575_v13 }
0x267d   :  { %v8584_v4 = vsel %vm8581_vm1, %v8583_v50, %v8579_v56 }
0x267e   :  { %v8585_v12 = vmul.f32 %v8941_v15, %v8584_v4 }
0x2680   :  { %8586 = vst.msk [vmem:[#allocation23] sm:$0x3] %vm8561_vm14, %v8585_v12 }
0x2681   :  { %8597 = dma.vmem_to_hbm [thread:$0]  %s8593_s11, 32, %s8595_s4, [#allocation4]  }
0x2682   :  { %9306 = dma.done.wait [#allocation4], 32  }
0x2683   :  { %9307 = vsyncadd [#allocation4], 4294967264 }
0x2684   :  { %8602 = vsyncpa [#allocation3], 1 }
0x2685   :  { %8603 = vsyncpa [#allocation6], 1 }
0x2686   :  { %8604 = vsyncpa [#allocation9], 1 }
0x2687   :  { %8605 = vsyncpa [#allocation12], 1 }
0x2688   :  { %8606 = vsyncpa [#allocation15], 1 }
0x2689   :  { %8607 = vsyncpa [#allocation18], 1 }
0x268a   :  { %8608 = vsyncpa [#allocation21], 1 }
0x268b   :  { %8609 = vsyncpa [#allocation4], 1 }

</bundles_post_ra>
